<compile_context>
chip_gen: v7x
topology: tpu7x:2x2x1
jax: 0.10.0
libtpu: 0.0.40
codegen_flags: <defaults>
</compile_context>

<pallas_src>
import functools

import jax
import jax.numpy as jnp
from jax.experimental import pallas as pl
from jax.experimental.pallas import tpu as pltpu

VMEM = pltpu.MemorySpace.VMEM
C_FEAT = 1280          # EfficientNet-B0 feature channels
PATCH = 4              # stand-in backbone patch size
ATT_PAD = 256          # attention hidden dim 1280//8=160, zero-padded to a lane multiple
FUS_HID = 256          # fusion head hidden width


# ----------------------------- kernels -------------------------------------

def backbone_pool_kernel(x_ref, w_ref, b_ref, o_ref, *, inv_n):
    # Stand-in backbone (linear patch-embed + SiLU) + spatial mean pooling.
    # Grid = (branch g [parallel], token-tile t [arbitrary reduction]).
    #   x_ref : (B, tile_s, K) bf16 tokens for branch g, token tile t
    #   w_ref : (K, C)         bf16 branch patch-embed weight
    #   b_ref : (1, C)         f32 bias
    #   o_ref : (B, C)         f32 pooled features; resident across t -> accumulator
    t = pl.program_id(1)

    @pl.when(t == 0)
    def _():
        o_ref[...] = jnp.zeros_like(o_ref)

    x = x_ref[...]                                   # (B, tile_s, K) bf16
    bsz, ts, k = x.shape
    y = jnp.dot(x.reshape(bsz * ts, k), w_ref[...],  # MXU: M = B*tile_s
                preferred_element_type=jnp.float32) + b_ref[...]
    y = y * jax.nn.sigmoid(y)                        # SiLU in f32 (v5e has no bf16 VPU/EUP)
    o_ref[...] += jnp.sum(y.reshape(bsz, ts, -1), axis=1) * inv_n


def attn_fusion_kernel(pooled_ref, aw1_ref, ab1_ref, aw2_ref, ab2_ref,
                       fw1_ref, fb1_ref, fw2_ref, fb2_ref, o_ref):
    # SE attention per branch + fusion head, fused into one small kernel.
    #   pooled_ref : (2, B, C) f32    spatial-mean pooled features (rgb, gray)
    #   aw1/ab1    : (2, C, A) bf16 / (2, 1, A) f32   attention fc1 (A=256 zero-padded)
    #   aw2/ab2    : (2, A, C) bf16 / (2, 1, C) f32   attention fc2
    #   fw1/fb1    : (2, C, 256) bf16 / (1, 256) f32  fusion Linear(2560,256) split halves
    #   fw2/fb2    : (256, ncls) bf16 / (1, ncls) f32
    #   o_ref      : (B, ncls) f32
    # concat([rgb, gray]) @ W1 == rgb @ W1[:C] + gray @ W1[C:]  -> no concat needed.
    h_fus = fb1_ref[...]                                          # (1, 256), broadcasts
    for g in range(2):                                            # static unroll (branches)
        pooled = pooled_ref[g]                                    # (B, C) f32
        h = jnp.dot(pooled.astype(jnp.bfloat16), aw1_ref[g],
                    preferred_element_type=jnp.float32) + ab1_ref[g]
        h = jnp.maximum(h, 0.0)                                   # ReLU
        att = jax.nn.sigmoid(
            jnp.dot(h.astype(jnp.bfloat16), aw2_ref[g],
                    preferred_element_type=jnp.float32) + ab2_ref[g])
        vec = pooled * att                # mean_hw(x*a) == a*mean_hw(x), a spatially const
        h_fus = h_fus + jnp.dot(vec.astype(jnp.bfloat16), fw1_ref[g],
                                preferred_element_type=jnp.float32)
    h_fus = jnp.maximum(h_fus, 0.0)       # ReLU; Dropout(0.5) is identity at inference
    y = jnp.dot(h_fus.astype(jnp.bfloat16), fw2_ref[...],
                preferred_element_type=jnp.float32) + fb2_ref[...]
    o_ref[...] = jax.nn.sigmoid(y)


# ----------------------------- wrappers -------------------------------------

def gray_conv_xla(gray, w_oihw, b):
    # nn.Conv2d(1, 3, kernel_size=3, padding=1), kept in XLA per perf review
    # (K=9/N=3 is ~0% MXU utilization as a Pallas kernel).  Output NHWC.
    y = jax.lax.conv_general_dilated(
        gray, w_oihw, window_strides=(1, 1), padding=((1, 1), (1, 1)),
        dimension_numbers=('NCHW', 'OIHW', 'NCHW'))
    return jnp.transpose(y + b.reshape(1, 3, 1, 1), (0, 2, 3, 1))     # [B,H,W,3]


def patchify_nhwc(x_nhwc, patch):
    # NHWC image -> tokens [B, S, patch*patch*C]
    B, H, W, C = x_nhwc.shape
    Hf, Wf = H // patch, W // patch
    x = x_nhwc.reshape(B, Hf, patch, Wf, patch, C)
    return jnp.transpose(x, (0, 1, 3, 2, 4, 5)).reshape(B, Hf * Wf, patch * patch * C)


def _choose_token_tile(B, S, K, budget_bytes=8 * 1024 * 1024):
    # Prefer the whole token axis in one block (T=1: no reduction-axis overhead);
    # otherwise the largest sublane-aligned divisor whose double-buffered bf16
    # slab stays under budget (well inside v7x's 64 MiB / 32 MiB scoped VMEM).
    def fits(ts):
        return B * ts * K * 2 * 2 <= budget_bytes     # bf16, x2 for double buffering
    if fits(S):
        return S
    for cand in (2048, 1024, 512, 256, 128, 64, 32, 16, 8):
        if S % cand == 0 and fits(cand):
            return cand
    return S


def fused_backbone_pool(tokens, feat_w, feat_b):
    # TODO(synk): the real pretrained EfficientNet-B0 `.features` (MBConv/BN/SE stack)
    # is not reproduced; a deterministic stride-PATCH patch-embedding + SiLU stands in,
    # matching the 1280-channel feature contract consumed downstream.
    G, B, S, K = tokens.shape
    C = feat_w.shape[-1]
    tile_s = _choose_token_tile(B, S, K)
    T = S // tile_s
    kern = functools.partial(backbone_pool_kernel, inv_n=1.0 / float(S))
    return pl.pallas_call(
        kern,
        out_shape=jax.ShapeDtypeStruct((G, B, C), jnp.float32),
        grid_spec=pltpu.PrefetchScalarGridSpec(
            num_scalar_prefetch=0,
            grid=(G, T),                                   # branch leading -> 2 TCs on v7x
            in_specs=[
                pl.BlockSpec((pl.Squeezed(), B, tile_s, K), lambda g, t: (g, 0, t, 0)),
                pl.BlockSpec((pl.Squeezed(), K, C),         lambda g, t: (g, 0, 0)),
                pl.BlockSpec((pl.Squeezed(), 1, C),         lambda g, t: (g, 0, 0)),
            ],
            out_specs=pl.BlockSpec((pl.Squeezed(), B, C),   lambda g, t: (g, 0, 0)),
        ),
        compiler_params=pltpu.CompilerParams(
            dimension_semantics=("parallel", "arbitrary"),
            vmem_limit_bytes=32 * 1024 * 1024,
        ),
    )(tokens, feat_w, feat_b)


def attention_fusion(pooled, q):
    # One tiny gridless kernel: everything (~4 MiB, mostly bf16 weights) fits VMEM whole.
    B = pooled.shape[1]
    n_out = q['fus_w2'].shape[1]
    return pl.pallas_call(
        attn_fusion_kernel,
        out_shape=jax.ShapeDtypeStruct((B, n_out), jnp.float32),
        in_specs=[pl.BlockSpec(memory_space=VMEM)] * 9,
        out_specs=pl.BlockSpec(memory_space=VMEM),
    )(pooled, q['att_w1'], q['att_b1'], q['att_w2'], q['att_b2'],
      q['fus_w1'], q['fus_b1'], q['fus_w2'], q['fus_b2'])


# ----------------------------- parameters -----------------------------------

def init_params(key, num_classes=1):
    ks = jax.random.split(key, 18)
    n = lambda k, shape, s=0.05: (s * jax.random.normal(k, shape)).astype(jnp.float32)
    C = C_FEAT
    K = PATCH * PATCH * 3
    p = {}
    # nn.Conv2d(1, 3, 3, padding=1)  (OIHW)
    p['gray_conv_w'] = n(ks[0], (3, 1, 3, 3))
    p['gray_conv_b'] = n(ks[1], (3,))
    # stand-in backbones (rgb_branch / gray_branch are separate instances)
    p['rgb_feat_w'] = n(ks[2], (K, C));   p['rgb_feat_b'] = n(ks[3], (1, C))
    p['gray_feat_w'] = n(ks[4], (K, C));  p['gray_feat_b'] = n(ks[5], (1, C))
    # AttentionModule: fc1 (C -> C//8), fc2 (C//8 -> C); weights stored [in, out]
    p['rgb_att_w1'] = n(ks[6], (C, C // 8));   p['rgb_att_b1'] = n(ks[7], (1, C // 8))
    p['rgb_att_w2'] = n(ks[8], (C // 8, C));   p['rgb_att_b2'] = n(ks[9], (1, C))
    p['gray_att_w1'] = n(ks[10], (C, C // 8)); p['gray_att_b1'] = n(ks[11], (1, C // 8))
    p['gray_att_w2'] = n(ks[12], (C // 8, C)); p['gray_att_b2'] = n(ks[13], (1, C))
    # fusion head: Linear(2560,256) -> ReLU -> Dropout -> Linear(256,ncls) -> Sigmoid
    p['fus_w1'] = n(ks[14], (2 * C, FUS_HID)); p['fus_b1'] = n(ks[15], (1, FUS_HID))
    p['fus_w2'] = n(ks[16], (FUS_HID, num_classes)); p['fus_b2'] = n(ks[17], (1, num_classes))
    return p


def prepare_params(p):
    """Stack the two branches, cast matmul weights to bf16 (f32 biases/accumulation),
    zero-pad attention hidden 160->256 (numerically exact), split fusion W1 halves."""
    C, A, a_in = C_FEAT, ATT_PAD, C_FEAT // 8

    def pad_att(w1, b1, w2):
        w1p = jnp.zeros((C, A), jnp.float32).at[:, :a_in].set(w1)
        b1p = jnp.zeros((1, A), jnp.float32).at[:, :a_in].set(b1)
        w2p = jnp.zeros((A, C), jnp.float32).at[:a_in, :].set(w2)
        return w1p, b1p, w2p

    rw1, rb1, rw2 = pad_att(p['rgb_att_w1'], p['rgb_att_b1'], p['rgb_att_w2'])
    gw1, gb1, gw2 = pad_att(p['gray_att_w1'], p['gray_att_b1'], p['gray_att_w2'])
    return {
        'gray_conv_w': p['gray_conv_w'],                                       # (3,1,3,3)
        'gray_conv_b': p['gray_conv_b'],                                       # (3,)
        'feat_w': jnp.stack([p['rgb_feat_w'], p['gray_feat_w']], 0).astype(jnp.bfloat16),
        'feat_b': jnp.stack([p['rgb_feat_b'], p['gray_feat_b']], 0),           # (2,1,C) f32
        'att_w1': jnp.stack([rw1, gw1], 0).astype(jnp.bfloat16),               # (2,C,A)
        'att_b1': jnp.stack([rb1, gb1], 0),                                    # (2,1,A) f32
        'att_w2': jnp.stack([rw2, gw2], 0).astype(jnp.bfloat16),               # (2,A,C)
        'att_b2': jnp.stack([p['rgb_att_b2'], p['gray_att_b2']], 0),           # (2,1,C) f32
        'fus_w1': p['fus_w1'].reshape(2, C, FUS_HID).astype(jnp.bfloat16),     # rgb/gray halves
        'fus_b1': p['fus_b1'],                                                 # (1,256) f32
        'fus_w2': p['fus_w2'].astype(jnp.bfloat16),                            # (256,ncls)
        'fus_b2': p['fus_b2'],                                                 # (1,ncls) f32
    }


# ----------------------------- forward --------------------------------------

def multibranch_forward(q, rgb, gray):
    # Gray branch front-end: 1->3 channel 3x3 conv (XLA), NHWC out
    g3 = gray_conv_xla(gray, q['gray_conv_w'], q['gray_conv_b'])       # [B,H,W,3]
    rgb_nhwc = jnp.transpose(rgb, (0, 2, 3, 1))                        # [B,H,W,3]

    rgb_tok = patchify_nhwc(rgb_nhwc, PATCH)                           # [B,S,K]
    gray_tok = patchify_nhwc(g3, PATCH)                                # [B,S,K]
    tokens = jnp.stack([rgb_tok, gray_tok], axis=0).astype(jnp.bfloat16)   # [2,B,S,K]

    # Both branches: backbone features + spatial mean, fused in one pallas_call
    pooled = fused_backbone_pool(tokens, q['feat_w'], q['feat_b'])     # [2,B,1280] f32

    # SE attention (per branch) + fusion head, one small post-kernel
    out = attention_fusion(pooled, q)                                  # [B, ncls]
    return jnp.squeeze(out)                                            # matches out.squeeze()


if __name__ == "__main__":
    key = jax.random.PRNGKey(0)
    k_p, k_rgb, k_gray = jax.random.split(key, 3)
    params = init_params(k_p, num_classes=1)
    prepped = prepare_params(params)

    B, H, W = 2, 32, 32
    rgb = jax.random.normal(k_rgb, (B, 3, H, W), jnp.float32)    # NCHW like PyTorch
    gray = jax.random.normal(k_gray, (B, 1, H, W), jnp.float32)

    fwd = jax.jit(multibranch_forward)
    out = jax.block_until_ready(fwd(prepped, rgb, gray))

    assert out.shape == (B,), out.shape
    assert bool(jnp.all(jnp.isfinite(out)))
    assert bool(jnp.all((out >= 0.0) & (out <= 1.0)))
    print("KERNEL_OK")
</pallas_src>

<mosaic_0001>
module attributes {stable_mosaic.version = 11 : i64} {
  func.func @backbone_pool_kernel(%arg0: i32, %arg1: i32, %arg2: memref<1x2x64x48xbf16, #tpu.memory_space<vmem>>, %arg3: memref<1x48x1280xbf16, #tpu.memory_space<vmem>>, %arg4: memref<1x1x1280xf32, #tpu.memory_space<vmem>>, %arg5: memref<1x2x1280xf32, #tpu.memory_space<vmem>>) attributes {dimension_semantics = [#tpu.dimension_semantics<parallel>, #tpu.dimension_semantics<arbitrary>], iteration_bounds = array<i64: 2, 1>, scalar_prefetch = 0 : i64, scratch_operands = 0 : i64, tpu.core_type = #tpu.core_type<tc>, window_params = [{transform_indices = @transform_0, window_bounds = array<i64: 1, 2, 64, 48>}, {transform_indices = @transform_1, window_bounds = array<i64: 1, 48, 1280>}, {transform_indices = @transform_2, window_bounds = array<i64: 1, 1, 1280>}, {transform_indices = @transform_3, window_bounds = array<i64: 1, 2, 1280>}]} {
    %c0_i32 = arith.constant 0 : i32
    %0 = arith.cmpi eq, %arg1, %c0_i32 : i32
    %1 = arith.extui %0 : i1 to i32
    %c0_i32_0 = arith.constant 0 : i32
    %2 = arith.cmpi ne, %1, %c0_i32_0 : i32
    scf.if %2 {
      %cst_19 = arith.constant 0.000000e+00 : f32
      %29 = vector.broadcast %cst_19 : f32 to vector<2x1280xf32>
      %c0_20 = arith.constant 0 : index
      %c0_21 = arith.constant 0 : index
      %c0_22 = arith.constant 0 : index
      %30 = vector.load %arg5[%c0_20, %c0_21, %c0_22] : memref<1x2x1280xf32, #tpu.memory_space<vmem>>, vector<1x2x1280xf32>
      %31 = vector.shape_cast %30 : vector<1x2x1280xf32> to vector<2x1280xf32>
      %32 = vector.shape_cast %29 : vector<2x1280xf32> to vector<1x2x1280xf32>
      tpu.vector_store %arg5[%c0_20, %c0_21, %c0_22], %32 {strides = array<i32>} : memref<1x2x1280xf32, #tpu.memory_space<vmem>>, vector<1x2x1280xf32>,
    } else {
    }
    %c0 = arith.constant 0 : index
    %c0_1 = arith.constant 0 : index
    %c0_2 = arith.constant 0 : index
    %c0_3 = arith.constant 0 : index
    %3 = vector.load %arg2[%c0, %c0_1, %c0_2, %c0_3] : memref<1x2x64x48xbf16, #tpu.memory_space<vmem>>, vector<1x2x64x48xbf16>
    %4 = vector.shape_cast %3 : vector<1x2x64x48xbf16> to vector<2x64x48xbf16>
    %5 = vector.shape_cast %4 : vector<2x64x48xbf16> to vector<128x48xbf16>
    %c0_4 = arith.constant 0 : index
    %c0_5 = arith.constant 0 : index
    %c0_6 = arith.constant 0 : index
    %6 = vector.load %arg3[%c0_4, %c0_5, %c0_6] : memref<1x48x1280xbf16, #tpu.memory_space<vmem>>, vector<1x48x1280xbf16>
    %7 = vector.shape_cast %6 : vector<1x48x1280xbf16> to vector<48x1280xbf16>
    %cst = arith.constant dense<0.000000e+00> : vector<128x1280xf32>
    %8 = tpu.matmul %5, %7, %cst {dimension_numbers = #tpu.dot_dimension_numbers<[1], [0], [0], [1], [0, 0, 1, 1], [], []>} : vector<128x48xbf16>, vector<48x1280xbf16>, vector<128x1280xf32> -> vector<128x1280xf32>
    %c0_7 = arith.constant 0 : index
    %c0_8 = arith.constant 0 : index
    %c0_9 = arith.constant 0 : index
    %9 = vector.load %arg4[%c0_7, %c0_8, %c0_9] : memref<1x1x1280xf32, #tpu.memory_space<vmem>>, vector<1x1x1280xf32>
    %10 = vector.shape_cast %9 : vector<1x1x1280xf32> to vector<1x1280xf32>
    %11 = vector.broadcast %10 : vector<1x1280xf32> to vector<128x1280xf32>
    %12 = arith.addf %8, %11 : vector<128x1280xf32>
    %13 = arith.negf %12 : vector<128x1280xf32>
    %14 = math.exp %13 : vector<128x1280xf32>
    %cst_10 = arith.constant 1.000000e+00 : f32
    %15 = vector.broadcast %cst_10 : f32 to vector<128x1280xf32>
    %16 = arith.addf %15, %14 : vector<128x1280xf32>
    %17 = arith.divf %15, %16 : vector<128x1280xf32>
    %18 = arith.mulf %12, %17 : vector<128x1280xf32>
    %c0_11 = arith.constant 0 : index
    %c0_12 = arith.constant 0 : index
    %c0_13 = arith.constant 0 : index
    %19 = vector.load %arg5[%c0_11, %c0_12, %c0_13] : memref<1x2x1280xf32, #tpu.memory_space<vmem>>, vector<1x2x1280xf32>
    %20 = vector.shape_cast %19 : vector<1x2x1280xf32> to vector<2x1280xf32>
    %21 = vector.shape_cast %18 : vector<128x1280xf32> to vector<2x64x1280xf32>
    %cst_14 = arith.constant dense<0.000000e+00> : vector<2x1280xf32>
    %22 = vector.multi_reduction <add>, %21, %cst_14 [1] : vector<2x64x1280xf32> to vector<2x1280xf32>
    %cst_15 = arith.constant 1.562500e-02 : f32
    %23 = vector.broadcast %cst_15 : f32 to vector<2x1280xf32>
    %24 = arith.mulf %22, %23 : vector<2x1280xf32>
    %25 = arith.addf %20, %24 : vector<2x1280xf32>
    %c0_16 = arith.constant 0 : index
    %c0_17 = arith.constant 0 : index
    %c0_18 = arith.constant 0 : index
    %26 = vector.load %arg5[%c0_16, %c0_17, %c0_18] : memref<1x2x1280xf32, #tpu.memory_space<vmem>>, vector<1x2x1280xf32>
    %27 = vector.shape_cast %26 : vector<1x2x1280xf32> to vector<2x1280xf32>
    %28 = vector.shape_cast %25 : vector<2x1280xf32> to vector<1x2x1280xf32>
    tpu.vector_store %arg5[%c0_16, %c0_17, %c0_18], %28 {strides = array<i32>} : memref<1x2x1280xf32, #tpu.memory_space<vmem>>, vector<1x2x1280xf32>,
    return
  }
  func.func @transform_0(%arg0: i32, %arg1: i32) -> (i32, i32, i32, i32) {
    %c0_i32 = arith.constant 0 : i32
    %c0_i32_0 = arith.constant 0 : i32
    %c0_i32_1 = arith.constant 0 : i32
    return %arg0, %c0_i32, %arg1, %c0_i32_0 : i32, i32, i32, i32
  }
  func.func @transform_1(%arg0: i32, %arg1: i32) -> (i32, i32, i32) {
    %c0_i32 = arith.constant 0 : i32
    %c0_i32_0 = arith.constant 0 : i32
    %c0_i32_1 = arith.constant 0 : i32
    return %arg0, %c0_i32, %c0_i32_0 : i32, i32, i32
  }
  func.func @transform_2(%arg0: i32, %arg1: i32) -> (i32, i32, i32) {
    %c0_i32 = arith.constant 0 : i32
    %c0_i32_0 = arith.constant 0 : i32
    %c0_i32_1 = arith.constant 0 : i32
    return %arg0, %c0_i32, %c0_i32_0 : i32, i32, i32
  }
  func.func @transform_3(%arg0: i32, %arg1: i32) -> (i32, i32, i32) {
    %c0_i32 = arith.constant 0 : i32
    %c0_i32_0 = arith.constant 0 : i32
    %c0_i32_1 = arith.constant 0 : i32
    return %arg0, %c0_i32, %c0_i32_0 : i32, i32, i32
  }
}

module attributes {stable_mosaic.version = 11 : i64} {
  func.func @attn_fusion_kernel(%arg0: memref<2x2x1280xf32, #tpu.memory_space<vmem>>, %arg1: memref<2x1280x256xbf16, #tpu.memory_space<vmem>>, %arg2: memref<2x1x256xf32, #tpu.memory_space<vmem>>, %arg3: memref<2x256x1280xbf16, #tpu.memory_space<vmem>>, %arg4: memref<2x1x1280xf32, #tpu.memory_space<vmem>>, %arg5: memref<2x1280x256xbf16, #tpu.memory_space<vmem>>, %arg6: memref<1x256xf32, #tpu.memory_space<vmem>>, %arg7: memref<256x1xbf16, #tpu.memory_space<vmem>>, %arg8: memref<1x1xf32, #tpu.memory_space<vmem>>, %arg9: memref<2x1xf32, #tpu.memory_space<vmem>>) attributes {dimension_semantics = [], scalar_prefetch = 0 : i64, scratch_operands = 0 : i64, tpu.core_type = #tpu.core_type<tc>} {
    %c0 = arith.constant 0 : index
    %c0_0 = arith.constant 0 : index
    %0 = vector.load %arg6[%c0, %c0_0] : memref<1x256xf32, #tpu.memory_space<vmem>>, vector<1x256xf32>
    %c0_1 = arith.constant 0 : index
    %c0_2 = arith.constant 0 : index
    %c0_3 = arith.constant 0 : index
    %1 = vector.load %arg0[%c0_1, %c0_2, %c0_3] : memref<2x2x1280xf32, #tpu.memory_space<vmem>>, vector<1x2x1280xf32>
    %2 = vector.shape_cast %1 : vector<1x2x1280xf32> to vector<2x1280xf32>
    %3 = arith.truncf %2 : vector<2x1280xf32> to vector<2x1280xbf16>
    %c0_4 = arith.constant 0 : index
    %c0_5 = arith.constant 0 : index
    %c0_6 = arith.constant 0 : index
    %4 = vector.load %arg1[%c0_4, %c0_5, %c0_6] : memref<2x1280x256xbf16, #tpu.memory_space<vmem>>, vector<1x1280x256xbf16>
    %5 = vector.shape_cast %4 : vector<1x1280x256xbf16> to vector<1280x256xbf16>
    %cst = arith.constant dense<0.000000e+00> : vector<2x256xf32>
    %6 = tpu.matmul %3, %5, %cst {dimension_numbers = #tpu.dot_dimension_numbers<[1], [0], [0], [1], [0, 0, 1, 1], [], []>} : vector<2x1280xbf16>, vector<1280x256xbf16>, vector<2x256xf32> -> vector<2x256xf32>
    %c0_7 = arith.constant 0 : index
    %c0_8 = arith.constant 0 : index
    %c0_9 = arith.constant 0 : index
    %7 = vector.load %arg2[%c0_7, %c0_8, %c0_9] : memref<2x1x256xf32, #tpu.memory_space<vmem>>, vector<1x1x256xf32>
    %8 = vector.shape_cast %7 : vector<1x1x256xf32> to vector<1x256xf32>
    %9 = vector.broadcast %8 : vector<1x256xf32> to vector<2x256xf32>
    %10 = arith.addf %6, %9 : vector<2x256xf32>
    %cst_10 = arith.constant 0.000000e+00 : f32
    %11 = vector.broadcast %cst_10 : f32 to vector<2x256xf32>
    %12 = arith.maximumf %10, %11 : vector<2x256xf32>
    %13 = arith.truncf %12 : vector<2x256xf32> to vector<2x256xbf16>
    %c0_11 = arith.constant 0 : index
    %c0_12 = arith.constant 0 : index
    %c0_13 = arith.constant 0 : index
    %14 = vector.load %arg3[%c0_11, %c0_12, %c0_13] : memref<2x256x1280xbf16, #tpu.memory_space<vmem>>, vector<1x256x1280xbf16>
    %15 = vector.shape_cast %14 : vector<1x256x1280xbf16> to vector<256x1280xbf16>
    %cst_14 = arith.constant dense<0.000000e+00> : vector<2x1280xf32>
    %16 = tpu.matmul %13, %15, %cst_14 {dimension_numbers = #tpu.dot_dimension_numbers<[1], [0], [0], [1], [0, 0, 1, 1], [], []>} : vector<2x256xbf16>, vector<256x1280xbf16>, vector<2x1280xf32> -> vector<2x1280xf32>
    %c0_15 = arith.constant 0 : index
    %c0_16 = arith.constant 0 : index
    %c0_17 = arith.constant 0 : index
    %17 = vector.load %arg4[%c0_15, %c0_16, %c0_17] : memref<2x1x1280xf32, #tpu.memory_space<vmem>>, vector<1x1x1280xf32>
    %18 = vector.shape_cast %17 : vector<1x1x1280xf32> to vector<1x1280xf32>
    %19 = vector.broadcast %18 : vector<1x1280xf32> to vector<2x1280xf32>
    %20 = arith.addf %16, %19 : vector<2x1280xf32>
    %21 = arith.negf %20 : vector<2x1280xf32>
    %22 = math.exp %21 : vector<2x1280xf32>
    %cst_18 = arith.constant 1.000000e+00 : f32
    %23 = vector.broadcast %cst_18 : f32 to vector<2x1280xf32>
    %24 = arith.addf %23, %22 : vector<2x1280xf32>
    %25 = arith.divf %23, %24 : vector<2x1280xf32>
    %26 = arith.mulf %2, %25 : vector<2x1280xf32>
    %27 = arith.truncf %26 : vector<2x1280xf32> to vector<2x1280xbf16>
    %c0_19 = arith.constant 0 : index
    %c0_20 = arith.constant 0 : index
    %c0_21 = arith.constant 0 : index
    %28 = vector.load %arg5[%c0_19, %c0_20, %c0_21] : memref<2x1280x256xbf16, #tpu.memory_space<vmem>>, vector<1x1280x256xbf16>
    %29 = vector.shape_cast %28 : vector<1x1280x256xbf16> to vector<1280x256xbf16>
    %cst_22 = arith.constant dense<0.000000e+00> : vector<2x256xf32>
    %30 = tpu.matmul %27, %29, %cst_22 {dimension_numbers = #tpu.dot_dimension_numbers<[1], [0], [0], [1], [0, 0, 1, 1], [], []>} : vector<2x1280xbf16>, vector<1280x256xbf16>, vector<2x256xf32> -> vector<2x256xf32>
    %31 = vector.broadcast %0 : vector<1x256xf32> to vector<2x256xf32>
    %32 = arith.addf %31, %30 : vector<2x256xf32>
    %c1 = arith.constant 1 : index
    %c0_23 = arith.constant 0 : index
    %c0_24 = arith.constant 0 : index
    %33 = vector.load %arg0[%c1, %c0_23, %c0_24] : memref<2x2x1280xf32, #tpu.memory_space<vmem>>, vector<1x2x1280xf32>
    %34 = vector.shape_cast %33 : vector<1x2x1280xf32> to vector<2x1280xf32>
    %35 = arith.truncf %34 : vector<2x1280xf32> to vector<2x1280xbf16>
    %c1_25 = arith.constant 1 : index
    %c0_26 = arith.constant 0 : index
    %c0_27 = arith.constant 0 : index
    %36 = vector.load %arg1[%c1_25, %c0_26, %c0_27] : memref<2x1280x256xbf16, #tpu.memory_space<vmem>>, vector<1x1280x256xbf16>
    %37 = vector.shape_cast %36 : vector<1x1280x256xbf16> to vector<1280x256xbf16>
    %cst_28 = arith.constant dense<0.000000e+00> : vector<2x256xf32>
    %38 = tpu.matmul %35, %37, %cst_28 {dimension_numbers = #tpu.dot_dimension_numbers<[1], [0], [0], [1], [0, 0, 1, 1], [], []>} : vector<2x1280xbf16>, vector<1280x256xbf16>, vector<2x256xf32> -> vector<2x256xf32>
    %c1_29 = arith.constant 1 : index
    %c0_30 = arith.constant 0 : index
    %c0_31 = arith.constant 0 : index
    %39 = vector.load %arg2[%c1_29, %c0_30, %c0_31] : memref<2x1x256xf32, #tpu.memory_space<vmem>>, vector<1x1x256xf32>
    %40 = vector.shape_cast %39 : vector<1x1x256xf32> to vector<1x256xf32>
    %41 = vector.broadcast %40 : vector<1x256xf32> to vector<2x256xf32>
    %42 = arith.addf %38, %41 : vector<2x256xf32>
    %cst_32 = arith.constant 0.000000e+00 : f32
    %43 = vector.broadcast %cst_32 : f32 to vector<2x256xf32>
    %44 = arith.maximumf %42, %43 : vector<2x256xf32>
    %45 = arith.truncf %44 : vector<2x256xf32> to vector<2x256xbf16>
    %c1_33 = arith.constant 1 : index
    %c0_34 = arith.constant 0 : index
    %c0_35 = arith.constant 0 : index
    %46 = vector.load %arg3[%c1_33, %c0_34, %c0_35] : memref<2x256x1280xbf16, #tpu.memory_space<vmem>>, vector<1x256x1280xbf16>
    %47 = vector.shape_cast %46 : vector<1x256x1280xbf16> to vector<256x1280xbf16>
    %cst_36 = arith.constant dense<0.000000e+00> : vector<2x1280xf32>
    %48 = tpu.matmul %45, %47, %cst_36 {dimension_numbers = #tpu.dot_dimension_numbers<[1], [0], [0], [1], [0, 0, 1, 1], [], []>} : vector<2x256xbf16>, vector<256x1280xbf16>, vector<2x1280xf32> -> vector<2x1280xf32>
    %c1_37 = arith.constant 1 : index
    %c0_38 = arith.constant 0 : index
    %c0_39 = arith.constant 0 : index
    %49 = vector.load %arg4[%c1_37, %c0_38, %c0_39] : memref<2x1x1280xf32, #tpu.memory_space<vmem>>, vector<1x1x1280xf32>
    %50 = vector.shape_cast %49 : vector<1x1x1280xf32> to vector<1x1280xf32>
    %51 = vector.broadcast %50 : vector<1x1280xf32> to vector<2x1280xf32>
    %52 = arith.addf %48, %51 : vector<2x1280xf32>
    %53 = arith.negf %52 : vector<2x1280xf32>
    %54 = math.exp %53 : vector<2x1280xf32>
    %cst_40 = arith.constant 1.000000e+00 : f32
    %55 = vector.broadcast %cst_40 : f32 to vector<2x1280xf32>
    %56 = arith.addf %55, %54 : vector<2x1280xf32>
    %57 = arith.divf %55, %56 : vector<2x1280xf32>
    %58 = arith.mulf %34, %57 : vector<2x1280xf32>
    %59 = arith.truncf %58 : vector<2x1280xf32> to vector<2x1280xbf16>
    %c1_41 = arith.constant 1 : index
    %c0_42 = arith.constant 0 : index
    %c0_43 = arith.constant 0 : index
    %60 = vector.load %arg5[%c1_41, %c0_42, %c0_43] : memref<2x1280x256xbf16, #tpu.memory_space<vmem>>, vector<1x1280x256xbf16>
    %61 = vector.shape_cast %60 : vector<1x1280x256xbf16> to vector<1280x256xbf16>
    %cst_44 = arith.constant dense<0.000000e+00> : vector<2x256xf32>
    %62 = tpu.matmul %59, %61, %cst_44 {dimension_numbers = #tpu.dot_dimension_numbers<[1], [0], [0], [1], [0, 0, 1, 1], [], []>} : vector<2x1280xbf16>, vector<1280x256xbf16>, vector<2x256xf32> -> vector<2x256xf32>
    %63 = arith.addf %32, %62 : vector<2x256xf32>
    %cst_45 = arith.constant 0.000000e+00 : f32
    %64 = vector.broadcast %cst_45 : f32 to vector<2x256xf32>
    %65 = arith.maximumf %63, %64 : vector<2x256xf32>
    %66 = arith.truncf %65 : vector<2x256xf32> to vector<2x256xbf16>
    %c0_46 = arith.constant 0 : index
    %c0_47 = arith.constant 0 : index
    %67 = vector.load %arg7[%c0_46, %c0_47] : memref<256x1xbf16, #tpu.memory_space<vmem>>, vector<256x1xbf16>
    %cst_48 = arith.constant dense<0.000000e+00> : vector<2x1xf32>
    %68 = tpu.matmul %66, %67, %cst_48 {dimension_numbers = #tpu.dot_dimension_numbers<[1], [0], [0], [1], [0, 0, 1, 1], [], []>} : vector<2x256xbf16>, vector<256x1xbf16>, vector<2x1xf32> -> vector<2x1xf32>
    %c0_49 = arith.constant 0 : index
    %c0_50 = arith.constant 0 : index
    %69 = vector.load %arg8[%c0_49, %c0_50] : memref<1x1xf32, #tpu.memory_space<vmem>>, vector<1x1xf32>
    %70 = vector.broadcast %69 : vector<1x1xf32> to vector<2x1xf32>
    %71 = arith.addf %68, %70 : vector<2x1xf32>
    %72 = arith.negf %71 : vector<2x1xf32>
    %73 = math.exp %72 : vector<2x1xf32>
    %cst_51 = arith.constant 1.000000e+00 : f32
    %74 = vector.broadcast %cst_51 : f32 to vector<2x1xf32>
    %75 = arith.addf %74, %73 : vector<2x1xf32>
    %76 = arith.divf %74, %75 : vector<2x1xf32>
    %c0_52 = arith.constant 0 : index
    %c0_53 = arith.constant 0 : index
    %77 = vector.load %arg9[%c0_52, %c0_53] : memref<2x1xf32, #tpu.memory_space<vmem>>, vector<2x1xf32>
    tpu.vector_store %arg9[%c0_52, %c0_53], %76 {strides = array<i32>} : memref<2x1xf32, #tpu.memory_space<vmem>>, vector<2x1xf32>,
    return
  }
}

</mosaic_0001>

<bundles_post_ra>
// kernel: multibranch_forward.2
= control target key start
LH: loop header
LB: loop body
LE: loop exit
PB: predicated region body
PF: predicated region fallthrough
CT: control target
= control target key end

     0   :  { %s3787_s12 = smov 0   ;;  %s3789_s13 = smov 0   ;;  %s5689_s0 = inlined_call_operand.vmem [shape: bf16[2,2,64,48], index: 0, kind: input, shape index: {}]   ;;  %s5690_s1 = inlined_call_operand.vmem [shape: bf16[2,48,1280], index: 1, kind: input, shape index: {}]   ;;  %s5691_s2 = inlined_call_operand.vmem [shape: f32[2,1,1280], index: 2, kind: input, shape index: {}]   ;;  %s5692_s3 = inlined_call_operand.vmem [shape: f32[2,2,1280], index: 3, kind: output, shape index: {}]  }
   0x1   :  { %s3791_s14 = smov 0  }
   0x2 LB: > { %s25_s15 = sadd.s32 1, %s3758_s13  ;;  %p2764_p0 = scmp.ge.s32.totalorder %s3762_s14, 1  ;;  %s3762_s14 = sphi %s3791_s14, %s13_s14   ;;  %s3758_s13 = sphi %s3789_s13, %s5970_s13   ;;  %s3754_s12 = sphi %s3787_s12, %s5969_s12  }
   0x3   : > { %p27_p1 = scmp.ge.s32.totalorder %s25_s15, 2  ;;  %p175_p2 = scmp.lt.s32.totalorder %s3762_s14, 3 }
   0x5   : > { %s5972_s15 = smov (%p27_p1, %s25_s15), 0  ;;  %p176_p3 = pnand %p2764_p0, %p175_p2 }
   0x7   : > { %179 = sbr.rel (%p176_p3) target bundleno = 627 (0x273), region = 32 }
   0xe   : > { %p213_p4 = scmp.lt.s32.totalorder %s3754_s12, 1  ;;  %v3764_v0 = vmov 0   ;;  %vm534_vm0 = vcmask 392192   ;;  %v294_v39 = vlaneseq  ;;  %vm2636_vm1 = vcmask 1041409  }
   0xf   : > { %591 = vmatprep.mubr.bf16.mxu0 %v3764_v0  ;;  %631 = vmatprep.mubr.bf16.mxu1 %v3764_v0  ;;  %vm2638_vm2 = vcmask 1043459   ;;  %vm2640_vm3 = vcmask 1045509   ;;  %vm2642_vm4 = vcmask 1047559  }
  0x10   : > { %s5974_s12 = smov (!%p213_p4, %s3754_s12), 1  ;;  %v3994_v40 = vshrl.u32 %v294_v39, 7 }
  0x11   : > { %s3016_s16 = smul.u32 240, %s5974_s12  ;;  %s3009_s17 = sshll.u32 %s5974_s12, 6 }
  0x12   : > { %s3814_s20 = scalar_lea.vmem %s5689_s0, %s3009_s17  ;;  %s3017_s24 = smul.u32 10, %s5974_s12  ;;  %5719 = vst [vmem:[#allocation2_spill] sm:$0xff] %v3994_v40  ;;  %v5694_v41 = vsub.s32 0, %v3994_v40  ;;  %v5693_v43 = vsub.s32 1, %v3994_v40 }
  0x13   : > { %s3819_s23 = scalar_lea.vmem %s5690_s1, %s3016_s16  ;;  %v3830_v9 = vld [vmem:[%s3814_s20] sm:$0xff]   ;;  %v3849_v18 = vld [vmem:[%s3814_s20 + $0x8] sm:$0xff]   ;;  %v3866_v25 = vld [vmem:[%s3814_s20 + $0x10] sm:$0xff]   ;;  %s3018_s28 = smul.u32 20, %s5974_s12 }
  0x14   : > { %v3046_v1 = vld [vmem:[%s3819_s23 + $0x4] ss:$40 sps:$4 sm:$0xff]   ;;  %v3048_v2 = vld [vmem:[%s3819_s23] ss:$40 sps:$4 sm:$0xff]   ;;  %v3049_v3 = vld [vmem:[%s3819_s23 + $0x54] ss:$40 sps:$4 sm:$0xff]   ;;  %s3999_s27 = scalar_lea.vmem %s5691_s2, %s3017_s24 }
  0x15   : > { %559 = vmatprep.subr.bf16.mxu0 %v3046_v1  ;;  %3010 = vmatprep.subr.bf16.mxu1 %v3046_v1  ;;  %v3051_v4 = vld [vmem:[%s3819_s23 + $0x50] ss:$40 sps:$4 sm:$0xff]   ;;  %v3052_v5 = vld [vmem:[%s3819_s23 + $0xa4] ss:$40 sps:$4 sm:$0xff]   ;;  %v3054_v6 = vld [vmem:[%s3819_s23 + $0xa0] ss:$40 sps:$4 sm:$0xff]   ;;  %s4748_s4 = scalar_lea.vmem %s5692_s3, %s3018_s28 }
  0x16   : > { %560 = vmatpush1.bf16.msra.mxu0 %v3048_v2  ;;  %3013 = vmatpush1.bf16.msra.mxu1 %v3048_v2  ;;  %v3059_v7 = vld [vmem:[%s3819_s23 + $0xc] ss:$40 sps:$4 sm:$0xff]   ;;  %v3833_v10 = vld [vmem:[%s3814_s20 + $0x20] sm:$0xff]   ;;  %v3057_v11 = vld [vmem:[%s3819_s23 + $0x8] ss:$40 sps:$4 sm:$0xff]  }
  0x17   : > { %561 = vmatprep.subr.bf16.mxu0 %v3049_v3  ;;  %3011 = vmatprep.subr.bf16.mxu1 %v3049_v3  ;;  %v3062_v8 = vld [vmem:[%s3819_s23 + $0x14] ss:$40 sps:$4 sm:$0xff]   ;;  %v3060_v12 = vld [vmem:[%s3819_s23 + $0x10] ss:$40 sps:$4 sm:$0xff]   ;;  %v3070_v14 = vld [vmem:[%s3819_s23 + $0x64] ss:$40 sps:$4 sm:$0xff]  }
  0x18   : > { %v3067_v13 = vld [vmem:[%s3819_s23 + $0x5c] ss:$40 sps:$4 sm:$0xff]   ;;  %v3065_v15 = vld [vmem:[%s3819_s23 + $0x58] ss:$40 sps:$4 sm:$0xff]   ;;  %v3075_v17 = vld [vmem:[%s3819_s23 + $0xac] ss:$40 sps:$4 sm:$0xff]  }
  0x19   : > { %v3068_v16 = vld [vmem:[%s3819_s23 + $0x60] ss:$40 sps:$4 sm:$0xff]   ;;  %v3080_v20 = vld [vmem:[%s3819_s23 + $0xb4] ss:$40 sps:$4 sm:$0xff]   ;;  %v3078_v22 = vld [vmem:[%s3819_s23 + $0xb0] ss:$40 sps:$4 sm:$0xff]  }
  0x1a   : > { %562 = vmatpush1.bf16.msra.mxu0 %v3051_v4  ;;  %3014 = vmatpush1.bf16.msra.mxu1 %v3051_v4  ;;  %v3852_v19 = vld [vmem:[%s3814_s20 + $0x28] sm:$0xff]   ;;  %v3083_v23 = vld [vmem:[%s3819_s23 + $0x1c] ss:$40 sps:$4 sm:$0xff]   ;;  %v3869_v26 = vld [vmem:[%s3814_s20 + $0x30] sm:$0xff]  }
  0x1b   : > { %563 = vmatprep.subr.bf16.mxu0 %v3052_v5  ;;  %3012 = vmatprep.subr.bf16.mxu1 %v3052_v5  ;;  %v3073_v21 = vld [vmem:[%s3819_s23 + $0xa8] ss:$40 sps:$4 sm:$0xff]   ;;  %v3086_v24 = vld [vmem:[%s3819_s23 + $0x24] ss:$40 sps:$4 sm:$0xff]   ;;  %v3878_v27 = vld [vmem:[%s3814_s20 + $0x18] sm:$0xff]  }
  0x1c   : > { %v3881_v28 = vld [vmem:[%s3814_s20 + $0x38] sm:$0xff]   ;;  %v3084_v30 = vld [vmem:[%s3819_s23 + $0x20] ss:$40 sps:$4 sm:$0xff]   ;;  %v3089_v31 = vld [vmem:[%s3819_s23 + $0x6c] ss:$40 sps:$4 sm:$0xff]  }
  0x1d   : > { %v3081_v29 = vld [vmem:[%s3819_s23 + $0x18] ss:$40 sps:$4 sm:$0xff]   ;;  %v3092_v32 = vld [vmem:[%s3819_s23 + $0x74] ss:$40 sps:$4 sm:$0xff]   ;;  %v3087_v33 = vld [vmem:[%s3819_s23 + $0x68] ss:$40 sps:$4 sm:$0xff]  }
  0x1e   : > { %564 = vmatpush1.bf16.msra.mxu0 %v3054_v6  ;;  %3015 = vmatpush1.bf16.msra.mxu1 %v3054_v6  ;;  %v3090_v34 = vld [vmem:[%s3819_s23 + $0x70] ss:$40 sps:$4 sm:$0xff]   ;;  %v3095_v35 = vld [vmem:[%s3819_s23 + $0xbc] ss:$40 sps:$4 sm:$0xff]   ;;  %v3096_v38 = vld [vmem:[%s3819_s23 + $0xc0] ss:$40 sps:$4 sm:$0xff]  }
  0x1f   : > { %672 = vmatprep.subr.bf16.mxu1 %v3059_v7  ;;  %785 = vmatprep.subr.bf16.mxu0 %v3062_v8  ;;  %v3098_v36 = vld [vmem:[%s3819_s23 + $0xc4] ss:$40 sps:$4 sm:$0xff]   ;;  %v3093_v37 = vld [vmem:[%s3819_s23 + $0xb8] ss:$40 sps:$4 sm:$0xff]  }
  0x20   : > { %v4003_v42 = vld [vmem:[%s3999_s27] sm:$0xff] }
  0x21   : > { %2807 = vmatmul.mubr.msk.bf16.vlgmr.msra.gmra.mrb[0].mxu0 %vm534_vm0, %v3830_v9  ;;  %2811 = vmatmul.mubr.msk.bf16.vlgmr.msra.gmra.mrb[0].mxu1 %vm534_vm0, %v3833_v10  ;;  %v4009_v44 = vrot.slane %v4003_v42, %v5694_v41  ;;  %v4014_v45 = vrot.slane %v4003_v42, %v5693_v43 }
  0x22   : > { %673 = vmatpush1.bf16.msra.mxu1 %v3057_v11  ;;  %786 = vmatpush1.bf16.msra.mxu0 %v3060_v12 }
  0x23   : > { %601 = vmatprep.mubr.bf16.mxu0 %v3764_v0  ;;  %641 = vmatprep.mubr.bf16.mxu1 %v3764_v0 }
  0x24   : > { %674 = vmatprep.subr.bf16.mxu1 %v3067_v13  ;;  %787 = vmatprep.subr.bf16.mxu0 %v3070_v14 }
  0x26   : > { %675 = vmatpush1.bf16.msra.mxu1 %v3065_v15  ;;  %788 = vmatpush1.bf16.msra.mxu0 %v3068_v16 }
  0x27   : > { %676 = vmatprep.subr.bf16.mxu1 %v3075_v17  ;;  %789 = vmatprep.subr.bf16.mxu0 %v3080_v20 }
  0x29   : > { %2808 = vmatmul.mubr.msk.bf16.gmra.mrb[4].mxu0 %vm534_vm0, %v3849_v18  ;;  %2812 = vmatmul.mubr.msk.bf16.gmra.mrb[4].mxu1 %vm534_vm0, %v3852_v19 }
  0x2a   : > { %611 = vmatprep.mubr.bf16.mxu0 %v3764_v0  ;;  %651 = vmatprep.mubr.bf16.mxu1 %v3764_v0 }
  0x2b   : > { %677 = vmatpush1.bf16.msra.mxu1 %v3073_v21  ;;  %790 = vmatpush1.bf16.msra.mxu0 %v3078_v22 }
  0x2c   : > { %898 = vmatprep.subr.bf16.mxu1 %v3083_v23  ;;  %1011 = vmatprep.subr.bf16.mxu0 %v3086_v24 }
  0x31   : > { %2809 = vmatmul.mubr.msk.bf16.gmra.mrb[8].mxu0 %vm534_vm0, %v3866_v25  ;;  %2813 = vmatmul.mubr.msk.bf16.gmra.mrb[8].mxu1 %vm534_vm0, %v3869_v26 }
  0x32   : > { %621 = vmatprep.mubr.bf16.mxu0 %v3764_v0  ;;  %661 = vmatprep.mubr.bf16.mxu1 %v3764_v0 }
  0x39   : > { %2810 = vmatmul.mubr.msk.bf16.gmra.mrb[12].mxu0 %vm534_vm0, %v3878_v27  ;;  %2814 = vmatmul.mubr.msk.bf16.gmra.mrb[12].mxu1 %vm534_vm0, %v3881_v28 }
  0x3a   : > { %704 = vmatprep.mubr.bf16.mxu1 %v3764_v0  ;;  %817 = vmatprep.mubr.bf16.mxu0 %v3764_v0 }
  0x41   : > { %2815 = vmatmul.mubr.msk.bf16.vlgmr.msra.gmra.mrb[16].mxu1 %vm534_vm0, %v3830_v9  ;;  %2823 = vmatmul.mubr.msk.bf16.vlgmr.msra.gmra.mrb[16].mxu0 %vm534_vm0, %v3830_v9 }
  0x42   : > { %899 = vmatpush1.bf16.msra.mxu1 %v3081_v29  ;;  %1012 = vmatpush1.bf16.msra.mxu0 %v3084_v30 }
  0x43   : > { %714 = vmatprep.mubr.bf16.mxu1 %v3764_v0  ;;  %827 = vmatprep.mubr.bf16.mxu0 %v3764_v0 }
  0x44   : > { %900 = vmatprep.subr.bf16.mxu1 %v3089_v31  ;;  %1013 = vmatprep.subr.bf16.mxu0 %v3092_v32 }
  0x46   : > { %901 = vmatpush1.bf16.msra.mxu1 %v3087_v33  ;;  %1014 = vmatpush1.bf16.msra.mxu0 %v3090_v34 }
  0x47   : > { %902 = vmatprep.subr.bf16.mxu1 %v3095_v35  ;;  %1015 = vmatprep.subr.bf16.mxu0 %v3098_v36 }
  0x49   : > { %2816 = vmatmul.mubr.msk.bf16.gmra.mrb[20].mxu1 %vm534_vm0, %v3849_v18  ;;  %2824 = vmatmul.mubr.msk.bf16.gmra.mrb[20].mxu0 %vm534_vm0, %v3849_v18 }
  0x4a   : > { %724 = vmatprep.mubr.bf16.mxu1 %v3764_v0  ;;  %837 = vmatprep.mubr.bf16.mxu0 %v3764_v0 }
  0x4b   : > { %903 = vmatpush1.bf16.msra.mxu1 %v3093_v37  ;;  %1016 = vmatpush1.bf16.msra.mxu0 %v3096_v38 }
  0x51   : > { %2817 = vmatmul.mubr.msk.bf16.gmra.mrb[24].mxu1 %vm534_vm0, %v3866_v25  ;;  %2825 = vmatmul.mubr.msk.bf16.gmra.mrb[24].mxu0 %vm534_vm0, %v3866_v25 }
  0x52   : > { %734 = vmatprep.mubr.bf16.mxu1 %v3764_v0  ;;  %847 = vmatprep.mubr.bf16.mxu0 %v3764_v0 }
  0x59   : > { %2818 = vmatmul.mubr.msk.bf16.gmra.mrb[28].mxu1 %vm534_vm0, %v3878_v27  ;;  %2826 = vmatmul.mubr.msk.bf16.gmra.mrb[28].mxu0 %vm534_vm0, %v3878_v27 }
  0x5a   : > { %744 = vmatprep.mubr.bf16.mxu1 %v3764_v0  ;;  %857 = vmatprep.mubr.bf16.mxu0 %v3764_v0 }
  0x61   : > { %2819 = vmatmul.mubr.msk.bf16.gmra.mrb[32].mxu1 %vm534_vm0, %v3833_v10  ;;  %2827 = vmatmul.mubr.msk.bf16.gmra.mrb[32].mxu0 %vm534_vm0, %v3833_v10 }
  0x62   : > { %754 = vmatprep.mubr.bf16.mxu1 %v3764_v0  ;;  %867 = vmatprep.mubr.bf16.mxu0 %v3764_v0 }
  0x69   : > { %2820 = vmatmul.mubr.msk.bf16.gmra.mrb[36].mxu1 %vm534_vm0, %v3852_v19  ;;  %2828 = vmatmul.mubr.msk.bf16.gmra.mrb[36].mxu0 %vm534_vm0, %v3852_v19 }
  0x6a   : > { %764 = vmatprep.mubr.bf16.mxu1 %v3764_v0  ;;  %877 = vmatprep.mubr.bf16.mxu0 %v3764_v0 }
  0x71   : > { %2821 = vmatmul.mubr.msk.bf16.gmra.mrb[40].mxu1 %vm534_vm0, %v3869_v26  ;;  %2829 = vmatmul.mubr.msk.bf16.gmra.mrb[40].mxu0 %vm534_vm0, %v3869_v26 }
  0x72   : > { %774 = vmatprep.mubr.bf16.mxu1 %v3764_v0  ;;  %887 = vmatprep.mubr.bf16.mxu0 %v3764_v0 }
  0x79   : > { %2822 = vmatmul.mubr.msk.bf16.gmra.mrb[44].mxu1 %vm534_vm0, %v3881_v28  ;;  %2830 = vmatmul.mubr.msk.bf16.gmra.mrb[44].mxu0 %vm534_vm0, %v3881_v28 }
  0x7a   : > { %930 = vmatprep.mubr.bf16.mxu1 %v3764_v0  ;;  %1043 = vmatprep.mubr.bf16.mxu0 %v3764_v0 }
  0x81   : > { %2831 = vmatmul.mubr.msk.bf16.vlgmr.msra.gmra.mrb[48].mxu1 %vm534_vm0, %v3830_v9  ;;  %2839 = vmatmul.mubr.msk.bf16.vlgmr.msra.gmra.mrb[48].mxu0 %vm534_vm0, %v3830_v9 }
  0x82   : > { %940 = vmatprep.mubr.bf16.mxu1 %v3764_v0  ;;  %1053 = vmatprep.mubr.bf16.mxu0 %v3764_v0 }
  0x89   : > { %2832 = vmatmul.mubr.msk.bf16.gmra.mrb[52].mxu1 %vm534_vm0, %v3849_v18  ;;  %2840 = vmatmul.mubr.msk.bf16.gmra.mrb[52].mxu0 %vm534_vm0, %v3849_v18 }
  0x8a   : > { %950 = vmatprep.mubr.bf16.mxu1 %v3764_v0  ;;  %1063 = vmatprep.mubr.bf16.mxu0 %v3764_v0 }
  0x91   : > { %2833 = vmatmul.mubr.msk.bf16.gmra.mrb[56].mxu1 %vm534_vm0, %v3866_v25  ;;  %2841 = vmatmul.mubr.msk.bf16.gmra.mrb[56].mxu0 %vm534_vm0, %v3866_v25 }
  0x92   : > { %960 = vmatprep.mubr.bf16.mxu1 %v3764_v0  ;;  %1073 = vmatprep.mubr.bf16.mxu0 %v3764_v0 }
  0x99   : > { %2834 = vmatmul.mubr.msk.bf16.gmra.mrb[60].mxu1 %vm534_vm0, %v3878_v27  ;;  %2842 = vmatmul.mubr.msk.bf16.gmra.mrb[60].mxu0 %vm534_vm0, %v3878_v27 }
  0x9a   : > { %970 = vmatprep.mubr.bf16.mxu1 %v3764_v0  ;;  %1083 = vmatprep.mubr.bf16.mxu0 %v3764_v0 }
  0xa1   : > { %2835 = vmatmul.mubr.msk.bf16.gmra.mrb[64].mxu1 %vm534_vm0, %v3833_v10  ;;  %2843 = vmatmul.mubr.msk.bf16.gmra.mrb[64].mxu0 %vm534_vm0, %v3833_v10 }
  0xa2   : > { %980 = vmatprep.mubr.bf16.mxu1 %v3764_v0  ;;  %1093 = vmatprep.mubr.bf16.mxu0 %v3764_v0 }
  0xa9   : > { %2836 = vmatmul.mubr.msk.bf16.gmra.mrb[68].mxu1 %vm534_vm0, %v3852_v19  ;;  %2844 = vmatmul.mubr.msk.bf16.gmra.mrb[68].mxu0 %vm534_vm0, %v3852_v19 }
  0xaa   : > { %990 = vmatprep.mubr.bf16.mxu1 %v3764_v0  ;;  %1103 = vmatprep.mubr.bf16.mxu0 %v3764_v0 }
  0xb1   : > { %2837 = vmatmul.mubr.msk.bf16.gmra.mrb[72].mxu1 %vm534_vm0, %v3869_v26  ;;  %2845 = vmatmul.mubr.msk.bf16.gmra.mrb[72].mxu0 %vm534_vm0, %v3869_v26 }
  0xb2   : > { %1000 = vmatprep.mubr.bf16.mxu1 %v3764_v0  ;;  %1113 = vmatprep.mubr.bf16.mxu0 %v3764_v0 }
  0xb9   : > { %2838 = vmatmul.mubr.msk.bf16.gmra.mrb[76].mxu1 %vm534_vm0, %v3881_v28  ;;  %2846 = vmatmul.mubr.msk.bf16.gmra.mrb[76].mxu0 %vm534_vm0, %v3881_v28 }
  0xf4   : > { %v593_v46 = vpop.f32.mrb[0].mxu0  ;;  %v633_v47 = vpop.f32.mrb[0].mxu1 }
  0xf5   : > { %v4017_v48 = vadd.f32 %v593_v46, %v4009_v44  ;;  %v4020_v49 = vadd.f32 %v633_v47, %v4009_v44  ;;  %v595_v50 = vpop.f32.mrb[1].mxu0  ;;  %v635_v51 = vpop.f32.mrb[1].mxu1 }
  0xf6   : > { %v4023_v52 = vadd.f32 %v595_v50, %v4014_v45  ;;  %v4026_v53 = vadd.f32 %v635_v51, %v4014_v45  ;;  %v597_v54 = vpop.f32.mrb[2].mxu0  ;;  %v637_v55 = vpop.f32.mrb[2].mxu1 }
  0xf7   : > { %v2847_v56 = vmul.f32 -1.442695, %v4017_v48  ;;  %v2927_v57 = vmul.f32 -1.442695, %v4020_v49  ;;  %v4031_v58 = vadd.f32 %v597_v54, %v4009_v44  ;;  %v4034_v59 = vadd.f32 %v637_v55, %v4009_v44  ;;  %v599_v60 = vpop.f32.mrb[3].mxu0  ;;  %v639_v61 = vpop.f32.mrb[3].mxu1 }
  0xf8   : > { %v2848_v62 = vmul.f32 -1.442695, %v4023_v52  ;;  %v2928_v63 = vmul.f32 -1.442695, %v4026_v53  ;;  %v4039_v0 = vadd.f32 %v599_v60, %v4014_v45  ;;  %v4042_v1 = vadd.f32 %v639_v61, %v4014_v45 }
  0xf9   : > { %3099 = vpow2.f32 %v2847_v56  ;;  %v2857_v2 = vmul.f32 -1.442695, %v4031_v58  ;;  %v2937_v3 = vmul.f32 -1.442695, %v4034_v59 }
  0xfa   : > { %3101 = vpow2.f32 %v2927_v57  ;;  %v2858_v4 = vmul.f32 -1.442695, %v4039_v0  ;;  %v2938_v5 = vmul.f32 -1.442695, %v4042_v1 }
  0xfb   : > { %3103 = vpow2.f32 %v2848_v62 }
  0xfc   : > { %3105 = vpow2.f32 %v2928_v63  ;;  %v603_v6 = vpop.f32.mrb[4].mxu0  ;;  %v643_v7 = vpop.f32.mrb[4].mxu1 }
  0xfd   : > { %3107 = vpow2.f32 %v2857_v2  ;;  %v4049_v8 = vadd.f32 %v603_v6, %v4009_v44  ;;  %v4052_v9 = vadd.f32 %v643_v7, %v4009_v44  ;;  %v605_v10 = vpop.f32.mrb[5].mxu0  ;;  %v645_v11 = vpop.f32.mrb[5].mxu1 }
  0xfe   : > { %3109 = vpow2.f32 %v2937_v3  ;;  %v4055_v12 = vadd.f32 %v605_v10, %v4014_v45  ;;  %v4058_v13 = vadd.f32 %v645_v11, %v4014_v45  ;;  %v607_v14 = vpop.f32.mrb[6].mxu0  ;;  %v647_v15 = vpop.f32.mrb[6].mxu1 }
  0xff   : > { %3111 = vpow2.f32 %v2858_v4  ;;  %v2867_v16 = vmul.f32 -1.442695, %v4049_v8  ;;  %v2947_v17 = vmul.f32 -1.442695, %v4052_v9  ;;  %v4063_v18 = vadd.f32 %v607_v14, %v4009_v44  ;;  %v609_v19 = vpop.f32.mrb[7].mxu0  ;;  %v649_v20 = vpop.f32.mrb[7].mxu1 }
 0x100   : > { %3113 = vpow2.f32 %v2938_v5  ;;  %v2868_v21 = vmul.f32 -1.442695, %v4055_v12  ;;  %v2948_v22 = vmul.f32 -1.442695, %v4058_v13  ;;  %v4069_v50 = vadd.f32 %v647_v15, %v4009_v44 }
 0x101   : > { %3115 = vpow2.f32 %v2867_v16  ;;  %v2877_v23 = vmul.f32 -1.442695, %v4063_v18  ;;  %v4072_v56 = vadd.f32 %v609_v19, %v4014_v45  ;;  %v4076_v4 = vadd.f32 %v649_v20, %v4014_v45 }
 0x102   : > { %3117 = vpow2.f32 %v2947_v17  ;;  %v2957_v3 = vmul.f32 -1.442695, %v4069_v50 }
 0x103   : > { %v3100_v24 = vpop.eup %3099  ;;  %3119 = vpow2.f32 %v2868_v21  ;;  %v2878_v10 = vmul.f32 -1.442695, %v4072_v56 }
 0x104   : > { %v3102_v25 = vpop.eup %3101  ;;  %v1604_v26 = vadd.f32 1.0, %v3100_v24  ;;  %3121 = vpow2.f32 %v2948_v22  ;;  %v613_v27 = vpop.f32.mrb[8].mxu0 }
 0x105   : > { %v653_v28 = vpop.f32.mrb[8].mxu1  ;;  %v3104_v29 = vpop.eup %3103  ;;  %v1684_v30 = vadd.f32 1.0, %v3102_v25  ;;  %3123 = vpow2.f32 %v2877_v23  ;;  %v4080_v11 = vadd.f32 %v613_v27, %v4009_v44 }
 0x106   : > { %v615_v31 = vpop.f32.mrb[9].mxu0  ;;  %v655_v32 = vpop.f32.mrb[9].mxu1  ;;  %3125 = vrcp.f32 %v1604_v26  ;;  %v1605_v34 = vadd.f32 1.0, %v3104_v29  ;;  %v4085_v19 = vadd.f32 %v653_v28, %v4009_v44 }
 0x107   : > { %v3106_v33 = vpop.eup %3105  ;;  %v617_v35 = vpop.f32.mrb[10].mxu0  ;;  %3127 = vrcp.f32 %v1684_v30  ;;  %v4088_v20 = vadd.f32 %v615_v31, %v4014_v45  ;;  %v4095_v25 = vadd.f32 %v655_v32, %v4014_v45 }
 0x108   : > { %v657_v36 = vpop.f32.mrb[10].mxu1  ;;  %v3108_v37 = vpop.eup %3107  ;;  %v1685_v38 = vadd.f32 1.0, %v3106_v33  ;;  %3129 = vrcp.f32 %v1605_v34  ;;  %v4098_v26 = vadd.f32 %v617_v35, %v4009_v44  ;;  %v2958_v35 = vmul.f32 -1.442695, %v4076_v4 }
 0x109   : > { %v619_v39 = vpop.f32.mrb[11].mxu0  ;;  %v3110_v46 = vpop.eup %3109  ;;  %v1614_v47 = vadd.f32 1.0, %v3108_v37  ;;  %v4105_v31 = vadd.f32 %v657_v36, %v4009_v44  ;;  %v2888_v36 = vmul.f32 -1.442695, %v4088_v20 }
 0x10a   : > { %v659_v51 = vpop.f32.mrb[11].mxu1  ;;  %v3112_v54 = vpop.eup %3111  ;;  %3131 = vrcp.f32 %v1685_v38  ;;  %v1694_v55 = vadd.f32 1.0, %v3110_v46  ;;  %v4108_v33 = vadd.f32 %v619_v39, %v4014_v45  ;;  %v2887_v38 = vmul.f32 -1.442695, %v4080_v11 }
 0x10b   : > { %v3114_v57 = vpop.eup %3113  ;;  %3133 = vrcp.f32 %v1614_v47  ;;  %v1615_v60 = vadd.f32 1.0, %v3112_v54  ;;  %v2967_v46 = vmul.f32 -1.442695, %v4085_v19  ;;  %v2968_v54 = vmul.f32 -1.442695, %v4095_v25 }
 0x10c   : > { %v3116_v61 = vpop.eup %3115  ;;  %3135 = vrcp.f32 %v1694_v55  ;;  %v1695_v62 = vadd.f32 1.0, %v3114_v57  ;;  %v623_v5 = vpop.f32.mrb[12].mxu0  ;;  %v2897_v39 = vmul.f32 -1.442695, %v4098_v26  ;;  %v2977_v57 = vmul.f32 -1.442695, %v4105_v31 }
 0x10d   : > { %v3118_v63 = vpop.eup %3117  ;;  %3137 = vrcp.f32 %v1615_v60  ;;  %v1624_v2 = vadd.f32 1.0, %v3116_v61  ;;  %v663_v14 = vpop.f32.mrb[12].mxu1  ;;  %v2898_v60 = vmul.f32 -1.442695, %v4108_v33  ;;  %v4121_v61 = vadd.f32 %v659_v51, %v4014_v45 }
 0x10e   : > { %v3120_v6 = vpop.eup %3119  ;;  %3139 = vrcp.f32 %v1695_v62  ;;  %v1704_v7 = vadd.f32 1.0, %v3118_v63  ;;  %v4082_v15 = vpop.f32.mrb[13].mxu0 }
 0x10f   : > { %v3122_v16 = vpop.eup %3121  ;;  %3141 = vrcp.f32 %v1624_v2  ;;  %v1625_v17 = vadd.f32 1.0, %v3120_v6  ;;  %v4090_v21 = vpop.f32.mrb[13].mxu1 }
 0x110   : > { %v4092_v22 = vpop.f32.mrb[14].mxu0  ;;  %v3124_v23 = vpop.eup %3123  ;;  %3143 = vrcp.f32 %v1704_v7  ;;  %v1705_v24 = vadd.f32 1.0, %v3122_v16  ;;  %v4130_v7 = vadd.f32 %v623_v5, %v4009_v44 }
 0x111   : > { %v4100_v27 = vpop.f32.mrb[14].mxu1  ;;  %v4102_v28 = vpop.f32.mrb[15].mxu0  ;;  %3145 = vrcp.f32 %v1625_v17  ;;  %v1634_v30 = vadd.f32 1.0, %v3124_v23 }
 0x112   : > { %v3126_v29 = vpop.eup %3125  ;;  %v4110_v34 = vpop.f32.mrb[15].mxu1  ;;  %3147 = vrcp.f32 %v1705_v24  ;;  %v4139_v24 = vadd.f32 %v663_v14, %v4009_v44 }
 0x113   : > { %v3128_v32 = vpop.eup %3127  ;;  %3149 = vrcp.f32 %v1634_v30 }
 0x114   : > { %v3130_v37 = vpop.eup %3129  ;;  %3151 = vpow2.f32 %v2957_v3  ;;  %v4123_v62 = vpop.f32.mrb[16].mxu1  ;;  %v2084_v3 = vmul.f32 %v3126_v29, %v4017_v48  ;;  %v2164_v51 = vmul.f32 %v3128_v32, %v4020_v49 }
 0x115   : > { %v3132_v47 = vpop.eup %3131  ;;  %3153 = vpow2.f32 %v2878_v10  ;;  %v4125_v63 = vpop.f32.mrb[16].mxu0  ;;  %v2085_v5 = vmul.f32 %v3130_v37, %v4023_v52  ;;  %v2978_v52 = vmul.f32 -1.442695, %v4121_v61 }
 0x116   : > { %v3134_v55 = vpop.eup %3133  ;;  %3155 = vpow2.f32 %v2958_v35  ;;  %v4132_v10 = vpop.f32.mrb[17].mxu1  ;;  %v2165_v32 = vmul.f32 %v3132_v47, %v4026_v53 }
 0x117   : > { %v3136_v2 = vpop.eup %3135  ;;  %v2094_v6 = vmul.f32 %v3134_v55, %v4031_v58  ;;  %v4134_v16 = vpop.f32.mrb[17].mxu0  ;;  %3157 = vpow2.f32 %v2887_v38 }
 0x118   : > { %v3138_v17 = vpop.eup %3137  ;;  %v2174_v23 = vmul.f32 %v3136_v2, %v4034_v59  ;;  %v4141_v48 = vpop.f32.mrb[18].mxu1  ;;  %3159 = vpow2.f32 %v2967_v46 }
 0x119   : > { %v4143_v58 = vpop.f32.mrb[18].mxu0  ;;  %v3140_v29 = vpop.eup %3139  ;;  %v2247_v30 = vadd.f32 %v2094_v6, %v2084_v3  ;;  %v2095_v35 = vmul.f32 %v3138_v17, %v4039_v0  ;;  %3161 = vpow2.f32 %v2888_v36  ;;  %v2907_v3 = vmul.f32 -1.442695, %v4130_v7 }
 0x11a   : > { %v4147_v55 = vpop.f32.mrb[19].mxu1  ;;  %v4149_v49 = vpop.f32.mrb[19].mxu0  ;;  %v2377_v14 = vadd.f32 %v2174_v23, %v2164_v51  ;;  %v2175_v38 = vmul.f32 %v3140_v29, %v4042_v1  ;;  %3163 = vpow2.f32 %v2968_v54  ;;  %v2987_v1 = vmul.f32 -1.442695, %v4139_v24 }
 0x11b   : > { %v3142_v59 = vpop.eup %3141  ;;  %v2260_v43 = vadd.f32 %v2095_v35, %v2085_v5  ;;  %3165 = vpow2.f32 %v2897_v39 }
 0x11c   : > { %v3144_v2 = vpop.eup %3143  ;;  %v2104_v41 = vmul.f32 %v3142_v59, %v4049_v8  ;;  %v2390_v37 = vadd.f32 %v2175_v38, %v2165_v32  ;;  %3167 = vpow2.f32 %v2977_v57  ;;  %v4162_v54 = vpop.f32.mrb[20].mxu1  ;;  %v312_v59 = vsub.s32 4, %v3994_v40 }
 0x11d   : > { %v3146_v0 = vpop.eup %3145  ;;  %v2184_v46 = vmul.f32 %v3144_v2, %v4052_v9  ;;  %3169 = vpow2.f32 %v2898_v60  ;;  %v4164_v51 = vpop.f32.mrb[20].mxu0 }
 0x11e   : > { %v3148_v6 = vpop.eup %3147  ;;  %v2248_v53 = vadd.f32 %v2247_v30, %v2104_v41  ;;  %v2105_v47 = vmul.f32 %v3146_v0, %v4055_v12  ;;  %3171 = vpow2.f32 %v2978_v52  ;;  %v4169_v12 = vpop.f32.mrb[21].mxu1  ;;  %v308_v52 = vsub.s32 3, %v3994_v40 }
 0x11f   : > { %v3150_v36 = vpop.eup %3149  ;;  %v4159_v17 = vadd.f32 %v2377_v14, %v2184_v46  ;;  %v2185_v8 = vmul.f32 %v3148_v6, %v4058_v13  ;;  %v4171_v57 = vpop.f32.mrb[21].mxu0  ;;  %3173 = vpow2.f32 %v2907_v3  ;;  %v304_v13 = vsub.s32 2, %v3994_v40 }
 0x120   : > { %v3152_v9 = vpop.eup %3151  ;;  %v4166_v39 = vadd.f32 %v2260_v43, %v2105_v47  ;;  %v2114_v41 = vmul.f32 %v3150_v36, %v4063_v18  ;;  %v4176_v60 = vpop.f32.mrb[22].mxu1  ;;  %3175 = vpow2.f32 %v2987_v1  ;;  %v316_v0 = vsub.s32 5, %v3994_v40 }
 0x121   : > { %v3154_v23 = vpop.eup %3153  ;;  %v4173_v29 = vadd.f32 %v2390_v37, %v2185_v8  ;;  %v1714_v5 = vadd.f32 1.0, %v3152_v9  ;;  %v4178_v30 = vpop.f32.mrb[22].mxu0  ;;  %v4191_v3 = vadd.f32 %v4082_v15, %v4014_v45  ;;  %v4194_v36 = vrot.slane %v4003_v42, %v304_v13 }
 0x122   : > { %v3156_v43 = vpop.eup %3155  ;;  %v4180_v35 = vadd.f32 %v2248_v53, %v2114_v41  ;;  %v1635_v18 = vadd.f32 1.0, %v3154_v23  ;;  %v4183_v32 = vpop.f32.mrb[23].mxu1  ;;  %v4197_v8 = vrot.slane %v4003_v42, %v312_v59  ;;  %v4200_v23 = vrot.slane %v4003_v42, %v308_v52 }
 0x123   : > { %v4185_v14 = vpop.f32.mrb[23].mxu0  ;;  %v3158_v38 = vpop.eup %3157  ;;  %3177 = vrcp.f32 %v1714_v5  ;;  %v1715_v2 = vadd.f32 1.0, %v3156_v43  ;;  %v4203_v15 = vrot.slane %v4003_v42, %v316_v0  ;;  %v4212_v59 = vadd.f32 %v4090_v21, %v4014_v45 }
 0x124   : > { %v3160_v37 = vpop.eup %3159  ;;  %3179 = vrcp.f32 %v1635_v18  ;;  %v1644_v46 = vadd.f32 1.0, %v3158_v38  ;;  %v4205_v5 = vpop.f32.mrb[24].mxu1  ;;  %v2908_v38 = vmul.f32 -1.442695, %v4191_v3  ;;  %v4220_v0 = vadd.f32 %v4092_v22, %v4009_v44 }
 0x125   : > { %v3162_v6 = vpop.eup %3161  ;;  %3181 = vrcp.f32 %v1715_v2  ;;  %v1724_v53 = vadd.f32 1.0, %v3160_v37  ;;  %v4207_v43 = vpop.f32.mrb[24].mxu0 }
 0x126   : > { %v3164_v47 = vpop.eup %3163  ;;  %3183 = vrcp.f32 %v1644_v46  ;;  %v1645_v1 = vadd.f32 1.0, %v3162_v6  ;;  %v4214_v2 = vpop.f32.mrb[25].mxu1  ;;  %v4224_v46 = vadd.f32 %v4100_v27, %v4009_v44 }
 0x127   : > { %v3166_v9 = vpop.eup %3165  ;;  %3185 = vrcp.f32 %v1724_v53  ;;  %v1725_v41 = vadd.f32 1.0, %v3164_v47  ;;  %v4216_v52 = vpop.f32.mrb[25].mxu0 }
 0x128   : > { %v3168_v18 = vpop.eup %3167  ;;  %3187 = vrcp.f32 %v1645_v1  ;;  %v1654_v13 = vadd.f32 1.0, %v3166_v9  ;;  %5720 = vst [vmem:[#allocation3_spill] sm:$0xff] %v4224_v46  ;;  %v4226_v6 = vpop.f32.mrb[26].mxu1  ;;  %v4232_v1 = vadd.f32 %v4102_v28, %v4014_v45  ;;  %v4236_v9 = vadd.f32 %v4110_v34, %v4014_v45 }
 0x129   : > { %v3170_v37 = vpop.eup %3169  ;;  %3189 = vrcp.f32 %v1725_v41  ;;  %v1734_v42 = vadd.f32 1.0, %v3168_v18  ;;  %5721 = vst [vmem:[#allocation4_spill] sm:$0xff] %v4226_v6  ;;  %v4228_v53 = vpop.f32.mrb[26].mxu0  ;;  %v4244_v18 = vadd.f32 %v4123_v62, %v4194_v36  ;;  %v2988_v45 = vmul.f32 -1.442695, %v4212_v59 }
 0x12a   : > { %5722 = vst [vmem:[#allocation5_spill] sm:$0xff] %v4228_v53  ;;  %v3172_v21 = vpop.eup %3171  ;;  %3191 = vrcp.f32 %v1654_v13  ;;  %v1655_v47 = vadd.f32 1.0, %v3170_v37  ;;  %5723 = vst [vmem:[#allocation6_spill] sm:$0xff] %v4236_v9  ;;  %v4238_v22 = vpop.f32.mrb[27].mxu1  ;;  %v4248_v13 = vadd.f32 %v4125_v63, %v4197_v8  ;;  %v4253_v34 = vadd.f32 %v4132_v10, %v4200_v23 }
 0x12b   : > { %5724 = vst [vmem:[#allocation7_spill] sm:$0xff] %v4238_v22  ;;  %v4240_v41 = vpop.f32.mrb[27].mxu0  ;;  %v3174_v44 = vpop.eup %3173  ;;  %3193 = vrcp.f32 %v1734_v42  ;;  %v1735_v27 = vadd.f32 1.0, %v3172_v21  ;;  %v2917_v21 = vmul.f32 -1.442695, %v4220_v0 }
 0x12c   : > { %5725 = vst [vmem:[#allocation8_spill] sm:$0xff] %v4240_v41  ;;  %5726 = vst [vmem:[#allocation9_spill] sm:$0xff] %v4248_v13  ;;  %v3176_v28 = vpop.eup %3175  ;;  %3195 = vrcp.f32 %v1655_v47  ;;  %v1664_v37 = vadd.f32 1.0, %v3174_v44  ;;  %v2997_v62 = vmul.f32 -1.442695, %v4224_v46  ;;  %v4265_v6 = vpop.f32.mrb[28].mxu0 }
 0x12d   : > { %v3178_v40 = vpop.eup %3177  ;;  %3197 = vrcp.f32 %v1735_v27  ;;  %v1744_v42 = vadd.f32 1.0, %v3176_v28  ;;  %v2918_v47 = vmul.f32 -1.442695, %v4232_v1  ;;  %v2998_v44 = vmul.f32 -1.442695, %v4236_v9  ;;  %v4263_v28 = vpop.f32.mrb[28].mxu1 }
 0x12e   : > { %v3180_v41 = vpop.eup %3179  ;;  %v2194_v63 = vmul.f32 %v3178_v40, %v4069_v50  ;;  %3199 = vrcp.f32 %v1664_v37  ;;  %v2849_v10 = vmul.f32 -1.442695, %v4244_v18  ;;  %v2851_v27 = vmul.f32 -1.442695, %v4248_v13  ;;  %5727 = vst [vmem:[#allocation10_spill] sm:$0xff] %v4265_v6  ;;  %v4270_v9 = vpop.f32.mrb[29].mxu1 }
 0x12f   : > { %v3182_v22 = vpop.eup %3181  ;;  %v2115_v53 = vmul.f32 %v3180_v41, %v4072_v56  ;;  %3201 = vrcp.f32 %v1744_v42  ;;  %v2850_v37 = vmul.f32 -1.442695, %v4253_v34  ;;  %v4272_v56 = vpop.f32.mrb[29].mxu0  ;;  %v4278_v6 = vadd.f32 %v4134_v16, %v4203_v15 }
 0x130   : > { %v3184_v46 = vpop.eup %3183  ;;  %v2379_v40 = vadd.f32 %v4159_v17, %v2194_v63  ;;  %v2195_v50 = vmul.f32 %v3182_v22, %v4076_v4  ;;  %3203 = vpow2.f32 %v2908_v38  ;;  %v4280_v17 = vpop.f32.mrb[30].mxu1 }
 0x131   : > { %v3186_v41 = vpop.eup %3185  ;;  %v2262_v42 = vadd.f32 %v4166_v39, %v2115_v53  ;;  %v2124_v13 = vmul.f32 %v3184_v46, %v4080_v11  ;;  %3205 = vpow2.f32 %v2988_v45  ;;  %v4282_v4 = vpop.f32.mrb[30].mxu0  ;;  %v4288_v39 = vadd.f32 %v4141_v48, %v4194_v36 }
 0x132   : > { %v3188_v38 = vpop.eup %3187  ;;  %v2392_v22 = vadd.f32 %v4173_v29, %v2195_v50  ;;  %v2204_v63 = vmul.f32 %v3186_v41, %v4085_v19  ;;  %3207 = vpow2.f32 %v2917_v21  ;;  %v4290_v11 = vpop.f32.mrb[31].mxu1  ;;  %v4298_v29 = vadd.f32 %v4143_v58, %v4197_v8 }
 0x133   : > { %v4292_v46 = vpop.f32.mrb[31].mxu0  ;;  %v3190_v16 = vpop.eup %3189  ;;  %v2250_v53 = vadd.f32 %v4180_v35, %v2124_v13  ;;  %v2125_v45 = vmul.f32 %v3188_v38, %v4088_v20  ;;  %3209 = vpow2.f32 %v2997_v62  ;;  %v4303_v48 = vadd.f32 %v4147_v55, %v4200_v23 }
 0x134   : > { %5728 = vst [vmem:[#allocation11_spill] sm:$0xff] %v4292_v46  ;;  %v3192_v19 = vpop.eup %3191  ;;  %v2380_v21 = vadd.f32 %v2379_v40, %v2204_v63  ;;  %v2205_v50 = vmul.f32 %v3190_v16, %v4095_v25  ;;  %3211 = vpow2.f32 %v2918_v47  ;;  %v2852_v20 = vmul.f32 -1.442695, %v4278_v6 }
 0x135   : > { %v3194_v41 = vpop.eup %3193  ;;  %v2263_v46 = vadd.f32 %v2262_v42, %v2125_v45  ;;  %v2134_v35 = vmul.f32 %v3192_v19, %v4098_v26  ;;  %3213 = vpow2.f32 %v2998_v44  ;;  %v2859_v40 = vmul.f32 -1.442695, %v4288_v39  ;;  %v4311_v42 = vpop.f32.mrb[32].mxu1 }
 0x136   : > { %v3196_v13 = vpop.eup %3195  ;;  %v2393_v62 = vadd.f32 %v2392_v22, %v2205_v50  ;;  %v2214_v58 = vmul.f32 %v3194_v41, %v4105_v31  ;;  %3215 = vpow2.f32 %v2849_v10  ;;  %v2861_v55 = vmul.f32 -1.442695, %v4298_v29  ;;  %v4313_v26 = vpop.f32.mrb[32].mxu0 }
 0x137   : > { %v3198_v25 = vpop.eup %3197  ;;  %v2251_v47 = vadd.f32 %v2250_v53, %v2134_v35  ;;  %v2135_v38 = vmul.f32 %v3196_v13, %v4108_v33  ;;  %3217 = vpow2.f32 %v2851_v27  ;;  %v2860_v31 = vmul.f32 -1.442695, %v4303_v48  ;;  %v4317_v10 = vpop.f32.mrb[33].mxu1 }
 0x138   : > { %v3200_v44 = vpop.eup %3199  ;;  %v2381_v63 = vadd.f32 %v2380_v21, %v2214_v58  ;;  %v2215_v22 = vmul.f32 %v3198_v25, %v4121_v61  ;;  %3219 = vpow2.f32 %v2850_v37  ;;  %v4319_v16 = vpop.f32.mrb[33].mxu0 }
 0x139   : > { %v3202_v53 = vpop.eup %3201  ;;  %v4321_v33 = vadd.f32 %v2263_v46, %v2135_v38  ;;  %v2144_v27 = vmul.f32 %v3200_v44, %v4130_v7  ;;  %3221 = vpow2.f32 %v2852_v20  ;;  %v4324_v45 = vpop.f32.mrb[34].mxu1  ;;  %v4339_v7 = vadd.f32 %v4149_v49, %v4203_v15 }
 0x13a   : > { %5729 = vst [vmem:[#allocation12_spill] sm:$0xff] %v4324_v45  ;;  %v4326_v19 = vpop.f32.mrb[34].mxu0  ;;  %v3204_v21 = vpop.eup %3203  ;;  %v4328_v50 = vadd.f32 %v2393_v62, %v2215_v22  ;;  %v2224_v61 = vmul.f32 %v3202_v53, %v4139_v24  ;;  %3223 = vpow2.f32 %v2859_v40  ;;  %v4345_v24 = vadd.f32 %v4162_v54, %v4194_v36  ;;  %v5752_v45 = vld [vmem:[#allocation3_spill] sm:$0xff] }
 0x13b   : > { %5730 = vst [vmem:[#allocation13_spill] sm:$0xff] %v4326_v19  ;;  %v4331_v37 = vpop.f32.mrb[35].mxu1  ;;  %v4333_v41 = vpop.f32.mrb[35].mxu0  ;;  %v4335_v46 = vadd.f32 %v2251_v47, %v2144_v27  ;;  %v1665_v13 = vadd.f32 1.0, %v3204_v21  ;;  %3225 = vpow2.f32 %v2861_v55  ;;  %v3765_v47 = vmov 1983009808  }
 0x13c   : > { %5731 = vst [vmem:[#allocation14_spill] sm:$0xff] %v4331_v37  ;;  %5732 = vst [vmem:[#allocation15_spill] sm:$0xff] %v4333_v41  ;;  %v3206_v35 = vpop.eup %3205  ;;  %v4341_v58 = vadd.f32 %v2381_v63, %v2224_v61  ;;  %3227 = vpow2.f32 %v2860_v31  ;;  %v4347_v38 = vunpack.c.l.s4 %v3765_v47  ;;  %v4351_v55 = vadd.f32 %v4164_v51, %v4197_v8  ;;  %v4361_v53 = vpop.f32.mrb[36].mxu1 }
 0x13d   : > { %v3208_v20 = vpop.eup %3207  ;;  %v1745_v62 = vadd.f32 1.0, %v3206_v35  ;;  %3229 = vrcp.f32 %v1665_v13  ;;  %v4355_v63 = vadd.f32 %v4169_v12, %v4200_v23  ;;  %v4359_v31 = vadd.f32 %v4171_v57, %v4203_v15  ;;  %5733 = vst [vmem:[#allocation16_spill] sm:$0xff] %v4361_v53  ;;  %v4363_v27 = vpop.f32.mrb[36].mxu0 }
 0x13e   : > { %v3210_v40 = vpop.eup %3209  ;;  %v1674_v25 = vadd.f32 1.0, %v3208_v20  ;;  %5734 = vst [vmem:[#allocation17_spill] sm:$0xff] %v4363_v27  ;;  %v2862_v61 = vmul.f32 -1.442695, %v4339_v7  ;;  %v4367_v35 = vmul.f32 -1.442695, %v4345_v24 }
 0x13f   : > { %v3212_v49 = vpop.eup %3211  ;;  %3231 = vrcp.f32 %v1745_v62  ;;  %v1754_v44 = vadd.f32 1.0, %v3210_v40  ;;  %v4369_v12 = vpop.f32.mrb[37].mxu1  ;;  %v4373_v62 = vmul.f32 -1.442695, %v4351_v55 }
 0x140   : > { %v3214_v22 = vpop.eup %3213  ;;  %3233 = vrcp.f32 %v1674_v25  ;;  %v1675_v54 = vadd.f32 1.0, %v3212_v49  ;;  %5735 = vst [vmem:[#allocation18_spill] sm:$0xff] %v4369_v12  ;;  %v4375_v40 = vpop.f32.mrb[37].mxu0 }
 0x141   : > { %v3216_v51 = vpop.eup %3215  ;;  %3235 = vrcp.f32 %v1754_v44  ;;  %v1755_v21 = vadd.f32 1.0, %v3214_v22  ;;  %5736 = vst [vmem:[#allocation19_spill] sm:$0xff] %v4375_v40  ;;  %v4377_v25 = vpop.f32.mrb[38].mxu1  ;;  %v4380_v44 = vmul.f32 -1.442695, %v4355_v63  ;;  %v4384_v22 = vadd.f32 %v4176_v60, %v4194_v36 }
 0x142   : > { %v3218_v13 = vpop.eup %3217  ;;  %3237 = vrcp.f32 %v1675_v54  ;;  %v1606_v57 = vadd.f32 1.0, %v3216_v51  ;;  %5737 = vst [vmem:[#allocation20_spill] sm:$0xff] %v4377_v25  ;;  %v4386_v54 = vpop.f32.mrb[38].mxu0  ;;  %v4391_v40 = vmul.f32 -1.442695, %v4359_v31 }
 0x143   : > { %v3220_v47 = vpop.eup %3219  ;;  %3239 = vrcp.f32 %v1755_v21  ;;  %v1608_v49 = vadd.f32 1.0, %v3218_v13  ;;  %5738 = vst [vmem:[#allocation21_spill] sm:$0xff] %v4386_v54  ;;  %v4388_v51 = vpop.f32.mrb[39].mxu1  ;;  %v4395_v21 = vadd.f32 %v4178_v30, %v4197_v8  ;;  %v4401_v54 = vadd.f32 %v4183_v32, %v4200_v23 }
 0x144   : > { %5739 = vst [vmem:[#allocation22_spill] sm:$0xff] %v4388_v51  ;;  %v3222_v20 = vpop.eup %3221  ;;  %3241 = vrcp.f32 %v1606_v57  ;;  %v1607_v12 = vadd.f32 1.0, %v3220_v47  ;;  %v4397_v13 = vpop.f32.mrb[39].mxu0  ;;  %v4405_v57 = vadd.f32 %v4185_v14, %v4203_v15  ;;  %v4409_v30 = vadd.f32 %v4205_v5, %v4194_v36 }
 0x145   : > { %5740 = vst [vmem:[#allocation23_spill] sm:$0xff] %v4397_v13  ;;  %v3224_v25 = vpop.eup %3223  ;;  %3243 = vrcp.f32 %v1608_v49  ;;  %v1609_v60 = vadd.f32 1.0, %v3222_v20  ;;  %v4413_v13 = vadd.f32 %v4207_v43, %v4197_v8  ;;  %v2879_v32 = vmul.f32 -1.442695, %v4384_v22  ;;  %v4425_v43 = vpop.f32.mrb[40].mxu1 }
 0x146   : > { %v3226_v47 = vpop.eup %3225  ;;  %3245 = vrcp.f32 %v1607_v12  ;;  %v1616_v51 = vadd.f32 1.0, %v3224_v25  ;;  %v4418_v14 = vadd.f32 %v4214_v2, %v4200_v23  ;;  %v2881_v25 = vmul.f32 -1.442695, %v4395_v21  ;;  %5744 = vst [vmem:[#allocation27_spill] sm:$0xff] %v4425_v43  ;;  %v4427_v53 = vpop.f32.mrb[40].mxu0 }
 0x147   : > { %5741 = vst [vmem:[#allocation24_spill] sm:$0xff] %v4413_v13  ;;  %v3228_v20 = vpop.eup %3227  ;;  %3247 = vrcp.f32 %v1609_v60  ;;  %v1618_v49 = vadd.f32 1.0, %v3226_v47  ;;  %v4423_v5 = vadd.f32 %v4216_v52, %v4203_v15  ;;  %5745 = vst [vmem:[#allocation28_spill] sm:$0xff] %v4427_v53  ;;  %v2880_v2 = vmul.f32 -1.442695, %v4401_v54 }
 0x148   : > { %5742 = vst [vmem:[#allocation25_spill] sm:$0xff] %v4418_v14  ;;  %v3230_v27 = vpop.eup %3229  ;;  %3249 = vrcp.f32 %v1616_v51  ;;  %v1617_v12 = vadd.f32 1.0, %v3228_v20  ;;  %v2882_v41 = vmul.f32 -1.442695, %v4405_v57  ;;  %v4432_v51 = vpop.f32.mrb[41].mxu1 }
 0x149   : > { %5743 = vst [vmem:[#allocation26_spill] sm:$0xff] %v4423_v5  ;;  %v3232_v60 = vpop.eup %3231  ;;  %v2145_v47 = vmul.f32 %v3230_v27, %v4191_v3  ;;  %3251 = vrcp.f32 %v1618_v49  ;;  %5746 = vst [vmem:[#allocation29_spill] sm:$0xff] %v4432_v51  ;;  %v4434_v20 = vpop.f32.mrb[41].mxu0  ;;  %v4438_v43 = vmul.f32 -1.442695, %v4409_v30 }
 0x14a   : > { %5747 = vst [vmem:[#allocation30_spill] sm:$0xff] %v4434_v20  ;;  %v3234_v37 = vpop.eup %3233  ;;  %v2225_v52 = vmul.f32 %v3232_v60, %v4212_v59  ;;  %3253 = vrcp.f32 %v1617_v12  ;;  %v4441_v53 = vmul.f32 -1.442695, %v4413_v13  ;;  %v4443_v3 = vpop.f32.mrb[42].mxu1  ;;  %v4450_v20 = vmul.f32 -1.442695, %v4418_v14 }
 0x14b   : > { %5748 = vst [vmem:[#allocation31_spill] sm:$0xff] %v4443_v3  ;;  %v4445_v27 = vpop.f32.mrb[42].mxu0  ;;  %v3236_v49 = vpop.eup %3235  ;;  %v2265_v19 = vadd.f32 %v4321_v33, %v2145_v47  ;;  %v2154_v51 = vmul.f32 %v3234_v37, %v4220_v0  ;;  %3255 = vpow2.f32 %v2862_v61  ;;  %v5753_v61 = vld [vmem:[#allocation4_spill] sm:$0xff] }
 0x14c   : > { %5749 = vst [vmem:[#allocation32_spill] sm:$0xff] %v4445_v27  ;;  %v4452_v59 = vpop.f32.mrb[43].mxu1  ;;  %v4454_v12 = vpop.f32.mrb[43].mxu0  ;;  %v2395_v13 = vadd.f32 %v4328_v50, %v2225_v52  ;;  %v2234_v3 = vmul.f32 %v3236_v49, %v5752_v45  ;;  %3257 = vpow2.f32 %v4367_v35  ;;  %v4460_v27 = vmul.f32 -1.442695, %v4423_v5  ;;  %v5754_v45 = vld [vmem:[#allocation6_spill] sm:$0xff] }
 0x14d   : > { %5750 = vst [vmem:[#allocation33_spill] sm:$0xff] %v4452_v59  ;;  %5751 = vst [vmem:[#allocation34_spill] sm:$0xff] %v4454_v12  ;;  %v3238_v60 = vpop.eup %3237  ;;  %v2253_v0 = vadd.f32 %v4335_v46, %v2154_v51  ;;  %3259 = vpow2.f32 %v4373_v62  ;;  %v4467_v47 = vadd.f32 %v5753_v61, %v4194_v36  ;;  %v5755_v35 = vld [vmem:[#allocation5_spill] sm:$0xff]  ;;  %v5756_v62 = vld [vmem:[#allocation7_spill] sm:$0xff] }
 0x14e   : > { %v3240_v33 = vpop.eup %3239  ;;  %v2155_v37 = vmul.f32 %v3238_v60, %v4232_v1  ;;  %v2383_v50 = vadd.f32 %v4341_v58, %v2234_v3  ;;  %3261 = vpow2.f32 %v4380_v44  ;;  %v4474_v49 = vadd.f32 %v5755_v35, %v4197_v8  ;;  %v4482_v44 = vpop.f32.mrb[44].mxu1 }
 0x14f   : > { %v3242_v12 = vpop.eup %3241  ;;  %v2235_v52 = vmul.f32 %v3240_v33, %v5754_v45  ;;  %v2254_v51 = vrot.slane %v2253_v0, 4  ;;  %3263 = vpow2.f32 %v4391_v40  ;;  %v4479_v60 = vadd.f32 %v5756_v62, %v4200_v23  ;;  %v4484_v33 = vpop.f32.mrb[44].mxu0 }
 0x150   : > { %v3244_v46 = vpop.eup %3243  ;;  %v2266_v1 = vadd.f32 %v2265_v19, %v2155_v37  ;;  %v2384_v59 = vrot.slane %v2383_v50, 4  ;;  %v2086_v3 = vmul.f32 %v3242_v12, %v4244_v18  ;;  %3265 = vpow2.f32 %v2879_v32  ;;  %5757 = vst [vmem:[#allocation3_spill] sm:$0xff] %v4484_v33  ;;  %v5758_v37 = vld [vmem:[#allocation9_spill] sm:$0xff]  ;;  %v4489_v5 = vpop.f32.mrb[45].mxu1 }
 0x151   : > { %v3246_v61 = vpop.eup %3245  ;;  %v2396_v58 = vadd.f32 %v2395_v13, %v2235_v52  ;;  %v2255_v35 = vadd.f32 %v2254_v51, %v2253_v0  ;;  %v2088_v40 = vmul.f32 %v3244_v46, %v5758_v37  ;;  %3267 = vpow2.f32 %v2881_v25  ;;  %5759 = vst [vmem:[#allocation4_spill] sm:$0xff] %v4489_v5  ;;  %v4491_v62 = vpop.f32.mrb[45].mxu0 }
 0x152   : > { %v4486_v45 = vpop.eup %3247  ;;  %v2267_v19 = vrot.slane %v2266_v1, 4  ;;  %5760 = vst [vmem:[#allocation6_spill] sm:$0xff] %v4491_v62  ;;  %v2385_v13 = vadd.f32 %v2384_v59, %v2383_v50  ;;  %v2087_v18 = vmul.f32 %v3246_v61, %v4253_v34  ;;  %3269 = vpow2.f32 %v2880_v2  ;;  %v4494_v32 = vpop.f32.mrb[46].mxu1 }
 0x153   : > { %v3250_v14 = vpop.eup %3249  ;;  %v2397_v52 = vrot.slane %v2396_v58, 4  ;;  %5761 = vst [vmem:[#allocation5_spill] sm:$0xff] %v4494_v32  ;;  %v4496_v12 = vpop.f32.mrb[46].mxu0  ;;  %v2256_v0 = vrot.slane %v2255_v35, 2  ;;  %3271 = vpow2.f32 %v2882_v41 }
 0x154   : > { %5762 = vst [vmem:[#allocation7_spill] sm:$0xff] %v4496_v12  ;;  %v3252_v33 = vpop.eup %3251  ;;  %v2268_v51 = vadd.f32 %v2267_v19, %v2266_v1  ;;  %v2096_v46 = vmul.f32 %v3250_v14, %v4288_v39  ;;  %v4499_v25 = vpop.f32.mrb[47].mxu1  ;;  %v2386_v59 = vrot.slane %v2385_v13, 2  ;;  %3273 = vpow2.f32 %v4438_v43 }
 0x155   : > { %5763 = vst [vmem:[#allocation9_spill] sm:$0xff] %v4499_v25  ;;  %v4501_v37 = vpop.f32.mrb[47].mxu0  ;;  %v3254_v62 = vpop.eup %3253  ;;  %v2398_v50 = vadd.f32 %v2397_v52, %v2396_v58  ;;  %v2098_v34 = vmul.f32 %v3252_v33, %v4298_v29  ;;  %v2257_v61 = vadd.f32 %v2256_v0, %v2255_v35 }
 0x156   : > { %5764 = vst [vmem:[#allocation35_spill] sm:$0xff] %v4501_v37  ;;  %v3256_v2 = vpop.eup %3255  ;;  %v2269_v12 = vrot.slane %v2268_v51, 2  ;;  %v4505_v32 = vadd.f32 %v2096_v46, %v2086_v3  ;;  %v2097_v1 = vmul.f32 %v3254_v62, %v4303_v48  ;;  %v2387_v41 = vadd.f32 %v2386_v59, %v2385_v13  ;;  %v4512_v0 = vpop.f32.mrb[48].mxu1 }
 0x157   : > { %v3258_v39 = vpop.eup %3257  ;;  %v2399_v14 = vrot.slane %v2398_v50, 2  ;;  %v4508_v19 = vadd.f32 %v2098_v34, %v2088_v40  ;;  %v1619_v37 = vadd.f32 1.0, %v3256_v2  ;;  %v2258_v5 = vrot.slane %v2257_v61, 1  ;;  %5765 = vst [vmem:[#allocation36_spill] sm:$0xff] %v4512_v0  ;;  %v4514_v48 = vpop.f32.mrb[48].mxu0  ;;  %v5815_v0 = vld [vmem:[#allocation20_spill] sm:$0xff] }
 0x158   : > { %v3260_v25 = vpop.eup %3259  ;;  %v2270_v58 = vadd.f32 %v2269_v12, %v2268_v51  ;;  %v4510_v52 = vadd.f32 %v2097_v1, %v2087_v18  ;;  %v1626_v29 = vadd.f32 1.0, %v3258_v39  ;;  %v2388_v33 = vrot.slane %v2387_v41, 1  ;;  %5766 = vst [vmem:[#allocation37_spill] sm:$0xff] %v4514_v48  ;;  %v4516_v59 = vpop.f32.mrb[49].mxu1 }
 0x159   : > { %v3262_v43 = vpop.eup %3261  ;;  %v2400_v35 = vadd.f32 %v2399_v14, %v2398_v50  ;;  %3275 = vrcp.f32 %v1619_v37  ;;  %v1628_v3 = vadd.f32 1.0, %v3260_v25  ;;  %v2259_v13 = vadd.f32 %v2258_v5, %v2257_v61  ;;  %5767 = vst [vmem:[#allocation38_spill] sm:$0xff] %v4516_v59  ;;  %v4518_v12 = vpop.f32.mrb[49].mxu0 }
 0x15a   : > { %v3264_v62 = vpop.eup %3263  ;;  %v2271_v40 = vrot.slane %v2270_v58, 1  ;;  %3277 = vrcp.f32 %v1626_v29  ;;  %v1627_v46 = vadd.f32 1.0, %v3262_v43  ;;  %5768 = vst [vmem:[#allocation39_spill] sm:$0xff] %v4518_v12  ;;  %v2389_v51 = vadd.f32 %v2388_v33, %v2387_v41  ;;  %v4520_v37 = vpop.f32.mrb[50].mxu1  ;;  %v5814_v12 = vld [vmem:[#allocation24_spill] sm:$0xff] }
 0x15b   : > { %v3266_v18 = vpop.eup %3265  ;;  %v2401_v34 = vrot.slane %v2400_v35, 1  ;;  %3279 = vrcp.f32 %v1628_v3  ;;  %v1629_v50 = vadd.f32 1.0, %v3264_v62  ;;  %5769 = vst [vmem:[#allocation40_spill] sm:$0xff] %v4520_v37  ;;  %v4522_v25 = vpop.f32.mrb[50].mxu0  ;;  %v4524_v1 = vmul.f32 0.015625, %v2259_v13  ;;  %v5773_v13 = vld [vmem:[#allocation8_spill] sm:$0xff] }
 0x15c   : > { %5770 = vst [vmem:[#allocation41_spill] sm:$0xff] %v4522_v25  ;;  %v3268_v2 = vpop.eup %3267  ;;  %v2272_v5 = vadd.f32 %v2271_v40, %v2270_v58  ;;  %3281 = vrcp.f32 %v1627_v46  ;;  %v1636_v61 = vadd.f32 1.0, %v3266_v18  ;;  %v4526_v39 = vpop.f32.mrb[51].mxu1  ;;  %v4530_v43 = vmul.f32 0.015625, %v2389_v51 }
 0x15d   : > { %5771 = vst [vmem:[#allocation42_spill] sm:$0xff] %v4526_v39  ;;  %v4528_v14 = vpop.f32.mrb[51].mxu0  ;;  %v3270_v29 = vpop.eup %3269  ;;  %v2402_v41 = vadd.f32 %v2401_v34, %v2400_v35  ;;  %3283 = vrcp.f32 %v1629_v50  ;;  %v1638_v33 = vadd.f32 1.0, %v3268_v2  ;;  %v4536_v58 = vadd.f32 %v5773_v13, %v4203_v15 }
 0x15e   : > { %5772 = vst [vmem:[#allocation43_spill] sm:$0xff] %v4528_v14  ;;  %v3272_v3 = vpop.eup %3271  ;;  %v4532_v62 = vmul.f32 0.015625, %v2272_v5  ;;  %3285 = vrcp.f32 %v1636_v61  ;;  %v1637_v25 = vadd.f32 1.0, %v3270_v29  ;;  %v4542_v51 = vadd.f32 %v4263_v28, %v4194_v36  ;;  %v5774_v5 = vld [vmem:[#allocation10_spill] sm:$0xff]  ;;  %v4557_v28 = vpop.f32.mrb[52].mxu1 }
 0x15f   : > { %v3274_v40 = vpop.eup %3273  ;;  %v4538_v46 = vmul.f32 0.015625, %v2402_v41  ;;  %3287 = vrcp.f32 %v1638_v33  ;;  %v1639_v18 = vadd.f32 1.0, %v3272_v3  ;;  %v2899_v50 = vmul.f32 -1.442695, %v4467_v47  ;;  %5775 = vst [vmem:[#allocation8_spill] sm:$0xff] %v4557_v28  ;;  %v4559_v41 = vpop.f32.mrb[52].mxu0 }
 0x160   : > { %3289 = vrcp.f32 %v1637_v25  ;;  %v1646_v34 = vadd.f32 1.0, %v3274_v40  ;;  %v4551_v61 = vadd.f32 %v5774_v5, %v4197_v8  ;;  %v4555_v29 = vadd.f32 %v4270_v9, %v4200_v23  ;;  %5776 = vst [vmem:[#allocation10_spill] sm:$0xff] %v4559_v41  ;;  %v5777_v25 = vld [vmem:[#allocation2_spill] sm:$0xff]  ;;  %v4570_v5 = vpop.f32.mrb[53].mxu0 }
 0x161   : > { %3291 = vrcp.f32 %v1639_v18  ;;  %v5778_v33 = vunpack.c.0.s8 %v4347_v38  ;;  %v2901_v13 = vmul.f32 -1.442695, %v4474_v49  ;;  %v2900_v40 = vmul.f32 -1.442695, %v4479_v60  ;;  %v4568_v18 = vpop.f32.mrb[53].mxu1  ;;  %5780 = vst [vmem:[#allocation44_spill] sm:$0xff] %v4570_v5 }
 0x162   : > { %3293 = vrcp.f32 %v1646_v34  ;;  %5779 = vst [vmem:[#allocation2_spill] sm:$0xff] %v4568_v18  ;;  %v2902_v2 = vmul.f32 -1.442695, %v4536_v58  ;;  %v2909_v35 = vmul.f32 -1.442695, %v4542_v51  ;;  %v4577_v38 = vadd.f32 %v4272_v56, %v4203_v15  ;;  %v4579_v34 = vpop.f32.mrb[54].mxu1 }
 0x163   : > { %v4564_v3 = vsub.s32 %v5778_v33, %v5777_v25  ;;  %v3276_v9 = vpop.eup %3275  ;;  %3295 = vpow2.f32 %v4441_v53  ;;  %5781 = vst [vmem:[#allocation45_spill] sm:$0xff] %v4579_v34  ;;  %v4581_v33 = vpop.f32.mrb[54].mxu0  ;;  %v2089_v18 = vmul.f32 %v4486_v45, %v4278_v6  ;;  %v4589_v53 = vadd.f32 %v4280_v17, %v4194_v36 }
 0x164   : > { %5782 = vst [vmem:[#allocation46_spill] sm:$0xff] %v4581_v33  ;;  %v3278_v41 = vpop.eup %3277  ;;  %v2099_v5 = vmul.f32 %v3276_v9, %v4339_v7  ;;  %3297 = vpow2.f32 %v4450_v20  ;;  %v4591_v28 = vpop.f32.mrb[55].mxu1  ;;  %v2911_v33 = vmul.f32 -1.442695, %v4551_v61  ;;  %v2910_v6 = vmul.f32 -1.442695, %v4555_v29 }
 0x165   : > { %5783 = vst [vmem:[#allocation47_spill] sm:$0xff] %v4591_v28  ;;  %v4593_v56 = vpop.f32.mrb[55].mxu0  ;;  %v3280_v14 = vpop.eup %3279  ;;  %v2106_v34 = vmul.f32 %v3278_v41, %v4345_v24  ;;  %3299 = vpow2.f32 %v4460_v27  ;;  %v4602_v17 = vadd.f32 %v4282_v4, %v4197_v8  ;;  %v2912_v27 = vmul.f32 -1.442695, %v4577_v38 }
 0x166   : > { %5784 = vst [vmem:[#allocation48_spill] sm:$0xff] %v4593_v56  ;;  %v3282_v7 = vpop.eup %3281  ;;  %v2312_v45 = vadd.f32 %v2099_v5, %v2089_v18  ;;  %v2108_v20 = vmul.f32 %v3280_v14, %v4351_v55  ;;  %3301 = vpow2.f32 %v2899_v50  ;;  %v2919_v55 = vmul.f32 -1.442695, %v4589_v53 }
 0x167   : > { %v3284_v9 = vpop.eup %3283  ;;  %v2274_v56 = vadd.f32 %v4505_v32, %v2106_v34  ;;  %v2107_v24 = vmul.f32 %v3282_v7, %v4355_v63  ;;  %3303 = vpow2.f32 %v2901_v13  ;;  %v4614_v63 = vadd.f32 %v4290_v11, %v4200_v23  ;;  %v4616_v32 = vpop.f32.mrb[56].mxu1  ;;  %v5789_v7 = vld [vmem:[#allocation11_spill] sm:$0xff] }
 0x168   : > { %v3286_v41 = vpop.eup %3285  ;;  %v2300_v28 = vadd.f32 %v4508_v19, %v2108_v20  ;;  %v2109_v18 = vmul.f32 %v3284_v9, %v4359_v31  ;;  %3305 = vpow2.f32 %v2900_v40  ;;  %5785 = vst [vmem:[#allocation49_spill] sm:$0xff] %v4616_v32  ;;  %v4618_v13 = vpop.f32.mrb[56].mxu0  ;;  %v2921_v40 = vmul.f32 -1.442695, %v4602_v17  ;;  %v5810_v32 = vld [vmem:[#allocation19_spill] sm:$0xff] }
 0x169   : > { %v3288_v14 = vpop.eup %3287  ;;  %v2287_v4 = vadd.f32 %v4510_v52, %v2107_v24  ;;  %v2116_v50 = vmul.f32 %v3286_v41, %v4384_v22  ;;  %3307 = vpow2.f32 %v2902_v2  ;;  %5786 = vst [vmem:[#allocation50_spill] sm:$0xff] %v4618_v13  ;;  %v4622_v34 = vpop.f32.mrb[57].mxu1  ;;  %v4629_v20 = vadd.f32 %v5789_v7, %v4203_v15 }
 0x16a   : > { %v3290_v19 = vpop.eup %3289  ;;  %v2313_v5 = vadd.f32 %v2312_v45, %v2109_v18  ;;  %v2118_v31 = vmul.f32 %v3288_v14, %v4395_v21  ;;  %3309 = vpow2.f32 %v2909_v35  ;;  %5787 = vst [vmem:[#allocation51_spill] sm:$0xff] %v4622_v34  ;;  %v4624_v52 = vpop.f32.mrb[57].mxu0  ;;  %v3766_v37 = vmov 0.0  }
 0x16b   : > { %5788 = vst [vmem:[#allocation52_spill] sm:$0xff] %v4624_v52  ;;  %v3292_v22 = vpop.eup %3291  ;;  %v2275_v2 = vadd.f32 %v2274_v56, %v2116_v50  ;;  %v2117_v11 = vmul.f32 %v3290_v19, %v4401_v54  ;;  %3311 = vpow2.f32 %v2911_v33  ;;  %v4631_v9 = vpop.f32.mrb[58].mxu1  ;;  %v4640_v56 = vadd.f32 %v4311_v42, %v4194_v36  ;;  %243 = vst [vmem:[%s4748_s4 + $0x10] sm:$0xf] %v3766_v37 }
 0x16c   : > { %5790 = vst [vmem:[#allocation11_spill] sm:$0xff] %v4631_v9  ;;  %v4633_v45 = vpop.f32.mrb[58].mxu0  ;;  %v3294_v21 = vpop.eup %3293  ;;  %v4635_v35 = vadd.f32 %v2300_v28, %v2118_v31  ;;  %v2119_v24 = vmul.f32 %v3292_v22, %v4405_v57  ;;  %3313 = vpow2.f32 %v2910_v6  ;;  %v4650_v28 = vmul.f32 -1.442695, %v4614_v63 }
 0x16d   : > { %5791 = vst [vmem:[#allocation53_spill] sm:$0xff] %v4633_v45  ;;  %v4642_v54 = vpop.f32.mrb[59].mxu1  ;;  %v4644_v33 = vpop.f32.mrb[59].mxu0  ;;  %v4646_v18 = vadd.f32 %v2287_v4, %v2117_v11  ;;  %v2126_v14 = vmul.f32 %v3294_v21, %v4409_v30  ;;  %3315 = vpow2.f32 %v2912_v27  ;;  %v4656_v42 = vadd.f32 %v4313_v26, %v4197_v8 }
 0x16e   : > { %5792 = vst [vmem:[#allocation54_spill] sm:$0xff] %v4642_v54  ;;  %5793 = vst [vmem:[#allocation55_spill] sm:$0xff] %v4644_v33  ;;  %v3296_v41 = vpop.eup %3295  ;;  %v4652_v57 = vadd.f32 %v2313_v5, %v2119_v24  ;;  %3317 = vpow2.f32 %v2919_v55  ;;  %v4662_v30 = vadd.f32 %v4317_v10, %v4200_v23  ;;  %v4665_v5 = vmul.f32 -1.442695, %v4629_v20  ;;  %v4678_v7 = vpop.f32.mrb[60].mxu1 }
 0x16f   : > { %v3298_v50 = vpop.eup %3297  ;;  %v1648_v6 = vadd.f32 1.0, %v3296_v41  ;;  %v4658_v31 = vadd.f32 %v2275_v2, %v2126_v14  ;;  %3319 = vpow2.f32 %v2921_v40  ;;  %v4669_v55 = vadd.f32 %v4319_v16, %v4203_v15  ;;  %v5794_v40 = vld [vmem:[#allocation12_spill] sm:$0xff]  ;;  %v4680_v21 = vpop.f32.mrb[60].mxu0  ;;  %v5797_v14 = vld [vmem:[#allocation13_spill] sm:$0xff] }
 0x170   : > { %v3300_v19 = vpop.eup %3299  ;;  %v1647_v4 = vadd.f32 1.0, %v3298_v50  ;;  %v4672_v11 = vmul.f32 -1.442695, %v4640_v56  ;;  %v4676_v10 = vadd.f32 %v5794_v40, %v4194_v36  ;;  %5795 = vst [vmem:[#allocation12_spill] sm:$0xff] %v4678_v7  ;;  %5796 = vst [vmem:[#allocation56_spill] sm:$0xff] %v4680_v21  ;;  %v4687_v50 = vadd.f32 %v5797_v14, %v4197_v8  ;;  %v5799_v40 = vld [vmem:[#allocation14_spill] sm:$0xff] }
 0x171   : > { %v3302_v27 = vpop.eup %3301  ;;  %3321 = vrcp.f32 %v1648_v6  ;;  %v1649_v22 = vadd.f32 1.0, %v3300_v19  ;;  %v4683_v16 = vmul.f32 -1.442695, %v4656_v42  ;;  %v4689_v6 = vpop.f32.mrb[61].mxu1  ;;  %v4701_v14 = vmul.f32 -1.442695, %v4669_v55 }
 0x172   : > { %v3304_v26 = vpop.eup %3303  ;;  %3323 = vrcp.f32 %v1647_v4  ;;  %v1656_v2 = vadd.f32 1.0, %v3302_v27  ;;  %5798 = vst [vmem:[#allocation13_spill] sm:$0xff] %v4689_v6  ;;  %v4692_v27 = vmul.f32 -1.442695, %v4662_v30  ;;  %v5801_v6 = vld [vmem:[#allocation15_spill] sm:$0xff] }
 0x173   : > { %v3306_v24 = vpop.eup %3305  ;;  %3325 = vrcp.f32 %v1649_v22  ;;  %v1658_v41 = vadd.f32 1.0, %v3304_v26  ;;  %v4696_v22 = vadd.f32 %v5799_v40, %v4200_v23  ;;  %v4698_v26 = vpop.f32.mrb[61].mxu0  ;;  %v4712_v45 = vmul.f32 -1.442695, %v4676_v10 }
 0x174   : > { %v3308_v19 = vpop.eup %3307  ;;  %3327 = vrcp.f32 %v1656_v2  ;;  %v1657_v4 = vadd.f32 1.0, %v3306_v24  ;;  %5800 = vst [vmem:[#allocation14_spill] sm:$0xff] %v4698_v26  ;;  %v4705_v2 = vadd.f32 %v5801_v6, %v4203_v15  ;;  %v4707_v24 = vpop.f32.mrb[62].mxu1 }
 0x175   : > { %v3310_v21 = vpop.eup %3309  ;;  %3329 = vrcp.f32 %v1658_v41  ;;  %v1659_v7 = vadd.f32 1.0, %v3308_v19  ;;  %5802 = vst [vmem:[#allocation15_spill] sm:$0xff] %v4707_v24  ;;  %v4709_v33 = vpop.f32.mrb[62].mxu0  ;;  %v5804_v41 = vld [vmem:[#allocation16_spill] sm:$0xff]  ;;  %v4722_v24 = vmul.f32 -1.442695, %v4687_v50 }
 0x176   : > { %5803 = vst [vmem:[#allocation57_spill] sm:$0xff] %v4709_v33  ;;  %v3312_v54 = vpop.eup %3311  ;;  %3331 = vrcp.f32 %v1657_v4  ;;  %v1666_v40 = vadd.f32 1.0, %v3310_v21  ;;  %v4716_v19 = vadd.f32 %v5804_v41, %v4194_v36  ;;  %v4719_v26 = vpop.f32.mrb[63].mxu1  ;;  %v5807_v33 = vld [vmem:[#allocation17_spill] sm:$0xff]  ;;  %v4729_v34 = vmul.f32 -1.442695, %v4696_v22 }
 0x177   : > { %5806 = vst [vmem:[#allocation58_spill] sm:$0xff] %v4719_v26  ;;  %v3314_v9 = vpop.eup %3313  ;;  %3333 = vrcp.f32 %v1659_v7  ;;  %v1668_v6 = vadd.f32 1.0, %v3312_v54  ;;  %v4726_v4 = vadd.f32 %v5807_v33, %v4197_v8  ;;  %v5808_v41 = vld [vmem:[#allocation18_spill] sm:$0xff]  ;;  %v4736_v7 = vmul.f32 -1.442695, %v4705_v2 }
 0x178   : > { %5805 = vst [vmem:[#allocation16_spill] sm:$0xff] %v4716_v19  ;;  %v3316_v21 = vpop.eup %3315  ;;  %3335 = vrcp.f32 %v1666_v40  ;;  %v1667_v52 = vadd.f32 1.0, %v3314_v9  ;;  %v4733_v13 = vadd.f32 %v5808_v41, %v4200_v23  ;;  %v4740_v33 = vadd.f32 %v5810_v32, %v4203_v15 }
 0x179   : > { %v3318_v26 = vpop.eup %3317  ;;  %3337 = vrcp.f32 %v1668_v6  ;;  %v1669_v54 = vadd.f32 1.0, %v3316_v21  ;;  %v4743_v40 = vmul.f32 -1.442695, %v4716_v19  ;;  %v4750_v6 = vpop.f32.mrb[63].mxu0  ;;  %v5812_v32 = vcombine.low %v4524_v1, %v4532_v62 }
 0x17a   : > { %5809 = vst [vmem:[#allocation17_spill] sm:$0xff] %v4733_v13  ;;  %v3320_v39 = vpop.eup %3319  ;;  %3339 = vrcp.f32 %v1667_v52  ;;  %v1676_v9 = vadd.f32 1.0, %v3318_v26  ;;  %5811 = vst [vmem:[#allocation18_spill] sm:$0xff] %v4750_v6  ;;  %v4759_v26 = vmul.f32 -1.442695, %v4726_v4  ;;  %v4768_v19 = vadd.f32 %v5815_v0, %v4194_v36  ;;  %v5820_v0 = vld [vmem:[#allocation21_spill] sm:$0xff] }
 0x17b   : > { %v3322_v21 = vpop.eup %3321  ;;  %v4756_v41 = vrot.slane %v5812_v32, %v4564_v3  ;;  %3341 = vrcp.f32 %v1669_v54  ;;  %v1678_v52 = vadd.f32 1.0, %v3320_v39  ;;  %v4764_v6 = vmul.f32 -1.442695, %v4733_v13  ;;  %v5818_v54 = vld [vmem:[#allocation25_spill] sm:$0xff]  ;;  %v5819_v32 = vld [vmem:[#allocation26_spill] sm:$0xff] }
 0x17c   : > { %v3324_v59 = vpop.eup %3323  ;;  %v2128_v48 = vmul.f32 %v3322_v21, %v5814_v12  ;;  %3343 = vrcp.f32 %v1676_v9  ;;  %v5816_v39 = vcombine.low %v4530_v43, %v4538_v46  ;;  %v4778_v12 = vmul.f32 -1.442695, %v4740_v33 }
 0x17d   : > { %5813 = vst [vmem:[#allocation19_spill] sm:$0xff] %v4756_v41  ;;  %v3326_v1 = vpop.eup %3325  ;;  %v2127_v37 = vmul.f32 %v3324_v59, %v5818_v54  ;;  %3345 = vrcp.f32 %v1678_v52  ;;  %v4785_v13 = vadd.f32 %v5820_v0, %v4197_v8  ;;  %v5821_v52 = vld [vmem:[#allocation22_spill] sm:$0xff] }
 0x17e   : > { %v4774_v62 = vrot.slane %v5816_v39, %v4564_v3  ;;  %v3328_v9 = vpop.eup %3327  ;;  %v2302_v21 = vadd.f32 %v4635_v35, %v2128_v48  ;;  %v2129_v41 = vmul.f32 %v3326_v1, %v5819_v32  ;;  %3347 = vpow2.f32 %v4650_v28  ;;  %v5822_v1 = vld [vmem:[#allocation23_spill] sm:$0xff] }
 0x17f   : > { %v3330_v43 = vpop.eup %3329  ;;  %v2289_v46 = vadd.f32 %v4646_v18, %v2127_v37  ;;  %v2136_v59 = vmul.f32 %v3328_v9, %v4467_v47  ;;  %3349 = vpow2.f32 %v4665_v5  ;;  %v4792_v39 = vadd.f32 %v5821_v52, %v4200_v23  ;;  %v4801_v18 = vpop.f32.mrb[64].mxu1 }
 0x180   : > { %5817 = vst [vmem:[#allocation24_spill] sm:$0xff] %v4774_v62  ;;  %v3332_v48 = vpop.eup %3331  ;;  %v2315_v35 = vadd.f32 %v4652_v57, %v2129_v41  ;;  %v2138_v28 = vmul.f32 %v3330_v43, %v4474_v49  ;;  %3351 = vpow2.f32 %v4672_v11  ;;  %v4799_v54 = vadd.f32 %v5822_v1, %v4203_v15  ;;  %5823 = vst [vmem:[#allocation20_spill] sm:$0xff] %v4801_v18  ;;  %v4803_v47 = vpop.f32.mrb[64].mxu0 }
 0x181   : > { %5824 = vst [vmem:[#allocation25_spill] sm:$0xff] %v4803_v47  ;;  %v3334_v5 = vpop.eup %3333  ;;  %v2277_v37 = vadd.f32 %v4658_v31, %v2136_v59  ;;  %v2137_v9 = vmul.f32 %v3332_v48, %v4479_v60  ;;  %3353 = vpow2.f32 %v4683_v16  ;;  %v4809_v57 = vmul.f32 -1.442695, %v4768_v19  ;;  %v4811_v49 = vpop.f32.mrb[65].mxu1 }
 0x182   : > { %5825 = vst [vmem:[#allocation26_spill] sm:$0xff] %v4811_v49  ;;  %v4813_v11 = vpop.f32.mrb[65].mxu0  ;;  %v3336_v41 = vpop.eup %3335  ;;  %v2303_v32 = vadd.f32 %v2302_v21, %v2138_v28  ;;  %v2139_v0 = vmul.f32 %v3334_v5, %v4536_v58  ;;  %3355 = vpow2.f32 %v4692_v27  ;;  %v4818_v43 = vmul.f32 -1.442695, %v4785_v13 }
 0x183   : > { %5826 = vst [vmem:[#allocation21_spill] sm:$0xff] %v4813_v11  ;;  %v4820_v31 = vpop.f32.mrb[66].mxu1  ;;  %v4822_v60 = vpop.f32.mrb[66].mxu0  ;;  %v2290_v59 = vadd.f32 %v2289_v46, %v2137_v9  ;;  %v2146_v52 = vmul.f32 %v3336_v41, %v4542_v51  ;;  %3357 = vpow2.f32 %v4701_v14  ;;  %v4827_v48 = vmul.f32 -1.442695, %v4792_v39  ;;  %v5831_v9 = vld [vmem:[#allocation27_spill] sm:$0xff] }
 0x184   : > { %5827 = vst [vmem:[#allocation22_spill] sm:$0xff] %v4820_v31  ;;  %5828 = vst [vmem:[#allocation23_spill] sm:$0xff] %v4822_v60  ;;  %v3338_v16 = vpop.eup %3337  ;;  %v4829_v21 = vpop.f32.mrb[67].mxu1  ;;  %v2316_v28 = vadd.f32 %v2315_v35, %v2139_v0  ;;  %3359 = vpow2.f32 %v4712_v45  ;;  %v4836_v5 = vmul.f32 -1.442695, %v4799_v54  ;;  %v4842_v41 = vadd.f32 %v5831_v9, %v4194_v36 }
 0x185   : > { %5829 = vst [vmem:[#allocation59_spill] sm:$0xff] %v4829_v21  ;;  %v4831_v58 = vpop.f32.mrb[67].mxu0  ;;  %v3340_v27 = vpop.eup %3339  ;;  %v2148_v1 = vmul.f32 %v3338_v16, %v4551_v61  ;;  %v2278_v51 = vadd.f32 %v2277_v37, %v2146_v52  ;;  %3361 = vpow2.f32 %v4722_v24  ;;  %v5832_v61 = vld [vmem:[#allocation28_spill] sm:$0xff]  ;;  %v5833_v24 = vld [vmem:[#allocation29_spill] sm:$0xff] }
 0x186   : > { %5830 = vst [vmem:[#allocation60_spill] sm:$0xff] %v4831_v58  ;;  %v3342_v46 = vpop.eup %3341  ;;  %v2147_v14 = vmul.f32 %v3340_v27, %v4555_v29  ;;  %3363 = vpow2.f32 %v4729_v34  ;;  %v4848_v45 = vadd.f32 %v5832_v61, %v4197_v8  ;;  %v4856_v16 = vadd.f32 %v5833_v24, %v4200_v23  ;;  %v5834_v34 = vld [vmem:[#allocation30_spill] sm:$0xff] }
 0x187   : > { %v3344_v58 = vpop.eup %3343  ;;  %v2304_v21 = vadd.f32 %v2303_v32, %v2148_v1  ;;  %v2149_v35 = vmul.f32 %v3342_v46, %v4577_v38  ;;  %3365 = vpow2.f32 %v4736_v7  ;;  %v4864_v27 = vadd.f32 %v5834_v34, %v4203_v15 }
 0x188   : > { %v3346_v0 = vpop.eup %3345  ;;  %v4850_v37 = vadd.f32 %v2290_v59, %v2147_v14  ;;  %v2156_v29 = vmul.f32 %v3344_v58, %v4589_v53  ;;  %3367 = vpow2.f32 %v4743_v40  ;;  %v4866_v59 = vpop.f32.mrb[68].mxu1 }
 0x189   : > { %v3348_v32 = vpop.eup %3347  ;;  %v4858_v52 = vadd.f32 %v2316_v28, %v2149_v35  ;;  %v2158_v38 = vmul.f32 %v3346_v0, %v4602_v17  ;;  %5835 = vst [vmem:[#allocation27_spill] sm:$0xff] %v4866_v59  ;;  %v4868_v53 = vpop.f32.mrb[68].mxu0  ;;  %3369 = vpow2.f32 %v4759_v26  ;;  %v4872_v28 = vmul.f32 -1.442695, %v4842_v41 }
 0x18a   : > { %5836 = vst [vmem:[#allocation28_spill] sm:$0xff] %v4868_v53  ;;  %v3350_v7 = vpop.eup %3349  ;;  %v2279_v58 = vadd.f32 %v2278_v51, %v2156_v29  ;;  %v1677_v1 = vadd.f32 1.0, %v3348_v32  ;;  %v4874_v46 = vpop.f32.mrb[69].mxu1  ;;  %3371 = vpow2.f32 %v4764_v6  ;;  %v4880_v35 = vmul.f32 -1.442695, %v4848_v45  ;;  %v5840_v53 = vld [vmem:[#allocation32_spill] sm:$0xff] }
 0x18b   : > { %5837 = vst [vmem:[#allocation29_spill] sm:$0xff] %v4874_v46  ;;  %v4876_v17 = vpop.f32.mrb[69].mxu0  ;;  %v3352_v40 = vpop.eup %3351  ;;  %v2305_v14 = vadd.f32 %v2304_v21, %v2158_v38  ;;  %v1679_v9 = vadd.f32 1.0, %v3350_v7  ;;  %v4883_v26 = vmul.f32 -1.442695, %v4856_v16  ;;  %v5839_v7 = vld [vmem:[#allocation31_spill] sm:$0xff]  ;;  %v4894_v59 = vadd.f32 %v5840_v53, %v4197_v8 }
 0x18c   : > { %5838 = vst [vmem:[#allocation30_spill] sm:$0xff] %v4876_v17  ;;  %v3354_v61 = vpop.eup %3353  ;;  %v2280_v51 = vrot.slane %v2279_v58, 4  ;;  %3373 = vrcp.f32 %v1677_v1  ;;  %v1686_v0 = vadd.f32 1.0, %v3352_v40  ;;  %v4886_v34 = vmul.f32 -1.442695, %v4864_v27 }
 0x18d   : > { %v3356_v29 = vpop.eup %3355  ;;  %v2306_v24 = vrot.slane %v2305_v14, 4  ;;  %3375 = vrcp.f32 %v1679_v9  ;;  %v1688_v32 = vadd.f32 1.0, %v3354_v61  ;;  %v4890_v17 = vadd.f32 %v5839_v7, %v4194_v36 }
 0x18e   : > { %v3358_v21 = vpop.eup %3357  ;;  %v2281_v38 = vadd.f32 %v2280_v51, %v2279_v58  ;;  %3377 = vrcp.f32 %v1686_v0  ;;  %v1687_v6 = vadd.f32 1.0, %v3356_v29  ;;  %v5841_v58 = vld [vmem:[#allocation33_spill] sm:$0xff]  ;;  %v4908_v11 = vmul.f32 -1.442695, %v4894_v59 }
 0x18f   : > { %v3360_v1 = vpop.eup %3359  ;;  %v2307_v40 = vadd.f32 %v2306_v24, %v2305_v14  ;;  %3379 = vrcp.f32 %v1688_v32  ;;  %v1689_v46 = vadd.f32 1.0, %v3358_v21  ;;  %v4898_v51 = vadd.f32 %v5841_v58, %v4200_v23  ;;  %v5843_v14 = vld [vmem:[#allocation34_spill] sm:$0xff] }
 0x190   : > { %v3362_v9 = vpop.eup %3361  ;;  %v2282_v61 = vrot.slane %v2281_v38, 2  ;;  %3381 = vrcp.f32 %v1687_v6  ;;  %v1696_v60 = vadd.f32 1.0, %v3360_v1  ;;  %v4902_v24 = vadd.f32 %v5843_v14, %v4203_v15 }
 0x191   : > { %5842 = vst [vmem:[#allocation31_spill] sm:$0xff] %v4898_v51  ;;  %v3364_v0 = vpop.eup %3363  ;;  %v2308_v29 = vrot.slane %v2307_v40, 2  ;;  %3383 = vrcp.f32 %v1689_v46  ;;  %v1698_v7 = vadd.f32 1.0, %v3362_v9  ;;  %v4905_v31 = vmul.f32 -1.442695, %v4890_v17 }
 0x192   : > { %v3366_v32 = vpop.eup %3365  ;;  %v2283_v21 = vadd.f32 %v2282_v61, %v2281_v38  ;;  %3385 = vrcp.f32 %v1696_v60  ;;  %v1697_v53 = vadd.f32 1.0, %v3364_v0  ;;  %v4912_v14 = vadd.f32 %v4482_v44, %v4194_v36  ;;  %v5844_v61 = vld [vmem:[#allocation3_spill] sm:$0xff]  ;;  %v5847_v44 = vld [vmem:[#allocation6_spill] sm:$0xff] }
 0x193   : > { %v3368_v6 = vpop.eup %3367  ;;  %v2309_v1 = vadd.f32 %v2308_v29, %v2307_v40  ;;  %3387 = vrcp.f32 %v1698_v7  ;;  %v1699_v58 = vadd.f32 1.0, %v3366_v32  ;;  %v4916_v0 = vadd.f32 %v5844_v61, %v4197_v8  ;;  %v5845_v40 = vld [vmem:[#allocation4_spill] sm:$0xff] }
 0x194   : > { %v3370_v46 = vpop.eup %3369  ;;  %v2284_v9 = vrot.slane %v2283_v21, 1  ;;  %3389 = vrcp.f32 %v1697_v53  ;;  %v1706_v49 = vadd.f32 1.0, %v3368_v6  ;;  %v4920_v29 = vadd.f32 %v5845_v40, %v4200_v23 }
 0x195   : > { %v3372_v60 = vpop.eup %3371  ;;  %3391 = vrcp.f32 %v1699_v58  ;;  %v1708_v38 = vadd.f32 1.0, %v3370_v46  ;;  %v4923_v53 = vmul.f32 -1.442695, %v4898_v51  ;;  %v4927_v6 = vadd.f32 %v5847_v44, %v4203_v15  ;;  %v4929_v58 = vpop.f32.mrb[70].mxu1 }
 0x196   : > { %5846 = vst [vmem:[#allocation32_spill] sm:$0xff] %v4920_v29  ;;  %v3374_v7 = vpop.eup %3373  ;;  %3393 = vrcp.f32 %v1706_v49  ;;  %v1707_v32 = vadd.f32 1.0, %v3372_v60  ;;  %5849 = vst [vmem:[#allocation34_spill] sm:$0xff] %v4929_v58  ;;  %v4931_v46 = vpop.f32.mrb[70].mxu0  ;;  %v2285_v47 = vadd.f32 %v2284_v9, %v2283_v21  ;;  %v2310_v18 = vrot.slane %v2309_v1, 1 }
 0x197   : > { %5848 = vst [vmem:[#allocation33_spill] sm:$0xff] %v4927_v6  ;;  %5850 = vst [vmem:[#allocation3_spill] sm:$0xff] %v4931_v46  ;;  %v3376_v61 = vpop.eup %3375  ;;  %v2157_v40 = vmul.f32 %v3374_v7, %v4614_v63  ;;  %3395 = vrcp.f32 %v1708_v38  ;;  %v4936_v60 = vmul.f32 -1.442695, %v4902_v24  ;;  %v4939_v44 = vmul.f32 -1.442695, %v4912_v14 }
 0x198   : > { %v3378_v62 = vpop.eup %3377  ;;  %v2159_v49 = vmul.f32 %v3376_v61, %v4629_v20  ;;  %3397 = vrcp.f32 %v1707_v32  ;;  %v4941_v51 = vpop.f32.mrb[71].mxu1  ;;  %v4948_v63 = vmul.f32 -1.442695, %v4916_v0  ;;  %v4951_v20 = vmul.f32 -1.442695, %v4920_v29 }
 0x199   : > { %5851 = vst [vmem:[#allocation4_spill] sm:$0xff] %v4941_v51  ;;  %v4943_v58 = vpop.f32.mrb[71].mxu0  ;;  %v3380_v46 = vpop.eup %3379  ;;  %v2292_v21 = vadd.f32 %v4850_v37, %v2157_v40  ;;  %3399 = vpow2.f32 %v4778_v12  ;;  %v4956_v7 = vmul.f32 -1.442695, %v4927_v6  ;;  %v4959_v37 = vmul.f32 0.015625, %v2285_v47 }
 0x19a   : > { %5852 = vst [vmem:[#allocation6_spill] sm:$0xff] %v4943_v58  ;;  %v3382_v9 = vpop.eup %3381  ;;  %v2318_v38 = vadd.f32 %v4858_v52, %v2159_v49  ;;  %3401 = vpow2.f32 %v4809_v57  ;;  %v2311_v12 = vadd.f32 %v2310_v18, %v2309_v1  ;;  %v2166_v29 = vmul.f32 %v3378_v62, %v4640_v56  ;;  %v4971_v56 = vpop.f32.mrb[72].mxu1 }
 0x19b   : > { %v3384_v61 = vpop.eup %3383  ;;  %v2293_v40 = vrot.slane %v2292_v21, 4  ;;  %3403 = vpow2.f32 %v4818_v43  ;;  %v2168_v52 = vmul.f32 %v3380_v46, %v4656_v42  ;;  %v2167_v6 = vmul.f32 %v3382_v9, %v4662_v30  ;;  %5853 = vst [vmem:[#allocation61_spill] sm:$0xff] %v4971_v56  ;;  %v4973_v42 = vpop.f32.mrb[72].mxu0 }
 0x19c   : > { %v3386_v58 = vpop.eup %3385  ;;  %v2319_v51 = vrot.slane %v2318_v38, 4  ;;  %3405 = vpow2.f32 %v4827_v48  ;;  %v2169_v43 = vmul.f32 %v3384_v61, %v4669_v55  ;;  %5854 = vst [vmem:[#allocation62_spill] sm:$0xff] %v4973_v42 }
 0x19d   : > { %v3388_v57 = vpop.eup %3387  ;;  %v2294_v49 = vadd.f32 %v2293_v40, %v2292_v21  ;;  %v2176_v32 = vmul.f32 %v3386_v58, %v4676_v10  ;;  %3407 = vpow2.f32 %v4836_v5  ;;  %v4977_v10 = vpop.f32.mrb[73].mxu1 }
 0x19e   : > { %v3390_v18 = vpop.eup %3389  ;;  %v2320_v47 = vadd.f32 %v2319_v51, %v2318_v38  ;;  %v2178_v1 = vmul.f32 %v3388_v57, %v4687_v50  ;;  %3409 = vpow2.f32 %v4872_v28  ;;  %5855 = vst [vmem:[#allocation63_spill] sm:$0xff] %v4977_v10  ;;  %v4979_v5 = vpop.f32.mrb[73].mxu0  ;;  %v5859_v38 = vld [vmem:[#allocation16_spill] sm:$0xff] }
 0x19f   : > { %v3392_v62 = vpop.eup %3391  ;;  %v2295_v48 = vrot.slane %v2294_v49, 2  ;;  %v2403_v46 = vadd.f32 %v2176_v32, %v2166_v29  ;;  %v2177_v30 = vmul.f32 %v3390_v18, %v4696_v22  ;;  %3411 = vpow2.f32 %v4880_v35  ;;  %5856 = vst [vmem:[#allocation64_spill] sm:$0xff] %v4979_v5  ;;  %v4983_v58 = vpop.f32.mrb[74].mxu1 }
 0x1a0   : > { %v3394_v55 = vpop.eup %3393  ;;  %v2321_v51 = vrot.slane %v2320_v47, 2  ;;  %v2429_v50 = vadd.f32 %v2178_v1, %v2168_v52  ;;  %v2179_v28 = vmul.f32 %v3392_v62, %v4705_v2  ;;  %3413 = vpow2.f32 %v4883_v26  ;;  %5857 = vst [vmem:[#allocation65_spill] sm:$0xff] %v4983_v58  ;;  %v4985_v21 = vpop.f32.mrb[74].mxu0  ;;  %v5908_v58 = vld [vmem:[#allocation53_spill] sm:$0xff] }
 0x1a1   : > { %5858 = vst [vmem:[#allocation66_spill] sm:$0xff] %v4985_v21  ;;  %v3396_v29 = vpop.eup %3395  ;;  %v2296_v9 = vadd.f32 %v2295_v48, %v2294_v49  ;;  %v2416_v22 = vadd.f32 %v2177_v30, %v2167_v6  ;;  %v2186_v35 = vmul.f32 %v3394_v55, %v5859_v38  ;;  %3415 = vpow2.f32 %v4886_v34  ;;  %v4989_v32 = vpop.f32.mrb[75].mxu1  ;;  %v5862_v6 = vld [vmem:[#allocation17_spill] sm:$0xff]  ;;  %v291_v38 = vld [vmem:[%s3999_s27 + $0x8] sm:$0x3] }
 0x1a2   : > { %5860 = vst [vmem:[#allocation16_spill] sm:$0xff] %v4989_v32  ;;  %v4991_v61 = vpop.f32.mrb[75].mxu0  ;;  %v3398_v40 = vpop.eup %3397  ;;  %v2322_v52 = vadd.f32 %v2321_v51, %v2320_v47  ;;  %v4993_v2 = vadd.f32 %v2179_v28, %v2169_v43  ;;  %v2188_v26 = vmul.f32 %v3396_v29, %v4726_v4  ;;  %3417 = vpow2.f32 %v4905_v31 }
 0x1a3   : > { %5861 = vst [vmem:[#allocation67_spill] sm:$0xff] %v4991_v61  ;;  %v3400_v57 = vpop.eup %3399  ;;  %v2297_v18 = vrot.slane %v2296_v9, 1  ;;  %v4997_v49 = vadd.f32 %v2403_v46, %v2186_v35  ;;  %v2187_v1 = vmul.f32 %v3398_v40, %v5862_v6  ;;  %3419 = vpow2.f32 %v4908_v11  ;;  %v5009_v28 = vpop.f32.mrb[76].mxu1  ;;  %v5867_v40 = vld [vmem:[#allocation7_spill] sm:$0xff]  ;;  %v3739_v6 = vld [vmem:[%s3999_s27] sm:$0xff] }
 0x1a4   : > { %v3402_v34 = vpop.eup %3401  ;;  %v2323_v62 = vrot.slane %v2322_v52, 1  ;;  %v5001_v48 = vadd.f32 %v2429_v50, %v2188_v26  ;;  %v1709_v30 = vadd.f32 1.0, %v3400_v57  ;;  %3421 = vpow2.f32 %v4923_v53  ;;  %5864 = vst [vmem:[#allocation68_spill] sm:$0xff] %v5009_v28 }
 0x1a5   : > { %v3404_v47 = vpop.eup %3403  ;;  %v2298_v4 = vadd.f32 %v2297_v18, %v2296_v9  ;;  %v5004_v43 = vadd.f32 %v2416_v22, %v2187_v1  ;;  %v1716_v31 = vadd.f32 1.0, %v3402_v34  ;;  %3423 = vpow2.f32 %v4936_v60  ;;  %v5865_v9 = vld [vmem:[#allocation5_spill] sm:$0xff] }
 0x1a6   : > { %v3406_v46 = vpop.eup %3405  ;;  %v5007_v55 = vmul.f32 0.015625, %v2311_v12  ;;  %v2324_v51 = vadd.f32 %v2323_v62, %v2322_v52  ;;  %3425 = vrcp.f32 %v1709_v30  ;;  %v1718_v11 = vadd.f32 1.0, %v3404_v47 }
 0x1a7   : > { %v3408_v50 = vpop.eup %3407  ;;  %v2510_v29 = vmul.f32 0.015625, %v2298_v4  ;;  %3427 = vrcp.f32 %v1716_v31  ;;  %v1717_v53 = vadd.f32 1.0, %v3406_v46  ;;  %v5013_v22 = vadd.f32 %v5865_v9, %v4194_v36 }
 0x1a8   : > { %5863 = vst [vmem:[#allocation17_spill] sm:$0xff] %v5007_v55  ;;  %v3410_v35 = vpop.eup %3409  ;;  %v5016_v60 = vmul.f32 0.015625, %v2324_v51  ;;  %3429 = vrcp.f32 %v1718_v11  ;;  %v1719_v12 = vadd.f32 1.0, %v3408_v50  ;;  %v5020_v52 = vadd.f32 %v5867_v40, %v4197_v8  ;;  %v5870_v50 = vld [vmem:[#allocation9_spill] sm:$0xff] }
 0x1a9   : > { %v3412_v26 = vpop.eup %3411  ;;  %v2548_v57 = vcombine.low %v4959_v37, %v2510_v29  ;;  %3431 = vrcp.f32 %v1717_v53  ;;  %v1726_v18 = vadd.f32 1.0, %v3410_v35  ;;  %v5868_v1 = vsub.s32 6, %v5777_v25  ;;  %v5871_v53 = vld [vmem:[#allocation35_spill] sm:$0xff] }
 0x1aa   : > { %5866 = vst [vmem:[#allocation5_spill] sm:$0xff] %v5016_v60  ;;  %v3414_v34 = vpop.eup %3413  ;;  %3433 = vrcp.f32 %v1719_v12  ;;  %v1728_v30 = vadd.f32 1.0, %v3412_v26  ;;  %v5869_v47 = vsub.s32 0, %v5777_v25  ;;  %v324_v46 = vsub.s32 7, %v5777_v25  ;;  %v5872_v12 = vld [vmem:[#allocation19_spill] sm:$0xff] }
 0x1ab   : > { %v5026_v36 = vrot.slane %v3739_v6, %v5868_v1  ;;  %v3416_v4 = vpop.eup %3415  ;;  %v5035_v37 = vrot.slane %v2548_v57, %v4564_v3  ;;  %3435 = vrcp.f32 %v1726_v18  ;;  %v1727_v31 = vadd.f32 1.0, %v3414_v34  ;;  %v5873_v57 = vld [vmem:[#allocation36_spill] sm:$0xff] }
 0x1ac   : > { %v5032_v8 = vrot.slane %v291_v38, %v5869_v47  ;;  %v3418_v51 = vpop.eup %3417  ;;  %3437 = vrcp.f32 %v1728_v30  ;;  %v1729_v11 = vadd.f32 1.0, %v3416_v4  ;;  %v5040_v29 = vadd.f32 %v5870_v50, %v4200_v23  ;;  %v5874_v23 = vld [vmem:[#allocation37_spill] sm:$0xff] }
 0x1ad   : > { %v5044_v9 = vadd.f32 %v5871_v53, %v4203_v15  ;;  %v3420_v35 = vpop.eup %3419  ;;  %3439 = vrcp.f32 %v1727_v31  ;;  %v1736_v26 = vadd.f32 1.0, %v3418_v51  ;;  %v5050_v18 = vadd.f32 %v5873_v57, %v5026_v36  ;;  %v5063_v53 = vpop.f32.mrb[76].mxu0 }
 0x1ae   : > { %v3422_v1 = vpop.eup %3421  ;;  %3441 = vrcp.f32 %v1729_v11  ;;  %v1738_v34 = vadd.f32 1.0, %v3420_v35  ;;  %v5054_v30 = vadd.f32 %v5874_v23, %v5032_v8  ;;  %v5875_v15 = vsub.s32 1, %v5777_v25  ;;  %5876 = vst [vmem:[#allocation7_spill] sm:$0xff] %v5063_v53 }
 0x1af   : > { %v3424_v4 = vpop.eup %3423  ;;  %3443 = vrcp.f32 %v1736_v26  ;;  %v1737_v50 = vadd.f32 1.0, %v3422_v1  ;;  %v2999_v31 = vmul.f32 -1.442695, %v5013_v22  ;;  %v5061_v51 = vrot.slane %v3739_v6, %v324_v46  ;;  %v5070_v1 = vpop.f32.mrb[77].mxu1 }
 0x1b0   : > { %v5058_v47 = vrot.slane %v291_v38, %v5875_v15  ;;  %v3426_v57 = vpop.eup %3425  ;;  %3445 = vrcp.f32 %v1738_v34  ;;  %v1739_v11 = vadd.f32 1.0, %v3424_v4  ;;  %v3001_v35 = vmul.f32 -1.442695, %v5020_v52  ;;  %5877 = vst [vmem:[#allocation9_spill] sm:$0xff] %v5070_v1  ;;  %v5072_v6 = vpop.f32.mrb[77].mxu0  ;;  %v5879_v4 = vld [vmem:[#allocation39_spill] sm:$0xff] }
 0x1b1   : > { %v3000_v23 = vmul.f32 -1.442695, %v5040_v29  ;;  %v3428_v62 = vpop.eup %3427  ;;  %v2189_v25 = vmul.f32 %v3426_v57, %v4740_v33  ;;  %3447 = vrcp.f32 %v1737_v50  ;;  %v3002_v38 = vmul.f32 -1.442695, %v5044_v9  ;;  %5878 = vst [vmem:[#allocation35_spill] sm:$0xff] %v5072_v6  ;;  %v5880_v1 = vld [vmem:[#allocation38_spill] sm:$0xff] }
 0x1b2   : > { %v2853_v26 = vmul.f32 -1.442695, %v5050_v18  ;;  %v3430_v46 = vpop.eup %3429  ;;  %v2196_v34 = vmul.f32 %v3428_v62, %v4768_v19  ;;  %3449 = vrcp.f32 %v1739_v11  ;;  %v2855_v15 = vmul.f32 -1.442695, %v5054_v30  ;;  %v5087_v53 = vpop.f32.mrb[78].mxu1 }
 0x1b3   : > { %v5078_v40 = vadd.f32 %v5879_v4, %v5058_v47  ;;  %v3432_v33 = vpop.eup %3431  ;;  %v2443_v50 = vadd.f32 %v4993_v2, %v2189_v25  ;;  %v2198_v57 = vmul.f32 %v3430_v46, %v4785_v13  ;;  %3451 = vpow2.f32 %v4939_v44  ;;  %5881 = vst [vmem:[#allocation19_spill] sm:$0xff] %v5087_v53  ;;  %v5089_v19 = vpop.f32.mrb[78].mxu0  ;;  %v5883_v2 = vld [vmem:[#allocation40_spill] sm:$0xff]  ;;  %v5884_v46 = vld [vmem:[#allocation41_spill] sm:$0xff] }
 0x1b4   : > { %v5085_v6 = vadd.f32 %v5880_v1, %v5061_v51  ;;  %5882 = vst [vmem:[#allocation36_spill] sm:$0xff] %v5089_v19  ;;  %v3434_v62 = vpop.eup %3433  ;;  %v2405_v11 = vadd.f32 %v4997_v49, %v2196_v34  ;;  %v2197_v4 = vmul.f32 %v3432_v33, %v4792_v39  ;;  %3453 = vpow2.f32 %v4948_v63  ;;  %v5105_v49 = vpop.f32.mrb[79].mxu1 }
 0x1b5   : > { %v5096_v13 = vadd.f32 %v5883_v2, %v5026_v36  ;;  %v3436_v44 = vpop.eup %3435  ;;  %v2431_v25 = vadd.f32 %v5001_v48, %v2198_v57  ;;  %v2199_v1 = vmul.f32 %v3434_v62, %v4799_v54  ;;  %3455 = vpow2.f32 %v4951_v20  ;;  %5885 = vst [vmem:[#allocation37_spill] sm:$0xff] %v5105_v49  ;;  %v5107_v39 = vpop.f32.mrb[79].mxu0 }
 0x1b6   : > { %v5103_v19 = vadd.f32 %v5884_v46, %v5032_v8  ;;  %5886 = vst [vmem:[#allocation39_spill] sm:$0xff] %v5107_v39  ;;  %v3438_v63 = vpop.eup %3437  ;;  %v2418_v34 = vadd.f32 %v5004_v43, %v2197_v4  ;;  %v2206_v33 = vmul.f32 %v3436_v44, %v4842_v41  ;;  %3457 = vpow2.f32 %v4956_v7 }
 0x1b7   : > { %v2856_v48 = vmul.f32 -1.442695, %v5078_v40  ;;  %v3440_v54 = vpop.eup %3439  ;;  %v2444_v57 = vadd.f32 %v2443_v50, %v2199_v1  ;;  %v2208_v20 = vmul.f32 %v3438_v63, %v4848_v45  ;;  %3459 = vpow2.f32 %v2999_v31 }
 0x1b8   : > { %v2854_v62 = vmul.f32 -1.442695, %v5085_v6  ;;  %v3442_v2 = vpop.eup %3441  ;;  %v2406_v46 = vadd.f32 %v2405_v11, %v2206_v33  ;;  %v2207_v39 = vmul.f32 %v3440_v54, %v4856_v16  ;;  %3461 = vpow2.f32 %v3001_v35  ;;  %v5887_v11 = vld [vmem:[#allocation42_spill] sm:$0xff] }
 0x1b9   : > { %v2863_v43 = vmul.f32 -1.442695, %v5096_v13  ;;  %v3444_v4 = vpop.eup %3443  ;;  %v2432_v41 = vadd.f32 %v2431_v25, %v2208_v20  ;;  %v2209_v7 = vmul.f32 %v3442_v2, %v4864_v27  ;;  %3463 = vpow2.f32 %v3000_v23  ;;  %v5888_v27 = vld [vmem:[#allocation43_spill] sm:$0xff] }
 0x1ba   : > { %v5119_v44 = vmul.f32 -1.442695, %v5103_v19  ;;  %v3446_v50 = vpop.eup %3445  ;;  %v2419_v45 = vadd.f32 %v2418_v34, %v2207_v39  ;;  %v2216_v31 = vmul.f32 %v3444_v4, %v4890_v17  ;;  %3465 = vpow2.f32 %v3002_v38  ;;  %v5889_v39 = vld [vmem:[#allocation31_spill] sm:$0xff]  ;;  %v5890_v17 = vld [vmem:[#allocation8_spill] sm:$0xff] }
 0x1bb   : > { %v5124_v1 = vadd.f32 %v5887_v11, %v5061_v51  ;;  %v3448_v16 = vpop.eup %3447  ;;  %v2445_v35 = vadd.f32 %v2444_v57, %v2209_v7  ;;  %v2218_v63 = vmul.f32 %v3446_v50, %v4894_v59  ;;  %3467 = vpow2.f32 %v2853_v26  ;;  %v5891_v26 = vld [vmem:[#allocation10_spill] sm:$0xff] }
 0x1bc   : > { %v5129_v23 = vadd.f32 %v5888_v27, %v5058_v47  ;;  %v3450_v25 = vpop.eup %3449  ;;  %v5131_v33 = vadd.f32 %v2406_v46, %v2216_v31  ;;  %v2217_v34 = vmul.f32 %v3448_v16, %v5889_v39  ;;  %3469 = vpow2.f32 %v2855_v15  ;;  %v5892_v15 = vld [vmem:[#allocation2_spill] sm:$0xff] }
 0x1bd   : > { %v5136_v38 = vadd.f32 %v5890_v17, %v5026_v36  ;;  %v3452_v54 = vpop.eup %3451  ;;  %v5138_v20 = vadd.f32 %v2432_v41, %v2218_v63  ;;  %v2219_v59 = vmul.f32 %v3450_v25, %v4902_v24  ;;  %3471 = vpow2.f32 %v2854_v62  ;;  %v5893_v24 = vld [vmem:[#allocation44_spill] sm:$0xff] }
 0x1be   : > { %v5143_v57 = vadd.f32 %v5891_v26, %v5032_v8  ;;  %v3454_v2 = vpop.eup %3453  ;;  %v5145_v46 = vadd.f32 %v2419_v45, %v2217_v34  ;;  %v1746_v4 = vadd.f32 1.0, %v3452_v54  ;;  %3473 = vpow2.f32 %v2856_v48  ;;  %v5894_v48 = vld [vmem:[#allocation45_spill] sm:$0xff]  ;;  %v5895_v54 = vld [vmem:[#allocation46_spill] sm:$0xff] }
 0x1bf   : > { %v5149_v7 = vadd.f32 %v5892_v15, %v5061_v51  ;;  %v3456_v50 = vpop.eup %3455  ;;  %v5151_v31 = vadd.f32 %v2445_v35, %v2219_v59  ;;  %v1748_v41 = vadd.f32 1.0, %v3454_v2  ;;  %3475 = vpow2.f32 %v2863_v43 }
 0x1c0   : > { %v5155_v62 = vadd.f32 %v5893_v24, %v5058_v47  ;;  %v3458_v11 = vpop.eup %3457  ;;  %3477 = vrcp.f32 %v1746_v4  ;;  %v1747_v16 = vadd.f32 1.0, %v3456_v50  ;;  %v5158_v45 = vmul.f32 -1.442695, %v5124_v1 }
 0x1c1   : > { %v5162_v63 = vadd.f32 %v5894_v48, %v5026_v36  ;;  %v3460_v27 = vpop.eup %3459  ;;  %3479 = vrcp.f32 %v1748_v41  ;;  %v1749_v35 = vadd.f32 1.0, %v3458_v11  ;;  %v5165_v25 = vmul.f32 -1.442695, %v5129_v23  ;;  %v5896_v11 = vld [vmem:[#allocation47_spill] sm:$0xff] }
 0x1c2   : > { %v5168_v43 = vmul.f32 -1.442695, %v5136_v38  ;;  %v3462_v39 = vpop.eup %3461  ;;  %3481 = vrcp.f32 %v1747_v16  ;;  %v1756_v34 = vadd.f32 1.0, %v3460_v27  ;;  %v5171_v17 = vmul.f32 -1.442695, %v5143_v57 }
 0x1c3   : > { %v5175_v59 = vadd.f32 %v5895_v54, %v5032_v8  ;;  %v3464_v26 = vpop.eup %3463  ;;  %3483 = vrcp.f32 %v1749_v35  ;;  %v1758_v2 = vadd.f32 1.0, %v3462_v39  ;;  %v5178_v4 = vmul.f32 -1.442695, %v5149_v7  ;;  %v5897_v35 = vld [vmem:[#allocation48_spill] sm:$0xff]  ;;  %v5898_v54 = vld [vmem:[#allocation49_spill] sm:$0xff] }
 0x1c4   : > { %v5181_v15 = vmul.f32 -1.442695, %v5155_v62  ;;  %v3466_v50 = vpop.eup %3465  ;;  %3485 = vrcp.f32 %v1756_v34  ;;  %v1757_v41 = vadd.f32 1.0, %v3464_v26  ;;  %v5184_v24 = vmul.f32 -1.442695, %v5162_v63 }
 0x1c5   : > { %v5188_v16 = vadd.f32 %v5896_v11, %v5061_v51  ;;  %v3468_v48 = vpop.eup %3467  ;;  %3487 = vrcp.f32 %v1758_v2  ;;  %v1759_v27 = vadd.f32 1.0, %v3466_v50  ;;  %v5192_v39 = vadd.f32 %v5897_v35, %v5058_v47  ;;  %v5900_v11 = vld [vmem:[#allocation50_spill] sm:$0xff]  ;;  %v5902_v35 = vld [vmem:[#allocation51_spill] sm:$0xff] }
 0x1c6   : > { %v5196_v49 = vadd.f32 %v5898_v54, %v5026_v36  ;;  %v3470_v34 = vpop.eup %3469  ;;  %3489 = vrcp.f32 %v1757_v41  ;;  %v1610_v26 = vadd.f32 1.0, %v3468_v48  ;;  %v5199_v53 = vmul.f32 -1.442695, %v5175_v59  ;;  %v5904_v54 = vld [vmem:[#allocation52_spill] sm:$0xff] }
 0x1c7   : > { %v5203_v28 = vadd.f32 %v5900_v11, %v5032_v8  ;;  %v3472_v2 = vpop.eup %3471  ;;  %3491 = vrcp.f32 %v1759_v27  ;;  %v1612_v50 = vadd.f32 1.0, %v3470_v34  ;;  %v5207_v60 = vadd.f32 %v5902_v35, %v5061_v51  ;;  %v5906_v11 = vld [vmem:[#allocation11_spill] sm:$0xff] }
 0x1c8   : > { %5899 = vst [vmem:[#allocation38_spill] sm:$0xff] %v5196_v49  ;;  %v5211_v55 = vadd.f32 %v5904_v54, %v5058_v47  ;;  %v3474_v41 = vpop.eup %3473  ;;  %3493 = vrcp.f32 %v1610_v26  ;;  %v1611_v48 = vadd.f32 1.0, %v3472_v2  ;;  %v5214_v61 = vmul.f32 -1.442695, %v5188_v16 }
 0x1c9   : > { %5901 = vst [vmem:[#allocation40_spill] sm:$0xff] %v5203_v28  ;;  %5903 = vst [vmem:[#allocation41_spill] sm:$0xff] %v5207_v60  ;;  %v5218_v32 = vadd.f32 %v5906_v11, %v5026_v36  ;;  %v3476_v27 = vpop.eup %3475  ;;  %3495 = vrcp.f32 %v1612_v50  ;;  %v1613_v34 = vadd.f32 1.0, %v3474_v41  ;;  %v5221_v35 = vmul.f32 -1.442695, %v5192_v39 }
 0x1ca   : > { %5905 = vst [vmem:[#allocation42_spill] sm:$0xff] %v5211_v55  ;;  %v5224_v21 = vmul.f32 -1.442695, %v5196_v49  ;;  %v3478_v54 = vpop.eup %3477  ;;  %3497 = vrcp.f32 %v1611_v48  ;;  %v1620_v26 = vadd.f32 1.0, %v3476_v27  ;;  %v5227_v2 = vmul.f32 -1.442695, %v5203_v28 }
 0x1cb   : > { %5907 = vst [vmem:[#allocation43_spill] sm:$0xff] %v5218_v32  ;;  %v5231_v5 = vadd.f32 %v5908_v58, %v5032_v8  ;;  %v3480_v11 = vpop.eup %3479  ;;  %v2226_v50 = vmul.f32 %v3478_v54, %v4912_v14  ;;  %3499 = vrcp.f32 %v1613_v34  ;;  %v5235_v41 = vmul.f32 -1.442695, %v5207_v60  ;;  %v5909_v58 = vld [vmem:[#allocation54_spill] sm:$0xff]  ;;  %v5911_v34 = vld [vmem:[#allocation32_spill] sm:$0xff] }
 0x1cc   : > { %v5238_v10 = vmul.f32 -1.442695, %v5211_v55  ;;  %v3482_v42 = vpop.eup %3481  ;;  %v2228_v48 = vmul.f32 %v3480_v11, %v4916_v0  ;;  %3501 = vrcp.f32 %v1620_v26  ;;  %v5242_v27 = vmul.f32 -1.442695, %v5218_v32  ;;  %v5912_v55 = vld [vmem:[#allocation55_spill] sm:$0xff]  ;;  %v5914_v11 = vld [vmem:[#allocation33_spill] sm:$0xff] }
 0x1cd   : > { %v5246_v56 = vadd.f32 %v5909_v58, %v5061_v51  ;;  %v3484_v28 = vpop.eup %3483  ;;  %v2408_v14 = vadd.f32 %v5131_v33, %v2226_v50  ;;  %v2227_v54 = vmul.f32 %v3482_v42, %v5911_v34  ;;  %3503 = vpow2.f32 %v5119_v44 }
 0x1ce   : > { %v5253_v60 = vadd.f32 %v5912_v55, %v5058_v47  ;;  %v3486_v0 = vpop.eup %3485  ;;  %v2434_v26 = vadd.f32 %v5138_v20, %v2228_v48  ;;  %v2229_v32 = vmul.f32 %v3484_v28, %v5914_v11  ;;  %3505 = vpow2.f32 %v5158_v45  ;;  %v5915_v55 = vld [vmem:[#allocation12_spill] sm:$0xff] }
 0x1cf   : > { %5910 = vst [vmem:[#allocation31_spill] sm:$0xff] %v5246_v56  ;;  %v5259_v58 = vmul.f32 -1.442695, %v5231_v5  ;;  %v3488_v49 = vpop.eup %3487  ;;  %v2421_v33 = vadd.f32 %v5145_v46, %v2227_v54  ;;  %v2236_v42 = vmul.f32 %v3486_v0, %v5013_v22  ;;  %3507 = vpow2.f32 %v5165_v25 }
 0x1d0   : > { %5913 = vst [vmem:[#allocation8_spill] sm:$0xff] %v5253_v60  ;;  %v5266_v44 = vadd.f32 %v5915_v55, %v5026_v36  ;;  %v3490_v50 = vpop.eup %3489  ;;  %v2447_v20 = vadd.f32 %v5151_v31, %v2229_v32  ;;  %v2238_v28 = vmul.f32 %v3488_v49, %v5020_v52  ;;  %3509 = vpow2.f32 %v5168_v43  ;;  %v5917_v52 = vld [vmem:[#allocation56_spill] sm:$0xff] }
 0x1d1   : > { %v5272_v45 = vmul.f32 -1.442695, %v5246_v56  ;;  %v3492_v48 = vpop.eup %3491  ;;  %v2409_v46 = vadd.f32 %v2408_v14, %v2236_v42  ;;  %v2237_v22 = vmul.f32 %v3490_v50, %v5040_v29  ;;  %3511 = vpow2.f32 %v5171_v17 }
 0x1d2   : > { %5916 = vst [vmem:[#allocation10_spill] sm:$0xff] %v5266_v44  ;;  %v5277_v25 = vmul.f32 -1.442695, %v5253_v60  ;;  %v3494_v34 = vpop.eup %3493  ;;  %v2435_v54 = vadd.f32 %v2434_v26, %v2238_v28  ;;  %v2239_v32 = vmul.f32 %v3492_v48, %v5044_v9  ;;  %3513 = vpow2.f32 %v5178_v4  ;;  %v5918_v9 = vld [vmem:[#allocation13_spill] sm:$0xff] }
 0x1d3   : > { %v5283_v49 = vadd.f32 %v5917_v52, %v5032_v8  ;;  %v5285_v31 = vpop.eup %3495  ;;  %v2410_v43 = vrot.slane %v2409_v46, 4  ;;  %v2422_v14 = vadd.f32 %v2421_v33, %v2237_v22  ;;  %3515 = vpow2.f32 %v5181_v15  ;;  %v5919_v15 = vld [vmem:[#allocation14_spill] sm:$0xff] }
 0x1d4   : > { %v5289_v29 = vmul.f32 -1.442695, %v5266_v44  ;;  %v5291_v17 = vpop.eup %3497  ;;  %v2436_v0 = vrot.slane %v2435_v54, 4  ;;  %v2448_v26 = vadd.f32 %v2447_v20, %v2239_v32  ;;  %3517 = vpow2.f32 %v5184_v24 }
 0x1d5   : > { %v5296_v4 = vadd.f32 %v5918_v9, %v5061_v51  ;;  %v5298_v11 = vpop.eup %3499  ;;  %v2411_v42 = vadd.f32 %v2410_v43, %v2409_v46  ;;  %v2423_v55 = vrot.slane %v2422_v14, 4  ;;  %3519 = vpow2.f32 %v5199_v53 }
 0x1d6   : > { %v5303_v33 = vadd.f32 %v5919_v15, %v5058_v47  ;;  %v3502_v50 = vpop.eup %3501  ;;  %v2437_v28 = vadd.f32 %v2436_v0, %v2435_v54  ;;  %v2449_v48 = vrot.slane %v2448_v26, 4  ;;  %v2090_v20 = vmul.f32 %v3494_v34, %v5050_v18 }
 0x1d7   : > { %3521 = vpow2.f32 %v5214_v61  ;;  %v3504_v24 = vpop.eup %3503  ;;  %v2412_v22 = vrot.slane %v2411_v42, 2  ;;  %v2424_v32 = vadd.f32 %v2423_v55, %v2422_v14  ;;  %v2100_v52 = vmul.f32 %v3502_v50, %v5096_v13 }
 0x1d8   : > { %3523 = vpow2.f32 %v5221_v35  ;;  %v3506_v46 = vpop.eup %3505  ;;  %v2438_v53 = vrot.slane %v2437_v28, 2  ;;  %v2450_v43 = vadd.f32 %v2449_v48, %v2448_v26  ;;  %v1622_v9 = vadd.f32 1.0, %v3504_v24 }
 0x1d9   : > { %3525 = vpow2.f32 %v5224_v21  ;;  %v3508_v15 = vpop.eup %3507  ;;  %v2413_v54 = vadd.f32 %v2412_v22, %v2411_v42  ;;  %v2425_v0 = vrot.slane %v2424_v32, 2  ;;  %v5310_v44 = vadd.f32 %v2100_v52, %v2090_v20 }
 0x1da   : > { %v1621_v18 = vadd.f32 1.0, %v3506_v46  ;;  %v3510_v61 = vpop.eup %3509  ;;  %v2439_v34 = vadd.f32 %v2438_v53, %v2437_v28  ;;  %v2451_v60 = vrot.slane %v2450_v43, 2  ;;  %3527 = vrcp.f32 %v1622_v9 }
 0x1db   : > { %v1623_v14 = vadd.f32 1.0, %v3508_v15  ;;  %v3512_v13 = vpop.eup %3511  ;;  %v2414_v55 = vrot.slane %v2413_v54, 1  ;;  %v2426_v35 = vadd.f32 %v2425_v0, %v2424_v32  ;;  %v1630_v50 = vadd.f32 1.0, %v3510_v61 }
 0x1dc   : > { %3529 = vrcp.f32 %v1621_v18  ;;  %v3514_v26 = vpop.eup %3513  ;;  %v2440_v48 = vrot.slane %v2439_v34, 1  ;;  %v2452_v24 = vadd.f32 %v2451_v60, %v2450_v43  ;;  %v1632_v21 = vadd.f32 1.0, %v3512_v13 }
 0x1dd   : > { %3531 = vrcp.f32 %v1623_v14  ;;  %v3516_v42 = vpop.eup %3515  ;;  %v2415_v22 = vadd.f32 %v2414_v55, %v2413_v54  ;;  %v2427_v20 = vrot.slane %v2426_v35, 1  ;;  %v1631_v52 = vadd.f32 1.0, %v3514_v26  ;;  %v5920_v26 = vld [vmem:[#allocation15_spill] sm:$0xff] }
 0x1de   : > { %3533 = vrcp.f32 %v1630_v50  ;;  %v3518_v46 = vpop.eup %3517  ;;  %v2441_v28 = vadd.f32 %v2440_v48, %v2439_v34  ;;  %v2453_v53 = vrot.slane %v2452_v24, 1  ;;  %v1633_v9 = vadd.f32 1.0, %v3516_v42 }
 0x1df   : > { %3535 = vrcp.f32 %v1632_v21  ;;  %v3520_v15 = vpop.eup %3519  ;;  %v2519_v56 = vmul.f32 0.015625, %v2415_v22  ;;  %v2428_v32 = vadd.f32 %v2427_v20, %v2426_v35  ;;  %v1640_v0 = vadd.f32 1.0, %v3518_v46  ;;  %v5921_v46 = vld [vmem:[#allocation57_spill] sm:$0xff] }
 0x1e0   : > { %3537 = vrcp.f32 %v1631_v52  ;;  %v5312_v61 = vmul.f32 0.015625, %v2441_v28  ;;  %v2454_v60 = vadd.f32 %v2453_v53, %v2452_v24  ;;  %v1642_v43 = vadd.f32 1.0, %v3520_v15 }
 0x1e1   : > { %v3522_v18 = vpop.eup %3521  ;;  %3539 = vrcp.f32 %v1633_v9  ;;  %v2520_v14 = vmul.f32 0.015625, %v2428_v32  ;;  %v5315_v13 = vmul.f32 -1.442695, %v5283_v49  ;;  %v5321_v48 = vadd.f32 %v5920_v26, %v5026_v36 }
 0x1e2   : > { %v3524_v54 = vpop.eup %3523  ;;  %3541 = vrcp.f32 %v1640_v0  ;;  %v1641_v34 = vadd.f32 1.0, %v3522_v18  ;;  %v5317_v35 = vmul.f32 0.015625, %v2454_v60  ;;  %v2914_v42 = vmul.f32 -1.442695, %v5296_v4 }
 0x1e3   : > { %v3526_v55 = vpop.eup %3525  ;;  %3543 = vrcp.f32 %v1642_v43  ;;  %v1643_v50 = vadd.f32 1.0, %v3524_v54  ;;  %v2590_v24 = vcombine.low %v2519_v56, %v2520_v14  ;;  %v2916_v52 = vmul.f32 -1.442695, %v5303_v33  ;;  %v5922_v54 = vld [vmem:[#allocation24_spill] sm:$0xff] }
 0x1e4   : > { %3545 = vrcp.f32 %v1641_v34  ;;  %v1650_v21 = vadd.f32 1.0, %v3526_v55  ;;  %v3528_v22 = vpop.eup %3527  ;;  %v2606_v20 = vcombine.low %v5312_v61, %v5317_v35  ;;  %v5329_v28 = vadd.f32 %v5921_v46, %v5032_v8  ;;  %v2246_v35 = vld [vmem:[%s4748_s4 + $0x10] sm:$0xf] }
 0x1e5   : > { %3547 = vrcp.f32 %v1643_v50  ;;  %v2604_v9 = vrot.slane %v2590_v24, %v4564_v3  ;;  %v2092_v56 = vmul.f32 %v5285_v31, %v5054_v30  ;;  %v2102_v15 = vmul.f32 %v3528_v22, %v5103_v19 }
 0x1e6   : > { %v3530_v53 = vpop.eup %3529  ;;  %3549 = vrcp.f32 %v1650_v21  ;;  %v2091_v0 = vmul.f32 %v5291_v17, %v5085_v6  ;;  %v2093_v18 = vmul.f32 %v5298_v11, %v5078_v40  ;;  %v2923_v40 = vmul.f32 -1.442695, %v5321_v48 }
 0x1e7   : > { %v3532_v32 = vpop.eup %3531  ;;  %v2101_v60 = vmul.f32 %v3530_v53, %v5124_v1  ;;  %3551 = vpow2.f32 %v5227_v2  ;;  %v2605_v14 = vcombine.low %v5922_v54, %v2604_v9  ;;  %v2351_v34 = vadd.f32 %v2102_v15, %v2092_v56 }
 0x1e8   : > { %v3534_v43 = vpop.eup %3533  ;;  %v2103_v30 = vmul.f32 %v3532_v32, %v5129_v23  ;;  %3553 = vpow2.f32 %v5235_v41 }
 0x1e9   : > { %v3536_v19 = vpop.eup %3535  ;;  %v2338_v31 = vadd.f32 %v2101_v60, %v2091_v0  ;;  %v2110_v55 = vmul.f32 %v3534_v43, %v5136_v38  ;;  %3555 = vpow2.f32 %v5238_v10  ;;  %v2635_v1 = vrot.slane %v2605_v14, 7 }
 0x1ea   : > { %v3538_v6 = vpop.eup %3537  ;;  %v2364_v17 = vadd.f32 %v2103_v30, %v2093_v18  ;;  %v2112_v2 = vmul.f32 %v3536_v19, %v5143_v57  ;;  %3557 = vpow2.f32 %v5242_v27  ;;  %v2925_v38 = vmul.f32 -1.442695, %v5329_v28 }
 0x1eb   : > { %v3540_v11 = vpop.eup %3539  ;;  %v2326_v23 = vadd.f32 %v5310_v44, %v2110_v55  ;;  %v2111_v41 = vmul.f32 %v3538_v6, %v5149_v7  ;;  %3559 = vpow2.f32 %v5259_v58  ;;  %v5923_v10 = vcombine.low %v5872_v12, %v5035_v37  ;;  %v5927_v6 = vld [vmem:[#allocation20_spill] sm:$0xff] }
 0x1ec   : > { %v3542_v50 = vpop.eup %3541  ;;  %v2352_v24 = vadd.f32 %v2351_v34, %v2112_v2  ;;  %v2113_v57 = vmul.f32 %v3540_v11, %v5155_v62  ;;  %3561 = vpow2.f32 %v5272_v45  ;;  %v5926_v34 = vld [vmem:[#allocation18_spill] sm:$0xff] }
 0x1ed   : > { %v2637_v26 = vsel %vm2636_vm1, %v2635_v1, %v5923_v10  ;;  %v3544_v27 = vpop.eup %3543  ;;  %v2339_v21 = vadd.f32 %v2338_v31, %v2111_v41  ;;  %v2120_v7 = vmul.f32 %v3542_v50, %v5162_v63  ;;  %3563 = vpow2.f32 %v5277_v25  ;;  %v5928_v50 = vld [vmem:[#allocation25_spill] sm:$0xff] }
 0x1ee   : > { %v2639_v44 = vsel %vm2638_vm2, %v2635_v1, %v2637_v26  ;;  %v3546_v58 = vpop.eup %3545  ;;  %v2365_v46 = vadd.f32 %v2364_v17, %v2113_v57  ;;  %v2122_v37 = vmul.f32 %v3544_v27, %v5175_v59  ;;  %3565 = vpow2.f32 %v5289_v29  ;;  %v5924_v59 = vld [vmem:[#allocation38_spill] sm:$0xff] }
 0x1ef   : > { %v2641_v22 = vsel %vm2640_vm3, %v2635_v1, %v2639_v44  ;;  %v3548_v12 = vpop.eup %3547  ;;  %v2327_v45 = vadd.f32 %v2326_v23, %v2120_v7  ;;  %v2121_v53 = vmul.f32 %v3546_v58, %v5188_v16  ;;  %3567 = vpow2.f32 %v5315_v13  ;;  %v5929_v57 = vld [vmem:[#allocation26_spill] sm:$0xff]  ;;  %v5930_v44 = vld [vmem:[#allocation21_spill] sm:$0xff] }
 0x1f0   : > { %v2643_v62 = vsel %vm2642_vm4, %v2635_v1, %v2641_v22  ;;  %v3550_v63 = vpop.eup %3549  ;;  %v5368_v9 = vadd.f32 %v2352_v24, %v2122_v37  ;;  %v2123_v25 = vmul.f32 %v3548_v12, %v5192_v39  ;;  %3569 = vpow2.f32 %v2914_v42  ;;  %v5925_v42 = vld [vmem:[#allocation58_spill] sm:$0xff] }
 0x1f1   : > { %v3552_v56 = vpop.eup %3551  ;;  %v5371_v15 = vadd.f32 %v2339_v21, %v2121_v53  ;;  %v2130_v32 = vmul.f32 %v3550_v63, %v5924_v59  ;;  %3571 = vpow2.f32 %v2916_v52  ;;  %2664 = vst [vmem:[%s4748_s4] sm:$0xff] %v2643_v62  ;;  %v5381_v54 = vadd.f32 %v5925_v42, %v5061_v51  ;;  %v5933_v63 = vld [vmem:[#allocation59_spill] sm:$0xff] }
 0x1f2   : > { %v3554_v29 = vpop.eup %3553  ;;  %v5375_v0 = vadd.f32 %v2365_v46, %v2123_v25  ;;  %v1652_v18 = vadd.f32 1.0, %v3552_v56  ;;  %3573 = vpow2.f32 %v2923_v40  ;;  %v5385_v30 = vadd.f32 %v5926_v34, %v5058_v47  ;;  %v5931_v46 = vld [vmem:[#allocation22_spill] sm:$0xff] }
 0x1f3   : > { %v3556_v16 = vpop.eup %3555  ;;  %v5377_v13 = vadd.f32 %v2327_v45, %v2130_v32  ;;  %v1651_v60 = vadd.f32 1.0, %v3554_v29  ;;  %3575 = vpow2.f32 %v2925_v38  ;;  %v5389_v1 = vadd.f32 %v5927_v6, %v5026_v36  ;;  %v5932_v45 = vld [vmem:[#allocation23_spill] sm:$0xff]  ;;  %v5934_v29 = vld [vmem:[#allocation60_spill] sm:$0xff] }
 0x1f4   : > { %v3558_v43 = vpop.eup %3557  ;;  %3577 = vrcp.f32 %v1652_v18  ;;  %v1653_v39 = vadd.f32 1.0, %v3556_v16  ;;  %v2924_v11 = vmul.f32 -1.442695, %v5381_v54  ;;  %v2926_v38 = vmul.f32 -1.442695, %v5385_v30 }
 0x1f5   : > { %v3560_v14 = vpop.eup %3559  ;;  %3579 = vrcp.f32 %v1651_v60  ;;  %v1660_v52 = vadd.f32 1.0, %v3558_v43  ;;  %v5395_v10 = vadd.f32 %v5928_v50, %v5032_v8  ;;  %v5399_v27 = vadd.f32 %v5929_v57, %v5061_v51  ;;  %v5938_v50 = vld [vmem:[#allocation42_spill] sm:$0xff] }
 0x1f6   : > { %v3562_v19 = vpop.eup %3561  ;;  %3581 = vrcp.f32 %v1653_v39  ;;  %v1662_v31 = vadd.f32 1.0, %v3560_v14  ;;  %v5403_v21 = vadd.f32 %v5930_v44, %v5058_v47  ;;  %v2933_v22 = vmul.f32 -1.442695, %v5389_v1  ;;  %v5935_v14 = vld [vmem:[#allocation40_spill] sm:$0xff] }
 0x1f7   : > { %v3564_v55 = vpop.eup %3563  ;;  %3583 = vrcp.f32 %v1660_v52  ;;  %v1661_v40 = vadd.f32 1.0, %v3562_v19  ;;  %v5408_v37 = vadd.f32 %v5931_v46, %v5026_v36  ;;  %v5412_v53 = vadd.f32 %v5932_v45, %v5032_v8  ;;  %v5936_v19 = vld [vmem:[#allocation27_spill] sm:$0xff]  ;;  %v5940_v46 = vld [vmem:[#allocation28_spill] sm:$0xff] }
 0x1f8   : > { %v3566_v17 = vpop.eup %3565  ;;  %3585 = vrcp.f32 %v1662_v31  ;;  %v1663_v2 = vadd.f32 1.0, %v3564_v55  ;;  %v5416_v25 = vadd.f32 %v5933_v63, %v5061_v51  ;;  %v2935_v32 = vmul.f32 -1.442695, %v5395_v10 }
 0x1f9   : > { %v3568_v23 = vpop.eup %3567  ;;  %3587 = vrcp.f32 %v1661_v40  ;;  %v1670_v41 = vadd.f32 1.0, %v3566_v17  ;;  %v5421_v18 = vadd.f32 %v5934_v29, %v5058_v47  ;;  %v2934_v43 = vmul.f32 -1.442695, %v5399_v27  ;;  %v5937_v40 = vld [vmem:[#allocation41_spill] sm:$0xff] }
 0x1fa   : > { %v3570_v26 = vpop.eup %3569  ;;  %3589 = vrcp.f32 %v1663_v2  ;;  %v1672_v24 = vadd.f32 1.0, %v3568_v23  ;;  %v2936_v39 = vmul.f32 -1.442695, %v5403_v21  ;;  %v2943_v34 = vmul.f32 -1.442695, %v5408_v37 }
 0x1fb   : > { %v3572_v7 = vpop.eup %3571  ;;  %3591 = vrcp.f32 %v1670_v41  ;;  %v1671_v58 = vadd.f32 1.0, %v3570_v26  ;;  %v5429_v31 = vadd.f32 %v5936_v19, %v5026_v36  ;;  %v2945_v17 = vmul.f32 -1.442695, %v5412_v53  ;;  %v5945_v19 = vld [vmem:[#allocation10_spill] sm:$0xff] }
 0x1fc   : > { %v3574_v12 = vpop.eup %3573  ;;  %3593 = vrcp.f32 %v1672_v24  ;;  %v1673_v62 = vadd.f32 1.0, %v3572_v7  ;;  %v2944_v2 = vmul.f32 -1.442695, %v5416_v25  ;;  %v2946_v24 = vmul.f32 -1.442695, %v5421_v18  ;;  %v5939_v7 = vld [vmem:[#allocation43_spill] sm:$0xff] }
 0x1fd   : > { %v3576_v56 = vpop.eup %3575  ;;  %3595 = vrcp.f32 %v1671_v58  ;;  %v1680_v59 = vadd.f32 1.0, %v3574_v12  ;;  %v5441_v12 = vadd.f32 %v5940_v46, %v5032_v8 }
 0x1fe   : > { %v3578_v16 = vpop.eup %3577  ;;  %3597 = vrcp.f32 %v1673_v62  ;;  %v1682_v60 = vadd.f32 1.0, %v3576_v56 }
 0x1ff   : > { %v3580_v42 = vpop.eup %3579  ;;  %v2132_v52 = vmul.f32 %v3578_v16, %v5935_v14  ;;  %3599 = vrcp.f32 %v1680_v59  ;;  %v5941_v59 = vld [vmem:[#allocation31_spill] sm:$0xff] }
 0x200   : > { %v3582_v55 = vpop.eup %3581  ;;  %v2131_v6 = vmul.f32 %v3580_v42, %v5937_v40  ;;  %3601 = vrcp.f32 %v1682_v60  ;;  %v5943_v42 = vld [vmem:[#allocation8_spill] sm:$0xff] }
 0x201   : > { %v3584_v23 = vpop.eup %3583  ;;  %v2354_v41 = vadd.f32 %v5368_v9, %v2132_v52  ;;  %v2133_v26 = vmul.f32 %v3582_v55, %v5938_v50  ;;  %3603 = vpow2.f32 %v2924_v11  ;;  %v2953_v11 = vmul.f32 -1.442695, %v5429_v31 }
 0x202   : > { %v3586_v57 = vpop.eup %3585  ;;  %v2341_v44 = vadd.f32 %v5371_v15, %v2131_v6  ;;  %v2140_v58 = vmul.f32 %v3584_v23, %v5939_v7  ;;  %3605 = vpow2.f32 %v2926_v38  ;;  %v5942_v38 = vld [vmem:[#allocation29_spill] sm:$0xff]  ;;  %v5946_v23 = vld [vmem:[#allocation34_spill] sm:$0xff] }
 0x203   : > { %v3588_v62 = vpop.eup %3587  ;;  %v2367_v45 = vadd.f32 %v5375_v0, %v2133_v26  ;;  %v2142_v9 = vmul.f32 %v3586_v57, %v5231_v5  ;;  %3607 = vpow2.f32 %v2933_v22  ;;  %v5450_v29 = vadd.f32 %v5942_v38, %v5061_v51  ;;  %v5944_v5 = vld [vmem:[#allocation30_spill] sm:$0xff] }
 0x204   : > { %v3590_v63 = vpop.eup %3589  ;;  %v2329_v56 = vadd.f32 %v5377_v13, %v2140_v58  ;;  %v2141_v15 = vmul.f32 %v3588_v62, %v5941_v59  ;;  %3609 = vpow2.f32 %v2935_v32  ;;  %v5455_v0 = vadd.f32 %v5944_v5, %v5058_v47  ;;  %v5947_v62 = vld [vmem:[#allocation3_spill] sm:$0xff] }
 0x205   : > { %v3592_v16 = vpop.eup %3591  ;;  %v2355_v60 = vadd.f32 %v2354_v41, %v2142_v9  ;;  %v2143_v14 = vmul.f32 %v3590_v63, %v5943_v42  ;;  %3611 = vpow2.f32 %v2934_v43  ;;  %v2955_v32 = vmul.f32 -1.442695, %v5441_v12 }
 0x206   : > { %v3594_v22 = vpop.eup %3593  ;;  %v2342_v52 = vadd.f32 %v2341_v44, %v2141_v15  ;;  %v2150_v13 = vmul.f32 %v3592_v16, %v5945_v19  ;;  %3613 = vpow2.f32 %v2936_v39  ;;  %v5462_v41 = vadd.f32 %v5946_v23, %v5026_v36  ;;  %v5949_v16 = vld [vmem:[#allocation6_spill] sm:$0xff]  ;;  %v5950_v19 = vld [vmem:[#allocation61_spill] sm:$0xff] }
 0x207   : > { %v3596_v55 = vpop.eup %3595  ;;  %v2368_v40 = vadd.f32 %v2367_v45, %v2143_v14  ;;  %v2152_v6 = vmul.f32 %v3594_v22, %v5283_v49  ;;  %3615 = vpow2.f32 %v2943_v34  ;;  %v2954_v57 = vmul.f32 -1.442695, %v5450_v29 }
 0x208   : > { %v3598_v43 = vpop.eup %3597  ;;  %v2330_v50 = vadd.f32 %v2329_v56, %v2150_v13  ;;  %v2151_v26 = vmul.f32 %v3596_v55, %v5296_v4  ;;  %3617 = vpow2.f32 %v2945_v17  ;;  %v5468_v58 = vmul.f32 -1.442695, %v5455_v0 }
 0x209   : > { %v3600_v44 = vpop.eup %3599  ;;  %v2356_v39 = vadd.f32 %v2355_v60, %v2152_v6  ;;  %v2153_v7 = vmul.f32 %v3598_v43, %v5303_v33  ;;  %3619 = vpow2.f32 %v2944_v2  ;;  %v5475_v4 = vadd.f32 %v5947_v62, %v5032_v8 }
 0x20a   : > { %v3602_v49 = vpop.eup %3601  ;;  %v5470_v34 = vadd.f32 %v2342_v52, %v2151_v26  ;;  %v2160_v46 = vmul.f32 %v3600_v44, %v5321_v48  ;;  %3621 = vpow2.f32 %v2946_v24  ;;  %v5481_v33 = vmul.f32 -1.442695, %v5462_v41  ;;  %v5948_v48 = vld [vmem:[#allocation4_spill] sm:$0xff] }
 0x20b   : > { %v3604_v17 = vpop.eup %3603  ;;  %v5477_v45 = vadd.f32 %v2368_v40, %v2153_v7  ;;  %v2162_v9 = vmul.f32 %v3602_v49, %v5329_v28  ;;  %3623 = vpow2.f32 %v2953_v11  ;;  %v5485_v24 = vadd.f32 %v5948_v48, %v5061_v51  ;;  %v5951_v7 = vld [vmem:[#allocation62_spill] sm:$0xff]  ;;  %v5952_v48 = vld [vmem:[#allocation63_spill] sm:$0xff] }
 0x20c   : > { %v3606_v2 = vpop.eup %3605  ;;  %v2331_v63 = vadd.f32 %v2330_v50, %v2160_v46  ;;  %v1681_v56 = vadd.f32 1.0, %v3604_v17  ;;  %3625 = vpow2.f32 %v2955_v32  ;;  %v5489_v60 = vadd.f32 %v5949_v16, %v5058_v47 }
 0x20d   : > { %v3608_v59 = vpop.eup %3607  ;;  %v2357_v15 = vadd.f32 %v2356_v39, %v2162_v9  ;;  %v1683_v38 = vadd.f32 1.0, %v3606_v2  ;;  %3627 = vpow2.f32 %v2954_v57  ;;  %v5492_v14 = vmul.f32 -1.442695, %v5475_v4 }
 0x20e   : > { %v3610_v28 = vpop.eup %3609  ;;  %v2332_v11 = vrot.slane %v2331_v63, 4  ;;  %3629 = vrcp.f32 %v1681_v56  ;;  %v1690_v42 = vadd.f32 1.0, %v3608_v59  ;;  %v5496_v13 = vadd.f32 %v5950_v19, %v5026_v36 }
 0x20f   : > { %v3612_v5 = vpop.eup %3611  ;;  %v2358_v22 = vrot.slane %v2357_v15, 4  ;;  %3631 = vrcp.f32 %v1683_v38  ;;  %v1692_v52 = vadd.f32 1.0, %v3610_v28  ;;  %v5499_v6 = vmul.f32 -1.442695, %v5485_v24  ;;  %v5953_v28 = vld [vmem:[#allocation64_spill] sm:$0xff] }
 0x210   : > { %v3614_v32 = vpop.eup %3613  ;;  %v2333_v55 = vadd.f32 %v2332_v11, %v2331_v63  ;;  %3633 = vrcp.f32 %v1690_v42  ;;  %v1691_v40 = vadd.f32 1.0, %v3612_v5  ;;  %v5502_v26 = vmul.f32 -1.442695, %v5489_v60 }
 0x211   : > { %v3616_v23 = vpop.eup %3615  ;;  %v2359_v43 = vadd.f32 %v2358_v22, %v2357_v15  ;;  %3635 = vrcp.f32 %v1692_v52  ;;  %v1693_v50 = vadd.f32 1.0, %v3614_v32  ;;  %v5506_v49 = vadd.f32 %v5951_v7, %v5032_v8  ;;  %v5957_v7 = vld [vmem:[#allocation67_spill] sm:$0xff] }
 0x212   : > { %v3618_v57 = vpop.eup %3617  ;;  %v2334_v44 = vrot.slane %v2333_v55, 2  ;;  %3637 = vrcp.f32 %v1691_v40  ;;  %v1700_v39 = vadd.f32 1.0, %v3616_v23  ;;  %v5509_v9 = vmul.f32 -1.442695, %v5496_v13  ;;  %v5955_v23 = vld [vmem:[#allocation66_spill] sm:$0xff] }
 0x213   : > { %v3620_v46 = vpop.eup %3619  ;;  %v2360_v62 = vrot.slane %v2359_v43, 2  ;;  %3639 = vrcp.f32 %v1693_v50  ;;  %v1702_v17 = vadd.f32 1.0, %v3618_v57  ;;  %v5513_v59 = vadd.f32 %v5952_v48, %v5061_v51 }
 0x214   : > { %v3622_v2 = vpop.eup %3621  ;;  %v2335_v63 = vadd.f32 %v2334_v44, %v2333_v55  ;;  %3641 = vrcp.f32 %v1700_v39  ;;  %v1701_v56 = vadd.f32 1.0, %v3620_v46  ;;  %v5517_v11 = vadd.f32 %v5953_v28, %v5058_v47  ;;  %v5954_v55 = vld [vmem:[#allocation65_spill] sm:$0xff]  ;;  %v5956_v44 = vld [vmem:[#allocation16_spill] sm:$0xff] }
 0x215   : > { %v3624_v15 = vpop.eup %3623  ;;  %v2361_v38 = vadd.f32 %v2360_v62, %v2359_v43  ;;  %3643 = vrcp.f32 %v1702_v17  ;;  %v1703_v16 = vadd.f32 1.0, %v3622_v2  ;;  %v2975_v52 = vmul.f32 -1.442695, %v5506_v49 }
 0x216   : > { %v3626_v42 = vpop.eup %3625  ;;  %v2336_v5 = vrot.slane %v2335_v63, 1  ;;  %3645 = vrcp.f32 %v1701_v56  ;;  %v1710_v22 = vadd.f32 1.0, %v3624_v15  ;;  %v5522_v40 = vadd.f32 %v5954_v55, %v5026_v36 }
 0x217   : > { %v3628_v19 = vpop.eup %3627  ;;  %3647 = vrcp.f32 %v1703_v16  ;;  %v1712_v32 = vadd.f32 1.0, %v3626_v42  ;;  %v5526_v43 = vadd.f32 %v5955_v23, %v5032_v8  ;;  %v5530_v39 = vadd.f32 %v5956_v44, %v5061_v51 }
 0x218   : > { %v3630_v50 = vpop.eup %3629  ;;  %3649 = vrcp.f32 %v1710_v22  ;;  %v1711_v57 = vadd.f32 1.0, %v3628_v19  ;;  %v5534_v46 = vadd.f32 %v5957_v7, %v5058_v47  ;;  %v2337_v17 = vadd.f32 %v2336_v5, %v2335_v63 }
 0x219   : > { %v3632_v62 = vpop.eup %3631  ;;  %v2362_v2 = vrot.slane %v2361_v38, 1  ;;  %v2161_v56 = vmul.f32 %v3630_v50, %v5381_v54  ;;  %3651 = vrcp.f32 %v1712_v32  ;;  %v2974_v16 = vmul.f32 -1.442695, %v5513_v59 }
 0x21a   : > { %v3634_v48 = vpop.eup %3633  ;;  %v2163_v15 = vmul.f32 %v3632_v62, %v5385_v30  ;;  %3653 = vrcp.f32 %v1711_v57  ;;  %v2976_v28 = vmul.f32 -1.442695, %v5517_v11  ;;  %v2983_v19 = vmul.f32 -1.442695, %v5522_v40 }
 0x21b   : > { %v3636_v42 = vpop.eup %3635  ;;  %v2344_v22 = vadd.f32 %v5470_v34, %v2161_v56  ;;  %3655 = vpow2.f32 %v5468_v58  ;;  %v2985_v63 = vmul.f32 -1.442695, %v5526_v43  ;;  %v2984_v30 = vmul.f32 -1.442695, %v5530_v39 }
 0x21c   : > { %v3638_v5 = vpop.eup %3637  ;;  %v2370_v54 = vadd.f32 %v5477_v45, %v2163_v15  ;;  %3657 = vpow2.f32 %v5481_v33  ;;  %v2986_v32 = vmul.f32 -1.442695, %v5534_v46  ;;  %v5548_v23 = vmul.f32 0.015625, %v2337_v17 }
 0x21d   : > { %v3640_v55 = vpop.eup %3639  ;;  %v2363_v50 = vadd.f32 %v2362_v2, %v2361_v38  ;;  %v2345_v34 = vrot.slane %v2344_v22, 4  ;;  %3659 = vpow2.f32 %v5492_v14  ;;  %v2170_v44 = vmul.f32 %v3634_v48, %v5389_v1 }
 0x21e   : > { %v3642_v58 = vpop.eup %3641  ;;  %v2371_v57 = vrot.slane %v2370_v54, 4  ;;  %v2172_v7 = vmul.f32 %v3636_v42, %v5395_v10  ;;  %3661 = vpow2.f32 %v5499_v6  ;;  %v2171_v62 = vmul.f32 %v3638_v5, %v5399_v27 }
 0x21f   : > { %v3644_v45 = vpop.eup %3643  ;;  %v2346_v33 = vadd.f32 %v2345_v34, %v2344_v22  ;;  %v2180_v56 = vmul.f32 %v3642_v58, %v5408_v37  ;;  %3663 = vpow2.f32 %v5502_v26  ;;  %v2173_v14 = vmul.f32 %v3640_v55, %v5403_v21 }
 0x220   : > { %v3646_v38 = vpop.eup %3645  ;;  %v2372_v17 = vadd.f32 %v2371_v57, %v2370_v54  ;;  %v2182_v2 = vmul.f32 %v3644_v45, %v5412_v53  ;;  %3665 = vpow2.f32 %v5509_v9 }
 0x221   : > { %v3648_v1 = vpop.eup %3647  ;;  %v2347_v10 = vrot.slane %v2346_v33, 2  ;;  %v2455_v48 = vadd.f32 %v2180_v56, %v2170_v44  ;;  %v2181_v6 = vmul.f32 %v3646_v38, %v5416_v25  ;;  %3667 = vpow2.f32 %v2975_v52 }
 0x222   : > { %v3650_v15 = vpop.eup %3649  ;;  %v2373_v27 = vrot.slane %v2372_v17, 2  ;;  %v2481_v42 = vadd.f32 %v2182_v2, %v2172_v7  ;;  %v2183_v37 = vmul.f32 %v3648_v1, %v5421_v18  ;;  %3669 = vpow2.f32 %v2974_v16 }
 0x223   : > { %v3652_v26 = vpop.eup %3651  ;;  %v2348_v22 = vadd.f32 %v2347_v10, %v2346_v33  ;;  %v2468_v5 = vadd.f32 %v2181_v6, %v2171_v62  ;;  %v2190_v21 = vmul.f32 %v3650_v15, %v5429_v31  ;;  %3671 = vpow2.f32 %v2976_v28  ;;  %v5959_v10 = vld [vmem:[#allocation5_spill] sm:$0xff] }
 0x224   : > { %v3654_v53 = vpop.eup %3653  ;;  %v2374_v9 = vadd.f32 %v2373_v27, %v2372_v17  ;;  %v5563_v54 = vadd.f32 %v2183_v37, %v2173_v14  ;;  %v2192_v55 = vmul.f32 %v3652_v26, %v5441_v12  ;;  %3673 = vpow2.f32 %v2983_v19  ;;  %v5961_v26 = vld [vmem:[#allocation68_spill] sm:$0xff] }
 0x225   : > { %v3656_v25 = vpop.eup %3655  ;;  %v2349_v52 = vrot.slane %v2348_v22, 1  ;;  %v5566_v34 = vadd.f32 %v2455_v48, %v2190_v21  ;;  %v2191_v18 = vmul.f32 %v3654_v53, %v5450_v29  ;;  %3675 = vpow2.f32 %v2985_v63  ;;  %v5962_v53 = vld [vmem:[#allocation7_spill] sm:$0xff] }
 0x226   : > { %v3658_v16 = vpop.eup %3657  ;;  %v2375_v58 = vrot.slane %v2374_v9, 1  ;;  %v5569_v57 = vadd.f32 %v2481_v42, %v2192_v55  ;;  %v1713_v31 = vadd.f32 1.0, %v3656_v25  ;;  %3677 = vpow2.f32 %v2984_v30 }
 0x227   : > { %v3660_v28 = vpop.eup %3659  ;;  %v2350_v44 = vadd.f32 %v2349_v52, %v2348_v22  ;;  %v5571_v7 = vadd.f32 %v2468_v5, %v2191_v18  ;;  %v1720_v45 = vadd.f32 1.0, %v3658_v16  ;;  %3679 = vpow2.f32 %v2986_v32  ;;  %v5963_v18 = vld [vmem:[#allocation9_spill] sm:$0xff] }
 0x228   : > { %v3662_v12 = vpop.eup %3661  ;;  %v5573_v19 = vmul.f32 0.015625, %v2363_v50  ;;  %v2376_v33 = vadd.f32 %v2375_v58, %v2374_v9  ;;  %3681 = vrcp.f32 %v1713_v31  ;;  %v1722_v62 = vadd.f32 1.0, %v3660_v28  ;;  %v5958_v50 = vld [vmem:[#allocation17_spill] sm:$0xff]  ;;  %v5964_v28 = vld [vmem:[#allocation35_spill] sm:$0xff] }
 0x229   : > { %v3664_v29 = vpop.eup %3663  ;;  %v2514_v63 = vmul.f32 0.015625, %v2350_v44  ;;  %3683 = vrcp.f32 %v1720_v45  ;;  %v1721_v56 = vadd.f32 1.0, %v3662_v12  ;;  %v5960_v48 = vcombine.low %v5958_v50, %v5959_v10  ;;  %v5967_v50 = vld [vmem:[#allocation37_spill] sm:$0xff] }
 0x22a   : > { %v3666_v38 = vpop.eup %3665  ;;  %v5575_v17 = vmul.f32 0.015625, %v2376_v33  ;;  %3685 = vrcp.f32 %v1722_v62  ;;  %v1723_v30 = vadd.f32 1.0, %v3664_v29  ;;  %v5591_v22 = vadd.f32 %v5961_v26, %v5026_v36  ;;  %v5965_v62 = vld [vmem:[#allocation19_spill] sm:$0xff] }
 0x22b   : > { %v3668_v14 = vpop.eup %3667  ;;  %v2565_v2 = vcombine.low %v5548_v23, %v2514_v63  ;;  %3687 = vrcp.f32 %v1721_v56  ;;  %v1730_v32 = vadd.f32 1.0, %v3666_v38  ;;  %v5582_v6 = vrot.slane %v5960_v48, %v4564_v3 }
 0x22c   : > { %v3670_v1 = vpop.eup %3669  ;;  %v2581_v15 = vcombine.low %v5573_v19, %v5575_v17  ;;  %3689 = vrcp.f32 %v1723_v30  ;;  %v1732_v27 = vadd.f32 1.0, %v3668_v14  ;;  %v5595_v9 = vadd.f32 %v5962_v53, %v5032_v8  ;;  %v5966_v30 = vld [vmem:[#allocation36_spill] sm:$0xff] }
 0x22d   : > { %v3672_v42 = vpop.eup %3671  ;;  %v5587_v37 = vrot.slane %v2565_v2, %v4564_v3  ;;  %3691 = vrcp.f32 %v1730_v32  ;;  %v1731_v23 = vadd.f32 1.0, %v3670_v1  ;;  %v5601_v16 = vadd.f32 %v5963_v18, %v5061_v51 }
 0x22e   : > { %v3674_v5 = vpop.eup %3673  ;;  %3693 = vrcp.f32 %v1732_v27  ;;  %v1733_v21 = vadd.f32 1.0, %v3672_v42  ;;  %v5605_v44 = vadd.f32 %v5964_v28, %v5058_v47  ;;  %v2993_v33 = vmul.f32 -1.442695, %v5591_v22  ;;  %v5968_v42 = vld [vmem:[#allocation39_spill] sm:$0xff] }
 0x22f   : > { %v3676_v55 = vpop.eup %3675  ;;  %v2580_v25 = vcombine.low %v5582_v6, %v5587_v37  ;;  %3695 = vrcp.f32 %v1731_v23  ;;  %v1740_v52 = vadd.f32 1.0, %v3674_v5  ;;  %v5610_v29 = vadd.f32 %v5965_v62, %v5026_v36 }
 0x230   : > { %v3678_v58 = vpop.eup %3677  ;;  %3697 = vrcp.f32 %v1733_v21  ;;  %v1742_v31 = vadd.f32 1.0, %v3676_v55  ;;  %v2995_v38 = vmul.f32 -1.442695, %v5595_v9  ;;  %v5615_v14 = vadd.f32 %v5966_v30, %v5032_v8 }
 0x231   : > { %v3680_v45 = vpop.eup %3679  ;;  %3699 = vrcp.f32 %v1740_v52  ;;  %v1741_v12 = vadd.f32 1.0, %v3678_v58  ;;  %v2994_v1 = vmul.f32 -1.442695, %v5601_v16  ;;  %v5621_v10 = vadd.f32 %v5967_v50, %v5061_v51 }
 0x232   : > { %v3682_v63 = vpop.eup %3681  ;;  %3701 = vrcp.f32 %v1742_v31  ;;  %v1743_v56 = vadd.f32 1.0, %v3680_v45  ;;  %v2996_v27 = vmul.f32 -1.442695, %v5605_v44  ;;  %v5627_v8 = vadd.f32 %v5968_v42, %v5058_v47 }
 0x233   : > { %v3684_v2 = vpop.eup %3683  ;;  %v2193_v32 = vmul.f32 %v3682_v63, %v5455_v0  ;;  %3703 = vrcp.f32 %v1741_v12  ;;  %v3003_v5 = vmul.f32 -1.442695, %v5610_v29  ;;  %v3005_v53 = vmul.f32 -1.442695, %v5615_v14 }
 0x234   : > { %v3686_v36 = vpop.eup %3685  ;;  %v2200_v48 = vmul.f32 %v3684_v2, %v5462_v41  ;;  %3705 = vrcp.f32 %v1743_v56 }
 0x235   : > { %v3688_v23 = vpop.eup %3687  ;;  %v2495_v0 = vadd.f32 %v5563_v54, %v2193_v32  ;;  %v2202_v26 = vmul.f32 %v3686_v36, %v5475_v4  ;;  %3707 = vpow2.f32 %v2993_v33  ;;  %v3004_v54 = vmul.f32 -1.442695, %v5621_v10 }
 0x236   : > { %v3690_v51 = vpop.eup %3689  ;;  %v2457_v21 = vadd.f32 %v5566_v34, %v2200_v48  ;;  %v2201_v41 = vmul.f32 %v3688_v23, %v5485_v24  ;;  %3709 = vpow2.f32 %v2995_v38  ;;  %v3006_v34 = vmul.f32 -1.442695, %v5627_v8 }
 0x237   : > { %v3692_v55 = vpop.eup %3691  ;;  %v2483_v47 = vadd.f32 %v5569_v57, %v2202_v26  ;;  %v2203_v52 = vmul.f32 %v3690_v51, %v5489_v60  ;;  %3711 = vpow2.f32 %v2994_v1 }
 0x238   : > { %v3694_v4 = vpop.eup %3693  ;;  %v2470_v18 = vadd.f32 %v5571_v7, %v2201_v41  ;;  %v2210_v58 = vmul.f32 %v3692_v55, %v5496_v13  ;;  %3713 = vpow2.f32 %v2996_v27 }
 0x239   : > { %v3696_v24 = vpop.eup %3695  ;;  %v2496_v31 = vadd.f32 %v2495_v0, %v2203_v52  ;;  %v2212_v28 = vmul.f32 %v3694_v4, %v5506_v49  ;;  %3715 = vpow2.f32 %v3003_v5 }
 0x23a   : > { %v3698_v45 = vpop.eup %3697  ;;  %v2458_v57 = vadd.f32 %v2457_v21, %v2210_v58  ;;  %v2211_v60 = vmul.f32 %v3696_v24, %v5513_v59  ;;  %3717 = vpow2.f32 %v3005_v53 }
 0x23b   : > { %v3700_v12 = vpop.eup %3699  ;;  %v2484_v33 = vadd.f32 %v2483_v47, %v2212_v28  ;;  %v2213_v62 = vmul.f32 %v3698_v45, %v5517_v11  ;;  %3719 = vpow2.f32 %v3004_v54 }
 0x23c   : > { %v3702_v7 = vpop.eup %3701  ;;  %v2471_v13 = vadd.f32 %v2470_v18, %v2211_v60  ;;  %v2220_v63 = vmul.f32 %v3700_v12, %v5522_v40  ;;  %3721 = vpow2.f32 %v3006_v34 }
 0x23d   : > { %v3704_v56 = vpop.eup %3703  ;;  %v2497_v38 = vadd.f32 %v2496_v31, %v2213_v62  ;;  %v2222_v49 = vmul.f32 %v3702_v7, %v5526_v43 }
 0x23e   : > { %v3706_v30 = vpop.eup %3705  ;;  %v2459_v2 = vadd.f32 %v2458_v57, %v2220_v63  ;;  %v2221_v32 = vmul.f32 %v3704_v56, %v5530_v39 }
 0x23f   : > { %v3708_v59 = vpop.eup %3707  ;;  %v2485_v1 = vadd.f32 %v2484_v33, %v2222_v49  ;;  %v2223_v50 = vmul.f32 %v3706_v30, %v5534_v46 }
 0x240   : > { %v3710_v36 = vpop.eup %3709  ;;  %v2472_v11 = vadd.f32 %v2471_v13, %v2221_v32  ;;  %v1750_v48 = vadd.f32 1.0, %v3708_v59 }
 0x241   : > { %v3712_v27 = vpop.eup %3711  ;;  %v2498_v42 = vadd.f32 %v2497_v38, %v2223_v50  ;;  %v1752_v23 = vadd.f32 1.0, %v3710_v36 }
 0x242   : > { %v3714_v40 = vpop.eup %3713  ;;  %3723 = vrcp.f32 %v1750_v48  ;;  %v1751_v0 = vadd.f32 1.0, %v3712_v27 }
 0x243   : > { %v3716_v26 = vpop.eup %3715  ;;  %3725 = vrcp.f32 %v1752_v23  ;;  %v1753_v43 = vadd.f32 1.0, %v3714_v40 }
 0x244   : > { %v3718_v5 = vpop.eup %3717  ;;  %3727 = vrcp.f32 %v1751_v0  ;;  %v1760_v51 = vadd.f32 1.0, %v3716_v26 }
 0x245   : > { %v3720_v39 = vpop.eup %3719  ;;  %3729 = vrcp.f32 %v1753_v43  ;;  %v1762_v21 = vadd.f32 1.0, %v3718_v5 }
 0x246   : > { %v3722_v41 = vpop.eup %3721  ;;  %3731 = vrcp.f32 %v1760_v51  ;;  %v1761_v46 = vadd.f32 1.0, %v3720_v39 }
 0x247   : > { %3733 = vrcp.f32 %v1762_v21  ;;  %v1763_v53 = vadd.f32 1.0, %v3722_v41 }
 0x248   : > { %3735 = vrcp.f32 %v1761_v46 }
 0x249   : > { %3737 = vrcp.f32 %v1763_v53 }
 0x24c   : > { %v3724_v55 = vpop.eup %3723 }
 0x24d   : > { %v3726_v47 = vpop.eup %3725  ;;  %v2230_v52 = vmul.f32 %v3724_v55, %v5591_v22  ;;  %v2614_v55 = vrot.slane %v2606_v20, %v4564_v3 }
 0x24e   : > { %v3728_v54 = vpop.eup %3727  ;;  %v2232_v4 = vmul.f32 %v3726_v47, %v5595_v9 }
 0x24f   : > { %v3730_v18 = vpop.eup %3729  ;;  %v2460_v58 = vadd.f32 %v2459_v2, %v2230_v52  ;;  %v2231_v34 = vmul.f32 %v3728_v54, %v5601_v16 }
 0x250   : > { %v3732_v24 = vpop.eup %3731  ;;  %v2486_v31 = vadd.f32 %v2485_v1, %v2232_v4  ;;  %v2233_v28 = vmul.f32 %v3730_v18, %v5605_v44  ;;  %v2588_v4 = vrot.slane %v2581_v15, %v4564_v3 }
 0x251   : > { %v3734_v45 = vpop.eup %3733  ;;  %v2473_v57 = vadd.f32 %v2472_v11, %v2231_v34  ;;  %v2240_v60 = vmul.f32 %v3732_v24, %v5610_v29 }
 0x252   : > { %v3736_v12 = vpop.eup %3735  ;;  %v2499_v33 = vadd.f32 %v2498_v42, %v2233_v28  ;;  %v2242_v62 = vmul.f32 %v3734_v45, %v5615_v14 }
 0x253   : > { %v3738_v22 = vpop.eup %3737  ;;  %v2461_v7 = vadd.f32 %v2460_v58, %v2240_v60  ;;  %v2241_v9 = vmul.f32 %v3736_v12, %v5621_v10 }
 0x254   : > { %v2487_v13 = vadd.f32 %v2486_v31, %v2242_v62  ;;  %v2243_v63 = vmul.f32 %v3738_v22, %v5627_v8 }
 0x255   : > { %v2462_v16 = vrot.slane %v2461_v7, 4  ;;  %v2474_v56 = vadd.f32 %v2473_v57, %v2241_v9 }
 0x256   : > { %v2488_v38 = vrot.slane %v2487_v13, 4  ;;  %v2500_v49 = vadd.f32 %v2499_v33, %v2243_v63 }
 0x257   : > { %v2463_v44 = vadd.f32 %v2462_v16, %v2461_v7  ;;  %v2475_v30 = vrot.slane %v2474_v56, 4 }
 0x258   : > { %v2489_v2 = vadd.f32 %v2488_v38, %v2487_v13  ;;  %v2501_v32 = vrot.slane %v2500_v49, 4 }
 0x259   : > { %v2464_v29 = vrot.slane %v2463_v44, 2  ;;  %v2476_v59 = vadd.f32 %v2475_v30, %v2474_v56 }
 0x25a   : > { %v2490_v1 = vrot.slane %v2489_v2, 2  ;;  %v2502_v50 = vadd.f32 %v2501_v32, %v2500_v49 }
 0x25b   : > { %v2465_v14 = vadd.f32 %v2464_v29, %v2463_v44  ;;  %v2477_v36 = vrot.slane %v2476_v59, 2 }
 0x25c   : > { %v2491_v11 = vadd.f32 %v2490_v1, %v2489_v2  ;;  %v2503_v48 = vrot.slane %v2502_v50, 2 }
 0x25d   : > { %v2466_v10 = vrot.slane %v2465_v14, 1  ;;  %v2478_v27 = vadd.f32 %v2477_v36, %v2476_v59 }
 0x25e   : > { %v2492_v42 = vrot.slane %v2491_v11, 1  ;;  %v2504_v8 = vadd.f32 %v2503_v48, %v2502_v50 }
 0x25f   : > { %v2467_v23 = vadd.f32 %v2466_v10, %v2465_v14  ;;  %v2479_v40 = vrot.slane %v2478_v27, 1 }
 0x260   : > { %v2493_v0 = vadd.f32 %v2492_v42, %v2491_v11  ;;  %v2505_v26 = vrot.slane %v2504_v8, 1 }
 0x261   : > { %v2523_v43 = vmul.f32 0.015625, %v2467_v23  ;;  %v2480_v5 = vadd.f32 %v2479_v40, %v2478_v27 }
 0x262   : > { %v2525_v51 = vmul.f32 0.015625, %v2493_v0  ;;  %v2506_v39 = vadd.f32 %v2505_v26, %v2504_v8 }
 0x263   : > { %v2524_v21 = vmul.f32 0.015625, %v2480_v5 }
 0x264   : > { %v2526_v41 = vmul.f32 0.015625, %v2506_v39 }
 0x265   : > { %v2607_v46 = vcombine.low %v2523_v43, %v2524_v21 }
 0x266   : > { %v2623_v53 = vcombine.low %v2525_v51, %v2526_v41 }
 0x267   : > { %v2621_v47 = vrot.slane %v2607_v46, %v4564_v3 }
 0x268   : > { %v2630_v52 = vrot.slane %v2623_v53, %v4564_v3 }
 0x269   : > { %v2622_v54 = vcombine.low %v2614_v55, %v2621_v47 }
 0x26a   : > { %v2653_v18 = vrot.slane %v2630_v52, 7 }
 0x26b   : > { %v2646_v58 = vrot.slane %v2622_v54, 7 }
 0x26c   : > { %v2654_v34 = vsel %vm2636_vm1, %v2653_v18, %v2588_v4 }
 0x26d   : > { %v2647_v61 = vsel %vm2636_vm1, %v2646_v58, %v2580_v25  ;;  %v2655_v20 = vsel %vm2638_vm2, %v2653_v18, %v2654_v34 }
 0x26e   : > { %v2648_v24 = vsel %vm2638_vm2, %v2646_v58, %v2647_v61  ;;  %v2656_v31 = vsel %vm2640_vm3, %v2653_v18, %v2655_v20 }
 0x26f   : > { %v2649_v28 = vsel %vm2640_vm3, %v2646_v58, %v2648_v24  ;;  %v2657_v3 = vsel %vm2642_vm4, %v2653_v18, %v2656_v31 }
 0x270   : > { %v2650_v19 = vsel %vm2642_vm4, %v2646_v58, %v2649_v28  ;;  %v2663_v17 = vadd.f32 %v2657_v3, %v2246_v35 }
 0x271   : > { %2665 = vst [vmem:[%s4748_s4 + $0x8] sm:$0xff] %v2650_v19 }
 0x272   : > { %2666 = vst [vmem:[%s4748_s4 + $0x10] sm:$0xf] %v2663_v17 }
 0x273 PF: > { %s13_s14 = sadd.s32 1, %s3762_s14   ;;  %s5969_s12 = smov %s3758_s13 }
 0x274   : > { %p10_p5 = scmp.ge.s32.totalorder %s13_s14, 4   ;;  %s5970_s13 = smov %s5972_s15 }
 0x276   :  { %12 = sbr.rel (!%p10_p5) target bundleno = 2 (0x2), region = 72 }

// kernel: multibranch_forward.3
= control target key start
LH: loop header
LB: loop body
LE: loop exit
PB: predicated region body
PF: predicated region fallthrough
CT: control target
= control target key end

     0   :  { %v11012_v36 = vmov 1983009808   ;;  %v46_v38 = vlaneseq  ;;  %vm7874_vm0 = vcmask 1024   ;;  %s14329_s1 = inlined_call_operand.vmem [shape: bf16[2,1280,256], index: 1, kind: input, shape index: {}]   ;;  %s14330_s0 = inlined_call_operand.vmem [shape: f32[2,2,1280], index: 0, kind: input, shape index: {}]   ;;  %s14331_s3 = inlined_call_operand.vmem [shape: bf16[2,256,1280], index: 3, kind: input, shape index: {}]   ;;  %s14332_s2 = inlined_call_operand.vmem [shape: f32[2,1,256], index: 2, kind: input, shape index: {}]   ;;  %s14333_s5 = inlined_call_operand.vmem [shape: bf16[2,1280,256], index: 5, kind: input, shape index: {}]   ;;  %s14334_s4 = inlined_call_operand.vmem [shape: f32[2,1,1280], index: 4, kind: input, shape index: {}]   ;;  %s14335_s7 = inlined_call_operand.vmem [shape: bf16[256,1], index: 7, kind: input, shape index: {}]   ;;  %s14336_s6 = inlined_call_operand.vmem [shape: f32[1,256], index: 6, kind: input, shape index: {}]   ;;  %s14337_s8 = inlined_call_operand.<no memory space> [shape: f32[1,1], index: 8, kind: input, shape index: {}]   ;;  %s14338_s9 = inlined_call_operand.vmem [shape: f32[2,1], index: 9, kind: output, shape index: {}]  }
   0x1   :  { %v9459_v0 = vld [vmem:[%s14329_s1 + $0x4] ss:$8 sps:$4 sm:$0xff]   ;;  %v9463_v2 = vld [vmem:[%s14329_s1] ss:$8 sps:$4 sm:$0xff]   ;;  %v9465_v4 = vld [vmem:[%s14329_s1 + $0x14] ss:$8 sps:$4 sm:$0xff]   ;;  %v44_v37 = vunpack.c.l.s4 %v11012_v36 }
   0x2   :  { %v9461_v1 = vld [vmem:[%s14329_s1 + $0x304] ss:$8 sps:$4 sm:$0xff]   ;;  %1076 = vmatprep.subr.bf16.mxu1 %v9459_v0  ;;  %v9464_v3 = vld [vmem:[%s14329_s1 + $0x300] ss:$8 sps:$4 sm:$0xff]   ;;  %v9467_v5 = vld [vmem:[%s14329_s1 + $0x314] ss:$8 sps:$4 sm:$0xff]  }
   0x3   :  { %1199 = vmatprep.subr.bf16.mxu0 %v9461_v1  ;;  %1077 = vmatpush1.bf16.msra.mxu1 %v9463_v2  ;;  %v9469_v6 = vld [vmem:[%s14329_s1 + $0x10] ss:$8 sps:$4 sm:$0xff]   ;;  %v9471_v8 = vld [vmem:[%s14329_s1 + $0x24] ss:$8 sps:$4 sm:$0xff]   ;;  %v9475_v10 = vld [vmem:[%s14329_s1 + $0x20] ss:$8 sps:$4 sm:$0xff]   ;;  %v45_v42 = vunpack.c.0.s8 %v44_v37 }
   0x4   :  { %1200 = vmatpush1.bf16.msra.mxu0 %v9464_v3  ;;  %1078 = vmatprep.subr.bf16.mxu1 %v9465_v4  ;;  %v9470_v7 = vld [vmem:[%s14329_s1 + $0x310] ss:$8 sps:$4 sm:$0xff]   ;;  %v9473_v9 = vld [vmem:[%s14329_s1 + $0x324] ss:$8 sps:$4 sm:$0xff]   ;;  %v9476_v11 = vld [vmem:[%s14329_s1 + $0x320] ss:$8 sps:$4 sm:$0xff]  }
   0x5   :  { %1201 = vmatprep.subr.bf16.mxu0 %v9467_v5  ;;  %v9477_v12 = vld [vmem:[%s14329_s1 + $0x34] ss:$8 sps:$4 sm:$0xff]   ;;  %v9481_v14 = vld [vmem:[%s14329_s1 + $0x30] ss:$8 sps:$4 sm:$0xff]   ;;  %v9483_v16 = vld [vmem:[%s14329_s1 + $0x44] ss:$8 sps:$4 sm:$0xff]  }
   0x6   :  { %v9479_v13 = vld [vmem:[%s14329_s1 + $0x334] ss:$8 sps:$4 sm:$0xff]   ;;  %v9482_v15 = vld [vmem:[%s14329_s1 + $0x330] ss:$8 sps:$4 sm:$0xff]   ;;  %v9485_v17 = vld [vmem:[%s14329_s1 + $0x344] ss:$8 sps:$4 sm:$0xff]  }
   0x7   :  { %1079 = vmatpush1.bf16.msra.mxu1 %v9469_v6  ;;  %v9487_v18 = vld [vmem:[%s14329_s1 + $0x40] ss:$8 sps:$4 sm:$0xff]   ;;  %v9489_v20 = vld [vmem:[%s14329_s1 + $0x54] ss:$8 sps:$4 sm:$0xff]   ;;  %v9493_v22 = vld [vmem:[%s14329_s1 + $0x50] ss:$8 sps:$4 sm:$0xff]  }
   0x8   :  { %1202 = vmatpush1.bf16.msra.mxu0 %v9470_v7  ;;  %1080 = vmatprep.subr.bf16.mxu1 %v9471_v8  ;;  %v9488_v19 = vld [vmem:[%s14329_s1 + $0x340] ss:$8 sps:$4 sm:$0xff]   ;;  %v9491_v21 = vld [vmem:[%s14329_s1 + $0x354] ss:$8 sps:$4 sm:$0xff]   ;;  %v9494_v23 = vld [vmem:[%s14329_s1 + $0x350] ss:$8 sps:$4 sm:$0xff]  }
   0x9   :  { %1203 = vmatprep.subr.bf16.mxu0 %v9473_v9  ;;  %v9495_v24 = vld [vmem:[%s14329_s1 + $0x64] ss:$8 sps:$4 sm:$0xff]   ;;  %v9499_v26 = vld [vmem:[%s14329_s1 + $0x60] ss:$8 sps:$4 sm:$0xff]   ;;  %v9501_v28 = vld [vmem:[%s14329_s1 + $0x74] ss:$8 sps:$4 sm:$0xff]  }
   0xa   :  { %v9497_v25 = vld [vmem:[%s14329_s1 + $0x364] ss:$8 sps:$4 sm:$0xff]   ;;  %v9500_v27 = vld [vmem:[%s14329_s1 + $0x360] ss:$8 sps:$4 sm:$0xff]   ;;  %v9503_v29 = vld [vmem:[%s14329_s1 + $0x374] ss:$8 sps:$4 sm:$0xff]  }
   0xb   :  { %1081 = vmatpush1.bf16.msra.mxu1 %v9475_v10  ;;  %v9505_v30 = vld [vmem:[%s14329_s1 + $0x70] ss:$8 sps:$4 sm:$0xff]   ;;  %v9507_v32 = vld [vmem:[%s14329_s1 + $0x84] ss:$8 sps:$4 sm:$0xff]   ;;  %v9511_v34 = vld [vmem:[%s14329_s1 + $0x80] ss:$8 sps:$4 sm:$0xff]  }
   0xc   :  { %1204 = vmatpush1.bf16.msra.mxu0 %v9476_v11  ;;  %1082 = vmatprep.subr.bf16.mxu1 %v9477_v12  ;;  %v9506_v31 = vld [vmem:[%s14329_s1 + $0x370] ss:$8 sps:$4 sm:$0xff]   ;;  %v9509_v33 = vld [vmem:[%s14329_s1 + $0x384] ss:$8 sps:$4 sm:$0xff]   ;;  %v9512_v35 = vld [vmem:[%s14329_s1 + $0x380] ss:$8 sps:$4 sm:$0xff]  }
   0xd   :  { %1205 = vmatprep.subr.bf16.mxu0 %v9479_v13  ;;  %v9513_v39 = vld [vmem:[%s14329_s1 + $0x94] ss:$8 sps:$4 sm:$0xff]   ;;  %v9517_v41 = vld [vmem:[%s14329_s1 + $0x90] ss:$8 sps:$4 sm:$0xff]   ;;  %v11180_v43 = vshrl.u32 %v46_v38, 7  ;;  %v36_v52 = vld [vmem:[%s14330_s0] sm:$0xff] }
   0xe   :  { %v9515_v40 = vld [vmem:[%s14329_s1 + $0x394] ss:$8 sps:$4 sm:$0xff]   ;;  %v9518_v44 = vld [vmem:[%s14329_s1 + $0x390] ss:$8 sps:$4 sm:$0xff]   ;;  %v9519_v45 = vld [vmem:[%s14329_s1 + $0xa4] ss:$8 sps:$4 sm:$0xff]   ;;  %v42_v9 = vcombine.high %v36_v52, %v36_v52 }
   0xf   :  { %1083 = vmatpush1.bf16.msra.mxu1 %v9481_v14  ;;  %v9521_v46 = vld [vmem:[%s14329_s1 + $0x3a4] ss:$8 sps:$4 sm:$0xff]   ;;  %v9523_v47 = vld [vmem:[%s14329_s1 + $0xa0] ss:$8 sps:$4 sm:$0xff]   ;;  %v11198_v49 = vsub.s32 %v45_v42, %v11180_v43  ;;  %v9525_v50 = vld [vmem:[%s14329_s1 + $0xb4] ss:$8 sps:$4 sm:$0xff]  }
  0x10   :  { %1206 = vmatpush1.bf16.msra.mxu0 %v9482_v15  ;;  %1084 = vmatprep.subr.bf16.mxu1 %v9483_v16  ;;  %v9524_v48 = vld [vmem:[%s14329_s1 + $0x3a0] ss:$8 sps:$4 sm:$0xff]   ;;  %v9527_v51 = vld [vmem:[%s14329_s1 + $0x3b4] ss:$8 sps:$4 sm:$0xff]   ;;  %v9529_v53 = vld [vmem:[%s14329_s1 + $0xb0] ss:$8 sps:$4 sm:$0xff]  }
  0x11   :  { %1207 = vmatprep.subr.bf16.mxu0 %v9485_v17  ;;  %v11213_v54 = vrot.slane %v36_v52, %v11198_v49  ;;  %v9530_v55 = vld [vmem:[%s14329_s1 + $0x3b0] ss:$8 sps:$4 sm:$0xff]   ;;  %v11221_v56 = vld [vmem:[%s14330_s0 + $0x8] sm:$0xff]  ;;  %v9537_v1 = vld [vmem:[%s14329_s1 + $0xd4] ss:$8 sps:$4 sm:$0xff]   ;;  %v11271_v14 = vrot.slane %v42_v9, %v11198_v49 }
  0x12   :  { %v9531_v57 = vld [vmem:[%s14329_s1 + $0xc4] ss:$8 sps:$4 sm:$0xff]   ;;  %v59_v60 = vcombine.high %v11221_v56, %v11221_v56  ;;  %v9535_v63 = vld [vmem:[%s14329_s1 + $0xc0] ss:$8 sps:$4 sm:$0xff]   ;;  %v9539_v2 = vld [vmem:[%s14329_s1 + $0x3d4] ss:$8 sps:$4 sm:$0xff]  }
  0x13   :  { %1085 = vmatpush1.bf16.msra.mxu1 %v9487_v18  ;;  %v9533_v58 = vld [vmem:[%s14329_s1 + $0x3c4] ss:$8 sps:$4 sm:$0xff]   ;;  %v57_v59 = vcombine.high %v11213_v54, %v11213_v54  ;;  %v9536_v0 = vld [vmem:[%s14329_s1 + $0x3c0] ss:$8 sps:$4 sm:$0xff]   ;;  %v9541_v5 = vld [vmem:[%s14329_s1 + $0xd0] ss:$8 sps:$4 sm:$0xff]  }
  0x14   :  { %1208 = vmatpush1.bf16.msra.mxu0 %v9488_v19  ;;  %1086 = vmatprep.subr.bf16.mxu1 %v9489_v20  ;;  %v73_v62 = vrot.slane %v59_v60, %v11198_v49  ;;  %v9542_v6 = vld [vmem:[%s14329_s1 + $0x3d0] ss:$8 sps:$4 sm:$0xff]   ;;  %v9543_v7 = vld [vmem:[%s14329_s1 + $0xe4] ss:$8 sps:$4 sm:$0xff]   ;;  %v9547_v10 = vld [vmem:[%s14329_s1 + $0xe0] ss:$8 sps:$4 sm:$0xff]   ;;  %v58_v19 = vcombine.high %v11271_v14, %v11271_v14  ;;  %v94_v20 = vpack.c.bf16 %v11213_v54, %v11213_v54 }
  0x15   :  { %1209 = vmatprep.subr.bf16.mxu0 %v9491_v21  ;;  %v95_v61 = vpack.c.bf16 %v57_v59, %v57_v59  ;;  %v9545_v8 = vld [vmem:[%s14329_s1 + $0x3e4] ss:$8 sps:$4 sm:$0xff]   ;;  %v9548_v11 = vld [vmem:[%s14329_s1 + $0x3e0] ss:$8 sps:$4 sm:$0xff]   ;;  %v9549_v12 = vld [vmem:[%s14329_s1 + $0xf4] ss:$8 sps:$4 sm:$0xff]  }
  0x16   :  { %v75_v3 = vcombine.high %v73_v62, %v73_v62  ;;  %v9551_v13 = vld [vmem:[%s14329_s1 + $0x3f4] ss:$8 sps:$4 sm:$0xff]   ;;  %v9553_v15 = vld [vmem:[%s14329_s1 + $0xf0] ss:$8 sps:$4 sm:$0xff]   ;;  %v9558_v17 = vld [vmem:[%s14329_s1 + $0x104] ss:$8 sps:$4 sm:$0xff]   ;;  %v100_v21 = vpack.c.bf16 %v73_v62, %v73_v62 }
  0x17   :  { %1087 = vmatpush1.bf16.msra.mxu1 %v9493_v22  ;;  %1108 = vmatprep.mubr.bf16.mxu1 %v95_v61  ;;  %v9554_v16 = vld [vmem:[%s14329_s1 + $0x3f0] ss:$8 sps:$4 sm:$0xff]   ;;  %v9562_v18 = vld [vmem:[%s14329_s1 + $0x404] ss:$8 sps:$4 sm:$0xff]   ;;  %v9556_v22 = vld [vmem:[%s14329_s1 + $0x100] ss:$8 sps:$4 sm:$0xff]  }
  0x18   :  { %1210 = vmatpush1.bf16.msra.mxu0 %v9494_v23  ;;  %1088 = vmatprep.subr.bf16.mxu1 %v9495_v24  ;;  %v101_v4 = vpack.c.bf16 %v75_v3, %v75_v3  ;;  %v9560_v23 = vld [vmem:[%s14329_s1 + $0x400] ss:$8 sps:$4 sm:$0xff]   ;;  %v9565_v24 = vld [vmem:[%s14329_s1 + $0x114] ss:$8 sps:$4 sm:$0xff]   ;;  %v9578_v36 = vld [vmem:[%s14329_s1 + $0x430] ss:$8 sps:$4 sm:$0xff]  }
  0x19   :  { %1211 = vmatprep.subr.bf16.mxu0 %v9497_v25  ;;  %v9568_v25 = vld [vmem:[%s14329_s1 + $0x414] ss:$8 sps:$4 sm:$0xff]   ;;  %v9583_v37 = vld [vmem:[%s14329_s1 + $0x144] ss:$8 sps:$4 sm:$0xff]   ;;  %v9605_v61 = vld [vmem:[%s14329_s1 + $0x180] ss:$8 sps:$4 sm:$0xff]  }
  0x1a   :  { %1231 = vmatprep.mubr.bf16.mxu0 %v101_v4  ;;  %v9586_v38 = vld [vmem:[%s14329_s1 + $0x444] ss:$8 sps:$4 sm:$0xff]   ;;  %v9592_v42 = vld [vmem:[%s14329_s1 + $0x454] ss:$8 sps:$4 sm:$0xff]   ;;  %v9608_v62 = vld [vmem:[%s14329_s1 + $0x480] ss:$8 sps:$4 sm:$0xff]  }
  0x1b   :  { %1089 = vmatpush1.bf16.msra.mxu1 %v9499_v26  ;;  %v97_v26 = vpack.c.bf16 %v58_v19, %v58_v19  ;;  %v9601_v52 = vld [vmem:[%s14329_s1 + $0x174] ss:$8 sps:$4 sm:$0xff]   ;;  %v9607_v59 = vld [vmem:[%s14329_s1 + $0x184] ss:$8 sps:$4 sm:$0xff]   ;;  %v9623_v9 = vld [vmem:[%s14329_s1 + $0x1b0] ss:$8 sps:$4 sm:$0xff]  }
  0x1c   :  { %1212 = vmatpush1.bf16.msra.mxu0 %v9500_v27  ;;  %1090 = vmatprep.subr.bf16.mxu1 %v9501_v28  ;;  %v9563_v27 = vld [vmem:[%s14329_s1 + $0x110] ss:$8 sps:$4 sm:$0xff]   ;;  %v9610_v60 = vld [vmem:[%s14329_s1 + $0x484] ss:$8 sps:$4 sm:$0xff]  }
  0x1d   :  { %1213 = vmatprep.subr.bf16.mxu0 %v9503_v29  ;;  %v9566_v28 = vld [vmem:[%s14329_s1 + $0x410] ss:$8 sps:$4 sm:$0xff]   ;;  %v9571_v29 = vld [vmem:[%s14329_s1 + $0x124] ss:$8 sps:$4 sm:$0xff]  }
  0x1e   :  { %v9619_v3 = vld [vmem:[%s14329_s1 + $0x1a4] ss:$8 sps:$4 sm:$0xff]   ;;  %v9638_v19 = vld [vmem:[%s14329_s1 + $0x4d0] ss:$8 sps:$4 sm:$0xff]  }
  0x1f   :  { %1091 = vmatpush1.bf16.msra.mxu1 %v9505_v30  ;;  %v9574_v30 = vld [vmem:[%s14329_s1 + $0x424] ss:$8 sps:$4 sm:$0xff]  }
  0x20   :  { %1214 = vmatpush1.bf16.msra.mxu0 %v9506_v31  ;;  %1092 = vmatprep.subr.bf16.mxu1 %v9507_v32  ;;  %v9569_v31 = vld [vmem:[%s14329_s1 + $0x120] ss:$8 sps:$4 sm:$0xff]   ;;  %v9622_v4 = vld [vmem:[%s14329_s1 + $0x4a4] ss:$8 sps:$4 sm:$0xff]  }
  0x21   :  { %1215 = vmatprep.subr.bf16.mxu0 %v9509_v33  ;;  %v9572_v32 = vld [vmem:[%s14329_s1 + $0x420] ss:$8 sps:$4 sm:$0xff]   ;;  %v9577_v33 = vld [vmem:[%s14329_s1 + $0x134] ss:$8 sps:$4 sm:$0xff]  }
  0x23   :  { %1093 = vmatpush1.bf16.msra.mxu1 %v9511_v34  ;;  %v9580_v34 = vld [vmem:[%s14329_s1 + $0x434] ss:$8 sps:$4 sm:$0xff]  }
  0x24   :  { %1216 = vmatpush1.bf16.msra.mxu0 %v9512_v35  ;;  %1094 = vmatprep.subr.bf16.mxu1 %v9513_v39  ;;  %v9575_v35 = vld [vmem:[%s14329_s1 + $0x130] ss:$8 sps:$4 sm:$0xff]   ;;  %v9581_v39 = vld [vmem:[%s14329_s1 + $0x140] ss:$8 sps:$4 sm:$0xff]  }
  0x25   :  { %1217 = vmatprep.subr.bf16.mxu0 %v9515_v40  ;;  %v9584_v40 = vld [vmem:[%s14329_s1 + $0x440] ss:$8 sps:$4 sm:$0xff]  }
  0x27   :  { %1095 = vmatpush1.bf16.msra.mxu1 %v9517_v41  ;;  %v9589_v41 = vld [vmem:[%s14329_s1 + $0x154] ss:$8 sps:$4 sm:$0xff]  }
  0x28   :  { %1218 = vmatpush1.bf16.msra.mxu0 %v9518_v44  ;;  %1096 = vmatprep.subr.bf16.mxu1 %v9519_v45  ;;  %v9587_v44 = vld [vmem:[%s14329_s1 + $0x150] ss:$8 sps:$4 sm:$0xff]  }
  0x29   :  { %1219 = vmatprep.subr.bf16.mxu0 %v9521_v46  ;;  %v9590_v45 = vld [vmem:[%s14329_s1 + $0x450] ss:$8 sps:$4 sm:$0xff]   ;;  %v9595_v46 = vld [vmem:[%s14329_s1 + $0x164] ss:$8 sps:$4 sm:$0xff]  }
  0x2b   :  { %1097 = vmatpush1.bf16.msra.mxu1 %v9523_v47  ;;  %v9598_v47 = vld [vmem:[%s14329_s1 + $0x464] ss:$8 sps:$4 sm:$0xff]  }
  0x2c   :  { %1220 = vmatpush1.bf16.msra.mxu0 %v9524_v48  ;;  %1098 = vmatprep.subr.bf16.mxu1 %v9525_v50  ;;  %v11364_v48 = vld.sshfl [vmem:[%s14330_s0 + $0x10] sm:$0x33 pattern:$0x76325410]  ;;  %v9593_v50 = vld [vmem:[%s14329_s1 + $0x160] ss:$8 sps:$4 sm:$0xff]  }
  0x2d   :  { %1221 = vmatprep.subr.bf16.mxu0 %v9527_v51  ;;  %v9596_v51 = vld [vmem:[%s14329_s1 + $0x460] ss:$8 sps:$4 sm:$0xff]   ;;  %v83_v54 = vcombine.high %v11364_v48, %v11364_v48 }
  0x2f   :  { %1099 = vmatpush1.bf16.msra.mxu1 %v9529_v53  ;;  %v9604_v53 = vld [vmem:[%s14329_s1 + $0x474] ss:$8 sps:$4 sm:$0xff]  }
  0x30   :  { %1222 = vmatpush1.bf16.msra.mxu0 %v9530_v55  ;;  %1100 = vmatprep.subr.bf16.mxu1 %v9531_v57  ;;  %v9599_v55 = vld [vmem:[%s14329_s1 + $0x170] ss:$8 sps:$4 sm:$0xff]   ;;  %v103_v57 = vpack.c.bf16 %v83_v54, %v83_v54  ;;  %v9683_v54 = vld [vmem:[%s14329_s1 + $0x2a0] ss:$8 sps:$4 sm:$0xff]  }
  0x31   :  { %1223 = vmatprep.subr.bf16.mxu0 %v9533_v58  ;;  %v9602_v58 = vld [vmem:[%s14329_s1 + $0x470] ss:$8 sps:$4 sm:$0xff]  }
  0x33   :  { %1101 = vmatpush1.bf16.msra.mxu1 %v9535_v63  ;;  %v9613_v63 = vld [vmem:[%s14329_s1 + $0x194] ss:$8 sps:$4 sm:$0xff]  }
  0x34   :  { %1224 = vmatpush1.bf16.msra.mxu0 %v9536_v0  ;;  %1102 = vmatprep.subr.bf16.mxu1 %v9537_v1  ;;  %v9616_v0 = vld [vmem:[%s14329_s1 + $0x494] ss:$8 sps:$4 sm:$0xff]   ;;  %v9611_v1 = vld [vmem:[%s14329_s1 + $0x190] ss:$8 sps:$4 sm:$0xff]  }
  0x35   :  { %1225 = vmatprep.subr.bf16.mxu0 %v9539_v2  ;;  %v9614_v2 = vld [vmem:[%s14329_s1 + $0x490] ss:$8 sps:$4 sm:$0xff]  }
  0x37   :  { %1103 = vmatpush1.bf16.msra.mxu1 %v9541_v5  ;;  %v9617_v5 = vld [vmem:[%s14329_s1 + $0x1a0] ss:$8 sps:$4 sm:$0xff]  }
  0x38   :  { %1226 = vmatpush1.bf16.msra.mxu0 %v9542_v6  ;;  %1104 = vmatprep.subr.bf16.mxu1 %v9543_v7  ;;  %v9620_v6 = vld [vmem:[%s14329_s1 + $0x4a0] ss:$8 sps:$4 sm:$0xff]   ;;  %v9625_v7 = vld [vmem:[%s14329_s1 + $0x1b4] ss:$8 sps:$4 sm:$0xff]  }
  0x39   :  { %1227 = vmatprep.subr.bf16.mxu0 %v9545_v8  ;;  %v9628_v8 = vld [vmem:[%s14329_s1 + $0x4b4] ss:$8 sps:$4 sm:$0xff]  }
  0x3b   :  { %1105 = vmatpush1.bf16.msra.mxu1 %v9547_v10  ;;  %v9626_v10 = vld [vmem:[%s14329_s1 + $0x4b0] ss:$8 sps:$4 sm:$0xff]  }
  0x3c   :  { %1228 = vmatpush1.bf16.msra.mxu0 %v9548_v11  ;;  %1106 = vmatprep.subr.bf16.mxu1 %v9549_v12  ;;  %v9631_v11 = vld [vmem:[%s14329_s1 + $0x1c4] ss:$8 sps:$4 sm:$0xff]  }
  0x3d   :  { %1229 = vmatprep.subr.bf16.mxu0 %v9551_v13  ;;  %v9634_v12 = vld [vmem:[%s14329_s1 + $0x4c4] ss:$8 sps:$4 sm:$0xff]   ;;  %v9629_v13 = vld [vmem:[%s14329_s1 + $0x1c0] ss:$8 sps:$4 sm:$0xff]  }
  0x3f   :  { %1107 = vmatpush1.bf16.msra.mxu1 %v9553_v15  ;;  %v9632_v15 = vld [vmem:[%s14329_s1 + $0x4c0] ss:$8 sps:$4 sm:$0xff]  }
  0x40   :  { %1230 = vmatpush1.bf16.msra.mxu0 %v9554_v16  ;;  %1117 = vmatprep.subr.bf16.mxu1 %v9558_v17  ;;  %v9637_v16 = vld [vmem:[%s14329_s1 + $0x1d4] ss:$8 sps:$4 sm:$0xff]  }
  0x41   :  { %1240 = vmatprep.subr.bf16.mxu0 %v9562_v18  ;;  %v9640_v17 = vld [vmem:[%s14329_s1 + $0x4d4] ss:$8 sps:$4 sm:$0xff]   ;;  %v9635_v18 = vld [vmem:[%s14329_s1 + $0x1d0] ss:$8 sps:$4 sm:$0xff]  }
  0x42   :  { %1109 = vmatmul.mubr.bf16.vlgmr.msra.gmra.mrb[0].mxu1 %v94_v20  ;;  %v9643_v20 = vld [vmem:[%s14329_s1 + $0x1e4] ss:$8 sps:$4 sm:$0xff]  }
  0x43   :  { %1232 = vmatmul.mubr.bf16.vlgmr.msra.gmra.mrb[0].mxu0 %v100_v21  ;;  %1118 = vmatpush1.bf16.msra.mxu1 %v9556_v22  ;;  %v9646_v21 = vld [vmem:[%s14329_s1 + $0x4e4] ss:$8 sps:$4 sm:$0xff]   ;;  %v9641_v22 = vld [vmem:[%s14329_s1 + $0x1e0] ss:$8 sps:$4 sm:$0xff]  }
  0x44   :  { %1241 = vmatpush1.bf16.msra.mxu0 %v9560_v23  ;;  %1119 = vmatprep.subr.bf16.mxu1 %v9565_v24  ;;  %v9644_v23 = vld [vmem:[%s14329_s1 + $0x4e0] ss:$8 sps:$4 sm:$0xff]   ;;  %v9649_v24 = vld [vmem:[%s14329_s1 + $0x1f4] ss:$8 sps:$4 sm:$0xff]  }
  0x45   :  { %1242 = vmatprep.subr.bf16.mxu0 %v9568_v25  ;;  %1149 = vmatprep.mubr.bf16.mxu1 %v97_v26  ;;  %v9652_v25 = vld [vmem:[%s14329_s1 + $0x4f4] ss:$8 sps:$4 sm:$0xff]   ;;  %v11478_v26 = vrot.slane %v11221_v56, %v11198_v49 }
  0x46   :  { %1272 = vmatprep.mubr.bf16.mxu0 %v103_v57  ;;  %v9686_v57 = vld [vmem:[%s14329_s1 + $0x2b0] ss:$8 sps:$4 sm:$0xff]  }
  0x47   :  { %1120 = vmatpush1.bf16.msra.mxu1 %v9563_v27  ;;  %v9647_v27 = vld [vmem:[%s14329_s1 + $0x1f0] ss:$8 sps:$4 sm:$0xff]   ;;  %v74_v56 = vcombine.high %v11478_v26, %v11478_v26 }
  0x48   :  { %1243 = vmatpush1.bf16.msra.mxu0 %v9566_v28  ;;  %1121 = vmatprep.subr.bf16.mxu1 %v9571_v29  ;;  %v9650_v28 = vld [vmem:[%s14329_s1 + $0x4f0] ss:$8 sps:$4 sm:$0xff]   ;;  %v9655_v29 = vld [vmem:[%s14329_s1 + $0x204] ss:$8 sps:$4 sm:$0xff]  }
  0x49   :  { %1244 = vmatprep.subr.bf16.mxu0 %v9574_v30  ;;  %v9653_v30 = vld [vmem:[%s14329_s1 + $0x200] ss:$8 sps:$4 sm:$0xff]  }
  0x4b   :  { %1122 = vmatpush1.bf16.msra.mxu1 %v9569_v31  ;;  %v102_v31 = vpack.c.bf16 %v11364_v48, %v11364_v48  ;;  %v9679_v48 = vld [vmem:[%s14329_s1 + $0x284] ss:$8 sps:$4 sm:$0xff]  }
  0x4c   :  { %1245 = vmatpush1.bf16.msra.mxu0 %v9572_v32  ;;  %1123 = vmatprep.subr.bf16.mxu1 %v9577_v33  ;;  %v96_v32 = vpack.c.bf16 %v11271_v14, %v11271_v14  ;;  %v9658_v33 = vld [vmem:[%s14329_s1 + $0x214] ss:$8 sps:$4 sm:$0xff]   ;;  %v9659_v14 = vld [vmem:[%s14329_s1 + $0x220] ss:$8 sps:$4 sm:$0xff]  }
  0x4d   :  { %1246 = vmatprep.subr.bf16.mxu0 %v9580_v34  ;;  %v99_v34 = vpack.c.bf16 %v74_v56, %v74_v56  ;;  %v9742_v56 = vld [vmem:[%s14331_s3 + $0x414] ss:$40 sps:$4 sm:$0xff]  }
  0x4f   :  { %1124 = vmatpush1.bf16.msra.mxu1 %v9575_v35  ;;  %v9656_v35 = vld [vmem:[%s14329_s1 + $0x210] ss:$8 sps:$4 sm:$0xff]  }
  0x50   :  { %1247 = vmatpush1.bf16.msra.mxu0 %v9578_v36  ;;  %1125 = vmatprep.subr.bf16.mxu1 %v9583_v37  ;;  %v9661_v36 = vld [vmem:[%s14329_s1 + $0x224] ss:$8 sps:$4 sm:$0xff]   ;;  %v9664_v37 = vld [vmem:[%s14329_s1 + $0x234] ss:$8 sps:$4 sm:$0xff]  }
  0x51   :  { %1248 = vmatprep.subr.bf16.mxu0 %v9586_v38  ;;  %v9662_v38 = vld [vmem:[%s14329_s1 + $0x230] ss:$8 sps:$4 sm:$0xff]  }
  0x53   :  { %1126 = vmatpush1.bf16.msra.mxu1 %v9581_v39  ;;  %v9667_v39 = vld [vmem:[%s14329_s1 + $0x244] ss:$8 sps:$4 sm:$0xff]  }
  0x54   :  { %1249 = vmatpush1.bf16.msra.mxu0 %v9584_v40  ;;  %1127 = vmatprep.subr.bf16.mxu1 %v9589_v41  ;;  %v9665_v40 = vld [vmem:[%s14329_s1 + $0x240] ss:$8 sps:$4 sm:$0xff]   ;;  %v9670_v41 = vld [vmem:[%s14329_s1 + $0x254] ss:$8 sps:$4 sm:$0xff]  }
  0x55   :  { %1250 = vmatprep.subr.bf16.mxu0 %v9592_v42  ;;  %v9668_v42 = vld [vmem:[%s14329_s1 + $0x250] ss:$8 sps:$4 sm:$0xff]  }
  0x57   :  { %1128 = vmatpush1.bf16.msra.mxu1 %v9587_v44  ;;  %v9673_v44 = vld [vmem:[%s14329_s1 + $0x264] ss:$8 sps:$4 sm:$0xff]  }
  0x58   :  { %1251 = vmatpush1.bf16.msra.mxu0 %v9590_v45  ;;  %1129 = vmatprep.subr.bf16.mxu1 %v9595_v46  ;;  %v9671_v45 = vld [vmem:[%s14329_s1 + $0x260] ss:$8 sps:$4 sm:$0xff]   ;;  %v9676_v46 = vld [vmem:[%s14329_s1 + $0x274] ss:$8 sps:$4 sm:$0xff]  }
  0x59   :  { %1252 = vmatprep.subr.bf16.mxu0 %v9598_v47  ;;  %v9674_v47 = vld [vmem:[%s14329_s1 + $0x270] ss:$8 sps:$4 sm:$0xff]  }
  0x5b   :  { %1130 = vmatpush1.bf16.msra.mxu1 %v9593_v50  ;;  %v9677_v50 = vld [vmem:[%s14329_s1 + $0x280] ss:$8 sps:$4 sm:$0xff]  }
  0x5c   :  { %1253 = vmatpush1.bf16.msra.mxu0 %v9596_v51  ;;  %1131 = vmatprep.subr.bf16.mxu1 %v9601_v52  ;;  %v9682_v51 = vld [vmem:[%s14329_s1 + $0x294] ss:$8 sps:$4 sm:$0xff]   ;;  %v9680_v52 = vld [vmem:[%s14329_s1 + $0x290] ss:$8 sps:$4 sm:$0xff]  }
  0x5d   :  { %1254 = vmatprep.subr.bf16.mxu0 %v9604_v53  ;;  %v9685_v53 = vld [vmem:[%s14329_s1 + $0x2a4] ss:$8 sps:$4 sm:$0xff]  }
  0x5f   :  { %1132 = vmatpush1.bf16.msra.mxu1 %v9599_v55  ;;  %v9688_v55 = vld [vmem:[%s14329_s1 + $0x2b4] ss:$8 sps:$4 sm:$0xff]  }
  0x60   :  { %1255 = vmatpush1.bf16.msra.mxu0 %v9602_v58  ;;  %1133 = vmatprep.subr.bf16.mxu1 %v9607_v59  ;;  %v9691_v58 = vld [vmem:[%s14329_s1 + $0x2c4] ss:$8 sps:$4 sm:$0xff]   ;;  %v9689_v59 = vld [vmem:[%s14329_s1 + $0x2c0] ss:$8 sps:$4 sm:$0xff]  }
  0x61   :  { %1256 = vmatprep.subr.bf16.mxu0 %v9610_v60  ;;  %v9694_v60 = vld [vmem:[%s14329_s1 + $0x2d4] ss:$8 sps:$4 sm:$0xff]  }
  0x63   :  { %1134 = vmatpush1.bf16.msra.mxu1 %v9605_v61  ;;  %v9692_v61 = vld [vmem:[%s14329_s1 + $0x2d0] ss:$8 sps:$4 sm:$0xff]  }
  0x64   :  { %1257 = vmatpush1.bf16.msra.mxu0 %v9608_v62  ;;  %1135 = vmatprep.subr.bf16.mxu1 %v9613_v63  ;;  %v9697_v62 = vld [vmem:[%s14329_s1 + $0x2e4] ss:$8 sps:$4 sm:$0xff]   ;;  %v9695_v63 = vld [vmem:[%s14329_s1 + $0x2e0] ss:$8 sps:$4 sm:$0xff]  }
  0x65   :  { %1258 = vmatprep.subr.bf16.mxu0 %v9616_v0  ;;  %v9700_v0 = vld [vmem:[%s14329_s1 + $0x2f4] ss:$8 sps:$4 sm:$0xff]  }
  0x67   :  { %1136 = vmatpush1.bf16.msra.mxu1 %v9611_v1  ;;  %v9698_v1 = vld [vmem:[%s14329_s1 + $0x2f0] ss:$8 sps:$4 sm:$0xff]  }
  0x68   :  { %1259 = vmatpush1.bf16.msra.mxu0 %v9614_v2  ;;  %1137 = vmatprep.subr.bf16.mxu1 %v9619_v3  ;;  %v98_v2 = vpack.c.bf16 %v11478_v26, %v11478_v26  ;;  %v9701_v3 = vld [vmem:[%s14331_s3] ss:$40 sps:$4 sm:$0xff]   ;;  %v9736_v26 = vld [vmem:[%s14331_s3 + $0x374] ss:$40 sps:$4 sm:$0xff]  }
  0x69   :  { %1260 = vmatprep.subr.bf16.mxu0 %v9622_v4  ;;  %v9703_v4 = vld [vmem:[%s14331_s3 + $0x4] ss:$40 sps:$4 sm:$0xff]  }
  0x6b   :  { %1138 = vmatpush1.bf16.msra.mxu1 %v9617_v5  ;;  %v9706_v5 = vld [vmem:[%s14331_s3 + $0x54] ss:$40 sps:$4 sm:$0xff]  }
  0x6c   :  { %1261 = vmatpush1.bf16.msra.mxu0 %v9620_v6  ;;  %1139 = vmatprep.subr.bf16.mxu1 %v9625_v7  ;;  %v9704_v6 = vld [vmem:[%s14331_s3 + $0x50] ss:$40 sps:$4 sm:$0xff]   ;;  %v9709_v7 = vld [vmem:[%s14331_s3 + $0xa4] ss:$40 sps:$4 sm:$0xff]  }
  0x6d   :  { %1262 = vmatprep.subr.bf16.mxu0 %v9628_v8  ;;  %v9707_v8 = vld [vmem:[%s14331_s3 + $0xa0] ss:$40 sps:$4 sm:$0xff]  }
  0x6f   :  { %1140 = vmatpush1.bf16.msra.mxu1 %v9623_v9  ;;  %v9712_v9 = vld [vmem:[%s14331_s3 + $0xf4] ss:$40 sps:$4 sm:$0xff]  }
  0x70   :  { %1263 = vmatpush1.bf16.msra.mxu0 %v9626_v10  ;;  %1141 = vmatprep.subr.bf16.mxu1 %v9631_v11  ;;  %v9710_v10 = vld [vmem:[%s14331_s3 + $0xf0] ss:$40 sps:$4 sm:$0xff]   ;;  %v9715_v11 = vld [vmem:[%s14331_s3 + $0x144] ss:$40 sps:$4 sm:$0xff]  }
  0x71   :  { %1264 = vmatprep.subr.bf16.mxu0 %v9634_v12  ;;  %v9713_v12 = vld [vmem:[%s14331_s3 + $0x140] ss:$40 sps:$4 sm:$0xff]  }
  0x73   :  { %1142 = vmatpush1.bf16.msra.mxu1 %v9629_v13  ;;  %v9718_v13 = vld [vmem:[%s14331_s3 + $0x194] ss:$40 sps:$4 sm:$0xff]  }
  0x74   :  { %1265 = vmatpush1.bf16.msra.mxu0 %v9632_v15  ;;  %1143 = vmatprep.subr.bf16.mxu1 %v9637_v16  ;;  %v9716_v15 = vld [vmem:[%s14331_s3 + $0x190] ss:$40 sps:$4 sm:$0xff]   ;;  %v9721_v16 = vld [vmem:[%s14331_s3 + $0x1e4] ss:$40 sps:$4 sm:$0xff]  }
  0x75   :  { %1266 = vmatprep.subr.bf16.mxu0 %v9640_v17  ;;  %v9719_v17 = vld [vmem:[%s14331_s3 + $0x1e0] ss:$40 sps:$4 sm:$0xff]  }
  0x77   :  { %1144 = vmatpush1.bf16.msra.mxu1 %v9635_v18  ;;  %v9724_v18 = vld [vmem:[%s14331_s3 + $0x234] ss:$40 sps:$4 sm:$0xff]  }
  0x78   :  { %1267 = vmatpush1.bf16.msra.mxu0 %v9638_v19  ;;  %1145 = vmatprep.subr.bf16.mxu1 %v9643_v20  ;;  %v9722_v19 = vld [vmem:[%s14331_s3 + $0x230] ss:$40 sps:$4 sm:$0xff]   ;;  %v9727_v20 = vld [vmem:[%s14331_s3 + $0x284] ss:$40 sps:$4 sm:$0xff]  }
  0x79   :  { %1268 = vmatprep.subr.bf16.mxu0 %v9646_v21  ;;  %v9725_v21 = vld [vmem:[%s14331_s3 + $0x280] ss:$40 sps:$4 sm:$0xff]  }
  0x7b   :  { %1146 = vmatpush1.bf16.msra.mxu1 %v9641_v22  ;;  %v9730_v22 = vld [vmem:[%s14331_s3 + $0x2d4] ss:$40 sps:$4 sm:$0xff]  }
  0x7c   :  { %1269 = vmatpush1.bf16.msra.mxu0 %v9644_v23  ;;  %1147 = vmatprep.subr.bf16.mxu1 %v9649_v24  ;;  %v9728_v23 = vld [vmem:[%s14331_s3 + $0x2d0] ss:$40 sps:$4 sm:$0xff]   ;;  %v9733_v24 = vld [vmem:[%s14331_s3 + $0x324] ss:$40 sps:$4 sm:$0xff]  }
  0x7d   :  { %1270 = vmatprep.subr.bf16.mxu0 %v9652_v25  ;;  %v9731_v25 = vld [vmem:[%s14331_s3 + $0x320] ss:$40 sps:$4 sm:$0xff]  }
  0x7f   :  { %1148 = vmatpush1.bf16.msra.mxu1 %v9647_v27  ;;  %v9734_v27 = vld [vmem:[%s14331_s3 + $0x370] ss:$40 sps:$4 sm:$0xff]  }
  0x80   :  { %1271 = vmatpush1.bf16.msra.mxu0 %v9650_v28  ;;  %1158 = vmatprep.subr.bf16.mxu1 %v9655_v29  ;;  %v9739_v28 = vld [vmem:[%s14331_s3 + $0x3c4] ss:$40 sps:$4 sm:$0xff]   ;;  %v9737_v29 = vld [vmem:[%s14331_s3 + $0x3c0] ss:$40 sps:$4 sm:$0xff]  }
  0x82   :  { %1150 = vmatmul.mubr.bf16.vlgmr.msra.gmra.mrb[0].mxu1 %v96_v32  ;;  %v9743_v32 = vld [vmem:[%s14331_s3 + $0x460] ss:$40 sps:$4 sm:$0xff]  }
  0x83   :  { %1273 = vmatmul.mubr.bf16.vlgmr.msra.gmra.mrb[0].mxu0 %v102_v31  ;;  %1159 = vmatpush1.bf16.msra.mxu1 %v9653_v30  ;;  %v9740_v30 = vld [vmem:[%s14331_s3 + $0x410] ss:$40 sps:$4 sm:$0xff]   ;;  %v9745_v31 = vld [vmem:[%s14331_s3 + $0x464] ss:$40 sps:$4 sm:$0xff]  }
  0x84   :  { %1190 = vmatprep.mubr.bf16.mxu1 %v99_v34  ;;  %1160 = vmatprep.subr.bf16.mxu1 %v9658_v33  ;;  %v9748_v33 = vld [vmem:[%s14331_s3 + $0x4b4] ss:$40 sps:$4 sm:$0xff]   ;;  %v9746_v34 = vld [vmem:[%s14331_s3 + $0x4b0] ss:$40 sps:$4 sm:$0xff]  }
  0x87   :  { %1161 = vmatpush1.bf16.msra.mxu1 %v9656_v35  ;;  %v9751_v35 = vld [vmem:[%s14331_s3 + $0xc] ss:$40 sps:$4 sm:$0xff]  }
  0x88   :  { %1162 = vmatprep.subr.bf16.mxu1 %v9661_v36 }
  0x8b   :  { %1163 = vmatpush1.bf16.msra.mxu1 %v9659_v14 }
  0x8c   :  { %1164 = vmatprep.subr.bf16.mxu1 %v9664_v37 }
  0x8f   :  { %1165 = vmatpush1.bf16.msra.mxu1 %v9662_v38 }
  0x90   :  { %1166 = vmatprep.subr.bf16.mxu1 %v9667_v39  ;;  %v11690_v39 = vsub.s32 0, %v11180_v43 }
  0x93   :  { %1167 = vmatpush1.bf16.msra.mxu1 %v9665_v40  ;;  %v264_v40 = vld [vmem:[%s14332_s2] sm:$0x3] }
  0x94   :  { %1168 = vmatprep.subr.bf16.mxu1 %v9670_v41  ;;  %v11696_v41 = vsub.s32 1, %v11180_v43 }
  0x97   :  { %1169 = vmatpush1.bf16.msra.mxu1 %v9668_v42  ;;  %v269_v42 = vrot.slane %v264_v40, %v11690_v39 }
  0x98   :  { %1170 = vmatprep.subr.bf16.mxu1 %v9673_v44  ;;  %v273_v44 = vrot.slane %v264_v40, %v11696_v41  ;;  %v9820_v40 = vld [vmem:[%s14331_s3 + $0x244] ss:$40 sps:$4 sm:$0xff]  }
  0x9b   :  { %1171 = vmatpush1.bf16.msra.mxu1 %v9671_v45 }
  0x9c   :  { %1172 = vmatprep.subr.bf16.mxu1 %v9676_v46 }
  0x9f   :  { %1173 = vmatpush1.bf16.msra.mxu1 %v9674_v47 }
  0xa0   :  { %1174 = vmatprep.subr.bf16.mxu1 %v9679_v48 }
  0xa3   :  { %1175 = vmatpush1.bf16.msra.mxu1 %v9677_v50 }
  0xa4   :  { %1176 = vmatprep.subr.bf16.mxu1 %v9682_v51 }
  0xa7   :  { %1177 = vmatpush1.bf16.msra.mxu1 %v9680_v52 }
  0xa8   :  { %1178 = vmatprep.subr.bf16.mxu1 %v9685_v53 }
  0xab   :  { %1179 = vmatpush1.bf16.msra.mxu1 %v9683_v54 }
  0xac   :  { %1180 = vmatprep.subr.bf16.mxu1 %v9688_v55 }
  0xaf   :  { %1181 = vmatpush1.bf16.msra.mxu1 %v9686_v57 }
  0xb0   :  { %1182 = vmatprep.subr.bf16.mxu1 %v9691_v58  ;;  %v9749_v58 = vld [vmem:[%s14331_s3 + $0x8] ss:$40 sps:$4 sm:$0xff]  }
  0xb3   :  { %1183 = vmatpush1.bf16.msra.mxu1 %v9689_v59 }
  0xb4   :  { %1184 = vmatprep.subr.bf16.mxu1 %v9694_v60  ;;  %v9754_v60 = vld [vmem:[%s14331_s3 + $0x5c] ss:$40 sps:$4 sm:$0xff]  }
  0xb7   :  { %1185 = vmatpush1.bf16.msra.mxu1 %v9692_v61  ;;  %v9752_v61 = vld [vmem:[%s14331_s3 + $0x58] ss:$40 sps:$4 sm:$0xff]  }
  0xb8   :  { %1186 = vmatprep.subr.bf16.mxu1 %v9697_v62  ;;  %v9757_v62 = vld [vmem:[%s14331_s3 + $0xac] ss:$40 sps:$4 sm:$0xff]  }
  0xbb   :  { %1187 = vmatpush1.bf16.msra.mxu1 %v9695_v63  ;;  %v9755_v63 = vld [vmem:[%s14331_s3 + $0xa8] ss:$40 sps:$4 sm:$0xff]  }
  0xbc   :  { %1188 = vmatprep.subr.bf16.mxu1 %v9700_v0  ;;  %v9760_v0 = vld [vmem:[%s14331_s3 + $0xfc] ss:$40 sps:$4 sm:$0xff]  }
  0xbf   :  { %1189 = vmatpush1.bf16.msra.mxu1 %v9698_v1  ;;  %v9758_v1 = vld [vmem:[%s14331_s3 + $0xf8] ss:$40 sps:$4 sm:$0xff]  }
  0xc0   :  { %2299 = vmatprep.subr.bf16.mxu1 %v9703_v4  ;;  %v9766_v4 = vld [vmem:[%s14331_s3 + $0x19c] ss:$40 sps:$4 sm:$0xff]  }
  0xc2   :  { %1191 = vmatmul.mubr.bf16.vlgmr.msra.gmra.mrb[0].mxu1 %v98_v2  ;;  %v9763_v2 = vld [vmem:[%s14331_s3 + $0x14c] ss:$40 sps:$4 sm:$0xff]  }
  0xc3   :  { %2300 = vmatpush1.bf16.msra.mxu1 %v9701_v3  ;;  %v9761_v3 = vld [vmem:[%s14331_s3 + $0x148] ss:$40 sps:$4 sm:$0xff]  }
  0xc4   :  { %2301 = vmatprep.subr.bf16.mxu1 %v9706_v5  ;;  %v9764_v5 = vld [vmem:[%s14331_s3 + $0x198] ss:$40 sps:$4 sm:$0xff]  }
  0xc7   :  { %2302 = vmatpush1.bf16.msra.mxu1 %v9704_v6  ;;  %v9769_v6 = vld [vmem:[%s14331_s3 + $0x1ec] ss:$40 sps:$4 sm:$0xff]  }
  0xc8   :  { %2303 = vmatprep.subr.bf16.mxu1 %v9709_v7  ;;  %v9767_v7 = vld [vmem:[%s14331_s3 + $0x1e8] ss:$40 sps:$4 sm:$0xff]  }
  0xcb   :  { %2304 = vmatpush1.bf16.msra.mxu1 %v9707_v8  ;;  %v9772_v8 = vld [vmem:[%s14331_s3 + $0x23c] ss:$40 sps:$4 sm:$0xff]  }
  0xcc   :  { %2305 = vmatprep.subr.bf16.mxu1 %v9712_v9  ;;  %v9770_v9 = vld [vmem:[%s14331_s3 + $0x238] ss:$40 sps:$4 sm:$0xff]  }
  0xcf   :  { %2306 = vmatpush1.bf16.msra.mxu1 %v9710_v10  ;;  %v9775_v10 = vld [vmem:[%s14331_s3 + $0x28c] ss:$40 sps:$4 sm:$0xff]  }
  0xd0   :  { %2307 = vmatprep.subr.bf16.mxu1 %v9715_v11  ;;  %v9773_v11 = vld [vmem:[%s14331_s3 + $0x288] ss:$40 sps:$4 sm:$0xff]  }
  0xd3   :  { %2308 = vmatpush1.bf16.msra.mxu1 %v9713_v12  ;;  %v9778_v12 = vld [vmem:[%s14331_s3 + $0x2dc] ss:$40 sps:$4 sm:$0xff]  }
  0xd4   :  { %2309 = vmatprep.subr.bf16.mxu1 %v9718_v13  ;;  %v9776_v13 = vld [vmem:[%s14331_s3 + $0x2d8] ss:$40 sps:$4 sm:$0xff]  }
  0xd7   :  { %2310 = vmatpush1.bf16.msra.mxu1 %v9716_v15  ;;  %v9781_v15 = vld [vmem:[%s14331_s3 + $0x32c] ss:$40 sps:$4 sm:$0xff]  }
  0xd8   :  { %2311 = vmatprep.subr.bf16.mxu1 %v9721_v16  ;;  %v9779_v16 = vld [vmem:[%s14331_s3 + $0x328] ss:$40 sps:$4 sm:$0xff]  }
  0xdb   :  { %2312 = vmatpush1.bf16.msra.mxu1 %v9719_v17  ;;  %v9784_v17 = vld [vmem:[%s14331_s3 + $0x37c] ss:$40 sps:$4 sm:$0xff]  }
  0xdc   :  { %2313 = vmatprep.subr.bf16.mxu1 %v9724_v18  ;;  %v9782_v18 = vld [vmem:[%s14331_s3 + $0x378] ss:$40 sps:$4 sm:$0xff]  }
  0xdf   :  { %2314 = vmatpush1.bf16.msra.mxu1 %v9722_v19  ;;  %v9787_v19 = vld [vmem:[%s14331_s3 + $0x3cc] ss:$40 sps:$4 sm:$0xff]  }
  0xe0   :  { %2315 = vmatprep.subr.bf16.mxu1 %v9727_v20  ;;  %v9785_v20 = vld [vmem:[%s14331_s3 + $0x3c8] ss:$40 sps:$4 sm:$0xff]  }
  0xe3   :  { %2316 = vmatpush1.bf16.msra.mxu1 %v9725_v21  ;;  %v9790_v21 = vld [vmem:[%s14331_s3 + $0x41c] ss:$40 sps:$4 sm:$0xff]  }
  0xe4   :  { %2317 = vmatprep.subr.bf16.mxu1 %v9730_v22  ;;  %v9788_v22 = vld [vmem:[%s14331_s3 + $0x418] ss:$40 sps:$4 sm:$0xff]  }
  0xe7   :  { %2318 = vmatpush1.bf16.msra.mxu1 %v9728_v23  ;;  %v9793_v23 = vld [vmem:[%s14331_s3 + $0x46c] ss:$40 sps:$4 sm:$0xff]  }
  0xe8   :  { %2319 = vmatprep.subr.bf16.mxu1 %v9733_v24  ;;  %v9791_v24 = vld [vmem:[%s14331_s3 + $0x468] ss:$40 sps:$4 sm:$0xff]  }
  0xeb   :  { %2320 = vmatpush1.bf16.msra.mxu1 %v9731_v25  ;;  %v9796_v25 = vld [vmem:[%s14331_s3 + $0x4bc] ss:$40 sps:$4 sm:$0xff]  }
  0xec   :  { %2321 = vmatprep.subr.bf16.mxu1 %v9736_v26  ;;  %v9794_v26 = vld [vmem:[%s14331_s3 + $0x4b8] ss:$40 sps:$4 sm:$0xff]  }
  0xef   :  { %2322 = vmatpush1.bf16.msra.mxu1 %v9734_v27  ;;  %v9799_v27 = vld [vmem:[%s14331_s3 + $0x14] ss:$40 sps:$4 sm:$0xff]  }
  0xf0   :  { %2323 = vmatprep.subr.bf16.mxu1 %v9739_v28  ;;  %v9797_v28 = vld [vmem:[%s14331_s3 + $0x10] ss:$40 sps:$4 sm:$0xff]  }
  0xf3   :  { %2324 = vmatpush1.bf16.msra.mxu1 %v9737_v29  ;;  %v9802_v29 = vld [vmem:[%s14331_s3 + $0x64] ss:$40 sps:$4 sm:$0xff]  }
  0xf4   :  { %2325 = vmatprep.subr.bf16.mxu1 %v9742_v56  ;;  %v9800_v56 = vld [vmem:[%s14331_s3 + $0x60] ss:$40 sps:$4 sm:$0xff]  }
  0xf7   :  { %2326 = vmatpush1.bf16.msra.mxu1 %v9740_v30  ;;  %v9805_v30 = vld [vmem:[%s14331_s3 + $0xb4] ss:$40 sps:$4 sm:$0xff]  }
  0xf8   :  { %2327 = vmatprep.subr.bf16.mxu1 %v9745_v31  ;;  %v9803_v31 = vld [vmem:[%s14331_s3 + $0xb0] ss:$40 sps:$4 sm:$0xff]  }
  0xfb   :  { %2328 = vmatpush1.bf16.msra.mxu1 %v9743_v32  ;;  %v9808_v32 = vld [vmem:[%s14331_s3 + $0x104] ss:$40 sps:$4 sm:$0xff]  }
  0xfc   :  { %2329 = vmatprep.subr.bf16.mxu1 %v9748_v33  ;;  %v9806_v33 = vld [vmem:[%s14331_s3 + $0x100] ss:$40 sps:$4 sm:$0xff]  }
  0xff   :  { %2330 = vmatpush1.bf16.msra.mxu1 %v9746_v34  ;;  %v9811_v34 = vld [vmem:[%s14331_s3 + $0x154] ss:$40 sps:$4 sm:$0xff]  }
 0x100   :  { %2340 = vmatprep.subr.bf16.mxu1 %v9751_v35  ;;  %v9809_v35 = vld [vmem:[%s14331_s3 + $0x150] ss:$40 sps:$4 sm:$0xff]  }
 0x156   :  { %v1274_v36 = vpop.f32.mrb[0].mxu0 }
 0x157   :  { %v1276_v14 = vpop.f32.mrb[1].mxu0 }
 0x158   :  { %v1278_v37 = vpop.f32.mrb[2].mxu0 }
 0x159   :  { %v1279_v38 = vpop.f32.mrb[3].mxu0  ;;  %v9817_v37 = vld [vmem:[%s14331_s3 + $0x1f4] ss:$40 sps:$4 sm:$0xff]  }
 0x15a   :  { %v9815_v38 = vld [vmem:[%s14331_s3 + $0x1f0] ss:$40 sps:$4 sm:$0xff]  }
 0x195   :  { %v1192_v45 = vpop.f32.mrb[0].mxu1 }
 0x196   :  { %v9386_v46 = vadd.f32 %v1192_v45, %v269_v42  ;;  %v1194_v47 = vpop.f32.mrb[1].mxu1  ;;  %v9818_v42 = vld [vmem:[%s14331_s3 + $0x240] ss:$40 sps:$4 sm:$0xff]   ;;  %v9821_v45 = vld [vmem:[%s14331_s3 + $0x290] ss:$40 sps:$4 sm:$0xff]  }
 0x197   :  { %v9388_v48 = vadd.f32 %v1194_v47, %v273_v44  ;;  %v1196_v50 = vpop.f32.mrb[2].mxu1  ;;  %v9823_v44 = vld [vmem:[%s14331_s3 + $0x294] ss:$40 sps:$4 sm:$0xff]   ;;  %v9824_v47 = vld [vmem:[%s14331_s3 + $0x2e0] ss:$40 sps:$4 sm:$0xff]  }
 0x198   :  { %v9387_v51 = vadd.f32 %v9386_v46, %v1274_v36  ;;  %v1197_v52 = vpop.f32.mrb[3].mxu1  ;;  %v9814_v36 = vld [vmem:[%s14331_s3 + $0x1a4] ss:$40 sps:$4 sm:$0xff]   ;;  %v9827_v50 = vld [vmem:[%s14331_s3 + $0x330] ss:$40 sps:$4 sm:$0xff]  }
 0x199   :  { %v9389_v53 = vadd.f32 %v9388_v48, %v1276_v14  ;;  %v9812_v14 = vld [vmem:[%s14331_s3 + $0x1a0] ss:$40 sps:$4 sm:$0xff]   ;;  %v9826_v46 = vld [vmem:[%s14331_s3 + $0x2e4] ss:$40 sps:$4 sm:$0xff]   ;;  %v9829_v48 = vld [vmem:[%s14331_s3 + $0x334] ss:$40 sps:$4 sm:$0xff]  }
 0x19a   :  { %v1281_v54 = vmax.f32 %v9387_v51, 0.0  ;;  %v9832_v51 = vld [vmem:[%s14331_s3 + $0x384] ss:$40 sps:$4 sm:$0xff]   ;;  %v9830_v52 = vld [vmem:[%s14331_s3 + $0x380] ss:$40 sps:$4 sm:$0xff]  }
 0x19b   :  { %v1282_v55 = vmax.f32 %v9389_v53, 0.0  ;;  %v9835_v53 = vld [vmem:[%s14331_s3 + $0x3d4] ss:$40 sps:$4 sm:$0xff]  }
 0x19c   :  { %v11705_v59 = vpack.c.bf16 %v1281_v54, %v1281_v54  ;;  %v9833_v54 = vld [vmem:[%s14331_s3 + $0x3d0] ss:$40 sps:$4 sm:$0xff]  }
 0x19d   :  { %v11700_v57 = vpack.c.bf16 %v1282_v55, %v1282_v55  ;;  %v9838_v55 = vld [vmem:[%s14331_s3 + $0x424] ss:$40 sps:$4 sm:$0xff]  }
 0x19f   :  { %2331 = vmatprep.mubr.bf16.mxu1 %v11700_v57 }
 0x1a0   :  { %2332 = vmatmul.mubr.bf16.vlgmr.msra.gmra.mrb[4].mxu1 %v11705_v59 }
 0x1a1   :  { %2341 = vmatpush1.bf16.msra.mxu1 %v9749_v58  ;;  %2372 = vmatprep.mubr.bf16.mxu1 %v11700_v57  ;;  %v9836_v58 = vld [vmem:[%s14331_s3 + $0x420] ss:$40 sps:$4 sm:$0xff]  }
 0x1a2   :  { %2342 = vmatprep.subr.bf16.mxu1 %v9754_v60  ;;  %v9841_v60 = vld [vmem:[%s14331_s3 + $0x474] ss:$40 sps:$4 sm:$0xff]  }
 0x1a5   :  { %2343 = vmatpush1.bf16.msra.mxu1 %v9752_v61  ;;  %v9839_v61 = vld [vmem:[%s14331_s3 + $0x470] ss:$40 sps:$4 sm:$0xff]  }
 0x1a6   :  { %2344 = vmatprep.subr.bf16.mxu1 %v9757_v62  ;;  %v9844_v62 = vld [vmem:[%s14331_s3 + $0x4c4] ss:$40 sps:$4 sm:$0xff]  }
 0x1a9   :  { %2345 = vmatpush1.bf16.msra.mxu1 %v9755_v63  ;;  %v9842_v63 = vld [vmem:[%s14331_s3 + $0x4c0] ss:$40 sps:$4 sm:$0xff]  }
 0x1aa   :  { %2346 = vmatprep.subr.bf16.mxu1 %v9760_v0  ;;  %v9847_v0 = vld [vmem:[%s14331_s3 + $0x1c] ss:$40 sps:$4 sm:$0xff]  }
 0x1ad   :  { %2347 = vmatpush1.bf16.msra.mxu1 %v9758_v1  ;;  %v9845_v1 = vld [vmem:[%s14331_s3 + $0x18] ss:$40 sps:$4 sm:$0xff]  }
 0x1ae   :  { %2348 = vmatprep.subr.bf16.mxu1 %v9763_v2  ;;  %v9850_v2 = vld [vmem:[%s14331_s3 + $0x6c] ss:$40 sps:$4 sm:$0xff]  }
 0x1b1   :  { %2349 = vmatpush1.bf16.msra.mxu1 %v9761_v3  ;;  %v9941_v3 = vld [vmem:[%s14333_s5] ss:$8 sps:$4 sm:$0xff]  }
 0x1b2   :  { %2350 = vmatprep.subr.bf16.mxu1 %v9766_v4  ;;  %v9943_v4 = vld [vmem:[%s14333_s5 + $0x4] ss:$8 sps:$4 sm:$0xff]  }
 0x1b3   :  { %3647 = vmatprep.subr.bf16.mxu0 %v9943_v4  ;;  %v10033_v4 = vld [vmem:[%s14333_s5 + $0xf4] ss:$8 sps:$4 sm:$0xff]  }
 0x1b4   :  { %3648 = vmatpush1.bf16.msra.mxu0 %v9941_v3  ;;  %v9890_v3 = vld [vmem:[%s14331_s3 + $0x4c8] ss:$40 sps:$4 sm:$0xff]  }
 0x1b5   :  { %2351 = vmatpush1.bf16.msra.mxu1 %v9764_v5  ;;  %v9848_v5 = vld [vmem:[%s14331_s3 + $0x68] ss:$40 sps:$4 sm:$0xff]  }
 0x1b6   :  { %2352 = vmatprep.subr.bf16.mxu1 %v9769_v6  ;;  %v9853_v6 = vld [vmem:[%s14331_s3 + $0xbc] ss:$40 sps:$4 sm:$0xff]  }
 0x1b9   :  { %2353 = vmatpush1.bf16.msra.mxu1 %v9767_v7  ;;  %v9949_v7 = vld [vmem:[%s14333_s5 + $0x14] ss:$8 sps:$4 sm:$0xff]  }
 0x1ba   :  { %2354 = vmatprep.subr.bf16.mxu1 %v9772_v8  ;;  %v9947_v8 = vld [vmem:[%s14333_s5 + $0x10] ss:$8 sps:$4 sm:$0xff]   ;;  %3649 = vmatprep.subr.bf16.mxu0 %v9949_v7  ;;  %v9893_v7 = vld [vmem:[%s14331_s3 + $0x20] ss:$40 sps:$4 sm:$0xff]  }
 0x1bb   :  { %3650 = vmatpush1.bf16.msra.mxu0 %v9947_v8  ;;  %v10039_v8 = vld [vmem:[%s14333_s5 + $0x104] ss:$8 sps:$4 sm:$0xff]  }
 0x1bd   :  { %2355 = vmatpush1.bf16.msra.mxu1 %v9770_v9  ;;  %v9851_v9 = vld [vmem:[%s14331_s3 + $0xb8] ss:$40 sps:$4 sm:$0xff]  }
 0x1be   :  { %2356 = vmatprep.subr.bf16.mxu1 %v9775_v10  ;;  %v9856_v10 = vld [vmem:[%s14331_s3 + $0x10c] ss:$40 sps:$4 sm:$0xff]  }
 0x1c1   :  { %2357 = vmatpush1.bf16.msra.mxu1 %v9773_v11  ;;  %v9955_v11 = vld [vmem:[%s14333_s5 + $0x24] ss:$8 sps:$4 sm:$0xff]  }
 0x1c2   :  { %2358 = vmatprep.subr.bf16.mxu1 %v9778_v12  ;;  %v9953_v12 = vld [vmem:[%s14333_s5 + $0x20] ss:$8 sps:$4 sm:$0xff]   ;;  %3651 = vmatprep.subr.bf16.mxu0 %v9955_v11  ;;  %v9901_v11 = vld [vmem:[%s14331_s3 + $0xc4] ss:$40 sps:$4 sm:$0xff]  }
 0x1c3   :  { %3652 = vmatpush1.bf16.msra.mxu0 %v9953_v12  ;;  %v9899_v12 = vld [vmem:[%s14331_s3 + $0xc0] ss:$40 sps:$4 sm:$0xff]  }
 0x1c5   :  { %2359 = vmatpush1.bf16.msra.mxu1 %v9776_v13  ;;  %v9854_v13 = vld [vmem:[%s14331_s3 + $0x108] ss:$40 sps:$4 sm:$0xff]  }
 0x1c6   :  { %2360 = vmatprep.subr.bf16.mxu1 %v9781_v15  ;;  %v9859_v15 = vld [vmem:[%s14331_s3 + $0x15c] ss:$40 sps:$4 sm:$0xff]  }
 0x1c9   :  { %2361 = vmatpush1.bf16.msra.mxu1 %v9779_v16  ;;  %v9961_v16 = vld [vmem:[%s14333_s5 + $0x34] ss:$8 sps:$4 sm:$0xff]  }
 0x1ca   :  { %2362 = vmatprep.subr.bf16.mxu1 %v9784_v17  ;;  %v9959_v17 = vld [vmem:[%s14333_s5 + $0x30] ss:$8 sps:$4 sm:$0xff]   ;;  %3653 = vmatprep.subr.bf16.mxu0 %v9961_v16  ;;  %v9905_v16 = vld [vmem:[%s14331_s3 + $0x160] ss:$40 sps:$4 sm:$0xff]  }
 0x1cb   :  { %3654 = vmatpush1.bf16.msra.mxu0 %v9959_v17  ;;  %v12130_v17 = vld [vmem:[%s14334_s4] sm:$0xff] }
 0x1cd   :  { %2363 = vmatpush1.bf16.msra.mxu1 %v9782_v18  ;;  %v9857_v18 = vld [vmem:[%s14331_s3 + $0x158] ss:$40 sps:$4 sm:$0xff]  }
 0x1ce   :  { %2364 = vmatprep.subr.bf16.mxu1 %v9787_v19  ;;  %v9862_v19 = vld [vmem:[%s14331_s3 + $0x1ac] ss:$40 sps:$4 sm:$0xff]  }
 0x1d1   :  { %2365 = vmatpush1.bf16.msra.mxu1 %v9785_v20  ;;  %v9967_v20 = vld [vmem:[%s14333_s5 + $0x44] ss:$8 sps:$4 sm:$0xff]  }
 0x1d2   :  { %2366 = vmatprep.subr.bf16.mxu1 %v9790_v21  ;;  %v9965_v21 = vld [vmem:[%s14333_s5 + $0x40] ss:$8 sps:$4 sm:$0xff]   ;;  %3655 = vmatprep.subr.bf16.mxu0 %v9967_v20  ;;  %v9908_v20 = vld [vmem:[%s14331_s3 + $0x1b0] ss:$40 sps:$4 sm:$0xff]  }
 0x1d3   :  { %3656 = vmatpush1.bf16.msra.mxu0 %v9965_v21  ;;  %v1456_v21 = vrot.slane %v12130_v17, %v11696_v41 }
 0x1d5   :  { %2367 = vmatpush1.bf16.msra.mxu1 %v9788_v22  ;;  %v9860_v22 = vld [vmem:[%s14331_s3 + $0x1a8] ss:$40 sps:$4 sm:$0xff]  }
 0x1d6   :  { %2368 = vmatprep.subr.bf16.mxu1 %v9793_v23  ;;  %v9973_v23 = vld [vmem:[%s14333_s5 + $0x54] ss:$8 sps:$4 sm:$0xff]  }
 0x1d7   :  { %3657 = vmatprep.subr.bf16.mxu0 %v9973_v23 }
 0x1d9   :  { %2369 = vmatpush1.bf16.msra.mxu1 %v9791_v24  ;;  %v9865_v24 = vld [vmem:[%s14331_s3 + $0x1fc] ss:$40 sps:$4 sm:$0xff]  }
 0x1da   :  { %2370 = vmatprep.subr.bf16.mxu1 %v9796_v25  ;;  %v9971_v25 = vld [vmem:[%s14333_s5 + $0x50] ss:$8 sps:$4 sm:$0xff]  }
 0x1db   :  { %3658 = vmatpush1.bf16.msra.mxu0 %v9971_v25 }
 0x1dd   :  { %2371 = vmatpush1.bf16.msra.mxu1 %v9794_v26  ;;  %v9863_v26 = vld [vmem:[%s14331_s3 + $0x1f8] ss:$40 sps:$4 sm:$0xff]  }
 0x1de   :  { %2381 = vmatprep.subr.bf16.mxu1 %v9799_v27  ;;  %v9979_v27 = vld [vmem:[%s14333_s5 + $0x64] ss:$8 sps:$4 sm:$0xff]  }
 0x1df   :  { %3659 = vmatprep.subr.bf16.mxu0 %v9979_v27 }
 0x1e0   :  { %2373 = vmatmul.mubr.bf16.vlgmr.msra.gmra.mrb[8].mxu1 %v11705_v59 }
 0x1e1   :  { %2382 = vmatpush1.bf16.msra.mxu1 %v9797_v28  ;;  %2413 = vmatprep.mubr.bf16.mxu1 %v11700_v57  ;;  %v9868_v28 = vld [vmem:[%s14331_s3 + $0x24c] ss:$40 sps:$4 sm:$0xff]  }
 0x1e2   :  { %2383 = vmatprep.subr.bf16.mxu1 %v9802_v29  ;;  %v9977_v29 = vld [vmem:[%s14333_s5 + $0x60] ss:$8 sps:$4 sm:$0xff]  }
 0x1e3   :  { %3660 = vmatpush1.bf16.msra.mxu0 %v9977_v29 }
 0x1e5   :  { %2384 = vmatpush1.bf16.msra.mxu1 %v9800_v56  ;;  %v9866_v56 = vld [vmem:[%s14331_s3 + $0x248] ss:$40 sps:$4 sm:$0xff]  }
 0x1e6   :  { %2385 = vmatprep.subr.bf16.mxu1 %v9805_v30  ;;  %v9985_v30 = vld [vmem:[%s14333_s5 + $0x74] ss:$8 sps:$4 sm:$0xff]  }
 0x1e7   :  { %3661 = vmatprep.subr.bf16.mxu0 %v9985_v30  ;;  %v9916_v30 = vld [vmem:[%s14331_s3 + $0x254] ss:$40 sps:$4 sm:$0xff]  }
 0x1e9   :  { %2386 = vmatpush1.bf16.msra.mxu1 %v9803_v31  ;;  %v9871_v31 = vld [vmem:[%s14331_s3 + $0x29c] ss:$40 sps:$4 sm:$0xff]  }
 0x1ea   :  { %2387 = vmatprep.subr.bf16.mxu1 %v9808_v32  ;;  %v9983_v32 = vld [vmem:[%s14333_s5 + $0x70] ss:$8 sps:$4 sm:$0xff]  }
 0x1eb   :  { %3662 = vmatpush1.bf16.msra.mxu0 %v9983_v32  ;;  %v9914_v32 = vld [vmem:[%s14331_s3 + $0x250] ss:$40 sps:$4 sm:$0xff]  }
 0x1ed   :  { %2388 = vmatpush1.bf16.msra.mxu1 %v9806_v33  ;;  %v9869_v33 = vld [vmem:[%s14331_s3 + $0x298] ss:$40 sps:$4 sm:$0xff]  }
 0x1ee   :  { %2389 = vmatprep.subr.bf16.mxu1 %v9811_v34  ;;  %v9991_v34 = vld [vmem:[%s14333_s5 + $0x84] ss:$8 sps:$4 sm:$0xff]  }
 0x1ef   :  { %3663 = vmatprep.subr.bf16.mxu0 %v9991_v34  ;;  %v9917_v34 = vld [vmem:[%s14331_s3 + $0x2a0] ss:$40 sps:$4 sm:$0xff]  }
 0x1f1   :  { %2390 = vmatpush1.bf16.msra.mxu1 %v9809_v35  ;;  %v9874_v35 = vld [vmem:[%s14331_s3 + $0x2ec] ss:$40 sps:$4 sm:$0xff]  }
 0x1f2   :  { %2391 = vmatprep.subr.bf16.mxu1 %v9814_v36  ;;  %v9989_v36 = vld [vmem:[%s14333_s5 + $0x80] ss:$8 sps:$4 sm:$0xff]  }
 0x1f3   :  { %3664 = vmatpush1.bf16.msra.mxu0 %v9989_v36  ;;  %v9920_v36 = vld [vmem:[%s14331_s3 + $0x2f0] ss:$40 sps:$4 sm:$0xff]  }
 0x1f5   :  { %2392 = vmatpush1.bf16.msra.mxu1 %v9812_v14  ;;  %v9872_v14 = vld [vmem:[%s14331_s3 + $0x2e8] ss:$40 sps:$4 sm:$0xff]  }
 0x1f6   :  { %2393 = vmatprep.subr.bf16.mxu1 %v9817_v37  ;;  %v9997_v37 = vld [vmem:[%s14333_s5 + $0x94] ss:$8 sps:$4 sm:$0xff]  }
 0x1f7   :  { %3665 = vmatprep.subr.bf16.mxu0 %v9997_v37  ;;  %v9925_v37 = vld [vmem:[%s14331_s3 + $0x344] ss:$40 sps:$4 sm:$0xff]  }
 0x1f9   :  { %2394 = vmatpush1.bf16.msra.mxu1 %v9815_v38  ;;  %v9877_v38 = vld [vmem:[%s14331_s3 + $0x33c] ss:$40 sps:$4 sm:$0xff]  }
 0x1fa   :  { %2395 = vmatprep.subr.bf16.mxu1 %v9820_v40  ;;  %v9995_v40 = vld [vmem:[%s14333_s5 + $0x90] ss:$8 sps:$4 sm:$0xff]  }
 0x1fb   :  { %3666 = vmatpush1.bf16.msra.mxu0 %v9995_v40 }
 0x1fd   :  { %2396 = vmatpush1.bf16.msra.mxu1 %v9818_v42  ;;  %v9875_v42 = vld [vmem:[%s14331_s3 + $0x338] ss:$40 sps:$4 sm:$0xff]  }
 0x1fe   :  { %2397 = vmatprep.subr.bf16.mxu1 %v9823_v44  ;;  %v10003_v44 = vld [vmem:[%s14333_s5 + $0xa4] ss:$8 sps:$4 sm:$0xff]  }
 0x1ff   :  { %3667 = vmatprep.subr.bf16.mxu0 %v10003_v44  ;;  %v9923_v44 = vld [vmem:[%s14331_s3 + $0x340] ss:$40 sps:$4 sm:$0xff]  }
 0x201   :  { %2398 = vmatpush1.bf16.msra.mxu1 %v9821_v45  ;;  %v9880_v45 = vld [vmem:[%s14331_s3 + $0x38c] ss:$40 sps:$4 sm:$0xff]  }
 0x202   :  { %2399 = vmatprep.subr.bf16.mxu1 %v9826_v46  ;;  %v10001_v46 = vld [vmem:[%s14333_s5 + $0xa0] ss:$8 sps:$4 sm:$0xff]  }
 0x203   :  { %3668 = vmatpush1.bf16.msra.mxu0 %v10001_v46  ;;  %v9926_v46 = vld [vmem:[%s14331_s3 + $0x390] ss:$40 sps:$4 sm:$0xff]  }
 0x205   :  { %2400 = vmatpush1.bf16.msra.mxu1 %v9824_v47  ;;  %v9878_v47 = vld [vmem:[%s14331_s3 + $0x388] ss:$40 sps:$4 sm:$0xff]  }
 0x206   :  { %2401 = vmatprep.subr.bf16.mxu1 %v9829_v48  ;;  %v9883_v48 = vld [vmem:[%s14331_s3 + $0x3dc] ss:$40 sps:$4 sm:$0xff]  }
 0x209   :  { %2402 = vmatpush1.bf16.msra.mxu1 %v9827_v50  ;;  %v10009_v50 = vld [vmem:[%s14333_s5 + $0xb4] ss:$8 sps:$4 sm:$0xff]  }
 0x20a   :  { %2403 = vmatprep.subr.bf16.mxu1 %v9832_v51  ;;  %v10007_v51 = vld [vmem:[%s14333_s5 + $0xb0] ss:$8 sps:$4 sm:$0xff]   ;;  %3669 = vmatprep.subr.bf16.mxu0 %v10009_v50  ;;  %v9934_v50 = vld [vmem:[%s14331_s3 + $0x434] ss:$40 sps:$4 sm:$0xff]  }
 0x20b   :  { %3670 = vmatpush1.bf16.msra.mxu0 %v10007_v51 }
 0x20d   :  { %2404 = vmatpush1.bf16.msra.mxu1 %v9830_v52  ;;  %v9881_v52 = vld [vmem:[%s14331_s3 + $0x3d8] ss:$40 sps:$4 sm:$0xff]  }
 0x20e   :  { %2405 = vmatprep.subr.bf16.mxu1 %v9835_v53  ;;  %v9886_v53 = vld [vmem:[%s14331_s3 + $0x42c] ss:$40 sps:$4 sm:$0xff]  }
 0x211   :  { %2406 = vmatpush1.bf16.msra.mxu1 %v9833_v54  ;;  %v10015_v54 = vld [vmem:[%s14333_s5 + $0xc4] ss:$8 sps:$4 sm:$0xff]  }
 0x212   :  { %2407 = vmatprep.subr.bf16.mxu1 %v9838_v55  ;;  %v10013_v55 = vld [vmem:[%s14333_s5 + $0xc0] ss:$8 sps:$4 sm:$0xff]   ;;  %3671 = vmatprep.subr.bf16.mxu0 %v10015_v54 }
 0x213   :  { %3672 = vmatpush1.bf16.msra.mxu0 %v10013_v55  ;;  %v9937_v55 = vld [vmem:[%s14331_s3 + $0x484] ss:$40 sps:$4 sm:$0xff]  }
 0x215   :  { %2408 = vmatpush1.bf16.msra.mxu1 %v9836_v58  ;;  %v9884_v58 = vld [vmem:[%s14331_s3 + $0x428] ss:$40 sps:$4 sm:$0xff]  }
 0x216   :  { %2409 = vmatprep.subr.bf16.mxu1 %v9841_v60  ;;  %v9889_v60 = vld [vmem:[%s14331_s3 + $0x47c] ss:$40 sps:$4 sm:$0xff]  }
 0x219   :  { %2410 = vmatpush1.bf16.msra.mxu1 %v9839_v61  ;;  %v10021_v61 = vld [vmem:[%s14333_s5 + $0xd4] ss:$8 sps:$4 sm:$0xff]  }
 0x21a   :  { %2411 = vmatprep.subr.bf16.mxu1 %v9844_v62  ;;  %v10019_v62 = vld [vmem:[%s14333_s5 + $0xd0] ss:$8 sps:$4 sm:$0xff]   ;;  %3673 = vmatprep.subr.bf16.mxu0 %v10021_v61 }
 0x21b   :  { %3674 = vmatpush1.bf16.msra.mxu0 %v10019_v62  ;;  %v9940_v62 = vld [vmem:[%s14331_s3 + $0x4d4] ss:$40 sps:$4 sm:$0xff]  }
 0x21d   :  { %2412 = vmatpush1.bf16.msra.mxu1 %v9842_v63  ;;  %v9887_v63 = vld [vmem:[%s14331_s3 + $0x478] ss:$40 sps:$4 sm:$0xff]  }
 0x21e   :  { %2422 = vmatprep.subr.bf16.mxu1 %v9847_v0  ;;  %v9892_v0 = vld [vmem:[%s14331_s3 + $0x4cc] ss:$40 sps:$4 sm:$0xff]  }
 0x220   :  { %2414 = vmatmul.mubr.bf16.vlgmr.msra.gmra.mrb[12].mxu1 %v11705_v59 }
 0x221   :  { %2423 = vmatpush1.bf16.msra.mxu1 %v9845_v1  ;;  %2454 = vmatprep.mubr.bf16.mxu1 %v11700_v57  ;;  %v10027_v1 = vld [vmem:[%s14333_s5 + $0xe4] ss:$8 sps:$4 sm:$0xff]  }
 0x222   :  { %2424 = vmatprep.subr.bf16.mxu1 %v9850_v2  ;;  %v10025_v2 = vld [vmem:[%s14333_s5 + $0xe0] ss:$8 sps:$4 sm:$0xff]   ;;  %3675 = vmatprep.subr.bf16.mxu0 %v10027_v1  ;;  %v9946_v1 = vld [vmem:[%s14329_s1 + $0x504] ss:$8 sps:$4 sm:$0xff]  }
 0x223   :  { %3676 = vmatpush1.bf16.msra.mxu0 %v10025_v2  ;;  %v9944_v2 = vld [vmem:[%s14329_s1 + $0x500] ss:$8 sps:$4 sm:$0xff]  }
 0x224   :  { %3677 = vmatprep.subr.bf16.mxu0 %v10033_v4  ;;  %v9952_v4 = vld [vmem:[%s14329_s1 + $0x514] ss:$8 sps:$4 sm:$0xff]  }
 0x225   :  { %2425 = vmatpush1.bf16.msra.mxu1 %v9848_v5  ;;  %v9895_v5 = vld [vmem:[%s14331_s3 + $0x24] ss:$40 sps:$4 sm:$0xff]  }
 0x226   :  { %2426 = vmatprep.subr.bf16.mxu1 %v9853_v6  ;;  %v10031_v6 = vld [vmem:[%s14333_s5 + $0xf0] ss:$8 sps:$4 sm:$0xff]  }
 0x227   :  { %3678 = vmatpush1.bf16.msra.mxu0 %v10031_v6  ;;  %v9958_v6 = vld [vmem:[%s14329_s1 + $0x524] ss:$8 sps:$4 sm:$0xff]  }
 0x228   :  { %3688 = vmatprep.subr.bf16.mxu0 %v10039_v8  ;;  %v9962_v8 = vld [vmem:[%s14329_s1 + $0x530] ss:$8 sps:$4 sm:$0xff]  }
 0x229   :  { %2427 = vmatpush1.bf16.msra.mxu1 %v9851_v9  ;;  %v9898_v9 = vld [vmem:[%s14331_s3 + $0x74] ss:$40 sps:$4 sm:$0xff]  }
 0x22a   :  { %2428 = vmatprep.subr.bf16.mxu1 %v9856_v10  ;;  %v9896_v10 = vld [vmem:[%s14331_s3 + $0x70] ss:$40 sps:$4 sm:$0xff]  }
 0x22d   :  { %2429 = vmatpush1.bf16.msra.mxu1 %v9854_v13  ;;  %v9904_v13 = vld [vmem:[%s14331_s3 + $0x114] ss:$40 sps:$4 sm:$0xff]  }
 0x22e   :  { %2430 = vmatprep.subr.bf16.mxu1 %v9859_v15  ;;  %v9902_v15 = vld [vmem:[%s14331_s3 + $0x110] ss:$40 sps:$4 sm:$0xff]  }
 0x231   :  { %2431 = vmatpush1.bf16.msra.mxu1 %v9857_v18  ;;  %v9910_v18 = vld [vmem:[%s14331_s3 + $0x1b4] ss:$40 sps:$4 sm:$0xff]  }
 0x232   :  { %2432 = vmatprep.subr.bf16.mxu1 %v9862_v19  ;;  %v1452_v19 = vrot.slane %v12130_v17, %v11690_v39 }
 0x235   :  { %2433 = vmatpush1.bf16.msra.mxu1 %v9860_v22  ;;  %v9913_v22 = vld [vmem:[%s14331_s3 + $0x204] ss:$40 sps:$4 sm:$0xff]  }
 0x236   :  { %2434 = vmatprep.subr.bf16.mxu1 %v9865_v24 }
 0x239   :  { %2435 = vmatpush1.bf16.msra.mxu1 %v9863_v26  ;;  %v9911_v26 = vld [vmem:[%s14331_s3 + $0x200] ss:$40 sps:$4 sm:$0xff]  }
 0x23a   :  { %2436 = vmatprep.subr.bf16.mxu1 %v9868_v28 }
 0x23d   :  { %2437 = vmatpush1.bf16.msra.mxu1 %v9866_v56 }
 0x23e   :  { %2438 = vmatprep.subr.bf16.mxu1 %v9871_v31 }
 0x241   :  { %2439 = vmatpush1.bf16.msra.mxu1 %v9869_v33  ;;  %v9919_v33 = vld [vmem:[%s14331_s3 + $0x2a4] ss:$40 sps:$4 sm:$0xff]  }
 0x242   :  { %2440 = vmatprep.subr.bf16.mxu1 %v9874_v35  ;;  %v9922_v35 = vld [vmem:[%s14331_s3 + $0x2f4] ss:$40 sps:$4 sm:$0xff]  }
 0x245   :  { %2441 = vmatpush1.bf16.msra.mxu1 %v9872_v14 }
 0x246   :  { %2442 = vmatprep.subr.bf16.mxu1 %v9877_v38 }
 0x249   :  { %2443 = vmatpush1.bf16.msra.mxu1 %v9875_v42 }
 0x24a   :  { %2444 = vmatprep.subr.bf16.mxu1 %v9880_v45  ;;  %v9928_v45 = vld [vmem:[%s14331_s3 + $0x394] ss:$40 sps:$4 sm:$0xff]  }
 0x24d   :  { %2445 = vmatpush1.bf16.msra.mxu1 %v9878_v47  ;;  %v9931_v47 = vld [vmem:[%s14331_s3 + $0x3e4] ss:$40 sps:$4 sm:$0xff]  }
 0x24e   :  { %2446 = vmatprep.subr.bf16.mxu1 %v9883_v48  ;;  %v9929_v48 = vld [vmem:[%s14331_s3 + $0x3e0] ss:$40 sps:$4 sm:$0xff]  }
 0x251   :  { %2447 = vmatpush1.bf16.msra.mxu1 %v9881_v52 }
 0x252   :  { %2448 = vmatprep.subr.bf16.mxu1 %v9886_v53  ;;  %v9932_v53 = vld [vmem:[%s14331_s3 + $0x430] ss:$40 sps:$4 sm:$0xff]  }
 0x255   :  { %2449 = vmatpush1.bf16.msra.mxu1 %v9884_v58  ;;  %v12202_v58 = vld [vmem:[%s14330_s0 + $0x14] sm:$0xff] }
 0x256   :  { %2450 = vmatprep.subr.bf16.mxu1 %v9889_v60  ;;  %v9935_v60 = vld [vmem:[%s14331_s3 + $0x480] ss:$40 sps:$4 sm:$0xff]   ;;  %v12209_v61 = vrot.slane %v12202_v58, %v11198_v49 }
 0x259   :  { %2451 = vmatpush1.bf16.msra.mxu1 %v9887_v63  ;;  %v9938_v63 = vld [vmem:[%s14331_s3 + $0x4d0] ss:$40 sps:$4 sm:$0xff]  }
 0x25a   :  { %2452 = vmatprep.subr.bf16.mxu1 %v9892_v0  ;;  %v3887_v0 = vcombine.high %v12209_v61, %v12209_v61 }
 0x25d   :  { %2453 = vmatpush1.bf16.msra.mxu1 %v9890_v3  ;;  %v3925_v3 = vpack.c.bf16 %v3887_v0, %v3887_v0 }
 0x25e   :  { %2463 = vmatprep.subr.bf16.mxu1 %v9895_v5  ;;  %v9950_v5 = vld [vmem:[%s14329_s1 + $0x510] ss:$8 sps:$4 sm:$0xff]  }
 0x260   :  { %2455 = vmatmul.mubr.bf16.vlgmr.msra.gmra.mrb[16].mxu1 %v11705_v59 }
 0x261   :  { %2464 = vmatpush1.bf16.msra.mxu1 %v9893_v7  ;;  %2495 = vmatprep.mubr.bf16.mxu1 %v11700_v57  ;;  %v9907_v57 = vld [vmem:[%s14331_s3 + $0x164] ss:$40 sps:$4 sm:$0xff]   ;;  %v9956_v7 = vld [vmem:[%s14329_s1 + $0x520] ss:$8 sps:$4 sm:$0xff]  }
 0x262   :  { %2465 = vmatprep.subr.bf16.mxu1 %v9898_v9  ;;  %v9970_v9 = vld [vmem:[%s14329_s1 + $0x544] ss:$8 sps:$4 sm:$0xff]  }
 0x265   :  { %2466 = vmatpush1.bf16.msra.mxu1 %v9896_v10  ;;  %v9968_v10 = vld [vmem:[%s14329_s1 + $0x540] ss:$8 sps:$4 sm:$0xff]  }
 0x266   :  { %2467 = vmatprep.subr.bf16.mxu1 %v9901_v11  ;;  %v1459_v11 = vsub.s32 2, %v11180_v43 }
 0x269   :  { %2468 = vmatpush1.bf16.msra.mxu1 %v9899_v12  ;;  %v1463_v12 = vsub.s32 3, %v11180_v43 }
 0x26a   :  { %2469 = vmatprep.subr.bf16.mxu1 %v9904_v13  ;;  %v9976_v13 = vld [vmem:[%s14329_s1 + $0x554] ss:$8 sps:$4 sm:$0xff]  }
 0x26d   :  { %2470 = vmatpush1.bf16.msra.mxu1 %v9902_v15  ;;  %v1460_v15 = vrot.slane %v12130_v17, %v1459_v11 }
 0x26e   :  { %2471 = vmatprep.subr.bf16.mxu1 %v9907_v57  ;;  %v9974_v57 = vld [vmem:[%s14329_s1 + $0x550] ss:$8 sps:$4 sm:$0xff]  }
 0x271   :  { %2472 = vmatpush1.bf16.msra.mxu1 %v9905_v16  ;;  %v1464_v16 = vrot.slane %v12130_v17, %v1463_v12 }
 0x272   :  { %2473 = vmatprep.subr.bf16.mxu1 %v9910_v18  ;;  %v9982_v18 = vld [vmem:[%s14329_s1 + $0x564] ss:$8 sps:$4 sm:$0xff]  }
 0x273   :  { %v2333_v23 = vpop.f32.mrb[4].mxu1 }
 0x274   :  { %v2334_v24 = vadd.f32 %v2333_v23, %v1452_v19  ;;  %v2335_v25 = vpop.f32.mrb[5].mxu1 }
 0x275   :  { %v2336_v27 = vadd.f32 %v2335_v25, %v1456_v21  ;;  %2474 = vmatpush1.bf16.msra.mxu1 %v9908_v20  ;;  %v2337_v28 = vpop.f32.mrb[6].mxu1 }
 0x276   :  { %v8200_v29 = vmul.f32 -1.442695, %v2334_v24  ;;  %v2338_v56 = vpop.f32.mrb[7].mxu1  ;;  %2475 = vmatprep.subr.bf16.mxu1 %v9913_v22  ;;  %v9980_v22 = vld [vmem:[%s14329_s1 + $0x560] ss:$8 sps:$4 sm:$0xff]  }
 0x277   :  { %v8201_v31 = vmul.f32 -1.442695, %v2336_v27  ;;  %v9988_v27 = vld [vmem:[%s14329_s1 + $0x574] ss:$8 sps:$4 sm:$0xff]   ;;  %v9994_v56 = vld [vmem:[%s14329_s1 + $0x584] ss:$8 sps:$4 sm:$0xff]  }
 0x278   :  { %10919 = vpow2.f32 %v8200_v29  ;;  %v9986_v29 = vld [vmem:[%s14329_s1 + $0x570] ss:$8 sps:$4 sm:$0xff]  }
 0x279   :  { %10921 = vpow2.f32 %v8201_v31  ;;  %2476 = vmatpush1.bf16.msra.mxu1 %v9911_v26  ;;  %v10000_v31 = vld [vmem:[%s14329_s1 + $0x594] ss:$8 sps:$4 sm:$0xff]  }
 0x27a   :  { %2477 = vmatprep.subr.bf16.mxu1 %v9916_v30  ;;  %v9992_v30 = vld [vmem:[%s14329_s1 + $0x580] ss:$8 sps:$4 sm:$0xff]  }
 0x27d   :  { %2478 = vmatpush1.bf16.msra.mxu1 %v9914_v32  ;;  %v9998_v32 = vld [vmem:[%s14329_s1 + $0x590] ss:$8 sps:$4 sm:$0xff]  }
 0x27e   :  { %2479 = vmatprep.subr.bf16.mxu1 %v9919_v33 }
 0x281   :  { %2480 = vmatpush1.bf16.msra.mxu1 %v9917_v34  ;;  %v10006_v34 = vld [vmem:[%s14329_s1 + $0x5a4] ss:$8 sps:$4 sm:$0xff]  }
 0x282   :  { %v10920_v14 = vpop.eup %10919  ;;  %2481 = vmatprep.subr.bf16.mxu1 %v9922_v35 }
 0x283   :  { %v10922_v38 = vpop.eup %10921  ;;  %v2534_v40 = vadd.f32 1.0, %v10920_v14 }
 0x284   :  { %v2535_v42 = vadd.f32 1.0, %v10922_v38  ;;  %v10012_v38 = vld [vmem:[%s14329_s1 + $0x5b4] ss:$8 sps:$4 sm:$0xff]  }
 0x285   :  { %10923 = vrcp.f32 %v2534_v40  ;;  %2482 = vmatpush1.bf16.msra.mxu1 %v9920_v36  ;;  %v10010_v40 = vld [vmem:[%s14329_s1 + $0x5b0] ss:$8 sps:$4 sm:$0xff]  }
 0x286   :  { %10925 = vrcp.f32 %v2535_v42  ;;  %2483 = vmatprep.subr.bf16.mxu1 %v9925_v37  ;;  %v10004_v37 = vld [vmem:[%s14329_s1 + $0x5a0] ss:$8 sps:$4 sm:$0xff]   ;;  %v10018_v42 = vld [vmem:[%s14329_s1 + $0x5c4] ss:$8 sps:$4 sm:$0xff]  }
 0x289   :  { %2484 = vmatpush1.bf16.msra.mxu1 %v9923_v44  ;;  %v10016_v44 = vld [vmem:[%s14329_s1 + $0x5c0] ss:$8 sps:$4 sm:$0xff]  }
 0x28a   :  { %2485 = vmatprep.subr.bf16.mxu1 %v9928_v45  ;;  %v10024_v45 = vld [vmem:[%s14329_s1 + $0x5d4] ss:$8 sps:$4 sm:$0xff]  }
 0x28d   :  { %2486 = vmatpush1.bf16.msra.mxu1 %v9926_v46 }
 0x28e   :  { %2487 = vmatprep.subr.bf16.mxu1 %v9931_v47 }
 0x28f   :  { %v12187_v51 = vpop.eup %10923 }
 0x290   :  { %v12189_v52 = vpop.eup %10925 }
 0x291   :  { %2488 = vmatpush1.bf16.msra.mxu1 %v9929_v48  ;;  %v2574_v54 = vcombine.low %v12187_v51, %v12189_v52  ;;  %v10022_v48 = vld [vmem:[%s14329_s1 + $0x5d0] ss:$8 sps:$4 sm:$0xff]   ;;  %v11003_v51 = vld [vmem:[%s14330_s0] sm:$0xff] }
 0x292   :  { %2489 = vmatprep.subr.bf16.mxu1 %v9934_v50 }
 0x295   :  { %2490 = vmatpush1.bf16.msra.mxu1 %v9932_v53  ;;  %v10030_v53 = vld [vmem:[%s14329_s1 + $0x5e4] ss:$8 sps:$4 sm:$0xff]  }
 0x296   :  { %2491 = vmatprep.subr.bf16.mxu1 %v9937_v55  ;;  %v2582_v55 = vrot.slane %v2574_v54, %v11198_v49 }
 0x299   :  { %2492 = vmatpush1.bf16.msra.mxu1 %v9935_v60 }
 0x29a   :  { %2493 = vmatprep.subr.bf16.mxu1 %v9940_v62  ;;  %v3872_v62 = vcombine.high %v12202_v58, %v12202_v58  ;;  %v10034_v58 = vld [vmem:[%s14329_s1 + $0x5f0] ss:$8 sps:$4 sm:$0xff]  }
 0x29c   :  { %v12332_v54 = vrot.slane %v3872_v62, %v11198_v49 }
 0x29d   :  { %2494 = vmatpush1.bf16.msra.mxu1 %v9938_v63  ;;  %v10028_v63 = vld [vmem:[%s14329_s1 + $0x5e0] ss:$8 sps:$4 sm:$0xff]  }
 0x29e   :  { %4908 = vmatprep.subr.bf16.mxu1 %v9946_v1  ;;  %v10036_v1 = vld [vmem:[%s14329_s1 + $0x5f4] ss:$8 sps:$4 sm:$0xff]  }
 0x2a0   :  { %2496 = vmatmul.mubr.bf16.vlgmr.msra.gmra.mrb[20].mxu1 %v11705_v59  ;;  %v9964_v59 = vld [vmem:[%s14329_s1 + $0x534] ss:$8 sps:$4 sm:$0xff]  }
 0x2a1   :  { %4909 = vmatpush1.bf16.msra.mxu1 %v9944_v2  ;;  %4940 = vmatprep.mubr.bf16.mxu1 %v3925_v3 }
 0x2a2   :  { %4910 = vmatprep.subr.bf16.mxu1 %v9952_v4  ;;  %v10042_v4 = vld [vmem:[%s14329_s1 + $0x604] ss:$8 sps:$4 sm:$0xff]  }
 0x2a5   :  { %4911 = vmatpush1.bf16.msra.mxu1 %v9950_v5 }
 0x2a6   :  { %4912 = vmatprep.subr.bf16.mxu1 %v9958_v6 }
 0x2a9   :  { %4913 = vmatpush1.bf16.msra.mxu1 %v9956_v7  ;;  %v3888_v7 = vcombine.high %v12332_v54, %v12332_v54 }
 0x2aa   :  { %4914 = vmatprep.subr.bf16.mxu1 %v9964_v59  ;;  %v3924_v59 = vpack.c.bf16 %v12209_v61, %v12209_v61 }
 0x2ad   :  { %4915 = vmatpush1.bf16.msra.mxu1 %v9962_v8 }
 0x2ae   :  { %4916 = vmatprep.subr.bf16.mxu1 %v9970_v9  ;;  %v10037_v9 = vld [vmem:[%s14333_s5 + $0x100] ss:$8 sps:$4 sm:$0xff]  }
 0x2b1   :  { %4917 = vmatpush1.bf16.msra.mxu1 %v9968_v10 }
 0x2b2   :  { %4918 = vmatprep.subr.bf16.mxu1 %v9976_v13 }
 0x2b3   :  { %v2374_v19 = vpop.f32.mrb[8].mxu1 }
 0x2b4   :  { %v2375_v20 = vadd.f32 %v2374_v19, %v1460_v15  ;;  %v2376_v21 = vpop.f32.mrb[9].mxu1  ;;  %v10040_v15 = vld [vmem:[%s14329_s1 + $0x600] ss:$8 sps:$4 sm:$0xff]   ;;  %v10043_v19 = vld [vmem:[%s14333_s5 + $0x110] ss:$8 sps:$4 sm:$0xff]  }
 0x2b5   :  { %v2377_v23 = vadd.f32 %v2376_v21, %v1464_v16  ;;  %v2378_v24 = vpop.f32.mrb[10].mxu1  ;;  %4919 = vmatpush1.bf16.msra.mxu1 %v9974_v57  ;;  %v10045_v57 = vld [vmem:[%s14333_s5 + $0x114] ss:$8 sps:$4 sm:$0xff]   ;;  %v10051_v21 = vld [vmem:[%s14333_s5 + $0x124] ss:$8 sps:$4 sm:$0xff]  }
 0x2b6   :  { %v8202_v25 = vmul.f32 -1.442695, %v2375_v20  ;;  %v2379_v26 = vpop.f32.mrb[11].mxu1  ;;  %4920 = vmatprep.subr.bf16.mxu1 %v9982_v18  ;;  %v10048_v16 = vld [vmem:[%s14329_s1 + $0x614] ss:$8 sps:$4 sm:$0xff]   ;;  %v3927_v18 = vpack.c.bf16 %v3888_v7, %v3888_v7 }
 0x2b7   :  { %v8203_v28 = vmul.f32 -1.442695, %v2377_v23  ;;  %v10046_v20 = vld [vmem:[%s14329_s1 + $0x610] ss:$8 sps:$4 sm:$0xff]   ;;  %v10049_v23 = vld [vmem:[%s14333_s5 + $0x120] ss:$8 sps:$4 sm:$0xff]  }
 0x2b8   :  { %10927 = vpow2.f32 %v8202_v25  ;;  %v10052_v24 = vld [vmem:[%s14329_s1 + $0x620] ss:$8 sps:$4 sm:$0xff]   ;;  %v10057_v25 = vld [vmem:[%s14333_s5 + $0x134] ss:$8 sps:$4 sm:$0xff]  }
 0x2b9   :  { %10929 = vpow2.f32 %v8203_v28  ;;  %4921 = vmatpush1.bf16.msra.mxu1 %v9980_v22  ;;  %v10054_v22 = vld [vmem:[%s14329_s1 + $0x624] ss:$8 sps:$4 sm:$0xff]   ;;  %v10060_v26 = vld [vmem:[%s14329_s1 + $0x634] ss:$8 sps:$4 sm:$0xff]   ;;  %v10058_v28 = vld [vmem:[%s14329_s1 + $0x630] ss:$8 sps:$4 sm:$0xff]  }
 0x2ba   :  { %4922 = vmatprep.subr.bf16.mxu1 %v9988_v27  ;;  %v10055_v27 = vld [vmem:[%s14333_s5 + $0x130] ss:$8 sps:$4 sm:$0xff]  }
 0x2bd   :  { %4923 = vmatpush1.bf16.msra.mxu1 %v9986_v29  ;;  %v10063_v29 = vld [vmem:[%s14333_s5 + $0x144] ss:$8 sps:$4 sm:$0xff]  }
 0x2be   :  { %4924 = vmatprep.subr.bf16.mxu1 %v9994_v56  ;;  %v10066_v56 = vld [vmem:[%s14329_s1 + $0x644] ss:$8 sps:$4 sm:$0xff]  }
 0x2c1   :  { %4925 = vmatpush1.bf16.msra.mxu1 %v9992_v30  ;;  %v1467_v30 = vsub.s32 4, %v11180_v43 }
 0x2c2   :  { %v10928_v33 = vpop.eup %10927  ;;  %4926 = vmatprep.subr.bf16.mxu1 %v10000_v31  ;;  %v10061_v31 = vld [vmem:[%s14333_s5 + $0x140] ss:$8 sps:$4 sm:$0xff]  }
 0x2c3   :  { %v10930_v35 = vpop.eup %10929  ;;  %v2536_v36 = vadd.f32 1.0, %v10928_v33  ;;  %v10064_v33 = vld [vmem:[%s14329_s1 + $0x640] ss:$8 sps:$4 sm:$0xff]  }
 0x2c4   :  { %v2537_v14 = vadd.f32 1.0, %v10930_v35  ;;  %v10072_v35 = vld [vmem:[%s14329_s1 + $0x654] ss:$8 sps:$4 sm:$0xff]  }
 0x2c5   :  { %10931 = vrcp.f32 %v2536_v36  ;;  %4927 = vmatpush1.bf16.msra.mxu1 %v9998_v32  ;;  %v1471_v32 = vsub.s32 5, %v11180_v43  ;;  %v1468_v36 = vrot.slane %v12130_v17, %v1467_v30 }
 0x2c6   :  { %10933 = vrcp.f32 %v2537_v14  ;;  %4928 = vmatprep.subr.bf16.mxu1 %v10006_v34  ;;  %v10069_v34 = vld [vmem:[%s14333_s5 + $0x154] ss:$8 sps:$4 sm:$0xff]   ;;  %v10067_v14 = vld [vmem:[%s14333_s5 + $0x150] ss:$8 sps:$4 sm:$0xff]  }
 0x2c9   :  { %4929 = vmatpush1.bf16.msra.mxu1 %v10004_v37  ;;  %v1472_v37 = vrot.slane %v12130_v17, %v1471_v32 }
 0x2ca   :  { %4930 = vmatprep.subr.bf16.mxu1 %v10012_v38  ;;  %v10070_v38 = vld [vmem:[%s14329_s1 + $0x650] ss:$8 sps:$4 sm:$0xff]  }
 0x2cd   :  { %4931 = vmatpush1.bf16.msra.mxu1 %v10010_v40  ;;  %v10075_v40 = vld [vmem:[%s14333_s5 + $0x164] ss:$8 sps:$4 sm:$0xff]  }
 0x2ce   :  { %4932 = vmatprep.subr.bf16.mxu1 %v10018_v42 }
 0x2cf   :  { %v10932_v46 = vpop.eup %10931 }
 0x2d0   :  { %v10934_v47 = vpop.eup %10933 }
 0x2d1   :  { %4933 = vmatpush1.bf16.msra.mxu1 %v10016_v44  ;;  %v2575_v50 = vcombine.low %v10932_v46, %v10934_v47  ;;  %v10078_v44 = vld [vmem:[%s14329_s1 + $0x664] ss:$8 sps:$4 sm:$0xff]  }
 0x2d2   :  { %4934 = vmatprep.subr.bf16.mxu1 %v10024_v45 }
 0x2d3   :  { %v2589_v60 = vrot.slane %v2575_v50, %v11198_v49  ;;  %v10076_v50 = vld [vmem:[%s14329_s1 + $0x660] ss:$8 sps:$4 sm:$0xff]  }
 0x2d5   :  { %4935 = vmatpush1.bf16.msra.mxu1 %v10022_v48  ;;  %v2590_v0 = vcombine.low %v2582_v55, %v2589_v60  ;;  %v10073_v48 = vld [vmem:[%s14333_s5 + $0x160] ss:$8 sps:$4 sm:$0xff]   ;;  %v10081_v60 = vld [vmem:[%s14333_s5 + $0x174] ss:$8 sps:$4 sm:$0xff]  }
 0x2d6   :  { %4936 = vmatprep.subr.bf16.mxu1 %v10030_v53 }
 0x2d7   :  { %v2619_v52 = vmul.f32 %v11003_v51, %v2590_v0  ;;  %v10079_v0 = vld [vmem:[%s14333_s5 + $0x170] ss:$8 sps:$4 sm:$0xff]   ;;  %v10087_v51 = vld [vmem:[%s14333_s5 + $0x184] ss:$8 sps:$4 sm:$0xff]  }
 0x2d9   :  { %4937 = vmatpush1.bf16.msra.mxu1 %v10028_v63  ;;  %v2632_v2 = vrot.slane %v2619_v52, %v11198_v49  ;;  %v2625_v3 = vcombine.high %v2619_v52, %v2619_v52  ;;  %v10084_v63 = vld [vmem:[%s14329_s1 + $0x674] ss:$8 sps:$4 sm:$0xff]   ;;  %v10090_v52 = vld [vmem:[%s14329_s1 + $0x684] ss:$8 sps:$4 sm:$0xff]  }
 0x2da   :  { %4938 = vmatprep.subr.bf16.mxu1 %v10036_v1  ;;  %v10082_v1 = vld [vmem:[%s14329_s1 + $0x670] ss:$8 sps:$4 sm:$0xff]  }
 0x2db   :  { %v2640_v5 = vcombine.high %v2632_v2, %v2632_v2  ;;  %v12342_v6 = vrot.slane %v2625_v3, %v11198_v49  ;;  %v2677_v13 = vpack.c.bf16 %v2632_v2, %v2632_v2  ;;  %v10088_v2 = vld [vmem:[%s14329_s1 + $0x680] ss:$8 sps:$4 sm:$0xff]   ;;  %v10093_v3 = vld [vmem:[%s14333_s5 + $0x194] ss:$8 sps:$4 sm:$0xff]  }
 0x2dd   :  { %4939 = vmatpush1.bf16.msra.mxu1 %v10034_v58  ;;  %v2678_v8 = vpack.c.bf16 %v2640_v5, %v2640_v5  ;;  %v2641_v10 = vcombine.high %v12342_v6, %v12342_v6  ;;  %v10085_v58 = vld [vmem:[%s14333_s5 + $0x180] ss:$8 sps:$4 sm:$0xff]   ;;  %v10091_v5 = vld [vmem:[%s14333_s5 + $0x190] ss:$8 sps:$4 sm:$0xff]  }
 0x2de   :  { %4949 = vmatprep.subr.bf16.mxu1 %v10042_v4  ;;  %v10096_v4 = vld [vmem:[%s14329_s1 + $0x694] ss:$8 sps:$4 sm:$0xff]  }
 0x2df   :  { %3679 = vmatprep.mubr.bf16.mxu0 %v2678_v8  ;;  %v2680_v61 = vpack.c.bf16 %v2641_v10, %v2641_v10  ;;  %v10099_v8 = vld [vmem:[%s14333_s5 + $0x1a4] ss:$8 sps:$4 sm:$0xff]  }
 0x2e0   :  { %3680 = vmatmul.mubr.bf16.vlgmr.msra.gmra.mrb[4].mxu0 %v2677_v13  ;;  %4941 = vmatmul.mubr.bf16.vlgmr.msra.gmra.mrb[24].mxu1 %v3924_v59  ;;  %v10094_v59 = vld [vmem:[%s14329_s1 + $0x690] ss:$8 sps:$4 sm:$0xff]   ;;  %v10102_v13 = vld [vmem:[%s14329_s1 + $0x6a4] ss:$8 sps:$4 sm:$0xff]  }
 0x2e1   :  { %3689 = vmatpush1.bf16.msra.mxu0 %v10037_v9  ;;  %3720 = vmatprep.mubr.bf16.mxu0 %v2680_v61  ;;  %v10100_v61 = vld [vmem:[%s14329_s1 + $0x6a0] ss:$8 sps:$4 sm:$0xff]  }
 0x2e2   :  { %4950 = vmatpush1.bf16.msra.mxu1 %v10040_v15  ;;  %3690 = vmatprep.subr.bf16.mxu0 %v10045_v57  ;;  %v10097_v57 = vld [vmem:[%s14333_s5 + $0x1a0] ss:$8 sps:$4 sm:$0xff]  }
 0x2e3   :  { %4951 = vmatprep.subr.bf16.mxu1 %v10048_v16  ;;  %4981 = vmatprep.mubr.bf16.mxu1 %v3927_v18  ;;  %v10105_v16 = vld [vmem:[%s14333_s5 + $0x1b4] ss:$8 sps:$4 sm:$0xff]  }
 0x2e4   :  { %v10108_v18 = vld [vmem:[%s14329_s1 + $0x6b4] ss:$8 sps:$4 sm:$0xff]  }
 0x2e5   :  { %3691 = vmatpush1.bf16.msra.mxu0 %v10043_v19  ;;  %v10103_v19 = vld [vmem:[%s14333_s5 + $0x1b0] ss:$8 sps:$4 sm:$0xff]  }
 0x2e6   :  { %4952 = vmatpush1.bf16.msra.mxu1 %v10046_v20  ;;  %3692 = vmatprep.subr.bf16.mxu0 %v10051_v21  ;;  %v10106_v20 = vld [vmem:[%s14329_s1 + $0x6b0] ss:$8 sps:$4 sm:$0xff]   ;;  %v10111_v21 = vld [vmem:[%s14333_s5 + $0x1c4] ss:$8 sps:$4 sm:$0xff]  }
 0x2e7   :  { %4953 = vmatprep.subr.bf16.mxu1 %v10054_v22  ;;  %v10114_v22 = vld [vmem:[%s14329_s1 + $0x6c4] ss:$8 sps:$4 sm:$0xff]  }
 0x2e9   :  { %3693 = vmatpush1.bf16.msra.mxu0 %v10049_v23  ;;  %v10109_v23 = vld [vmem:[%s14333_s5 + $0x1c0] ss:$8 sps:$4 sm:$0xff]  }
 0x2ea   :  { %4954 = vmatpush1.bf16.msra.mxu1 %v10052_v24  ;;  %3694 = vmatprep.subr.bf16.mxu0 %v10057_v25  ;;  %v10112_v24 = vld [vmem:[%s14329_s1 + $0x6c0] ss:$8 sps:$4 sm:$0xff]   ;;  %v10117_v25 = vld [vmem:[%s14333_s5 + $0x1d4] ss:$8 sps:$4 sm:$0xff]  }
 0x2eb   :  { %4955 = vmatprep.subr.bf16.mxu1 %v10060_v26 }
 0x2ed   :  { %3695 = vmatpush1.bf16.msra.mxu0 %v10055_v27  ;;  %v10120_v27 = vld [vmem:[%s14329_s1 + $0x6d4] ss:$8 sps:$4 sm:$0xff]  }
 0x2ee   :  { %4956 = vmatpush1.bf16.msra.mxu1 %v10058_v28  ;;  %3696 = vmatprep.subr.bf16.mxu0 %v10063_v29  ;;  %v10115_v29 = vld [vmem:[%s14333_s5 + $0x1d0] ss:$8 sps:$4 sm:$0xff]  }
 0x2ef   :  { %4957 = vmatprep.subr.bf16.mxu1 %v10066_v56 }
 0x2f1   :  { %3697 = vmatpush1.bf16.msra.mxu0 %v10061_v31  ;;  %v10118_v31 = vld [vmem:[%s14329_s1 + $0x6d0] ss:$8 sps:$4 sm:$0xff]  }
 0x2f2   :  { %4958 = vmatpush1.bf16.msra.mxu1 %v10064_v33  ;;  %3698 = vmatprep.subr.bf16.mxu0 %v10069_v34  ;;  %v10123_v33 = vld [vmem:[%s14333_s5 + $0x1e4] ss:$8 sps:$4 sm:$0xff]  }
 0x2f3   :  { %v2415_v42 = vpop.f32.mrb[12].mxu1  ;;  %4959 = vmatprep.subr.bf16.mxu1 %v10072_v35  ;;  %v10126_v34 = vld [vmem:[%s14329_s1 + $0x6e4] ss:$8 sps:$4 sm:$0xff]   ;;  %v12535_v35 = vld [vmem:[%s14330_s0 + $0x1c] sm:$0xff] }
 0x2f4   :  { %v2416_v45 = vadd.f32 %v2415_v42, %v1468_v36  ;;  %v2417_v46 = vpop.f32.mrb[13].mxu1  ;;  %v10121_v36 = vld [vmem:[%s14333_s5 + $0x1e0] ss:$8 sps:$4 sm:$0xff]   ;;  %v10127_v42 = vld [vmem:[%s14333_s5 + $0x1f0] ss:$8 sps:$4 sm:$0xff]  }
 0x2f5   :  { %v2418_v47 = vadd.f32 %v2417_v46, %v1472_v37  ;;  %3699 = vmatpush1.bf16.msra.mxu0 %v10067_v14  ;;  %v2419_v17 = vpop.f32.mrb[14].mxu1  ;;  %v10124_v14 = vld [vmem:[%s14329_s1 + $0x6e0] ss:$8 sps:$4 sm:$0xff]   ;;  %v10129_v37 = vld [vmem:[%s14333_s5 + $0x1f4] ss:$8 sps:$4 sm:$0xff]  }
 0x2f6   :  { %v8204_v53 = vmul.f32 -1.442695, %v2416_v45  ;;  %4960 = vmatpush1.bf16.msra.mxu1 %v10070_v38  ;;  %v2420_v55 = vpop.f32.mrb[15].mxu1  ;;  %3700 = vmatprep.subr.bf16.mxu0 %v10075_v40  ;;  %v10132_v38 = vld [vmem:[%s14329_s1 + $0x6f4] ss:$8 sps:$4 sm:$0xff]   ;;  %v12551_v40 = vrot.slane %v12535_v35, %v11198_v49 }
 0x2f7   :  { %v8205_v62 = vmul.f32 -1.442695, %v2418_v47  ;;  %4961 = vmatprep.subr.bf16.mxu1 %v10078_v44  ;;  %v10130_v44 = vld [vmem:[%s14329_s1 + $0x6f0] ss:$8 sps:$4 sm:$0xff]   ;;  %v10135_v45 = vld [vmem:[%s14333_s5 + $0x204] ss:$8 sps:$4 sm:$0xff]  }
 0x2f8   :  { %10935 = vpow2.f32 %v8204_v53  ;;  %v10139_v46 = vld [vmem:[%s14329_s1 + $0x704] ss:$8 sps:$4 sm:$0xff]   ;;  %v3904_v47 = vcombine.high %v12551_v40, %v12551_v40  ;;  %v10133_v17 = vld [vmem:[%s14333_s5 + $0x200] ss:$8 sps:$4 sm:$0xff]   ;;  %v10142_v55 = vld [vmem:[%s14333_s5 + $0x214] ss:$8 sps:$4 sm:$0xff]  }
 0x2f9   :  { %10937 = vpow2.f32 %v8205_v62  ;;  %3701 = vmatpush1.bf16.msra.mxu0 %v10073_v48  ;;  %v3926_v48 = vpack.c.bf16 %v12332_v54, %v12332_v54  ;;  %v10137_v53 = vld [vmem:[%s14329_s1 + $0x700] ss:$8 sps:$4 sm:$0xff]   ;;  %v10140_v54 = vld [vmem:[%s14333_s5 + $0x210] ss:$8 sps:$4 sm:$0xff]  }
 0x2fa   :  { %4962 = vmatpush1.bf16.msra.mxu1 %v10076_v50  ;;  %3702 = vmatprep.subr.bf16.mxu0 %v10081_v60  ;;  %v2679_v50 = vpack.c.bf16 %v12342_v6, %v12342_v6  ;;  %v10145_v60 = vld [vmem:[%s14329_s1 + $0x714] ss:$8 sps:$4 sm:$0xff]   ;;  %v3929_v62 = vpack.c.bf16 %v3904_v47, %v3904_v47  ;;  %v10143_v6 = vld [vmem:[%s14329_s1 + $0x710] ss:$8 sps:$4 sm:$0xff]  }
 0x2fb   :  { %4963 = vmatprep.subr.bf16.mxu1 %v10084_v63  ;;  %v10148_v63 = vld [vmem:[%s14333_s5 + $0x224] ss:$8 sps:$4 sm:$0xff]   ;;  %v10190_v47 = vld [vmem:[%s14333_s5 + $0x294] ss:$8 sps:$4 sm:$0xff]  }
 0x2fd   :  { %3703 = vmatpush1.bf16.msra.mxu0 %v10079_v0  ;;  %v10151_v0 = vld [vmem:[%s14329_s1 + $0x724] ss:$8 sps:$4 sm:$0xff]  }
 0x2fe   :  { %4964 = vmatpush1.bf16.msra.mxu1 %v10082_v1  ;;  %3704 = vmatprep.subr.bf16.mxu0 %v10087_v51  ;;  %v10146_v1 = vld [vmem:[%s14333_s5 + $0x220] ss:$8 sps:$4 sm:$0xff]  }
 0x2ff   :  { %4965 = vmatprep.subr.bf16.mxu1 %v10090_v52  ;;  %v10149_v51 = vld [vmem:[%s14329_s1 + $0x720] ss:$8 sps:$4 sm:$0xff]   ;;  %v10154_v52 = vld [vmem:[%s14333_s5 + $0x234] ss:$8 sps:$4 sm:$0xff]  }
 0x301   :  { %3705 = vmatpush1.bf16.msra.mxu0 %v10085_v58  ;;  %v10157_v58 = vld [vmem:[%s14329_s1 + $0x734] ss:$8 sps:$4 sm:$0xff]  }
 0x302   :  { %v10936_v7 = vpop.eup %10935  ;;  %4966 = vmatpush1.bf16.msra.mxu1 %v10088_v2  ;;  %3706 = vmatprep.subr.bf16.mxu0 %v10093_v3  ;;  %v10152_v2 = vld [vmem:[%s14333_s5 + $0x230] ss:$8 sps:$4 sm:$0xff]  }
 0x303   :  { %v10938_v9 = vpop.eup %10937  ;;  %v2538_v10 = vadd.f32 1.0, %v10936_v7  ;;  %4967 = vmatprep.subr.bf16.mxu1 %v10096_v4  ;;  %v10155_v3 = vld [vmem:[%s14329_s1 + $0x730] ss:$8 sps:$4 sm:$0xff]   ;;  %v10160_v4 = vld [vmem:[%s14333_s5 + $0x244] ss:$8 sps:$4 sm:$0xff]   ;;  %v1475_v7 = vsub.s32 6, %v11180_v43 }
 0x304   :  { %v2539_v15 = vadd.f32 1.0, %v10938_v9  ;;  %v10161_v9 = vld [vmem:[%s14329_s1 + $0x740] ss:$8 sps:$4 sm:$0xff]  }
 0x305   :  { %10939 = vrcp.f32 %v2538_v10  ;;  %3707 = vmatpush1.bf16.msra.mxu0 %v10091_v5  ;;  %v10163_v5 = vld [vmem:[%s14329_s1 + $0x744] ss:$8 sps:$4 sm:$0xff]   ;;  %v10166_v10 = vld [vmem:[%s14333_s5 + $0x254] ss:$8 sps:$4 sm:$0xff]  }
 0x306   :  { %10941 = vrcp.f32 %v2539_v15  ;;  %4968 = vmatpush1.bf16.msra.mxu1 %v10094_v59  ;;  %3708 = vmatprep.subr.bf16.mxu0 %v10099_v8  ;;  %v10158_v59 = vld [vmem:[%s14333_s5 + $0x240] ss:$8 sps:$4 sm:$0xff]   ;;  %v1479_v8 = vsub.s32 7, %v11180_v43 }
 0x307   :  { %4969 = vmatprep.subr.bf16.mxu1 %v10102_v13  ;;  %v10169_v13 = vld [vmem:[%s14329_s1 + $0x754] ss:$8 sps:$4 sm:$0xff]   ;;  %v11004_v15 = vld [vmem:[%s14334_s4] sm:$0xff] }
 0x309   :  { %3709 = vmatpush1.bf16.msra.mxu0 %v10097_v57  ;;  %v1476_v57 = vrot.slane %v11004_v15, %v1475_v7 }
 0x30a   :  { %4970 = vmatpush1.bf16.msra.mxu1 %v10100_v61  ;;  %3710 = vmatprep.subr.bf16.mxu0 %v10105_v16  ;;  %v10164_v61 = vld [vmem:[%s14333_s5 + $0x250] ss:$8 sps:$4 sm:$0xff]   ;;  %v1480_v16 = vrot.slane %v11004_v15, %v1479_v8 }
 0x30b   :  { %4971 = vmatprep.subr.bf16.mxu1 %v10108_v18  ;;  %v10167_v18 = vld [vmem:[%s14329_s1 + $0x750] ss:$8 sps:$4 sm:$0xff]  }
 0x30c   :  { %v10212_v15 = vld [vmem:[%s14333_s5 + $0x2d0] ss:$8 sps:$4 sm:$0xff]  }
 0x30d   :  { %3711 = vmatpush1.bf16.msra.mxu0 %v10103_v19  ;;  %v10172_v19 = vld [vmem:[%s14333_s5 + $0x264] ss:$8 sps:$4 sm:$0xff]  }
 0x30e   :  { %4972 = vmatpush1.bf16.msra.mxu1 %v10106_v20  ;;  %3712 = vmatprep.subr.bf16.mxu0 %v10111_v21  ;;  %v10175_v21 = vld [vmem:[%s14329_s1 + $0x764] ss:$8 sps:$4 sm:$0xff]  }
 0x30f   :  { %v12511_v26 = vpop.eup %10939  ;;  %4973 = vmatprep.subr.bf16.mxu1 %v10114_v22 }
 0x310   :  { %v12516_v28 = vpop.eup %10941 }
 0x311   :  { %3713 = vmatpush1.bf16.msra.mxu0 %v10109_v23  ;;  %v2591_v56 = vcombine.low %v12511_v26, %v12516_v28  ;;  %v10226_v26 = vld [vmem:[%s14333_s5 + $0x2f4] ss:$8 sps:$4 sm:$0xff]  }
 0x312   :  { %4974 = vmatpush1.bf16.msra.mxu1 %v10112_v24  ;;  %3714 = vmatprep.subr.bf16.mxu0 %v10117_v25  ;;  %v10229_v28 = vld [vmem:[%s14329_s1 + $0x7f4] ss:$8 sps:$4 sm:$0xff]  }
 0x313   :  { %4975 = vmatprep.subr.bf16.mxu1 %v10120_v27  ;;  %v10170_v27 = vld [vmem:[%s14333_s5 + $0x260] ss:$8 sps:$4 sm:$0xff]  }
 0x315   :  { %3715 = vmatpush1.bf16.msra.mxu0 %v10115_v29  ;;  %v10173_v29 = vld [vmem:[%s14329_s1 + $0x760] ss:$8 sps:$4 sm:$0xff]  }
 0x316   :  { %4976 = vmatpush1.bf16.msra.mxu1 %v10118_v31  ;;  %3716 = vmatprep.subr.bf16.mxu0 %v10123_v33 }
 0x317   :  { %4977 = vmatprep.subr.bf16.mxu1 %v10126_v34  ;;  %v10178_v34 = vld [vmem:[%s14333_s5 + $0x274] ss:$8 sps:$4 sm:$0xff]  }
 0x319   :  { %3717 = vmatpush1.bf16.msra.mxu0 %v10121_v36 }
 0x31a   :  { %4978 = vmatpush1.bf16.msra.mxu1 %v10124_v14  ;;  %3718 = vmatprep.subr.bf16.mxu0 %v10129_v37  ;;  %v10181_v14 = vld [vmem:[%s14329_s1 + $0x774] ss:$8 sps:$4 sm:$0xff]   ;;  %v10176_v37 = vld [vmem:[%s14333_s5 + $0x270] ss:$8 sps:$4 sm:$0xff]  }
 0x31b   :  { %4979 = vmatprep.subr.bf16.mxu1 %v10132_v38  ;;  %v10179_v38 = vld [vmem:[%s14329_s1 + $0x770] ss:$8 sps:$4 sm:$0xff]  }
 0x31d   :  { %3719 = vmatpush1.bf16.msra.mxu0 %v10127_v42  ;;  %v10184_v42 = vld [vmem:[%s14333_s5 + $0x284] ss:$8 sps:$4 sm:$0xff]  }
 0x31e   :  { %4980 = vmatpush1.bf16.msra.mxu1 %v10130_v44  ;;  %3729 = vmatprep.subr.bf16.mxu0 %v10135_v45  ;;  %v10187_v44 = vld [vmem:[%s14329_s1 + $0x784] ss:$8 sps:$4 sm:$0xff]   ;;  %v10182_v45 = vld [vmem:[%s14333_s5 + $0x280] ss:$8 sps:$4 sm:$0xff]  }
 0x31f   :  { %4990 = vmatprep.subr.bf16.mxu1 %v10139_v46  ;;  %v10185_v46 = vld [vmem:[%s14329_s1 + $0x780] ss:$8 sps:$4 sm:$0xff]  }
 0x320   :  { %3721 = vmatmul.mubr.bf16.vlgmr.msra.gmra.mrb[4].mxu0 %v2679_v50 }
 0x321   :  { %3730 = vmatpush1.bf16.msra.mxu0 %v10133_v17  ;;  %4982 = vmatmul.mubr.bf16.vlgmr.msra.gmra.mrb[24].mxu1 %v3926_v48  ;;  %v10193_v17 = vld [vmem:[%s14329_s1 + $0x794] ss:$8 sps:$4 sm:$0xff]   ;;  %v10188_v48 = vld [vmem:[%s14333_s5 + $0x290] ss:$8 sps:$4 sm:$0xff]  }
 0x322   :  { %4991 = vmatpush1.bf16.msra.mxu1 %v10137_v53  ;;  %3731 = vmatprep.subr.bf16.mxu0 %v10142_v55  ;;  %v10191_v53 = vld [vmem:[%s14329_s1 + $0x790] ss:$8 sps:$4 sm:$0xff]   ;;  %v10196_v55 = vld [vmem:[%s14333_s5 + $0x2a4] ss:$8 sps:$4 sm:$0xff]  }
 0x323   :  { %4992 = vmatprep.subr.bf16.mxu1 %v10145_v60  ;;  %5022 = vmatprep.mubr.bf16.mxu1 %v3929_v62 }
 0x325   :  { %3732 = vmatpush1.bf16.msra.mxu0 %v10140_v54  ;;  %v10199_v54 = vld [vmem:[%s14329_s1 + $0x7a4] ss:$8 sps:$4 sm:$0xff]  }
 0x326   :  { %4993 = vmatpush1.bf16.msra.mxu1 %v10143_v6  ;;  %3733 = vmatprep.subr.bf16.mxu0 %v10148_v63  ;;  %v10194_v63 = vld [vmem:[%s14333_s5 + $0x2a0] ss:$8 sps:$4 sm:$0xff]  }
 0x327   :  { %4994 = vmatprep.subr.bf16.mxu1 %v10151_v0  ;;  %v10197_v0 = vld [vmem:[%s14329_s1 + $0x7a0] ss:$8 sps:$4 sm:$0xff]  }
 0x329   :  { %3734 = vmatpush1.bf16.msra.mxu0 %v10146_v1  ;;  %v10202_v1 = vld [vmem:[%s14333_s5 + $0x2b4] ss:$8 sps:$4 sm:$0xff]  }
 0x32a   :  { %4995 = vmatpush1.bf16.msra.mxu1 %v10149_v51  ;;  %3735 = vmatprep.subr.bf16.mxu0 %v10154_v52  ;;  %v10205_v51 = vld [vmem:[%s14329_s1 + $0x7b4] ss:$8 sps:$4 sm:$0xff]   ;;  %v10200_v52 = vld [vmem:[%s14333_s5 + $0x2b0] ss:$8 sps:$4 sm:$0xff]  }
 0x32b   :  { %4996 = vmatprep.subr.bf16.mxu1 %v10157_v58  ;;  %v10203_v58 = vld [vmem:[%s14329_s1 + $0x7b0] ss:$8 sps:$4 sm:$0xff]  }
 0x32d   :  { %3736 = vmatpush1.bf16.msra.mxu0 %v10152_v2  ;;  %v10208_v2 = vld [vmem:[%s14333_s5 + $0x2c4] ss:$8 sps:$4 sm:$0xff]  }
 0x32e   :  { %4997 = vmatpush1.bf16.msra.mxu1 %v10155_v3  ;;  %3737 = vmatprep.subr.bf16.mxu0 %v10160_v4  ;;  %v10211_v3 = vld [vmem:[%s14329_s1 + $0x7c4] ss:$8 sps:$4 sm:$0xff]   ;;  %v10206_v4 = vld [vmem:[%s14333_s5 + $0x2c0] ss:$8 sps:$4 sm:$0xff]  }
 0x32f   :  { %4998 = vmatprep.subr.bf16.mxu1 %v10163_v5  ;;  %v10209_v5 = vld [vmem:[%s14329_s1 + $0x7c0] ss:$8 sps:$4 sm:$0xff]  }
 0x331   :  { %3738 = vmatpush1.bf16.msra.mxu0 %v10158_v59  ;;  %v10214_v59 = vld [vmem:[%s14333_s5 + $0x2d4] ss:$8 sps:$4 sm:$0xff]  }
 0x332   :  { %4999 = vmatpush1.bf16.msra.mxu1 %v10161_v9  ;;  %3739 = vmatprep.subr.bf16.mxu0 %v10166_v10  ;;  %v10217_v10 = vld [vmem:[%s14329_s1 + $0x7d4] ss:$8 sps:$4 sm:$0xff]  }
 0x333   :  { %v2456_v20 = vpop.f32.mrb[16].mxu1  ;;  %5000 = vmatprep.subr.bf16.mxu1 %v10169_v13 }
 0x334   :  { %v2457_v22 = vadd.f32 %v2456_v20, %v1476_v57  ;;  %v2458_v23 = vpop.f32.mrb[17].mxu1 }
 0x335   :  { %v2459_v24 = vadd.f32 %v2458_v23, %v1480_v16  ;;  %3740 = vmatpush1.bf16.msra.mxu0 %v10164_v61  ;;  %v2460_v25 = vpop.f32.mrb[18].mxu1  ;;  %v10215_v61 = vld [vmem:[%s14329_s1 + $0x7d0] ss:$8 sps:$4 sm:$0xff]   ;;  %v10220_v16 = vld [vmem:[%s14333_s5 + $0x2e4] ss:$8 sps:$4 sm:$0xff]  }
 0x336   :  { %v8206_v31 = vmul.f32 -1.442695, %v2457_v22  ;;  %5001 = vmatpush1.bf16.msra.mxu1 %v10167_v18  ;;  %v2461_v33 = vpop.f32.mrb[19].mxu1  ;;  %3741 = vmatprep.subr.bf16.mxu0 %v10172_v19  ;;  %v10223_v18 = vld [vmem:[%s14329_s1 + $0x7e4] ss:$8 sps:$4 sm:$0xff]   ;;  %v2599_v19 = vrot.slane %v2591_v56, %v11198_v49 }
 0x337   :  { %v8207_v36 = vmul.f32 -1.442695, %v2459_v24  ;;  %5002 = vmatprep.subr.bf16.mxu1 %v10175_v21  ;;  %v3889_v21 = vcombine.high %v12535_v35, %v12535_v35  ;;  %v10218_v22 = vld [vmem:[%s14333_s5 + $0x2e0] ss:$8 sps:$4 sm:$0xff]   ;;  %v10227_v33 = vld [vmem:[%s14329_s1 + $0x7f0] ss:$8 sps:$4 sm:$0xff]  }
 0x338   :  { %10943 = vpow2.f32 %v8206_v31  ;;  %v10221_v24 = vld [vmem:[%s14329_s1 + $0x7e0] ss:$8 sps:$4 sm:$0xff]  }
 0x339   :  { %10945 = vpow2.f32 %v8207_v36  ;;  %3742 = vmatpush1.bf16.msra.mxu0 %v10170_v27  ;;  %v11005_v56 = vld [vmem:[%s14330_s0 + $0x8] sm:$0xff]  ;;  %v12771_v25 = vrot.slane %v3889_v21, %v11198_v49  ;;  %v10224_v27 = vld [vmem:[%s14333_s5 + $0x2f0] ss:$8 sps:$4 sm:$0xff]  }
 0x33a   :  { %5003 = vmatpush1.bf16.msra.mxu1 %v10173_v29  ;;  %3743 = vmatprep.subr.bf16.mxu0 %v10178_v34  ;;  %v10232_v34 = vld [vmem:[%s14333_s5 + $0x304] ss:$8 sps:$4 sm:$0xff]  }
 0x33b   :  { %5004 = vmatprep.subr.bf16.mxu1 %v10181_v14  ;;  %v10235_v14 = vld [vmem:[%s14329_s1 + $0x804] ss:$8 sps:$4 sm:$0xff]  }
 0x33d   :  { %3744 = vmatpush1.bf16.msra.mxu0 %v10176_v37 }
 0x33e   :  { %5005 = vmatpush1.bf16.msra.mxu1 %v10179_v38  ;;  %3745 = vmatprep.subr.bf16.mxu0 %v10184_v42  ;;  %v3905_v38 = vcombine.high %v12771_v25, %v12771_v25 }
 0x33f   :  { %5006 = vmatprep.subr.bf16.mxu1 %v10187_v44  ;;  %v10230_v44 = vld [vmem:[%s14333_s5 + $0x300] ss:$8 sps:$4 sm:$0xff]  }
 0x341   :  { %3746 = vmatpush1.bf16.msra.mxu0 %v10182_v45 }
 0x342   :  { %v10944_v50 = vpop.eup %10943  ;;  %5007 = vmatpush1.bf16.msra.mxu1 %v10185_v46  ;;  %3747 = vmatprep.subr.bf16.mxu0 %v10190_v47  ;;  %v3928_v47 = vpack.c.bf16 %v12551_v40, %v12551_v40  ;;  %v10236_v40 = vld [vmem:[%s14333_s5 + $0x310] ss:$8 sps:$4 sm:$0xff]  }
 0x343   :  { %v10946_v60 = vpop.eup %10945  ;;  %v2540_v62 = vadd.f32 1.0, %v10944_v50  ;;  %5008 = vmatprep.subr.bf16.mxu1 %v10193_v17  ;;  %v10238_v17 = vld [vmem:[%s14333_s5 + $0x314] ss:$8 sps:$4 sm:$0xff]  }
 0x344   :  { %v2541_v6 = vadd.f32 1.0, %v10946_v60  ;;  %v10244_v60 = vld [vmem:[%s14333_s5 + $0x324] ss:$8 sps:$4 sm:$0xff]  }
 0x345   :  { %10947 = vrcp.f32 %v2540_v62  ;;  %3748 = vmatpush1.bf16.msra.mxu0 %v10188_v48  ;;  %v10233_v48 = vld [vmem:[%s14329_s1 + $0x800] ss:$8 sps:$4 sm:$0xff]   ;;  %v10239_v62 = vld [vmem:[%s14329_s1 + $0x810] ss:$8 sps:$4 sm:$0xff]  }
 0x346   :  { %10949 = vrcp.f32 %v2541_v6  ;;  %5009 = vmatpush1.bf16.msra.mxu1 %v10191_v53  ;;  %3749 = vmatprep.subr.bf16.mxu0 %v10196_v55  ;;  %v3931_v53 = vpack.c.bf16 %v3905_v38, %v3905_v38  ;;  %v10241_v55 = vld [vmem:[%s14329_s1 + $0x814] ss:$8 sps:$4 sm:$0xff]   ;;  %v10242_v6 = vld [vmem:[%s14333_s5 + $0x320] ss:$8 sps:$4 sm:$0xff]  }
 0x347   :  { %5010 = vmatprep.subr.bf16.mxu1 %v10199_v54  ;;  %v10247_v54 = vld [vmem:[%s14329_s1 + $0x824] ss:$8 sps:$4 sm:$0xff]   ;;  %v10281_v38 = vld [vmem:[%s14329_s1 + $0x880] ss:$8 sps:$4 sm:$0xff]  }
 0x349   :  { %3750 = vmatpush1.bf16.msra.mxu0 %v10194_v63  ;;  %v10250_v63 = vld [vmem:[%s14333_s5 + $0x334] ss:$8 sps:$4 sm:$0xff]  }
 0x34a   :  { %5011 = vmatpush1.bf16.msra.mxu1 %v10197_v0  ;;  %3751 = vmatprep.subr.bf16.mxu0 %v10202_v1  ;;  %v10245_v0 = vld [vmem:[%s14329_s1 + $0x820] ss:$8 sps:$4 sm:$0xff]   ;;  %v10253_v1 = vld [vmem:[%s14329_s1 + $0x834] ss:$8 sps:$4 sm:$0xff]  }
 0x34b   :  { %5012 = vmatprep.subr.bf16.mxu1 %v10205_v51  ;;  %v10248_v51 = vld [vmem:[%s14333_s5 + $0x330] ss:$8 sps:$4 sm:$0xff]  }
 0x34d   :  { %3752 = vmatpush1.bf16.msra.mxu0 %v10200_v52  ;;  %v10256_v52 = vld [vmem:[%s14333_s5 + $0x344] ss:$8 sps:$4 sm:$0xff]  }
 0x34e   :  { %5013 = vmatpush1.bf16.msra.mxu1 %v10203_v58  ;;  %3753 = vmatprep.subr.bf16.mxu0 %v10208_v2  ;;  %v10251_v58 = vld [vmem:[%s14329_s1 + $0x830] ss:$8 sps:$4 sm:$0xff]   ;;  %v10259_v2 = vld [vmem:[%s14329_s1 + $0x844] ss:$8 sps:$4 sm:$0xff]  }
 0x34f   :  { %v10948_v9 = vpop.eup %10947  ;;  %5014 = vmatprep.subr.bf16.mxu1 %v10211_v3  ;;  %v10254_v3 = vld [vmem:[%s14333_s5 + $0x340] ss:$8 sps:$4 sm:$0xff]  }
 0x350   :  { %v10950_v13 = vpop.eup %10949 }
 0x351   :  { %3754 = vmatpush1.bf16.msra.mxu0 %v10206_v4  ;;  %v2592_v57 = vcombine.low %v10948_v9, %v10950_v13  ;;  %v1446_v4 = vld [vmem:[%s14334_s4 + $0x8] sm:$0x3]  ;;  %v10260_v13 = vld [vmem:[%s14333_s5 + $0x350] ss:$8 sps:$4 sm:$0xff]  }
 0x352   :  { %5015 = vmatpush1.bf16.msra.mxu1 %v10209_v5  ;;  %3755 = vmatprep.subr.bf16.mxu0 %v10214_v59  ;;  %v10262_v5 = vld [vmem:[%s14333_s5 + $0x354] ss:$8 sps:$4 sm:$0xff]   ;;  %v10257_v59 = vld [vmem:[%s14329_s1 + $0x840] ss:$8 sps:$4 sm:$0xff]   ;;  %v1484_v9 = vrot.slane %v1446_v4, %v11690_v39 }
 0x353   :  { %5016 = vmatprep.subr.bf16.mxu1 %v10217_v10  ;;  %v2606_v20 = vrot.slane %v2592_v57, %v11198_v49  ;;  %v10265_v10 = vld [vmem:[%s14329_s1 + $0x854] ss:$8 sps:$4 sm:$0xff]   ;;  %v10268_v57 = vld [vmem:[%s14333_s5 + $0x364] ss:$8 sps:$4 sm:$0xff]  }
 0x355   :  { %3756 = vmatpush1.bf16.msra.mxu0 %v10212_v15  ;;  %v2607_v23 = vcombine.low %v2599_v19, %v2606_v20  ;;  %v1488_v15 = vrot.slane %v1446_v4, %v11696_v41  ;;  %v10271_v20 = vld [vmem:[%s14329_s1 + $0x864] ss:$8 sps:$4 sm:$0xff]   ;;  %v10308_v4 = vld [vmem:[%s14333_s5 + $0x3d0] ss:$8 sps:$4 sm:$0xff]  }
 0x356   :  { %5017 = vmatpush1.bf16.msra.mxu1 %v10215_v61  ;;  %3757 = vmatprep.subr.bf16.mxu0 %v10220_v16  ;;  %v10263_v16 = vld [vmem:[%s14329_s1 + $0x850] ss:$8 sps:$4 sm:$0xff]  }
 0x357   :  { %5018 = vmatprep.subr.bf16.mxu1 %v10223_v18  ;;  %v2620_v35 = vmul.f32 %v11005_v56, %v2607_v23  ;;  %v10266_v23 = vld [vmem:[%s14333_s5 + $0x360] ss:$8 sps:$4 sm:$0xff]  }
 0x359   :  { %3758 = vmatpush1.bf16.msra.mxu0 %v10218_v22  ;;  %v2649_v29 = vrot.slane %v2620_v35, %v11198_v49  ;;  %v2642_v31 = vcombine.high %v2620_v35, %v2620_v35  ;;  %v10269_v35 = vld [vmem:[%s14329_s1 + $0x860] ss:$8 sps:$4 sm:$0xff]  }
 0x35a   :  { %5019 = vmatpush1.bf16.msra.mxu1 %v10221_v24  ;;  %3759 = vmatprep.subr.bf16.mxu0 %v10226_v26 }
 0x35b   :  { %5020 = vmatprep.subr.bf16.mxu1 %v10229_v28  ;;  %v2657_v36 = vcombine.high %v2649_v29, %v2649_v29  ;;  %v12787_v37 = vrot.slane %v2642_v31, %v11198_v49  ;;  %v2681_v46 = vpack.c.bf16 %v2649_v29, %v2649_v29  ;;  %v10274_v28 = vld [vmem:[%s14333_s5 + $0x374] ss:$8 sps:$4 sm:$0xff]   ;;  %v10272_v29 = vld [vmem:[%s14333_s5 + $0x370] ss:$8 sps:$4 sm:$0xff]   ;;  %v10280_v31 = vld [vmem:[%s14333_s5 + $0x384] ss:$8 sps:$4 sm:$0xff]  }
 0x35d   :  { %3760 = vmatpush1.bf16.msra.mxu0 %v10224_v27  ;;  %v2682_v42 = vpack.c.bf16 %v2657_v36, %v2657_v36  ;;  %v2658_v45 = vcombine.high %v12787_v37, %v12787_v37  ;;  %v10277_v27 = vld [vmem:[%s14329_s1 + $0x874] ss:$8 sps:$4 sm:$0xff]   ;;  %v10278_v36 = vld [vmem:[%s14333_s5 + $0x380] ss:$8 sps:$4 sm:$0xff]  }
 0x35e   :  { %5021 = vmatpush1.bf16.msra.mxu1 %v10227_v33  ;;  %3770 = vmatprep.subr.bf16.mxu0 %v10232_v34  ;;  %v10275_v33 = vld [vmem:[%s14329_s1 + $0x870] ss:$8 sps:$4 sm:$0xff]   ;;  %v10283_v34 = vld [vmem:[%s14329_s1 + $0x884] ss:$8 sps:$4 sm:$0xff]  }
 0x35f   :  { %3761 = vmatprep.mubr.bf16.mxu0 %v2682_v42  ;;  %5031 = vmatprep.subr.bf16.mxu1 %v10235_v14  ;;  %v2684_v50 = vpack.c.bf16 %v2658_v45, %v2658_v45  ;;  %v10286_v14 = vld [vmem:[%s14333_s5 + $0x394] ss:$8 sps:$4 sm:$0xff]  }
 0x360   :  { %3762 = vmatmul.mubr.bf16.vlgmr.msra.gmra.mrb[4].mxu0 %v2681_v46  ;;  %v10289_v42 = vld [vmem:[%s14329_s1 + $0x894] ss:$8 sps:$4 sm:$0xff]   ;;  %v10292_v46 = vld [vmem:[%s14333_s5 + $0x3a4] ss:$8 sps:$4 sm:$0xff]  }
 0x361   :  { %3771 = vmatpush1.bf16.msra.mxu0 %v10230_v44  ;;  %3802 = vmatprep.mubr.bf16.mxu0 %v2684_v50  ;;  %v10284_v44 = vld [vmem:[%s14333_s5 + $0x390] ss:$8 sps:$4 sm:$0xff]  }
 0x362   :  { %5023 = vmatmul.mubr.bf16.vlgmr.msra.gmra.mrb[24].mxu1 %v3928_v47  ;;  %3772 = vmatprep.subr.bf16.mxu0 %v10238_v17 }
 0x363   :  { %5032 = vmatpush1.bf16.msra.mxu1 %v10233_v48  ;;  %5063 = vmatprep.mubr.bf16.mxu1 %v3931_v53  ;;  %v10287_v48 = vld [vmem:[%s14329_s1 + $0x890] ss:$8 sps:$4 sm:$0xff]   ;;  %v10295_v53 = vld [vmem:[%s14329_s1 + $0x8a4] ss:$8 sps:$4 sm:$0xff]  }
 0x364   :  { %5033 = vmatprep.subr.bf16.mxu1 %v10241_v55  ;;  %v10290_v55 = vld [vmem:[%s14333_s5 + $0x3a0] ss:$8 sps:$4 sm:$0xff]  }
 0x365   :  { %3773 = vmatpush1.bf16.msra.mxu0 %v10236_v40  ;;  %v10298_v40 = vld [vmem:[%s14333_s5 + $0x3b4] ss:$8 sps:$4 sm:$0xff]  }
 0x366   :  { %3774 = vmatprep.subr.bf16.mxu0 %v10244_v60  ;;  %v10293_v60 = vld [vmem:[%s14329_s1 + $0x8a0] ss:$8 sps:$4 sm:$0xff]  }
 0x367   :  { %5034 = vmatpush1.bf16.msra.mxu1 %v10239_v62  ;;  %v10301_v62 = vld [vmem:[%s14329_s1 + $0x8b4] ss:$8 sps:$4 sm:$0xff]  }
 0x368   :  { %5035 = vmatprep.subr.bf16.mxu1 %v10247_v54  ;;  %v10296_v54 = vld [vmem:[%s14333_s5 + $0x3b0] ss:$8 sps:$4 sm:$0xff]  }
 0x369   :  { %3775 = vmatpush1.bf16.msra.mxu0 %v10242_v6  ;;  %v10304_v6 = vld [vmem:[%s14333_s5 + $0x3c4] ss:$8 sps:$4 sm:$0xff]  }
 0x36a   :  { %3776 = vmatprep.subr.bf16.mxu0 %v10250_v63  ;;  %v10299_v63 = vld [vmem:[%s14329_s1 + $0x8b0] ss:$8 sps:$4 sm:$0xff]  }
 0x36b   :  { %5036 = vmatpush1.bf16.msra.mxu1 %v10245_v0  ;;  %v10307_v0 = vld [vmem:[%s14329_s1 + $0x8c4] ss:$8 sps:$4 sm:$0xff]  }
 0x36c   :  { %5037 = vmatprep.subr.bf16.mxu1 %v10253_v1  ;;  %v10302_v1 = vld [vmem:[%s14333_s5 + $0x3c0] ss:$8 sps:$4 sm:$0xff]  }
 0x36d   :  { %3777 = vmatpush1.bf16.msra.mxu0 %v10248_v51  ;;  %v10310_v51 = vld [vmem:[%s14333_s5 + $0x3d4] ss:$8 sps:$4 sm:$0xff]  }
 0x36e   :  { %3778 = vmatprep.subr.bf16.mxu0 %v10256_v52 }
 0x36f   :  { %5038 = vmatpush1.bf16.msra.mxu1 %v10251_v58  ;;  %v10305_v58 = vld [vmem:[%s14329_s1 + $0x8c0] ss:$8 sps:$4 sm:$0xff]  }
 0x370   :  { %5039 = vmatprep.subr.bf16.mxu1 %v10259_v2 }
 0x371   :  { %3779 = vmatpush1.bf16.msra.mxu0 %v10254_v3  ;;  %v10313_v3 = vld [vmem:[%s14329_s1 + $0x8d4] ss:$8 sps:$4 sm:$0xff]  }
 0x372   :  { %3780 = vmatprep.subr.bf16.mxu0 %v10262_v5 }
 0x373   :  { %5040 = vmatpush1.bf16.msra.mxu1 %v10257_v59  ;;  %v2497_v61 = vpop.f32.mrb[20].mxu1  ;;  %v10316_v59 = vld [vmem:[%s14333_s5 + $0x3e4] ss:$8 sps:$4 sm:$0xff]  }
 0x374   :  { %v2498_v18 = vadd.f32 %v2497_v61, %v1484_v9  ;;  %v2499_v19 = vpop.f32.mrb[21].mxu1  ;;  %5041 = vmatprep.subr.bf16.mxu1 %v10265_v10  ;;  %v10311_v9 = vld [vmem:[%s14329_s1 + $0x8d0] ss:$8 sps:$4 sm:$0xff]  }
 0x375   :  { %v2500_v21 = vadd.f32 %v2499_v19, %v1488_v15  ;;  %3781 = vmatpush1.bf16.msra.mxu0 %v10260_v13  ;;  %v2501_v22 = vpop.f32.mrb[22].mxu1  ;;  %v10319_v13 = vld [vmem:[%s14329_s1 + $0x8e4] ss:$8 sps:$4 sm:$0xff]   ;;  %v11006_v61 = vld [vmem:[%s14330_s0 + $0x10] sm:$0xf] }
 0x376   :  { %v8208_v24 = vmul.f32 -1.442695, %v2498_v18  ;;  %v2502_v26 = vpop.f32.mrb[23].mxu1  ;;  %3782 = vmatprep.subr.bf16.mxu0 %v10268_v57  ;;  %v10314_v57 = vld [vmem:[%s14333_s5 + $0x3e0] ss:$8 sps:$4 sm:$0xff]  }
 0x377   :  { %v8209_v56 = vmul.f32 -1.442695, %v2500_v21  ;;  %5042 = vmatpush1.bf16.msra.mxu1 %v10263_v16  ;;  %v12972_v15 = vld.sshfl [vmem:[%s14330_s0 + $0x24] sm:$0x33 pattern:$0x76325410] }
 0x378   :  { %10951 = vpow2.f32 %v8208_v24  ;;  %5043 = vmatprep.subr.bf16.mxu1 %v10271_v20  ;;  %v10322_v18 = vld [vmem:[%s14333_s5 + $0x3f4] ss:$8 sps:$4 sm:$0xff]   ;;  %v10317_v19 = vld [vmem:[%s14329_s1 + $0x8e0] ss:$8 sps:$4 sm:$0xff]   ;;  %v10320_v22 = vld [vmem:[%s14333_s5 + $0x3f0] ss:$8 sps:$4 sm:$0xff]  }
 0x379   :  { %10953 = vpow2.f32 %v8209_v56  ;;  %3783 = vmatpush1.bf16.msra.mxu0 %v10266_v23  ;;  %v10325_v21 = vld [vmem:[%s14329_s1 + $0x8f4] ss:$8 sps:$4 sm:$0xff]   ;;  %v10328_v23 = vld [vmem:[%s14333_s5 + $0x404] ss:$8 sps:$4 sm:$0xff]   ;;  %v10323_v24 = vld [vmem:[%s14329_s1 + $0x8f0] ss:$8 sps:$4 sm:$0xff]  }
 0x37a   :  { %3784 = vmatprep.subr.bf16.mxu0 %v10274_v28  ;;  %v3913_v28 = vcombine.high %v12972_v15, %v12972_v15  ;;  %v10332_v56 = vld [vmem:[%s14329_s1 + $0x904] ss:$8 sps:$4 sm:$0xff]  }
 0x37b   :  { %5044 = vmatpush1.bf16.msra.mxu1 %v10269_v35  ;;  %v10326_v35 = vld [vmem:[%s14333_s5 + $0x400] ss:$8 sps:$4 sm:$0xff]  }
 0x37c   :  { %5045 = vmatprep.subr.bf16.mxu1 %v10277_v27  ;;  %v2683_v27 = vpack.c.bf16 %v12787_v37, %v12787_v37  ;;  %v10338_v37 = vld [vmem:[%s14329_s1 + $0x914] ss:$8 sps:$4 sm:$0xff]  }
 0x37d   :  { %3785 = vmatpush1.bf16.msra.mxu0 %v10272_v29  ;;  %v3930_v29 = vpack.c.bf16 %v12771_v25, %v12771_v25  ;;  %v10333_v25 = vld [vmem:[%s14333_s5 + $0x410] ss:$8 sps:$4 sm:$0xff]  }
 0x37e   :  { %3786 = vmatprep.subr.bf16.mxu0 %v10280_v31  ;;  %v10335_v31 = vld [vmem:[%s14333_s5 + $0x414] ss:$8 sps:$4 sm:$0xff]  }
 0x37f   :  { %5046 = vmatpush1.bf16.msra.mxu1 %v10275_v33 }
 0x380   :  { %5047 = vmatprep.subr.bf16.mxu1 %v10283_v34  ;;  %v10330_v34 = vld [vmem:[%s14329_s1 + $0x900] ss:$8 sps:$4 sm:$0xff]  }
 0x381   :  { %3787 = vmatpush1.bf16.msra.mxu0 %v10278_v36  ;;  %v3933_v36 = vpack.c.bf16 %v3913_v28, %v3913_v28  ;;  %v10396_v28 = vld [vmem:[%s14329_s1 + $0x9b0] ss:$8 sps:$4 sm:$0xff]  }
 0x382   :  { %v10952_v45 = vpop.eup %10951  ;;  %3788 = vmatprep.subr.bf16.mxu0 %v10286_v14  ;;  %v10341_v14 = vld [vmem:[%s14333_s5 + $0x424] ss:$8 sps:$4 sm:$0xff]  }
 0x383   :  { %v10954_v47 = vpop.eup %10953  ;;  %v2542_v17 = vadd.f32 1.0, %v10952_v45  ;;  %5048 = vmatpush1.bf16.msra.mxu1 %v10281_v38  ;;  %v10336_v38 = vld [vmem:[%s14329_s1 + $0x910] ss:$8 sps:$4 sm:$0xff]   ;;  %v10347_v45 = vld [vmem:[%s14333_s5 + $0x434] ss:$8 sps:$4 sm:$0xff]  }
 0x384   :  { %v2543_v50 = vadd.f32 1.0, %v10954_v47  ;;  %5049 = vmatprep.subr.bf16.mxu1 %v10289_v42  ;;  %v10344_v42 = vld [vmem:[%s14329_s1 + $0x924] ss:$8 sps:$4 sm:$0xff]   ;;  %v10350_v47 = vld [vmem:[%s14329_s1 + $0x934] ss:$8 sps:$4 sm:$0xff]  }
 0x385   :  { %10955 = vrcp.f32 %v2542_v17  ;;  %3789 = vmatpush1.bf16.msra.mxu0 %v10284_v44  ;;  %v10339_v44 = vld [vmem:[%s14333_s5 + $0x420] ss:$8 sps:$4 sm:$0xff]   ;;  %v10345_v17 = vld [vmem:[%s14333_s5 + $0x430] ss:$8 sps:$4 sm:$0xff]  }
 0x386   :  { %10957 = vrcp.f32 %v2543_v50  ;;  %3790 = vmatprep.subr.bf16.mxu0 %v10292_v46  ;;  %v10342_v46 = vld [vmem:[%s14329_s1 + $0x920] ss:$8 sps:$4 sm:$0xff]   ;;  %v10348_v50 = vld [vmem:[%s14329_s1 + $0x930] ss:$8 sps:$4 sm:$0xff]  }
 0x387   :  { %5050 = vmatpush1.bf16.msra.mxu1 %v10287_v48  ;;  %v10353_v48 = vld [vmem:[%s14333_s5 + $0x444] ss:$8 sps:$4 sm:$0xff]  }
 0x388   :  { %5051 = vmatprep.subr.bf16.mxu1 %v10295_v53  ;;  %v10356_v53 = vld [vmem:[%s14329_s1 + $0x944] ss:$8 sps:$4 sm:$0xff]  }
 0x389   :  { %3791 = vmatpush1.bf16.msra.mxu0 %v10290_v55  ;;  %v10351_v55 = vld [vmem:[%s14333_s5 + $0x440] ss:$8 sps:$4 sm:$0xff]  }
 0x38a   :  { %3792 = vmatprep.subr.bf16.mxu0 %v10298_v40  ;;  %v10359_v40 = vld [vmem:[%s14333_s5 + $0x454] ss:$8 sps:$4 sm:$0xff]  }
 0x38b   :  { %5052 = vmatpush1.bf16.msra.mxu1 %v10293_v60  ;;  %v10354_v60 = vld [vmem:[%s14329_s1 + $0x940] ss:$8 sps:$4 sm:$0xff]  }
 0x38c   :  { %5053 = vmatprep.subr.bf16.mxu1 %v10301_v62  ;;  %v10362_v62 = vld [vmem:[%s14329_s1 + $0x954] ss:$8 sps:$4 sm:$0xff]  }
 0x38d   :  { %3793 = vmatpush1.bf16.msra.mxu0 %v10296_v54  ;;  %v10357_v54 = vld [vmem:[%s14333_s5 + $0x450] ss:$8 sps:$4 sm:$0xff]  }
 0x38e   :  { %3794 = vmatprep.subr.bf16.mxu0 %v10304_v6  ;;  %v10365_v6 = vld [vmem:[%s14333_s5 + $0x464] ss:$8 sps:$4 sm:$0xff]  }
 0x38f   :  { %v10956_v52 = vpop.eup %10955  ;;  %5054 = vmatpush1.bf16.msra.mxu1 %v10299_v63  ;;  %v10360_v63 = vld [vmem:[%s14329_s1 + $0x950] ss:$8 sps:$4 sm:$0xff]  }
 0x390   :  { %v10958_v2 = vpop.eup %10957  ;;  %5055 = vmatprep.subr.bf16.mxu1 %v10307_v0  ;;  %v10368_v0 = vld [vmem:[%s14329_s1 + $0x964] ss:$8 sps:$4 sm:$0xff]  }
 0x391   :  { %3795 = vmatpush1.bf16.msra.mxu0 %v10302_v1  ;;  %v2608_v5 = vcombine.low %v10956_v52, %v10958_v2  ;;  %v10363_v1 = vld [vmem:[%s14333_s5 + $0x460] ss:$8 sps:$4 sm:$0xff]   ;;  %v10369_v2 = vld [vmem:[%s14333_s5 + $0x470] ss:$8 sps:$4 sm:$0xff]  }
 0x392   :  { %3796 = vmatprep.subr.bf16.mxu0 %v10310_v51  ;;  %v10371_v51 = vld [vmem:[%s14333_s5 + $0x474] ss:$8 sps:$4 sm:$0xff]   ;;  %v10366_v52 = vld [vmem:[%s14329_s1 + $0x960] ss:$8 sps:$4 sm:$0xff]  }
 0x393   :  { %5056 = vmatpush1.bf16.msra.mxu1 %v10305_v58  ;;  %v2615_v10 = vrot.slane %v2608_v5, %v11198_v49  ;;  %v10374_v58 = vld [vmem:[%s14329_s1 + $0x974] ss:$8 sps:$4 sm:$0xff]   ;;  %v10380_v5 = vld [vmem:[%s14329_s1 + $0x984] ss:$8 sps:$4 sm:$0xff]  }
 0x394   :  { %5057 = vmatprep.subr.bf16.mxu1 %v10313_v3  ;;  %v10377_v3 = vld [vmem:[%s14333_s5 + $0x484] ss:$8 sps:$4 sm:$0xff]  }
 0x395   :  { %3797 = vmatpush1.bf16.msra.mxu0 %v10308_v4  ;;  %v2621_v16 = vmul.f32 %v11006_v61, %v2615_v10  ;;  %v10372_v4 = vld [vmem:[%s14329_s1 + $0x970] ss:$8 sps:$4 sm:$0xff]   ;;  %v10378_v10 = vld [vmem:[%s14329_s1 + $0x980] ss:$8 sps:$4 sm:$0xff]   ;;  %v10389_v61 = vld [vmem:[%s14333_s5 + $0x4a4] ss:$8 sps:$4 sm:$0xff]  }
 0x396   :  { %3798 = vmatprep.subr.bf16.mxu0 %v10316_v59  ;;  %v10375_v59 = vld [vmem:[%s14333_s5 + $0x480] ss:$8 sps:$4 sm:$0xff]  }
 0x397   :  { %5058 = vmatpush1.bf16.msra.mxu1 %v10311_v9  ;;  %v12987_v20 = vrot.slane %v2621_v16, %v11198_v49  ;;  %v10383_v9 = vld [vmem:[%s14333_s5 + $0x494] ss:$8 sps:$4 sm:$0xff]   ;;  %v10384_v16 = vld [vmem:[%s14329_s1 + $0x990] ss:$8 sps:$4 sm:$0xff]  }
 0x398   :  { %5059 = vmatprep.subr.bf16.mxu1 %v10319_v13  ;;  %v10386_v13 = vld [vmem:[%s14329_s1 + $0x994] ss:$8 sps:$4 sm:$0xff]  }
 0x399   :  { %3799 = vmatpush1.bf16.msra.mxu0 %v10314_v57  ;;  %v2666_v26 = vcombine.high %v12987_v20, %v12987_v20  ;;  %v10381_v57 = vld [vmem:[%s14333_s5 + $0x490] ss:$8 sps:$4 sm:$0xff]  }
 0x39a   :  { %3800 = vmatprep.subr.bf16.mxu0 %v10322_v18  ;;  %v10392_v18 = vld [vmem:[%s14329_s1 + $0x9a4] ss:$8 sps:$4 sm:$0xff]  }
 0x39b   :  { %5060 = vmatpush1.bf16.msra.mxu1 %v10317_v19  ;;  %v2686_v33 = vpack.c.bf16 %v2666_v26, %v2666_v26  ;;  %v10387_v19 = vld [vmem:[%s14333_s5 + $0x4a0] ss:$8 sps:$4 sm:$0xff]   ;;  %v10401_v26 = vld [vmem:[%s14333_s5 + $0x4c4] ss:$8 sps:$4 sm:$0xff]  }
 0x39c   :  { %5061 = vmatprep.subr.bf16.mxu1 %v10325_v21  ;;  %v10395_v21 = vld [vmem:[%s14333_s5 + $0x4b4] ss:$8 sps:$4 sm:$0xff]  }
 0x39d   :  { %3801 = vmatpush1.bf16.msra.mxu0 %v10320_v22  ;;  %v10390_v22 = vld [vmem:[%s14329_s1 + $0x9a0] ss:$8 sps:$4 sm:$0xff]  }
 0x39e   :  { %3811 = vmatprep.subr.bf16.mxu0 %v10328_v23  ;;  %v10398_v23 = vld [vmem:[%s14329_s1 + $0x9b4] ss:$8 sps:$4 sm:$0xff]  }
 0x39f   :  { %5062 = vmatpush1.bf16.msra.mxu1 %v10323_v24  ;;  %v10393_v24 = vld [vmem:[%s14333_s5 + $0x4b0] ss:$8 sps:$4 sm:$0xff]  }
 0x3a0   :  { %3803 = vmatmul.mubr.bf16.vlgmr.msra.gmra.mrb[4].mxu0 %v2683_v27  ;;  %5072 = vmatprep.subr.bf16.mxu1 %v10332_v56  ;;  %v10404_v56 = vld [vmem:[%s14329_s1 + $0x9c4] ss:$8 sps:$4 sm:$0xff]   ;;  %v10407_v27 = vld [vmem:[%s14333_s5 + $0x4d4] ss:$8 sps:$4 sm:$0xff]  }
 0x3a1   :  { %3812 = vmatpush1.bf16.msra.mxu0 %v10326_v35  ;;  %3843 = vmatprep.mubr.bf16.mxu0 %v2686_v33  ;;  %v10399_v35 = vld [vmem:[%s14333_s5 + $0x4c0] ss:$8 sps:$4 sm:$0xff]   ;;  %v10405_v33 = vld [vmem:[%s14333_s5 + $0x4d0] ss:$8 sps:$4 sm:$0xff]  }
 0x3a2   :  { %5064 = vmatmul.mubr.bf16.vlgmr.msra.gmra.mrb[24].mxu1 %v3930_v29  ;;  %3813 = vmatprep.subr.bf16.mxu0 %v10335_v31  ;;  %v10402_v29 = vld [vmem:[%s14329_s1 + $0x9c0] ss:$8 sps:$4 sm:$0xff]   ;;  %v10410_v31 = vld [vmem:[%s14329_s1 + $0x9d4] ss:$8 sps:$4 sm:$0xff]  }
 0x3a3   :  { %5073 = vmatpush1.bf16.msra.mxu1 %v10330_v34  ;;  %5104 = vmatprep.mubr.bf16.mxu1 %v3933_v36  ;;  %v10413_v34 = vld [vmem:[%s14333_s5 + $0x4e4] ss:$8 sps:$4 sm:$0xff]   ;;  %v10408_v36 = vld [vmem:[%s14329_s1 + $0x9d0] ss:$8 sps:$4 sm:$0xff]  }
 0x3a4   :  { %5074 = vmatprep.subr.bf16.mxu1 %v10338_v37  ;;  %v10416_v37 = vld [vmem:[%s14329_s1 + $0x9e4] ss:$8 sps:$4 sm:$0xff]  }
 0x3a5   :  { %3814 = vmatpush1.bf16.msra.mxu0 %v10333_v25  ;;  %v10411_v25 = vld [vmem:[%s14333_s5 + $0x4e0] ss:$8 sps:$4 sm:$0xff]  }
 0x3a6   :  { %3815 = vmatprep.subr.bf16.mxu0 %v10341_v14  ;;  %v10419_v14 = vld [vmem:[%s14333_s5 + $0x4f4] ss:$8 sps:$4 sm:$0xff]  }
 0x3a7   :  { %5075 = vmatpush1.bf16.msra.mxu1 %v10336_v38  ;;  %v10414_v38 = vld [vmem:[%s14329_s1 + $0x9e0] ss:$8 sps:$4 sm:$0xff]  }
 0x3a8   :  { %5076 = vmatprep.subr.bf16.mxu1 %v10344_v42  ;;  %v10422_v42 = vld [vmem:[%s14329_s1 + $0x9f4] ss:$8 sps:$4 sm:$0xff]  }
 0x3a9   :  { %3816 = vmatpush1.bf16.msra.mxu0 %v10339_v44  ;;  %v10417_v44 = vld [vmem:[%s14333_s5 + $0x4f0] ss:$8 sps:$4 sm:$0xff]  }
 0x3aa   :  { %3817 = vmatprep.subr.bf16.mxu0 %v10347_v45  ;;  %v10425_v45 = vld [vmem:[%s14331_s3 + $0x504] ss:$40 sps:$4 sm:$0xff]  }
 0x3ab   :  { %5077 = vmatpush1.bf16.msra.mxu1 %v10342_v46  ;;  %v10420_v46 = vld [vmem:[%s14329_s1 + $0x9f0] ss:$8 sps:$4 sm:$0xff]  }
 0x3ac   :  { %5078 = vmatprep.subr.bf16.mxu1 %v10350_v47  ;;  %v10428_v47 = vld [vmem:[%s14331_s3 + $0x50c] ss:$40 sps:$4 sm:$0xff]  }
 0x3ad   :  { %3818 = vmatpush1.bf16.msra.mxu0 %v10345_v17  ;;  %v10423_v17 = vld [vmem:[%s14331_s3 + $0x500] ss:$40 sps:$4 sm:$0xff]  }
 0x3ae   :  { %3819 = vmatprep.subr.bf16.mxu0 %v10353_v48  ;;  %v2685_v48 = vpack.c.bf16 %v12987_v20, %v12987_v20  ;;  %v10437_v20 = vld [vmem:[%s14331_s3 + $0x5a4] ss:$40 sps:$4 sm:$0xff]  }
 0x3af   :  { %5079 = vmatpush1.bf16.msra.mxu1 %v10348_v50  ;;  %v3932_v50 = vpack.c.bf16 %v12972_v15, %v12972_v15  ;;  %v10429_v15 = vld [vmem:[%s14331_s3 + $0x550] ss:$40 sps:$4 sm:$0xff]  }
 0x3b0   :  { %5080 = vmatprep.subr.bf16.mxu1 %v10356_v53  ;;  %v10431_v53 = vld [vmem:[%s14331_s3 + $0x554] ss:$40 sps:$4 sm:$0xff]  }
 0x3b1   :  { %3820 = vmatpush1.bf16.msra.mxu0 %v10351_v55  ;;  %v10426_v55 = vld [vmem:[%s14331_s3 + $0x508] ss:$40 sps:$4 sm:$0xff]  }
 0x3b2   :  { %3821 = vmatprep.subr.bf16.mxu0 %v10359_v40  ;;  %v10434_v40 = vld [vmem:[%s14331_s3 + $0x55c] ss:$40 sps:$4 sm:$0xff]  }
 0x3b3   :  { %5081 = vmatpush1.bf16.msra.mxu1 %v10354_v60  ;;  %v10432_v60 = vld [vmem:[%s14331_s3 + $0x558] ss:$40 sps:$4 sm:$0xff]  }
 0x3b4   :  { %5082 = vmatprep.subr.bf16.mxu1 %v10362_v62  ;;  %v10440_v62 = vld [vmem:[%s14331_s3 + $0x5ac] ss:$40 sps:$4 sm:$0xff]  }
 0x3b5   :  { %3822 = vmatpush1.bf16.msra.mxu0 %v10357_v54  ;;  %v10435_v54 = vld [vmem:[%s14331_s3 + $0x5a0] ss:$40 sps:$4 sm:$0xff]  }
 0x3b6   :  { %3823 = vmatprep.subr.bf16.mxu0 %v10365_v6  ;;  %v10443_v6 = vld [vmem:[%s14331_s3 + $0x5f4] ss:$40 sps:$4 sm:$0xff]  }
 0x3b7   :  { %5083 = vmatpush1.bf16.msra.mxu1 %v10360_v63  ;;  %v10438_v63 = vld [vmem:[%s14331_s3 + $0x5a8] ss:$40 sps:$4 sm:$0xff]  }
 0x3b8   :  { %5084 = vmatprep.subr.bf16.mxu1 %v10368_v0  ;;  %v10446_v0 = vld [vmem:[%s14331_s3 + $0x5fc] ss:$40 sps:$4 sm:$0xff]  }
 0x3b9   :  { %3824 = vmatpush1.bf16.msra.mxu0 %v10363_v1  ;;  %v10441_v1 = vld [vmem:[%s14331_s3 + $0x5f0] ss:$40 sps:$4 sm:$0xff]  }
 0x3ba   :  { %3825 = vmatprep.subr.bf16.mxu0 %v10371_v51  ;;  %v10449_v51 = vld [vmem:[%s14331_s3 + $0x644] ss:$40 sps:$4 sm:$0xff]  }
 0x3bb   :  { %5085 = vmatpush1.bf16.msra.mxu1 %v10366_v52  ;;  %v10444_v52 = vld [vmem:[%s14331_s3 + $0x5f8] ss:$40 sps:$4 sm:$0xff]  }
 0x3bc   :  { %5086 = vmatprep.subr.bf16.mxu1 %v10374_v58  ;;  %v10452_v58 = vld [vmem:[%s14331_s3 + $0x64c] ss:$40 sps:$4 sm:$0xff]  }
 0x3bd   :  { %3826 = vmatpush1.bf16.msra.mxu0 %v10369_v2  ;;  %v10447_v2 = vld [vmem:[%s14331_s3 + $0x640] ss:$40 sps:$4 sm:$0xff]  }
 0x3be   :  { %3827 = vmatprep.subr.bf16.mxu0 %v10377_v3  ;;  %v10455_v3 = vld [vmem:[%s14331_s3 + $0x694] ss:$40 sps:$4 sm:$0xff]  }
 0x3bf   :  { %5087 = vmatpush1.bf16.msra.mxu1 %v10372_v4  ;;  %v10450_v4 = vld [vmem:[%s14331_s3 + $0x648] ss:$40 sps:$4 sm:$0xff]  }
 0x3c0   :  { %5088 = vmatprep.subr.bf16.mxu1 %v10380_v5  ;;  %v10458_v5 = vld [vmem:[%s14331_s3 + $0x69c] ss:$40 sps:$4 sm:$0xff]  }
 0x3c1   :  { %3828 = vmatpush1.bf16.msra.mxu0 %v10375_v59  ;;  %v10453_v59 = vld [vmem:[%s14331_s3 + $0x690] ss:$40 sps:$4 sm:$0xff]  }
 0x3c2   :  { %3829 = vmatprep.subr.bf16.mxu0 %v10383_v9  ;;  %v10461_v9 = vld [vmem:[%s14331_s3 + $0x6e4] ss:$40 sps:$4 sm:$0xff]  }
 0x3c3   :  { %5089 = vmatpush1.bf16.msra.mxu1 %v10378_v10  ;;  %v10456_v10 = vld [vmem:[%s14331_s3 + $0x698] ss:$40 sps:$4 sm:$0xff]  }
 0x3c4   :  { %5090 = vmatprep.subr.bf16.mxu1 %v10386_v13  ;;  %v10464_v13 = vld [vmem:[%s14331_s3 + $0x6ec] ss:$40 sps:$4 sm:$0xff]  }
 0x3c5   :  { %3830 = vmatpush1.bf16.msra.mxu0 %v10381_v57  ;;  %v10459_v57 = vld [vmem:[%s14331_s3 + $0x6e0] ss:$40 sps:$4 sm:$0xff]  }
 0x3c6   :  { %3831 = vmatprep.subr.bf16.mxu0 %v10389_v61  ;;  %v10467_v61 = vld [vmem:[%s14331_s3 + $0x734] ss:$40 sps:$4 sm:$0xff]  }
 0x3c7   :  { %5091 = vmatpush1.bf16.msra.mxu1 %v10384_v16  ;;  %v10462_v16 = vld [vmem:[%s14331_s3 + $0x6e8] ss:$40 sps:$4 sm:$0xff]  }
 0x3c8   :  { %5092 = vmatprep.subr.bf16.mxu1 %v10392_v18  ;;  %v10470_v18 = vld [vmem:[%s14331_s3 + $0x73c] ss:$40 sps:$4 sm:$0xff]  }
 0x3c9   :  { %3832 = vmatpush1.bf16.msra.mxu0 %v10387_v19  ;;  %v10465_v19 = vld [vmem:[%s14331_s3 + $0x730] ss:$40 sps:$4 sm:$0xff]  }
 0x3ca   :  { %3833 = vmatprep.subr.bf16.mxu0 %v10395_v21  ;;  %v10473_v21 = vld [vmem:[%s14331_s3 + $0x784] ss:$40 sps:$4 sm:$0xff]  }
 0x3cb   :  { %5093 = vmatpush1.bf16.msra.mxu1 %v10390_v22  ;;  %v10468_v22 = vld [vmem:[%s14331_s3 + $0x738] ss:$40 sps:$4 sm:$0xff]  }
 0x3cc   :  { %5094 = vmatprep.subr.bf16.mxu1 %v10398_v23  ;;  %v10476_v23 = vld [vmem:[%s14331_s3 + $0x78c] ss:$40 sps:$4 sm:$0xff]  }
 0x3cd   :  { %3834 = vmatpush1.bf16.msra.mxu0 %v10393_v24  ;;  %v10471_v24 = vld [vmem:[%s14331_s3 + $0x780] ss:$40 sps:$4 sm:$0xff]  }
 0x3ce   :  { %3835 = vmatprep.subr.bf16.mxu0 %v10401_v26  ;;  %v10479_v26 = vld [vmem:[%s14331_s3 + $0x7d4] ss:$40 sps:$4 sm:$0xff]  }
 0x3cf   :  { %5095 = vmatpush1.bf16.msra.mxu1 %v10396_v28  ;;  %v10474_v28 = vld [vmem:[%s14331_s3 + $0x788] ss:$40 sps:$4 sm:$0xff]  }
 0x3d0   :  { %5096 = vmatprep.subr.bf16.mxu1 %v10404_v56  ;;  %v10482_v56 = vld [vmem:[%s14331_s3 + $0x7dc] ss:$40 sps:$4 sm:$0xff]  }
 0x3d1   :  { %3836 = vmatpush1.bf16.msra.mxu0 %v10399_v35  ;;  %v10477_v35 = vld [vmem:[%s14331_s3 + $0x7d0] ss:$40 sps:$4 sm:$0xff]  }
 0x3d2   :  { %3837 = vmatprep.subr.bf16.mxu0 %v10407_v27  ;;  %v10485_v27 = vld [vmem:[%s14331_s3 + $0x824] ss:$40 sps:$4 sm:$0xff]  }
 0x3d3   :  { %5097 = vmatpush1.bf16.msra.mxu1 %v10402_v29  ;;  %v10480_v29 = vld [vmem:[%s14331_s3 + $0x7d8] ss:$40 sps:$4 sm:$0xff]  }
 0x3d4   :  { %5098 = vmatprep.subr.bf16.mxu1 %v10410_v31  ;;  %v10488_v31 = vld [vmem:[%s14331_s3 + $0x82c] ss:$40 sps:$4 sm:$0xff]  }
 0x3d5   :  { %3838 = vmatpush1.bf16.msra.mxu0 %v10405_v33  ;;  %v10483_v33 = vld [vmem:[%s14331_s3 + $0x820] ss:$40 sps:$4 sm:$0xff]  }
 0x3d6   :  { %3839 = vmatprep.subr.bf16.mxu0 %v10413_v34  ;;  %v10491_v34 = vld [vmem:[%s14331_s3 + $0x874] ss:$40 sps:$4 sm:$0xff]  }
 0x3d7   :  { %5099 = vmatpush1.bf16.msra.mxu1 %v10408_v36  ;;  %v10486_v36 = vld [vmem:[%s14331_s3 + $0x828] ss:$40 sps:$4 sm:$0xff]  }
 0x3d8   :  { %5100 = vmatprep.subr.bf16.mxu1 %v10416_v37  ;;  %v10494_v37 = vld [vmem:[%s14331_s3 + $0x87c] ss:$40 sps:$4 sm:$0xff]  }
 0x3d9   :  { %3840 = vmatpush1.bf16.msra.mxu0 %v10411_v25  ;;  %v10489_v25 = vld [vmem:[%s14331_s3 + $0x870] ss:$40 sps:$4 sm:$0xff]  }
 0x3da   :  { %3841 = vmatprep.subr.bf16.mxu0 %v10419_v14  ;;  %v10497_v14 = vld [vmem:[%s14331_s3 + $0x8c4] ss:$40 sps:$4 sm:$0xff]  }
 0x3db   :  { %5101 = vmatpush1.bf16.msra.mxu1 %v10414_v38  ;;  %v10492_v38 = vld [vmem:[%s14331_s3 + $0x878] ss:$40 sps:$4 sm:$0xff]  }
 0x3dc   :  { %5102 = vmatprep.subr.bf16.mxu1 %v10422_v42  ;;  %v10500_v42 = vld [vmem:[%s14331_s3 + $0x8cc] ss:$40 sps:$4 sm:$0xff]  }
 0x3dd   :  { %3842 = vmatpush1.bf16.msra.mxu0 %v10417_v44  ;;  %v10495_v44 = vld [vmem:[%s14331_s3 + $0x8c0] ss:$40 sps:$4 sm:$0xff]  }
 0x3de   :  { %6133 = vmatprep.subr.bf16.mxu0 %v10425_v45  ;;  %v10503_v45 = vld [vmem:[%s14331_s3 + $0x914] ss:$40 sps:$4 sm:$0xff]  }
 0x3df   :  { %5103 = vmatpush1.bf16.msra.mxu1 %v10420_v46  ;;  %v10498_v46 = vld [vmem:[%s14331_s3 + $0x8c8] ss:$40 sps:$4 sm:$0xff]  }
 0x3e0   :  { %3844 = vmatmul.mubr.bf16.vlgmr.msra.gmra.mrb[4].mxu0 %v2685_v48  ;;  %6174 = vmatprep.subr.bf16.mxu1 %v10428_v47  ;;  %v10506_v47 = vld [vmem:[%s14331_s3 + $0x91c] ss:$40 sps:$4 sm:$0xff]   ;;  %v10504_v48 = vld [vmem:[%s14331_s3 + $0x918] ss:$40 sps:$4 sm:$0xff]  }
 0x3e1   :  { %6134 = vmatpush1.bf16.msra.mxu0 %v10423_v17  ;;  %v10501_v17 = vld [vmem:[%s14331_s3 + $0x910] ss:$40 sps:$4 sm:$0xff]  }
 0x3e2   :  { %5105 = vmatmul.mubr.bf16.vlgmr.msra.gmra.mrb[24].mxu1 %v3932_v50  ;;  %6135 = vmatprep.subr.bf16.mxu0 %v10431_v53  ;;  %v10509_v50 = vld [vmem:[%s14331_s3 + $0x964] ss:$40 sps:$4 sm:$0xff]  }
 0x3e3   :  { %6175 = vmatpush1.bf16.msra.mxu1 %v10426_v55  ;;  %v10512_v53 = vld [vmem:[%s14331_s3 + $0x96c] ss:$40 sps:$4 sm:$0xff]   ;;  %v10507_v55 = vld [vmem:[%s14331_s3 + $0x960] ss:$40 sps:$4 sm:$0xff]  }
 0x3e4   :  { %6176 = vmatprep.subr.bf16.mxu1 %v10434_v40  ;;  %v10510_v40 = vld [vmem:[%s14331_s3 + $0x968] ss:$40 sps:$4 sm:$0xff]  }
 0x3e5   :  { %6136 = vmatpush1.bf16.msra.mxu0 %v10429_v15  ;;  %v10515_v15 = vld [vmem:[%s14331_s3 + $0x9b4] ss:$40 sps:$4 sm:$0xff]  }
 0x3e6   :  { %6137 = vmatprep.subr.bf16.mxu0 %v10437_v20  ;;  %v10518_v20 = vld [vmem:[%s14331_s3 + $0x9bc] ss:$40 sps:$4 sm:$0xff]  }
 0x3e7   :  { %6177 = vmatpush1.bf16.msra.mxu1 %v10432_v60  ;;  %v10513_v60 = vld [vmem:[%s14331_s3 + $0x9b0] ss:$40 sps:$4 sm:$0xff]  }
 0x3e8   :  { %6178 = vmatprep.subr.bf16.mxu1 %v10440_v62  ;;  %v10516_v62 = vld [vmem:[%s14331_s3 + $0x9b8] ss:$40 sps:$4 sm:$0xff]  }
 0x3e9   :  { %6138 = vmatpush1.bf16.msra.mxu0 %v10435_v54  ;;  %v10521_v54 = vld [vmem:[%s14331_s3 + $0x514] ss:$40 sps:$4 sm:$0xff]  }
 0x3ea   :  { %6139 = vmatprep.subr.bf16.mxu0 %v10443_v6  ;;  %v10524_v6 = vld [vmem:[%s14331_s3 + $0x51c] ss:$40 sps:$4 sm:$0xff]  }
 0x3eb   :  { %6179 = vmatpush1.bf16.msra.mxu1 %v10438_v63  ;;  %v8533_v63 = vld [vmem:[%s14332_s2 + $0x2] sm:$0x3] }
 0x3ec   :  { %6180 = vmatprep.subr.bf16.mxu1 %v10446_v0  ;;  %v4101_v0 = vrot.slane %v8533_v63, %v11690_v39 }
 0x3ed   :  { %6140 = vmatpush1.bf16.msra.mxu0 %v10441_v1  ;;  %v4105_v1 = vrot.slane %v8533_v63, %v11696_v41  ;;  %v10582_v63 = vld [vmem:[%s14331_s3 + $0x838] ss:$40 sps:$4 sm:$0xff]  }
 0x3ee   :  { %6141 = vmatprep.subr.bf16.mxu0 %v10449_v51 }
 0x3ef   :  { %6181 = vmatpush1.bf16.msra.mxu1 %v10444_v52 }
 0x3f0   :  { %6182 = vmatprep.subr.bf16.mxu1 %v10452_v58 }
 0x3f1   :  { %6142 = vmatpush1.bf16.msra.mxu0 %v10447_v2 }
 0x3f2   :  { %6143 = vmatprep.subr.bf16.mxu0 %v10455_v3 }
 0x3f3   :  { %6183 = vmatpush1.bf16.msra.mxu1 %v10450_v4 }
 0x3f4   :  { %6184 = vmatprep.subr.bf16.mxu1 %v10458_v5 }
 0x3f5   :  { %6144 = vmatpush1.bf16.msra.mxu0 %v10453_v59 }
 0x3f6   :  { %6145 = vmatprep.subr.bf16.mxu0 %v10461_v9 }
 0x3f7   :  { %6185 = vmatpush1.bf16.msra.mxu1 %v10456_v10  ;;  %v10519_v10 = vld [vmem:[%s14331_s3 + $0x510] ss:$40 sps:$4 sm:$0xff]  }
 0x3f8   :  { %6186 = vmatprep.subr.bf16.mxu1 %v10464_v13  ;;  %v10522_v13 = vld [vmem:[%s14331_s3 + $0x518] ss:$40 sps:$4 sm:$0xff]  }
 0x3f9   :  { %6146 = vmatpush1.bf16.msra.mxu0 %v10459_v57 }
 0x3fa   :  { %6147 = vmatprep.subr.bf16.mxu0 %v10467_v61  ;;  %v10527_v61 = vld [vmem:[%s14331_s3 + $0x564] ss:$40 sps:$4 sm:$0xff]  }
 0x3fb   :  { %6187 = vmatpush1.bf16.msra.mxu1 %v10462_v16  ;;  %v10530_v16 = vld [vmem:[%s14331_s3 + $0x56c] ss:$40 sps:$4 sm:$0xff]  }
 0x3fc   :  { %6188 = vmatprep.subr.bf16.mxu1 %v10470_v18  ;;  %v10525_v18 = vld [vmem:[%s14331_s3 + $0x560] ss:$40 sps:$4 sm:$0xff]  }
 0x3fd   :  { %6148 = vmatpush1.bf16.msra.mxu0 %v10465_v19  ;;  %v10528_v19 = vld [vmem:[%s14331_s3 + $0x568] ss:$40 sps:$4 sm:$0xff]  }
 0x3fe   :  { %6149 = vmatprep.subr.bf16.mxu0 %v10473_v21  ;;  %v10533_v21 = vld [vmem:[%s14331_s3 + $0x5b4] ss:$40 sps:$4 sm:$0xff]  }
 0x3ff   :  { %6189 = vmatpush1.bf16.msra.mxu1 %v10468_v22  ;;  %v10536_v22 = vld [vmem:[%s14331_s3 + $0x5bc] ss:$40 sps:$4 sm:$0xff]  }
 0x400   :  { %6190 = vmatprep.subr.bf16.mxu1 %v10476_v23  ;;  %v10531_v23 = vld [vmem:[%s14331_s3 + $0x5b0] ss:$40 sps:$4 sm:$0xff]  }
 0x401   :  { %6150 = vmatpush1.bf16.msra.mxu0 %v10471_v24  ;;  %v10534_v24 = vld [vmem:[%s14331_s3 + $0x5b8] ss:$40 sps:$4 sm:$0xff]  }
 0x402   :  { %6151 = vmatprep.subr.bf16.mxu0 %v10479_v26  ;;  %v10539_v26 = vld [vmem:[%s14331_s3 + $0x604] ss:$40 sps:$4 sm:$0xff]  }
 0x403   :  { %6191 = vmatpush1.bf16.msra.mxu1 %v10474_v28  ;;  %v10542_v28 = vld [vmem:[%s14331_s3 + $0x60c] ss:$40 sps:$4 sm:$0xff]  }
 0x404   :  { %6192 = vmatprep.subr.bf16.mxu1 %v10482_v56  ;;  %v10537_v56 = vld [vmem:[%s14331_s3 + $0x600] ss:$40 sps:$4 sm:$0xff]  }
 0x405   :  { %6152 = vmatpush1.bf16.msra.mxu0 %v10477_v35  ;;  %v10540_v35 = vld [vmem:[%s14331_s3 + $0x608] ss:$40 sps:$4 sm:$0xff]  }
 0x406   :  { %6153 = vmatprep.subr.bf16.mxu0 %v10485_v27  ;;  %v10545_v27 = vld [vmem:[%s14331_s3 + $0x654] ss:$40 sps:$4 sm:$0xff]  }
 0x407   :  { %6193 = vmatpush1.bf16.msra.mxu1 %v10480_v29  ;;  %v10548_v29 = vld [vmem:[%s14331_s3 + $0x65c] ss:$40 sps:$4 sm:$0xff]  }
 0x408   :  { %6194 = vmatprep.subr.bf16.mxu1 %v10488_v31  ;;  %v10543_v31 = vld [vmem:[%s14331_s3 + $0x650] ss:$40 sps:$4 sm:$0xff]  }
 0x409   :  { %6154 = vmatpush1.bf16.msra.mxu0 %v10483_v33  ;;  %v10546_v33 = vld [vmem:[%s14331_s3 + $0x658] ss:$40 sps:$4 sm:$0xff]  }
 0x40a   :  { %6155 = vmatprep.subr.bf16.mxu0 %v10491_v34  ;;  %v10551_v34 = vld [vmem:[%s14331_s3 + $0x6a4] ss:$40 sps:$4 sm:$0xff]  }
 0x40b   :  { %6195 = vmatpush1.bf16.msra.mxu1 %v10486_v36  ;;  %v10554_v36 = vld [vmem:[%s14331_s3 + $0x6ac] ss:$40 sps:$4 sm:$0xff]  }
 0x40c   :  { %6196 = vmatprep.subr.bf16.mxu1 %v10494_v37  ;;  %v10549_v37 = vld [vmem:[%s14331_s3 + $0x6a0] ss:$40 sps:$4 sm:$0xff]  }
 0x40d   :  { %6156 = vmatpush1.bf16.msra.mxu0 %v10489_v25  ;;  %v10552_v25 = vld [vmem:[%s14331_s3 + $0x6a8] ss:$40 sps:$4 sm:$0xff]  }
 0x40e   :  { %6157 = vmatprep.subr.bf16.mxu0 %v10497_v14  ;;  %v10557_v14 = vld [vmem:[%s14331_s3 + $0x6f4] ss:$40 sps:$4 sm:$0xff]  }
 0x40f   :  { %6197 = vmatpush1.bf16.msra.mxu1 %v10492_v38  ;;  %v10560_v38 = vld [vmem:[%s14331_s3 + $0x6fc] ss:$40 sps:$4 sm:$0xff]  }
 0x410   :  { %6198 = vmatprep.subr.bf16.mxu1 %v10500_v42  ;;  %v10555_v42 = vld [vmem:[%s14331_s3 + $0x6f0] ss:$40 sps:$4 sm:$0xff]  }
 0x411   :  { %6158 = vmatpush1.bf16.msra.mxu0 %v10495_v44  ;;  %v10558_v44 = vld [vmem:[%s14331_s3 + $0x6f8] ss:$40 sps:$4 sm:$0xff]  }
 0x412   :  { %6159 = vmatprep.subr.bf16.mxu0 %v10503_v45  ;;  %v10563_v45 = vld [vmem:[%s14331_s3 + $0x744] ss:$40 sps:$4 sm:$0xff]  }
 0x413   :  { %6199 = vmatpush1.bf16.msra.mxu1 %v10498_v46  ;;  %v10566_v46 = vld [vmem:[%s14331_s3 + $0x74c] ss:$40 sps:$4 sm:$0xff]  }
 0x414   :  { %6200 = vmatprep.subr.bf16.mxu1 %v10506_v47  ;;  %v10561_v47 = vld [vmem:[%s14331_s3 + $0x740] ss:$40 sps:$4 sm:$0xff]  }
 0x415   :  { %6160 = vmatpush1.bf16.msra.mxu0 %v10501_v17  ;;  %v10564_v17 = vld [vmem:[%s14331_s3 + $0x748] ss:$40 sps:$4 sm:$0xff]  }
 0x416   :  { %6161 = vmatprep.subr.bf16.mxu0 %v10509_v50  ;;  %v10572_v50 = vld [vmem:[%s14331_s3 + $0x79c] ss:$40 sps:$4 sm:$0xff]  }
 0x417   :  { %6201 = vmatpush1.bf16.msra.mxu1 %v10504_v48  ;;  %v10569_v48 = vld [vmem:[%s14331_s3 + $0x794] ss:$40 sps:$4 sm:$0xff]  }
 0x418   :  { %6202 = vmatprep.subr.bf16.mxu1 %v10512_v53  ;;  %v10567_v53 = vld [vmem:[%s14331_s3 + $0x790] ss:$40 sps:$4 sm:$0xff]  }
 0x419   :  { %6162 = vmatpush1.bf16.msra.mxu0 %v10507_v55  ;;  %v10570_v55 = vld [vmem:[%s14331_s3 + $0x798] ss:$40 sps:$4 sm:$0xff]  }
 0x41a   :  { %6163 = vmatprep.subr.bf16.mxu0 %v10515_v15  ;;  %v10578_v15 = vld [vmem:[%s14331_s3 + $0x7ec] ss:$40 sps:$4 sm:$0xff]  }
 0x41b   :  { %6203 = vmatpush1.bf16.msra.mxu1 %v10510_v40  ;;  %v10575_v40 = vld [vmem:[%s14331_s3 + $0x7e4] ss:$40 sps:$4 sm:$0xff]  }
 0x41c   :  { %6204 = vmatprep.subr.bf16.mxu1 %v10518_v20  ;;  %v10573_v20 = vld [vmem:[%s14331_s3 + $0x7e0] ss:$40 sps:$4 sm:$0xff]  }
 0x41d   :  { %6164 = vmatpush1.bf16.msra.mxu0 %v10513_v60  ;;  %v10576_v60 = vld [vmem:[%s14331_s3 + $0x7e8] ss:$40 sps:$4 sm:$0xff]  }
 0x41e   :  { %6215 = vmatprep.subr.bf16.mxu0 %v10521_v54  ;;  %v10584_v54 = vld [vmem:[%s14331_s3 + $0x83c] ss:$40 sps:$4 sm:$0xff]  }
 0x41f   :  { %6205 = vmatpush1.bf16.msra.mxu1 %v10516_v62  ;;  %v10581_v62 = vld [vmem:[%s14331_s3 + $0x834] ss:$40 sps:$4 sm:$0xff]  }
 0x420   :  { %6256 = vmatprep.subr.bf16.mxu1 %v10524_v6  ;;  %v10579_v6 = vld [vmem:[%s14331_s3 + $0x830] ss:$40 sps:$4 sm:$0xff]  }
 0x4b5   :  { %v5106_v51 = vpop.f32.mrb[24].mxu1 }
 0x4b6   :  { %v9392_v52 = vadd.f32 %v5106_v51, %v4101_v0  ;;  %v5108_v58 = vpop.f32.mrb[25].mxu1  ;;  %v10587_v0 = vld [vmem:[%s14331_s3 + $0x884] ss:$40 sps:$4 sm:$0xff]   ;;  %v10585_v51 = vld [vmem:[%s14331_s3 + $0x880] ss:$40 sps:$4 sm:$0xff]  }
 0x4b7   :  { %v9393_v2 = vadd.f32 %v5108_v58, %v4105_v1  ;;  %v5110_v3 = vpop.f32.mrb[26].mxu1  ;;  %v10590_v1 = vld [vmem:[%s14331_s3 + $0x88c] ss:$40 sps:$4 sm:$0xff]  }
 0x4b8   :  { %v5113_v4 = vmax.f32 %v9392_v52, 0.0  ;;  %v5111_v5 = vpop.f32.mrb[27].mxu1  ;;  %v10588_v52 = vld [vmem:[%s14331_s3 + $0x888] ss:$40 sps:$4 sm:$0xff]   ;;  %v10593_v58 = vld [vmem:[%s14331_s3 + $0x8d4] ss:$40 sps:$4 sm:$0xff]  }
 0x4b9   :  { %v5114_v59 = vmax.f32 %v9393_v2, 0.0  ;;  %v10596_v2 = vld [vmem:[%s14331_s3 + $0x8dc] ss:$40 sps:$4 sm:$0xff]   ;;  %v10591_v3 = vld [vmem:[%s14331_s3 + $0x8d0] ss:$40 sps:$4 sm:$0xff]  }
 0x4ba   :  { %v13413_v57 = vpack.c.bf16 %v5113_v4, %v5113_v4  ;;  %v10594_v4 = vld [vmem:[%s14331_s3 + $0x8d8] ss:$40 sps:$4 sm:$0xff]   ;;  %v10599_v5 = vld [vmem:[%s14331_s3 + $0x924] ss:$40 sps:$4 sm:$0xff]  }
 0x4bb   :  { %v13405_v9 = vpack.c.bf16 %v5114_v59, %v5114_v59  ;;  %v10602_v59 = vld [vmem:[%s14331_s3 + $0x92c] ss:$40 sps:$4 sm:$0xff]  }
 0x4bd   :  { %6165 = vmatprep.mubr.bf16.mxu0 %v13405_v9  ;;  %6206 = vmatprep.mubr.bf16.mxu1 %v13405_v9 }
 0x4be   :  { %6166 = vmatmul.mubr.bf16.vlgmr.msra.gmra.mrb[8].mxu0 %v13413_v57  ;;  %6207 = vmatmul.mubr.bf16.vlgmr.msra.gmra.mrb[28].mxu1 %v13413_v57 }
 0x4bf   :  { %6216 = vmatpush1.bf16.msra.mxu0 %v10519_v10  ;;  %6257 = vmatpush1.bf16.msra.mxu1 %v10522_v13  ;;  %v10597_v10 = vld [vmem:[%s14331_s3 + $0x920] ss:$40 sps:$4 sm:$0xff]  }
 0x4c0   :  { %6247 = vmatprep.mubr.bf16.mxu0 %v13405_v9  ;;  %6288 = vmatprep.mubr.bf16.mxu1 %v13405_v9  ;;  %v10600_v13 = vld [vmem:[%s14331_s3 + $0x928] ss:$40 sps:$4 sm:$0xff]  }
 0x4c1   :  { %6217 = vmatprep.subr.bf16.mxu0 %v10527_v61  ;;  %6258 = vmatprep.subr.bf16.mxu1 %v10530_v16  ;;  %v10605_v61 = vld [vmem:[%s14331_s3 + $0x974] ss:$40 sps:$4 sm:$0xff]  }
 0x4c2   :  { %v10608_v16 = vld [vmem:[%s14331_s3 + $0x97c] ss:$40 sps:$4 sm:$0xff]  }
 0x4c3   :  { %6218 = vmatpush1.bf16.msra.mxu0 %v10525_v18  ;;  %6259 = vmatpush1.bf16.msra.mxu1 %v10528_v19  ;;  %v10603_v18 = vld [vmem:[%s14331_s3 + $0x970] ss:$40 sps:$4 sm:$0xff]  }
 0x4c4   :  { %6219 = vmatprep.subr.bf16.mxu0 %v10533_v21  ;;  %6260 = vmatprep.subr.bf16.mxu1 %v10536_v22  ;;  %v10606_v19 = vld [vmem:[%s14331_s3 + $0x978] ss:$40 sps:$4 sm:$0xff]   ;;  %v10611_v21 = vld [vmem:[%s14331_s3 + $0x9c4] ss:$40 sps:$4 sm:$0xff]  }
 0x4c5   :  { %v10614_v22 = vld [vmem:[%s14331_s3 + $0x9cc] ss:$40 sps:$4 sm:$0xff]  }
 0x4c7   :  { %6220 = vmatpush1.bf16.msra.mxu0 %v10531_v23  ;;  %6261 = vmatpush1.bf16.msra.mxu1 %v10534_v24  ;;  %v10609_v23 = vld [vmem:[%s14331_s3 + $0x9c0] ss:$40 sps:$4 sm:$0xff]  }
 0x4c8   :  { %6221 = vmatprep.subr.bf16.mxu0 %v10539_v26  ;;  %6262 = vmatprep.subr.bf16.mxu1 %v10542_v28  ;;  %v10612_v24 = vld [vmem:[%s14331_s3 + $0x9c8] ss:$40 sps:$4 sm:$0xff]   ;;  %v10617_v26 = vld [vmem:[%s14331_s3 + $0x524] ss:$40 sps:$4 sm:$0xff]  }
 0x4c9   :  { %v10615_v28 = vld [vmem:[%s14331_s3 + $0x520] ss:$40 sps:$4 sm:$0xff]  }
 0x4cb   :  { %6222 = vmatpush1.bf16.msra.mxu0 %v10537_v56  ;;  %6263 = vmatpush1.bf16.msra.mxu1 %v10540_v35  ;;  %v10620_v56 = vld [vmem:[%s14331_s3 + $0x574] ss:$40 sps:$4 sm:$0xff]   ;;  %v10618_v35 = vld [vmem:[%s14331_s3 + $0x570] ss:$40 sps:$4 sm:$0xff]  }
 0x4cc   :  { %6223 = vmatprep.subr.bf16.mxu0 %v10545_v27  ;;  %6264 = vmatprep.subr.bf16.mxu1 %v10548_v29  ;;  %v10623_v27 = vld [vmem:[%s14331_s3 + $0x5c4] ss:$40 sps:$4 sm:$0xff]   ;;  %v10621_v29 = vld [vmem:[%s14331_s3 + $0x5c0] ss:$40 sps:$4 sm:$0xff]  }
 0x4cf   :  { %6224 = vmatpush1.bf16.msra.mxu0 %v10543_v31  ;;  %6265 = vmatpush1.bf16.msra.mxu1 %v10546_v33  ;;  %v10626_v31 = vld [vmem:[%s14331_s3 + $0x614] ss:$40 sps:$4 sm:$0xff]   ;;  %v10629_v33 = vld [vmem:[%s14331_s3 + $0x664] ss:$40 sps:$4 sm:$0xff]  }
 0x4d0   :  { %6225 = vmatprep.subr.bf16.mxu0 %v10551_v34  ;;  %6266 = vmatprep.subr.bf16.mxu1 %v10554_v36  ;;  %v10627_v34 = vld [vmem:[%s14331_s3 + $0x660] ss:$40 sps:$4 sm:$0xff]   ;;  %v10632_v36 = vld [vmem:[%s14331_s3 + $0x6b4] ss:$40 sps:$4 sm:$0xff]  }
 0x4d3   :  { %6226 = vmatpush1.bf16.msra.mxu0 %v10549_v37  ;;  %6267 = vmatpush1.bf16.msra.mxu1 %v10552_v25  ;;  %v10630_v37 = vld [vmem:[%s14331_s3 + $0x6b0] ss:$40 sps:$4 sm:$0xff]   ;;  %v10635_v25 = vld [vmem:[%s14331_s3 + $0x704] ss:$40 sps:$4 sm:$0xff]  }
 0x4d4   :  { %6227 = vmatprep.subr.bf16.mxu0 %v10557_v14  ;;  %6268 = vmatprep.subr.bf16.mxu1 %v10560_v38  ;;  %v10633_v14 = vld [vmem:[%s14331_s3 + $0x700] ss:$40 sps:$4 sm:$0xff]   ;;  %v10638_v38 = vld [vmem:[%s14331_s3 + $0x754] ss:$40 sps:$4 sm:$0xff]  }
 0x4d7   :  { %6228 = vmatpush1.bf16.msra.mxu0 %v10555_v42  ;;  %6269 = vmatpush1.bf16.msra.mxu1 %v10558_v44  ;;  %v10636_v42 = vld [vmem:[%s14331_s3 + $0x750] ss:$40 sps:$4 sm:$0xff]   ;;  %v10641_v44 = vld [vmem:[%s14331_s3 + $0x7a4] ss:$40 sps:$4 sm:$0xff]  }
 0x4d8   :  { %6229 = vmatprep.subr.bf16.mxu0 %v10563_v45  ;;  %6270 = vmatprep.subr.bf16.mxu1 %v10566_v46  ;;  %v10639_v45 = vld [vmem:[%s14331_s3 + $0x7a0] ss:$40 sps:$4 sm:$0xff]   ;;  %v10644_v46 = vld [vmem:[%s14331_s3 + $0x7f4] ss:$40 sps:$4 sm:$0xff]  }
 0x4db   :  { %6230 = vmatpush1.bf16.msra.mxu0 %v10561_v47  ;;  %6271 = vmatpush1.bf16.msra.mxu1 %v10564_v17  ;;  %v10642_v47 = vld [vmem:[%s14331_s3 + $0x7f0] ss:$40 sps:$4 sm:$0xff]   ;;  %v10647_v17 = vld [vmem:[%s14331_s3 + $0x844] ss:$40 sps:$4 sm:$0xff]  }
 0x4dc   :  { %6231 = vmatprep.subr.bf16.mxu0 %v10569_v48  ;;  %6272 = vmatprep.subr.bf16.mxu1 %v10572_v50  ;;  %v10645_v48 = vld [vmem:[%s14331_s3 + $0x840] ss:$40 sps:$4 sm:$0xff]   ;;  %v10650_v50 = vld [vmem:[%s14331_s3 + $0x894] ss:$40 sps:$4 sm:$0xff]  }
 0x4df   :  { %6232 = vmatpush1.bf16.msra.mxu0 %v10567_v53  ;;  %6273 = vmatpush1.bf16.msra.mxu1 %v10570_v55  ;;  %v10648_v53 = vld [vmem:[%s14331_s3 + $0x890] ss:$40 sps:$4 sm:$0xff]   ;;  %v10653_v55 = vld [vmem:[%s14331_s3 + $0x8e4] ss:$40 sps:$4 sm:$0xff]  }
 0x4e0   :  { %6233 = vmatprep.subr.bf16.mxu0 %v10575_v40  ;;  %6274 = vmatprep.subr.bf16.mxu1 %v10578_v15  ;;  %v10651_v40 = vld [vmem:[%s14331_s3 + $0x8e0] ss:$40 sps:$4 sm:$0xff]   ;;  %v10656_v15 = vld [vmem:[%s14331_s3 + $0x934] ss:$40 sps:$4 sm:$0xff]  }
 0x4e3   :  { %6234 = vmatpush1.bf16.msra.mxu0 %v10573_v20  ;;  %6275 = vmatpush1.bf16.msra.mxu1 %v10576_v60  ;;  %v10654_v20 = vld [vmem:[%s14331_s3 + $0x930] ss:$40 sps:$4 sm:$0xff]   ;;  %v10659_v60 = vld [vmem:[%s14331_s3 + $0x984] ss:$40 sps:$4 sm:$0xff]  }
 0x4e4   :  { %6235 = vmatprep.subr.bf16.mxu0 %v10581_v62  ;;  %6276 = vmatprep.subr.bf16.mxu1 %v10584_v54  ;;  %v10657_v62 = vld [vmem:[%s14331_s3 + $0x980] ss:$40 sps:$4 sm:$0xff]   ;;  %v10662_v54 = vld [vmem:[%s14331_s3 + $0x9d4] ss:$40 sps:$4 sm:$0xff]  }
 0x4e7   :  { %6236 = vmatpush1.bf16.msra.mxu0 %v10579_v6  ;;  %6277 = vmatpush1.bf16.msra.mxu1 %v10582_v63  ;;  %v10660_v6 = vld [vmem:[%s14331_s3 + $0x9d0] ss:$40 sps:$4 sm:$0xff]   ;;  %v10665_v63 = vld [vmem:[%s14333_s5 + $0x504] ss:$8 sps:$4 sm:$0xff]  }
 0x4e8   :  { %6237 = vmatprep.subr.bf16.mxu0 %v10587_v0  ;;  %6278 = vmatprep.subr.bf16.mxu1 %v10590_v1  ;;  %v10663_v0 = vld [vmem:[%s14333_s5 + $0x500] ss:$8 sps:$4 sm:$0xff]   ;;  %v10668_v1 = vld [vmem:[%s14333_s5 + $0x514] ss:$8 sps:$4 sm:$0xff]  }
 0x4eb   :  { %6238 = vmatpush1.bf16.msra.mxu0 %v10585_v51  ;;  %6279 = vmatpush1.bf16.msra.mxu1 %v10588_v52  ;;  %v10666_v51 = vld [vmem:[%s14333_s5 + $0x510] ss:$8 sps:$4 sm:$0xff]   ;;  %v10671_v52 = vld [vmem:[%s14333_s5 + $0x524] ss:$8 sps:$4 sm:$0xff]  }
 0x4ec   :  { %6239 = vmatprep.subr.bf16.mxu0 %v10593_v58  ;;  %6280 = vmatprep.subr.bf16.mxu1 %v10596_v2  ;;  %v10669_v58 = vld [vmem:[%s14333_s5 + $0x520] ss:$8 sps:$4 sm:$0xff]   ;;  %v10672_v2 = vld [vmem:[%s14333_s5 + $0x530] ss:$8 sps:$4 sm:$0xff]  }
 0x4ef   :  { %6240 = vmatpush1.bf16.msra.mxu0 %v10591_v3  ;;  %6281 = vmatpush1.bf16.msra.mxu1 %v10594_v4  ;;  %v10677_v3 = vld [vmem:[%s14333_s5 + $0x544] ss:$8 sps:$4 sm:$0xff]   ;;  %v10675_v4 = vld [vmem:[%s14333_s5 + $0x540] ss:$8 sps:$4 sm:$0xff]  }
 0x4f0   :  { %6241 = vmatprep.subr.bf16.mxu0 %v10599_v5  ;;  %6282 = vmatprep.subr.bf16.mxu1 %v10602_v59  ;;  %v10680_v5 = vld [vmem:[%s14333_s5 + $0x554] ss:$8 sps:$4 sm:$0xff]   ;;  %v10678_v59 = vld [vmem:[%s14333_s5 + $0x550] ss:$8 sps:$4 sm:$0xff]  }
 0x4f3   :  { %6242 = vmatpush1.bf16.msra.mxu0 %v10597_v10  ;;  %6283 = vmatpush1.bf16.msra.mxu1 %v10600_v13  ;;  %v10683_v10 = vld [vmem:[%s14333_s5 + $0x564] ss:$8 sps:$4 sm:$0xff]   ;;  %v10681_v13 = vld [vmem:[%s14333_s5 + $0x560] ss:$8 sps:$4 sm:$0xff]  }
 0x4f4   :  { %6243 = vmatprep.subr.bf16.mxu0 %v10605_v61  ;;  %6284 = vmatprep.subr.bf16.mxu1 %v10608_v16  ;;  %v10686_v61 = vld [vmem:[%s14333_s5 + $0x574] ss:$8 sps:$4 sm:$0xff]   ;;  %v10684_v16 = vld [vmem:[%s14333_s5 + $0x570] ss:$8 sps:$4 sm:$0xff]  }
 0x4f7   :  { %6244 = vmatpush1.bf16.msra.mxu0 %v10603_v18  ;;  %6285 = vmatpush1.bf16.msra.mxu1 %v10606_v19  ;;  %v10689_v18 = vld [vmem:[%s14333_s5 + $0x584] ss:$8 sps:$4 sm:$0xff]   ;;  %v10687_v19 = vld [vmem:[%s14333_s5 + $0x580] ss:$8 sps:$4 sm:$0xff]  }
 0x4f8   :  { %6245 = vmatprep.subr.bf16.mxu0 %v10611_v21  ;;  %6286 = vmatprep.subr.bf16.mxu1 %v10614_v22  ;;  %v10692_v21 = vld [vmem:[%s14333_s5 + $0x594] ss:$8 sps:$4 sm:$0xff]   ;;  %v10690_v22 = vld [vmem:[%s14333_s5 + $0x590] ss:$8 sps:$4 sm:$0xff]  }
 0x4fb   :  { %6246 = vmatpush1.bf16.msra.mxu0 %v10609_v23  ;;  %6287 = vmatpush1.bf16.msra.mxu1 %v10612_v24  ;;  %v10695_v23 = vld [vmem:[%s14333_s5 + $0x5a4] ss:$8 sps:$4 sm:$0xff]   ;;  %v10693_v24 = vld [vmem:[%s14333_s5 + $0x5a0] ss:$8 sps:$4 sm:$0xff]  }
 0x4fc   :  { %6297 = vmatprep.subr.bf16.mxu0 %v10617_v26  ;;  %v10698_v26 = vld [vmem:[%s14333_s5 + $0x5b4] ss:$8 sps:$4 sm:$0xff]  }
 0x4fe   :  { %6248 = vmatmul.mubr.bf16.vlgmr.msra.gmra.mrb[12].mxu0 %v13413_v57  ;;  %6289 = vmatmul.mubr.bf16.vlgmr.msra.gmra.mrb[32].mxu1 %v13413_v57 }
 0x4ff   :  { %6298 = vmatpush1.bf16.msra.mxu0 %v10615_v28  ;;  %6329 = vmatprep.mubr.bf16.mxu0 %v13405_v9  ;;  %v10624_v9 = vld [vmem:[%s14331_s3 + $0x610] ss:$40 sps:$4 sm:$0xff]  }
 0x500   :  { %6299 = vmatprep.subr.bf16.mxu0 %v10620_v56  ;;  %v10696_v28 = vld [vmem:[%s14333_s5 + $0x5b0] ss:$8 sps:$4 sm:$0xff]   ;;  %v10701_v56 = vld [vmem:[%s14333_s5 + $0x5c4] ss:$8 sps:$4 sm:$0xff]  }
 0x503   :  { %6300 = vmatpush1.bf16.msra.mxu0 %v10618_v35  ;;  %v10699_v35 = vld [vmem:[%s14333_s5 + $0x5c0] ss:$8 sps:$4 sm:$0xff]  }
 0x504   :  { %6301 = vmatprep.subr.bf16.mxu0 %v10623_v27  ;;  %v10704_v27 = vld [vmem:[%s14333_s5 + $0x5d4] ss:$8 sps:$4 sm:$0xff]  }
 0x507   :  { %6302 = vmatpush1.bf16.msra.mxu0 %v10621_v29  ;;  %v10702_v29 = vld [vmem:[%s14333_s5 + $0x5d0] ss:$8 sps:$4 sm:$0xff]  }
 0x508   :  { %6303 = vmatprep.subr.bf16.mxu0 %v10626_v31  ;;  %v10707_v31 = vld [vmem:[%s14333_s5 + $0x5e4] ss:$8 sps:$4 sm:$0xff]  }
 0x50b   :  { %6304 = vmatpush1.bf16.msra.mxu0 %v10624_v9  ;;  %v10705_v9 = vld [vmem:[%s14333_s5 + $0x5e0] ss:$8 sps:$4 sm:$0xff]  }
 0x50c   :  { %6305 = vmatprep.subr.bf16.mxu0 %v10629_v33  ;;  %v10710_v33 = vld [vmem:[%s14333_s5 + $0x5f4] ss:$8 sps:$4 sm:$0xff]  }
 0x50f   :  { %6306 = vmatpush1.bf16.msra.mxu0 %v10627_v34  ;;  %v10708_v34 = vld [vmem:[%s14333_s5 + $0x5f0] ss:$8 sps:$4 sm:$0xff]  }
 0x510   :  { %6307 = vmatprep.subr.bf16.mxu0 %v10632_v36  ;;  %v10713_v36 = vld [vmem:[%s14333_s5 + $0x604] ss:$8 sps:$4 sm:$0xff]  }
 0x513   :  { %6308 = vmatpush1.bf16.msra.mxu0 %v10630_v37  ;;  %v13803_v37 = vld [vmem:[%s14334_s4 + $0xa] sm:$0xff] }
 0x514   :  { %6309 = vmatprep.subr.bf16.mxu0 %v10635_v25  ;;  %v5286_v25 = vrot.slane %v13803_v37, %v11690_v39 }
 0x517   :  { %6310 = vmatpush1.bf16.msra.mxu0 %v10633_v14  ;;  %v5294_v14 = vrot.slane %v13803_v37, %v1459_v11 }
 0x518   :  { %6311 = vmatprep.subr.bf16.mxu0 %v10638_v38  ;;  %v5290_v38 = vrot.slane %v13803_v37, %v11696_v41 }
 0x51b   :  { %6312 = vmatpush1.bf16.msra.mxu0 %v10636_v42  ;;  %v5298_v42 = vrot.slane %v13803_v37, %v1463_v12 }
 0x51c   :  { %6313 = vmatprep.subr.bf16.mxu0 %v10641_v44 }
 0x51f   :  { %6314 = vmatpush1.bf16.msra.mxu0 %v10639_v45 }
 0x520   :  { %6315 = vmatprep.subr.bf16.mxu0 %v10644_v46 }
 0x523   :  { %6316 = vmatpush1.bf16.msra.mxu0 %v10642_v47 }
 0x524   :  { %6317 = vmatprep.subr.bf16.mxu0 %v10647_v17 }
 0x527   :  { %6318 = vmatpush1.bf16.msra.mxu0 %v10645_v48 }
 0x528   :  { %6319 = vmatprep.subr.bf16.mxu0 %v10650_v50 }
 0x52b   :  { %6320 = vmatpush1.bf16.msra.mxu0 %v10648_v53 }
 0x52c   :  { %6321 = vmatprep.subr.bf16.mxu0 %v10653_v55 }
 0x52f   :  { %6322 = vmatpush1.bf16.msra.mxu0 %v10651_v40 }
 0x530   :  { %6323 = vmatprep.subr.bf16.mxu0 %v10656_v15 }
 0x533   :  { %6324 = vmatpush1.bf16.msra.mxu0 %v10654_v20 }
 0x534   :  { %6325 = vmatprep.subr.bf16.mxu0 %v10659_v60 }
 0x537   :  { %6326 = vmatpush1.bf16.msra.mxu0 %v10657_v62 }
 0x538   :  { %6327 = vmatprep.subr.bf16.mxu0 %v10662_v54 }
 0x53b   :  { %6328 = vmatpush1.bf16.msra.mxu0 %v10660_v6 }
 0x53c   :  { %7482 = vmatprep.subr.bf16.mxu0 %v10665_v63 }
 0x53e   :  { %6330 = vmatmul.mubr.bf16.vlgmr.msra.gmra.mrb[16].mxu0 %v13413_v57  ;;  %v10674_v57 = vld [vmem:[%s14333_s5 + $0x534] ss:$8 sps:$4 sm:$0xff]  }
 0x53f   :  { %7483 = vmatpush1.bf16.msra.mxu0 %v10663_v0 }
 0x540   :  { %7484 = vmatprep.subr.bf16.mxu0 %v10668_v1 }
 0x543   :  { %7485 = vmatpush1.bf16.msra.mxu0 %v10666_v51 }
 0x544   :  { %7486 = vmatprep.subr.bf16.mxu0 %v10671_v52 }
 0x547   :  { %7487 = vmatpush1.bf16.msra.mxu0 %v10669_v58 }
 0x548   :  { %7488 = vmatprep.subr.bf16.mxu0 %v10674_v57 }
 0x54b   :  { %7489 = vmatpush1.bf16.msra.mxu0 %v10672_v2 }
 0x54c   :  { %7490 = vmatprep.subr.bf16.mxu0 %v10677_v3 }
 0x54f   :  { %7491 = vmatpush1.bf16.msra.mxu0 %v10675_v4 }
 0x550   :  { %7492 = vmatprep.subr.bf16.mxu0 %v10680_v5 }
 0x553   :  { %7493 = vmatpush1.bf16.msra.mxu0 %v10678_v59 }
 0x554   :  { %7494 = vmatprep.subr.bf16.mxu0 %v10683_v10 }
 0x557   :  { %7495 = vmatpush1.bf16.msra.mxu0 %v10681_v13 }
 0x558   :  { %7496 = vmatprep.subr.bf16.mxu0 %v10686_v61 }
 0x55b   :  { %7497 = vmatpush1.bf16.msra.mxu0 %v10684_v16  ;;  %v11007_v16 = vld [vmem:[%s14330_s0 + $0x14] sm:$0xff] }
 0x55c   :  { %7498 = vmatprep.subr.bf16.mxu0 %v10689_v18 }
 0x55f   :  { %7499 = vmatpush1.bf16.msra.mxu0 %v10687_v19 }
 0x560   :  { %7500 = vmatprep.subr.bf16.mxu0 %v10692_v21 }
 0x563   :  { %7501 = vmatpush1.bf16.msra.mxu0 %v10690_v22 }
 0x564   :  { %7502 = vmatprep.subr.bf16.mxu0 %v10695_v23 }
 0x567   :  { %7503 = vmatpush1.bf16.msra.mxu0 %v10693_v24 }
 0x568   :  { %7504 = vmatprep.subr.bf16.mxu0 %v10698_v26  ;;  %v10711_v26 = vld [vmem:[%s14333_s5 + $0x600] ss:$8 sps:$4 sm:$0xff]  }
 0x56b   :  { %7505 = vmatpush1.bf16.msra.mxu0 %v10696_v28 }
 0x56c   :  { %7506 = vmatprep.subr.bf16.mxu0 %v10701_v56 }
 0x56f   :  { %7507 = vmatpush1.bf16.msra.mxu0 %v10699_v35  ;;  %v10716_v35 = vld [vmem:[%s14333_s5 + $0x614] ss:$8 sps:$4 sm:$0xff]  }
 0x570   :  { %7508 = vmatprep.subr.bf16.mxu0 %v10704_v27 }
 0x573   :  { %7509 = vmatpush1.bf16.msra.mxu0 %v10702_v29  ;;  %v10714_v29 = vld [vmem:[%s14333_s5 + $0x610] ss:$8 sps:$4 sm:$0xff]  }
 0x574   :  { %7510 = vmatprep.subr.bf16.mxu0 %v10707_v31  ;;  %v10719_v31 = vld [vmem:[%s14333_s5 + $0x624] ss:$8 sps:$4 sm:$0xff]  }
 0x577   :  { %7511 = vmatpush1.bf16.msra.mxu0 %v10705_v9  ;;  %v10717_v9 = vld [vmem:[%s14333_s5 + $0x620] ss:$8 sps:$4 sm:$0xff]  }
 0x578   :  { %7512 = vmatprep.subr.bf16.mxu0 %v10710_v33  ;;  %v10722_v33 = vld [vmem:[%s14333_s5 + $0x634] ss:$8 sps:$4 sm:$0xff]  }
 0x57b   :  { %7513 = vmatpush1.bf16.msra.mxu0 %v10708_v34  ;;  %v10720_v34 = vld [vmem:[%s14333_s5 + $0x630] ss:$8 sps:$4 sm:$0xff]  }
 0x57c   :  { %7523 = vmatprep.subr.bf16.mxu0 %v10713_v36  ;;  %v10725_v36 = vld [vmem:[%s14333_s5 + $0x644] ss:$8 sps:$4 sm:$0xff]  }
 0x591   :  { %v6167_v44 = vpop.f32.mrb[8].mxu0  ;;  %v6208_v45 = vpop.f32.mrb[28].mxu1 }
 0x592   :  { %v6168_v46 = vadd.f32 %v6167_v44, %v5286_v25  ;;  %v6209_v47 = vadd.f32 %v6208_v45, %v5294_v14  ;;  %v6169_v17 = vpop.f32.mrb[9].mxu0  ;;  %v6210_v48 = vpop.f32.mrb[29].mxu1  ;;  %v10723_v25 = vld [vmem:[%s14333_s5 + $0x640] ss:$8 sps:$4 sm:$0xff]   ;;  %v5302_v14 = vrot.slane %v13803_v37, %v1467_v30  ;;  %v5306_v44 = vrot.slane %v13803_v37, %v1471_v32  ;;  %v10726_v30 = vld [vmem:[%s14333_s5 + $0x650] ss:$8 sps:$4 sm:$0xff]  }
 0x593   :  { %v6170_v50 = vadd.f32 %v6169_v17, %v5290_v38  ;;  %v6211_v53 = vadd.f32 %v6210_v48, %v5298_v42  ;;  %v6171_v55 = vpop.f32.mrb[10].mxu0  ;;  %v6212_v40 = vpop.f32.mrb[30].mxu1  ;;  %v5310_v38 = vrot.slane %v13803_v37, %v1475_v7  ;;  %v10728_v42 = vld [vmem:[%s14333_s5 + $0x654] ss:$8 sps:$4 sm:$0xff]   ;;  %v5314_v45 = vrot.slane %v13803_v37, %v1479_v8  ;;  %v10731_v32 = vld [vmem:[%s14333_s5 + $0x664] ss:$8 sps:$4 sm:$0xff]  }
 0x594   :  { %v9016_v15 = vmul.f32 -1.442695, %v6168_v46  ;;  %v9018_v20 = vmul.f32 -1.442695, %v6209_v47  ;;  %v6172_v11 = vpop.f32.mrb[11].mxu0  ;;  %v6213_v60 = vpop.f32.mrb[31].mxu1 }
 0x595   :  { %v9017_v62 = vmul.f32 -1.442695, %v6170_v50  ;;  %v9019_v54 = vmul.f32 -1.442695, %v6211_v53 }
 0x596   :  { %10959 = vpow2.f32 %v9016_v15 }
 0x597   :  { %10961 = vpow2.f32 %v9018_v20 }
 0x598   :  { %10963 = vpow2.f32 %v9017_v62  ;;  %v10729_v62 = vld [vmem:[%s14333_s5 + $0x660] ss:$8 sps:$4 sm:$0xff]  }
 0x599   :  { %10965 = vpow2.f32 %v9019_v54  ;;  %v10734_v54 = vld [vmem:[%s14333_s5 + $0x674] ss:$8 sps:$4 sm:$0xff]  }
 0x5a0   :  { %v10960_v12 = vpop.eup %10959 }
 0x5a1   :  { %v10962_v6 = vpop.eup %10961  ;;  %v6368_v63 = vadd.f32 1.0, %v10960_v12  ;;  %v10732_v12 = vld [vmem:[%s14333_s5 + $0x670] ss:$8 sps:$4 sm:$0xff]  }
 0x5a2   :  { %v10964_v0 = vpop.eup %10963  ;;  %v6370_v1 = vadd.f32 1.0, %v10962_v6  ;;  %v10737_v6 = vld [vmem:[%s14333_s5 + $0x684] ss:$8 sps:$4 sm:$0xff]  }
 0x5a3   :  { %v10966_v51 = vpop.eup %10965  ;;  %10967 = vrcp.f32 %v6368_v63  ;;  %v6369_v52 = vadd.f32 1.0, %v10964_v0  ;;  %v10735_v63 = vld [vmem:[%s14333_s5 + $0x680] ss:$8 sps:$4 sm:$0xff]   ;;  %v10740_v0 = vld [vmem:[%s14333_s5 + $0x694] ss:$8 sps:$4 sm:$0xff]  }
 0x5a4   :  { %10969 = vrcp.f32 %v6370_v1  ;;  %v6371_v58 = vadd.f32 1.0, %v10966_v51 }
 0x5a5   :  { %10971 = vrcp.f32 %v6369_v52 }
 0x5a6   :  { %10973 = vrcp.f32 %v6371_v58  ;;  %v10738_v58 = vld [vmem:[%s14333_s5 + $0x690] ss:$8 sps:$4 sm:$0xff]  }
 0x5ad   :  { %v10968_v57 = vpop.eup %10967 }
 0x5ae   :  { %v10970_v2 = vpop.eup %10969 }
 0x5af   :  { %v10972_v3 = vpop.eup %10971 }
 0x5b0   :  { %v10974_v4 = vpop.eup %10973  ;;  %v6408_v5 = vcombine.low %v10968_v57, %v10972_v3  ;;  %v10743_v3 = vld [vmem:[%s14333_s5 + $0x6a4] ss:$8 sps:$4 sm:$0xff]  }
 0x5b1   :  { %v6409_v59 = vcombine.low %v10970_v2, %v10974_v4 }
 0x5b2   :  { %v6416_v10 = vrot.slane %v6408_v5, %v11198_v49 }
 0x5b3   :  { %v6423_v13 = vrot.slane %v6409_v59, %v11198_v49 }
 0x5b5   :  { %v6424_v61 = vcombine.low %v6416_v10, %v6423_v13  ;;  %v10741_v10 = vld [vmem:[%s14333_s5 + $0x6a0] ss:$8 sps:$4 sm:$0xff]   ;;  %v10746_v13 = vld [vmem:[%s14333_s5 + $0x6b4] ss:$8 sps:$4 sm:$0xff]  }
 0x5b7   :  { %v6453_v18 = vmul.f32 %v11007_v16, %v6424_v61  ;;  %v10744_v61 = vld [vmem:[%s14333_s5 + $0x6b0] ss:$8 sps:$4 sm:$0xff]   ;;  %v10749_v16 = vld [vmem:[%s14333_s5 + $0x6c4] ss:$8 sps:$4 sm:$0xff]  }
 0x5b9   :  { %v6466_v19 = vrot.slane %v6453_v18, %v11198_v49  ;;  %v6459_v21 = vcombine.high %v6453_v18, %v6453_v18 }
 0x5bb   :  { %v6474_v22 = vcombine.high %v6466_v19, %v6466_v19  ;;  %v13822_v23 = vrot.slane %v6459_v21, %v11198_v49  ;;  %v6511_v56 = vpack.c.bf16 %v6466_v19, %v6466_v19  ;;  %v10747_v19 = vld [vmem:[%s14333_s5 + $0x6c0] ss:$8 sps:$4 sm:$0xff]  }
 0x5bd   :  { %v6512_v24 = vpack.c.bf16 %v6474_v22, %v6474_v22  ;;  %v6475_v28 = vcombine.high %v13822_v23, %v13822_v23  ;;  %v10752_v22 = vld [vmem:[%s14333_s5 + $0x6d4] ss:$8 sps:$4 sm:$0xff]  }
 0x5bf   :  { %7514 = vmatprep.mubr.bf16.mxu0 %v6512_v24  ;;  %v6514_v27 = vpack.c.bf16 %v6475_v28, %v6475_v28 }
 0x5c0   :  { %7515 = vmatmul.mubr.bf16.vlgmr.msra.gmra.mrb[4].mxu0 %v6511_v56  ;;  %v10750_v56 = vld [vmem:[%s14333_s5 + $0x6d0] ss:$8 sps:$4 sm:$0xff]  }
 0x5c1   :  { %7524 = vmatpush1.bf16.msra.mxu0 %v10711_v26  ;;  %7555 = vmatprep.mubr.bf16.mxu0 %v6514_v27  ;;  %v10755_v27 = vld [vmem:[%s14333_s5 + $0x6e4] ss:$8 sps:$4 sm:$0xff]  }
 0x5c2   :  { %7525 = vmatprep.subr.bf16.mxu0 %v10716_v35 }
 0x5c5   :  { %7526 = vmatpush1.bf16.msra.mxu0 %v10714_v29 }
 0x5c6   :  { %7527 = vmatprep.subr.bf16.mxu0 %v10719_v31 }
 0x5c9   :  { %7528 = vmatpush1.bf16.msra.mxu0 %v10717_v9  ;;  %v10753_v9 = vld [vmem:[%s14333_s5 + $0x6e0] ss:$8 sps:$4 sm:$0xff]  }
 0x5ca   :  { %7529 = vmatprep.subr.bf16.mxu0 %v10722_v33 }
 0x5cd   :  { %7530 = vmatpush1.bf16.msra.mxu0 %v10720_v34  ;;  %v10758_v34 = vld [vmem:[%s14333_s5 + $0x6f4] ss:$8 sps:$4 sm:$0xff]  }
 0x5ce   :  { %7531 = vmatprep.subr.bf16.mxu0 %v10725_v36  ;;  %v11008_v36 = vld [vmem:[%s14330_s0 + $0x1c] sm:$0xff] }
 0x5d1   :  { %7532 = vmatpush1.bf16.msra.mxu0 %v10723_v25  ;;  %v6249_v46 = vpop.f32.mrb[12].mxu0  ;;  %v6290_v47 = vpop.f32.mrb[32].mxu1 }
 0x5d2   :  { %v6250_v7 = vadd.f32 %v6249_v46, %v5302_v14  ;;  %v6291_v17 = vadd.f32 %v6290_v47, %v5310_v38  ;;  %v6251_v48 = vpop.f32.mrb[13].mxu0  ;;  %v6292_v50 = vpop.f32.mrb[33].mxu1  ;;  %7533 = vmatprep.subr.bf16.mxu0 %v10728_v42  ;;  %v10756_v14 = vld [vmem:[%s14333_s5 + $0x6f0] ss:$8 sps:$4 sm:$0xff]   ;;  %v10761_v42 = vld [vmem:[%s14333_s5 + $0x704] ss:$8 sps:$4 sm:$0xff]   ;;  %v6513_v46 = vpack.c.bf16 %v13822_v23, %v13822_v23 }
 0x5d3   :  { %v6252_v53 = vadd.f32 %v6251_v48, %v5306_v44  ;;  %v6293_v43 = vadd.f32 %v6292_v50, %v5314_v45  ;;  %v6253_v55 = vpop.f32.mrb[14].mxu0  ;;  %v6294_v8 = vpop.f32.mrb[34].mxu1  ;;  %v10759_v45 = vld [vmem:[%s14333_s5 + $0x700] ss:$8 sps:$4 sm:$0xff]   ;;  %v10764_v47 = vld [vmem:[%s14333_s5 + $0x714] ss:$8 sps:$4 sm:$0xff]  }
 0x5d4   :  { %v9020_v37 = vmul.f32 -1.442695, %v6250_v7  ;;  %v9022_v40 = vmul.f32 -1.442695, %v6291_v17  ;;  %v6254_v15 = vpop.f32.mrb[15].mxu0  ;;  %v6295_v20 = vpop.f32.mrb[35].mxu1 }
 0x5d5   :  { %v9021_v11 = vmul.f32 -1.442695, %v6252_v53  ;;  %v9023_v60 = vmul.f32 -1.442695, %v6293_v43  ;;  %7534 = vmatpush1.bf16.msra.mxu0 %v10726_v30  ;;  %v10762_v7 = vld [vmem:[%s14333_s5 + $0x710] ss:$8 sps:$4 sm:$0xff]  }
 0x5d6   :  { %10975 = vpow2.f32 %v9020_v37  ;;  %7535 = vmatprep.subr.bf16.mxu0 %v10731_v32  ;;  %v10767_v17 = vld [vmem:[%s14333_s5 + $0x724] ss:$8 sps:$4 sm:$0xff]   ;;  %v10765_v23 = vld [vmem:[%s14333_s5 + $0x720] ss:$8 sps:$4 sm:$0xff]   ;;  %v10770_v48 = vld [vmem:[%s14333_s5 + $0x734] ss:$8 sps:$4 sm:$0xff]  }
 0x5d7   :  { %10977 = vpow2.f32 %v9022_v40  ;;  %v10768_v50 = vld [vmem:[%s14333_s5 + $0x730] ss:$8 sps:$4 sm:$0xff]   ;;  %v10773_v32 = vld [vmem:[%s14333_s5 + $0x744] ss:$8 sps:$4 sm:$0xff]   ;;  %v10771_v43 = vld [vmem:[%s14333_s5 + $0x740] ss:$8 sps:$4 sm:$0xff]  }
 0x5d8   :  { %10979 = vpow2.f32 %v9021_v11  ;;  %v8855_v53 = vld [vmem:[%s14334_s4 + $0x12] sm:$0x3]  ;;  %v10776_v8 = vld [vmem:[%s14333_s5 + $0x754] ss:$8 sps:$4 sm:$0xff]  }
 0x5d9   :  { %10981 = vpow2.f32 %v9023_v60  ;;  %7536 = vmatpush1.bf16.msra.mxu0 %v10729_v62  ;;  %v5318_v55 = vrot.slane %v8855_v53, %v11690_v39  ;;  %v5322_v37 = vrot.slane %v8855_v53, %v11696_v41  ;;  %v10774_v15 = vld [vmem:[%s14333_s5 + $0x750] ss:$8 sps:$4 sm:$0xff]   ;;  %v10779_v60 = vld [vmem:[%s14333_s5 + $0x764] ss:$8 sps:$4 sm:$0xff]  }
 0x5da   :  { %7537 = vmatprep.subr.bf16.mxu0 %v10734_v54  ;;  %v10821_v53 = vld [vmem:[%s14333_s5 + $0x844] ss:$8 sps:$4 sm:$0xff]  }
 0x5dd   :  { %7538 = vmatpush1.bf16.msra.mxu0 %v10732_v12 }
 0x5de   :  { %7539 = vmatprep.subr.bf16.mxu0 %v10737_v6 }
 0x5e0   :  { %v10976_v1 = vpop.eup %10975 }
 0x5e1   :  { %v10978_v51 = vpop.eup %10977  ;;  %v6372_v52 = vadd.f32 1.0, %v10976_v1  ;;  %7540 = vmatpush1.bf16.msra.mxu0 %v10735_v63  ;;  %v10782_v1 = vld [vmem:[%s14333_s5 + $0x774] ss:$8 sps:$4 sm:$0xff]  }
 0x5e2   :  { %v10980_v57 = vpop.eup %10979  ;;  %v6374_v2 = vadd.f32 1.0, %v10978_v51  ;;  %7541 = vmatprep.subr.bf16.mxu0 %v10740_v0  ;;  %v10777_v0 = vld [vmem:[%s14333_s5 + $0x760] ss:$8 sps:$4 sm:$0xff]   ;;  %v10780_v51 = vld [vmem:[%s14333_s5 + $0x770] ss:$8 sps:$4 sm:$0xff]  }
 0x5e3   :  { %v10982_v4 = vpop.eup %10981  ;;  %10983 = vrcp.f32 %v6372_v52  ;;  %v6373_v5 = vadd.f32 1.0, %v10980_v57  ;;  %v10785_v52 = vld [vmem:[%s14333_s5 + $0x784] ss:$8 sps:$4 sm:$0xff]   ;;  %v10788_v57 = vld [vmem:[%s14333_s5 + $0x794] ss:$8 sps:$4 sm:$0xff]  }
 0x5e4   :  { %10985 = vrcp.f32 %v6374_v2  ;;  %v6375_v59 = vadd.f32 1.0, %v10982_v4 }
 0x5e5   :  { %10987 = vrcp.f32 %v6373_v5  ;;  %7542 = vmatpush1.bf16.msra.mxu0 %v10738_v58  ;;  %v10783_v58 = vld [vmem:[%s14333_s5 + $0x780] ss:$8 sps:$4 sm:$0xff]   ;;  %v10786_v5 = vld [vmem:[%s14333_s5 + $0x790] ss:$8 sps:$4 sm:$0xff]  }
 0x5e6   :  { %10989 = vrcp.f32 %v6375_v59  ;;  %7543 = vmatprep.subr.bf16.mxu0 %v10743_v3 }
 0x5e9   :  { %7544 = vmatpush1.bf16.msra.mxu0 %v10741_v10  ;;  %v10791_v10 = vld [vmem:[%s14333_s5 + $0x7a4] ss:$8 sps:$4 sm:$0xff]  }
 0x5ea   :  { %7545 = vmatprep.subr.bf16.mxu0 %v10746_v13  ;;  %v10789_v13 = vld [vmem:[%s14333_s5 + $0x7a0] ss:$8 sps:$4 sm:$0xff]  }
 0x5ed   :  { %v10984_v18 = vpop.eup %10983  ;;  %7546 = vmatpush1.bf16.msra.mxu0 %v10744_v61  ;;  %v10794_v61 = vld [vmem:[%s14333_s5 + $0x7b4] ss:$8 sps:$4 sm:$0xff]  }
 0x5ee   :  { %v10986_v21 = vpop.eup %10985  ;;  %7547 = vmatprep.subr.bf16.mxu0 %v10749_v16  ;;  %v10792_v16 = vld [vmem:[%s14333_s5 + $0x7b0] ss:$8 sps:$4 sm:$0xff]  }
 0x5ef   :  { %v10988_v24 = vpop.eup %10987 }
 0x5f0   :  { %v10990_v26 = vpop.eup %10989  ;;  %v6425_v28 = vcombine.low %v10984_v18, %v10988_v24  ;;  %v10797_v18 = vld [vmem:[%s14333_s5 + $0x7c4] ss:$8 sps:$4 sm:$0xff]   ;;  %v10800_v24 = vld [vmem:[%s14333_s5 + $0x7d4] ss:$8 sps:$4 sm:$0xff]  }
 0x5f1   :  { %7548 = vmatpush1.bf16.msra.mxu0 %v10747_v19  ;;  %v6426_v35 = vcombine.low %v10986_v21, %v10990_v26  ;;  %v10795_v21 = vld [vmem:[%s14333_s5 + $0x7c0] ss:$8 sps:$4 sm:$0xff]  }
 0x5f2   :  { %7549 = vmatprep.subr.bf16.mxu0 %v10752_v22  ;;  %v6433_v29 = vrot.slane %v6425_v28, %v11198_v49  ;;  %v10798_v28 = vld [vmem:[%s14333_s5 + $0x7d0] ss:$8 sps:$4 sm:$0xff]  }
 0x5f3   :  { %v6440_v31 = vrot.slane %v6426_v35, %v11198_v49 }
 0x5f5   :  { %7550 = vmatpush1.bf16.msra.mxu0 %v10750_v56  ;;  %v6441_v33 = vcombine.low %v6433_v29, %v6440_v31  ;;  %v10803_v56 = vld [vmem:[%s14333_s5 + $0x7e4] ss:$8 sps:$4 sm:$0xff]   ;;  %v10806_v29 = vld [vmem:[%s14333_s5 + $0x7f4] ss:$8 sps:$4 sm:$0xff]  }
 0x5f6   :  { %7551 = vmatprep.subr.bf16.mxu0 %v10755_v27  ;;  %v10801_v27 = vld [vmem:[%s14333_s5 + $0x7e0] ss:$8 sps:$4 sm:$0xff]  }
 0x5f7   :  { %v13933_v25 = vmul.f32 %v11008_v36, %v6441_v33  ;;  %v10809_v33 = vld [vmem:[%s14333_s5 + $0x804] ss:$8 sps:$4 sm:$0xff]   ;;  %v10807_v36 = vld [vmem:[%s14333_s5 + $0x800] ss:$8 sps:$4 sm:$0xff]  }
 0x5f9   :  { %7552 = vmatpush1.bf16.msra.mxu0 %v10753_v9  ;;  %v13940_v38 = vrot.slane %v13933_v25, %v11198_v49  ;;  %v6476_v35 = vcombine.high %v13933_v25, %v13933_v25  ;;  %v10804_v9 = vld [vmem:[%s14333_s5 + $0x7f0] ss:$8 sps:$4 sm:$0xff]  }
 0x5fa   :  { %7553 = vmatprep.subr.bf16.mxu0 %v10758_v34 }
 0x5fb   :  { %v6491_v44 = vcombine.high %v13940_v38, %v13940_v38  ;;  %v14053_v31 = vrot.slane %v6476_v35, %v11198_v49  ;;  %v6515_v25 = vpack.c.bf16 %v13940_v38, %v13940_v38  ;;  %v10903_v38 = vld [vmem:[%s14335_s7 + $0x40] sm:$0xff]   ;;  %v10858_v35 = vld [vmem:[%s14333_s5 + $0x910] ss:$8 sps:$4 sm:$0xff]  }
 0x5fc   :  { %9364 = vmatprep.subr.bf16.mxu1 %v10903_v38  ;;  %v10881_v38 = vld [vmem:[%s14333_s5 + $0x984] ss:$8 sps:$4 sm:$0xff]  }
 0x5fd   :  { %7554 = vmatpush1.bf16.msra.mxu0 %v10756_v14  ;;  %v6516_v30 = vpack.c.bf16 %v6491_v44, %v6491_v44  ;;  %v6492_v34 = vcombine.high %v14053_v31, %v14053_v31  ;;  %v10812_v14 = vld [vmem:[%s14333_s5 + $0x814] ss:$8 sps:$4 sm:$0xff]   ;;  %v10810_v44 = vld [vmem:[%s14333_s5 + $0x810] ss:$8 sps:$4 sm:$0xff]  }
 0x5fe   :  { %7564 = vmatprep.subr.bf16.mxu0 %v10761_v42 }
 0x5ff   :  { %v6518_v42 = vpack.c.bf16 %v6492_v34, %v6492_v34  ;;  %v10867_v34 = vld [vmem:[%s14333_s5 + $0x940] ss:$8 sps:$4 sm:$0xff]  }
 0x600   :  { %7556 = vmatmul.mubr.bf16.vlgmr.msra.gmra.mrb[4].mxu0 %v6513_v46  ;;  %v10904_v46 = vld [vmem:[%s14335_s7] sm:$0xff]  }
 0x601   :  { %7565 = vmatpush1.bf16.msra.mxu0 %v10759_v45  ;;  %7596 = vmatprep.mubr.bf16.mxu0 %v6516_v30  ;;  %v10815_v45 = vld [vmem:[%s14333_s5 + $0x824] ss:$8 sps:$4 sm:$0xff]  }
 0x602   :  { %7566 = vmatprep.subr.bf16.mxu0 %v10764_v47  ;;  %v10813_v47 = vld [vmem:[%s14333_s5 + $0x820] ss:$8 sps:$4 sm:$0xff]   ;;  %9365 = vmatpush3.bf16.msra.mxu1 %v10904_v46 }
 0x603   :  { %v10905_v30 = vld [vmem:[%s14335_s7 + $0x48] sm:$0xff]  }
 0x604   :  { %9366 = vmatprep.subr.bf16.mxu1 %v10905_v30  ;;  %v10879_v46 = vld [vmem:[%s14333_s5 + $0x980] ss:$8 sps:$4 sm:$0xff]   ;;  %v10882_v30 = vld [vmem:[%s14333_s5 + $0x990] ss:$8 sps:$4 sm:$0xff]  }
 0x605   :  { %7567 = vmatpush1.bf16.msra.mxu0 %v10762_v7  ;;  %v10906_v7 = vld [vmem:[%s14335_s7 + $0x8] sm:$0xff]  }
 0x606   :  { %7568 = vmatprep.subr.bf16.mxu0 %v10767_v17  ;;  %v10907_v17 = vld [vmem:[%s14335_s7 + $0x50] sm:$0xff]   ;;  %9367 = vmatpush3.bf16.msra.mxu1 %v10906_v7  ;;  %v10887_v7 = vld [vmem:[%s14333_s5 + $0x9a4] ss:$8 sps:$4 sm:$0xff]  }
 0x607   :  { %9368 = vmatprep.subr.bf16.mxu1 %v10907_v17  ;;  %v10885_v17 = vld [vmem:[%s14333_s5 + $0x9a0] ss:$8 sps:$4 sm:$0xff]  }
 0x609   :  { %7569 = vmatpush1.bf16.msra.mxu0 %v10765_v23  ;;  %v10818_v23 = vld [vmem:[%s14333_s5 + $0x834] ss:$8 sps:$4 sm:$0xff]  }
 0x60a   :  { %7570 = vmatprep.subr.bf16.mxu0 %v10770_v48  ;;  %v10816_v48 = vld [vmem:[%s14333_s5 + $0x830] ss:$8 sps:$4 sm:$0xff]  }
 0x60d   :  { %7571 = vmatpush1.bf16.msra.mxu0 %v10768_v50  ;;  %v10908_v50 = vld [vmem:[%s14335_s7 + $0x10] sm:$0xff]  }
 0x60e   :  { %7572 = vmatprep.subr.bf16.mxu0 %v10773_v32  ;;  %v10909_v32 = vld [vmem:[%s14335_s7 + $0x58] sm:$0xff]   ;;  %9369 = vmatpush3.bf16.msra.mxu1 %v10908_v50  ;;  %v10893_v50 = vld [vmem:[%s14333_s5 + $0x9c4] ss:$8 sps:$4 sm:$0xff]  }
 0x60f   :  { %9370 = vmatprep.subr.bf16.mxu1 %v10909_v32  ;;  %v10891_v32 = vld [vmem:[%s14333_s5 + $0x9c0] ss:$8 sps:$4 sm:$0xff]  }
 0x611   :  { %7573 = vmatpush1.bf16.msra.mxu0 %v10771_v43  ;;  %v6331_v40 = vpop.f32.mrb[16].mxu0  ;;  %v10819_v43 = vld [vmem:[%s14333_s5 + $0x840] ss:$8 sps:$4 sm:$0xff]  }
 0x612   :  { %v6332_v20 = vadd.f32 %v6331_v40, %v5318_v55  ;;  %v6333_v11 = vpop.f32.mrb[17].mxu0  ;;  %7574 = vmatprep.subr.bf16.mxu0 %v10776_v8  ;;  %v10824_v55 = vld [vmem:[%s14333_s5 + $0x854] ss:$8 sps:$4 sm:$0xff]   ;;  %v10912_v40 = vld [vmem:[%s14335_s7 + $0x20] sm:$0xff]  }
 0x613   :  { %v6334_v62 = vadd.f32 %v6333_v11, %v5322_v37  ;;  %v6335_v54 = vpop.f32.mrb[18].mxu0  ;;  %v10910_v8 = vld [vmem:[%s14335_s7 + $0x18] sm:$0xff]   ;;  %v10911_v37 = vld [vmem:[%s14335_s7 + $0x60] sm:$0xff]  }
 0x614   :  { %v9024_v12 = vmul.f32 -1.442695, %v6332_v20  ;;  %v6336_v6 = vpop.f32.mrb[19].mxu0  ;;  %9371 = vmatpush3.bf16.msra.mxu1 %v10910_v8  ;;  %v10913_v20 = vld [vmem:[%s14335_s7 + $0x68] sm:$0xff]   ;;  %v10830_v54 = vld [vmem:[%s14333_s5 + $0x874] ss:$8 sps:$4 sm:$0xff]  }
 0x615   :  { %v9025_v63 = vmul.f32 -1.442695, %v6334_v62  ;;  %7575 = vmatpush1.bf16.msra.mxu0 %v10774_v15  ;;  %v10822_v15 = vld [vmem:[%s14333_s5 + $0x850] ss:$8 sps:$4 sm:$0xff]   ;;  %9372 = vmatprep.subr.bf16.mxu1 %v10911_v37  ;;  %v10827_v11 = vld [vmem:[%s14333_s5 + $0x864] ss:$8 sps:$4 sm:$0xff]  }
 0x616   :  { %10991 = vpow2.f32 %v9024_v12  ;;  %7576 = vmatprep.subr.bf16.mxu0 %v10779_v60  ;;  %v10914_v60 = vld [vmem:[%s14335_s7 + $0x28] sm:$0xff]   ;;  %v10828_v12 = vld [vmem:[%s14333_s5 + $0x870] ss:$8 sps:$4 sm:$0xff]   ;;  %v10902_v37 = vld [vmem:[%s14333_s5 + $0x9f4] ss:$8 sps:$4 sm:$0xff]  }
 0x617   :  { %10993 = vpow2.f32 %v9025_v63  ;;  %v10825_v62 = vld [vmem:[%s14333_s5 + $0x860] ss:$8 sps:$4 sm:$0xff]   ;;  %v10833_v6 = vld [vmem:[%s14333_s5 + $0x884] ss:$8 sps:$4 sm:$0xff]  }
 0x618   :  { %9373 = vmatpush3.bf16.msra.mxu1 %v10912_v40  ;;  %v10831_v63 = vld [vmem:[%s14333_s5 + $0x880] ss:$8 sps:$4 sm:$0xff]   ;;  %v10900_v40 = vld [vmem:[%s14333_s5 + $0x9f0] ss:$8 sps:$4 sm:$0xff]  }
 0x619   :  { %7577 = vmatpush1.bf16.msra.mxu0 %v10777_v0  ;;  %9374 = vmatprep.subr.bf16.mxu1 %v10913_v20  ;;  %v10836_v0 = vld [vmem:[%s14333_s5 + $0x894] ss:$8 sps:$4 sm:$0xff]   ;;  %v10897_v8 = vld [vmem:[%s14333_s5 + $0x9e0] ss:$8 sps:$4 sm:$0xff]  }
 0x61a   :  { %7578 = vmatprep.subr.bf16.mxu0 %v10782_v1  ;;  %v10834_v1 = vld [vmem:[%s14333_s5 + $0x890] ss:$8 sps:$4 sm:$0xff]  }
 0x61b   :  { %v10915_v20 = vld [vmem:[%s14335_s7 + $0x70] sm:$0xff]  }
 0x61c   :  { %9375 = vmatpush3.bf16.msra.mxu1 %v10914_v60  ;;  %v10917_v60 = vld [vmem:[%s14335_s7 + $0x78] sm:$0xff]  }
 0x61d   :  { %7579 = vmatpush1.bf16.msra.mxu0 %v10780_v51  ;;  %v10839_v51 = vld [vmem:[%s14333_s5 + $0x8a4] ss:$8 sps:$4 sm:$0xff]   ;;  %9376 = vmatprep.subr.bf16.mxu1 %v10915_v20 }
 0x61e   :  { %7580 = vmatprep.subr.bf16.mxu0 %v10785_v52  ;;  %v10837_v52 = vld [vmem:[%s14333_s5 + $0x8a0] ss:$8 sps:$4 sm:$0xff]  }
 0x620   :  { %v10992_v2 = vpop.eup %10991 }
 0x621   :  { %v10994_v3 = vpop.eup %10993  ;;  %v6376_v4 = vadd.f32 1.0, %v10992_v2  ;;  %7581 = vmatpush1.bf16.msra.mxu0 %v10783_v58  ;;  %v10842_v58 = vld [vmem:[%s14333_s5 + $0x8b4] ss:$8 sps:$4 sm:$0xff]   ;;  %v10845_v2 = vld [vmem:[%s14333_s5 + $0x8c4] ss:$8 sps:$4 sm:$0xff]  }
 0x622   :  { %v6377_v59 = vadd.f32 1.0, %v10994_v3  ;;  %7582 = vmatprep.subr.bf16.mxu0 %v10788_v57  ;;  %v10840_v57 = vld [vmem:[%s14333_s5 + $0x8b0] ss:$8 sps:$4 sm:$0xff]   ;;  %v10843_v3 = vld [vmem:[%s14333_s5 + $0x8c0] ss:$8 sps:$4 sm:$0xff]  }
 0x623   :  { %10995 = vrcp.f32 %v6376_v4  ;;  %v10848_v4 = vld [vmem:[%s14333_s5 + $0x8d4] ss:$8 sps:$4 sm:$0xff]  }
 0x624   :  { %10997 = vrcp.f32 %v6377_v59  ;;  %v10846_v59 = vld [vmem:[%s14333_s5 + $0x8d0] ss:$8 sps:$4 sm:$0xff]  }
 0x625   :  { %7583 = vmatpush1.bf16.msra.mxu0 %v10786_v5 }
 0x626   :  { %7584 = vmatprep.subr.bf16.mxu0 %v10791_v10  ;;  %v10851_v10 = vld [vmem:[%s14333_s5 + $0x8e4] ss:$8 sps:$4 sm:$0xff]  }
 0x629   :  { %7585 = vmatpush1.bf16.msra.mxu0 %v10789_v13  ;;  %v11009_v13 = vld [vmem:[%s14330_s0 + $0x24] sm:$0xf] }
 0x62a   :  { %7586 = vmatprep.subr.bf16.mxu0 %v10794_v61 }
 0x62d   :  { %v14026_v19 = vpop.eup %10995  ;;  %7587 = vmatpush1.bf16.msra.mxu0 %v10792_v16  ;;  %v10849_v16 = vld [vmem:[%s14333_s5 + $0x8e0] ss:$8 sps:$4 sm:$0xff]  }
 0x62e   :  { %v14031_v22 = vpop.eup %10997  ;;  %7588 = vmatprep.subr.bf16.mxu0 %v10797_v18  ;;  %v10854_v18 = vld [vmem:[%s14333_s5 + $0x8f4] ss:$8 sps:$4 sm:$0xff]  }
 0x62f   :  { %v6442_v26 = vcombine.low %v14026_v19, %v14031_v22  ;;  %v10857_v22 = vld [vmem:[%s14333_s5 + $0x904] ss:$8 sps:$4 sm:$0xff]  }
 0x631   :  { %7589 = vmatpush1.bf16.msra.mxu0 %v10795_v21  ;;  %v6449_v5 = vrot.slane %v6442_v26, %v11198_v49  ;;  %v10852_v21 = vld [vmem:[%s14333_s5 + $0x8f0] ss:$8 sps:$4 sm:$0xff]   ;;  %v10855_v26 = vld [vmem:[%s14333_s5 + $0x900] ss:$8 sps:$4 sm:$0xff]  }
 0x632   :  { %7590 = vmatprep.subr.bf16.mxu0 %v10800_v24 }
 0x633   :  { %v6455_v61 = vmul.f32 %v11009_v13, %v6449_v5  ;;  %v14_v5 = vstv %s14337_s8 }
 0x634   :  { %15 = vst [vmem:[#allocation2] sm:$0x1] %v14_v5 }
 0x635   :  { %7591 = vmatpush1.bf16.msra.mxu0 %v10798_v28  ;;  %v14199_v19 = vrot.slane %v6455_v61, %v11198_v49  ;;  %v6517_v49 = vpack.c.bf16 %v14053_v31, %v14053_v31  ;;  %v10860_v28 = vld [vmem:[%s14333_s5 + $0x914] ss:$8 sps:$4 sm:$0xff]  }
 0x636   :  { %7592 = vmatprep.subr.bf16.mxu0 %v10803_v56  ;;  %v10866_v31 = vld [vmem:[%s14333_s5 + $0x934] ss:$8 sps:$4 sm:$0xff]  }
 0x637   :  { %v6500_v24 = vcombine.high %v14199_v19, %v14199_v19 }
 0x639   :  { %7593 = vmatpush1.bf16.msra.mxu0 %v10801_v27  ;;  %v6520_v56 = vpack.c.bf16 %v6500_v24, %v6500_v24  ;;  %v10863_v27 = vld [vmem:[%s14333_s5 + $0x924] ss:$8 sps:$4 sm:$0xff]  }
 0x63a   :  { %7594 = vmatprep.subr.bf16.mxu0 %v10806_v29  ;;  %v10861_v29 = vld [vmem:[%s14333_s5 + $0x920] ss:$8 sps:$4 sm:$0xff]  }
 0x63d   :  { %7595 = vmatpush1.bf16.msra.mxu0 %v10804_v9  ;;  %v10864_v9 = vld [vmem:[%s14333_s5 + $0x930] ss:$8 sps:$4 sm:$0xff]  }
 0x63e   :  { %7605 = vmatprep.subr.bf16.mxu0 %v10809_v33  ;;  %v10869_v33 = vld [vmem:[%s14333_s5 + $0x944] ss:$8 sps:$4 sm:$0xff]  }
 0x640   :  { %7597 = vmatmul.mubr.bf16.vlgmr.msra.gmra.mrb[4].mxu0 %v6515_v25  ;;  %v10870_v25 = vld [vmem:[%s14333_s5 + $0x950] ss:$8 sps:$4 sm:$0xff]  }
 0x641   :  { %7606 = vmatpush1.bf16.msra.mxu0 %v10807_v36  ;;  %7637 = vmatprep.mubr.bf16.mxu0 %v6518_v42  ;;  %v10872_v36 = vld [vmem:[%s14333_s5 + $0x954] ss:$8 sps:$4 sm:$0xff]   ;;  %v10873_v42 = vld [vmem:[%s14333_s5 + $0x960] ss:$8 sps:$4 sm:$0xff]  }
 0x642   :  { %7607 = vmatprep.subr.bf16.mxu0 %v10812_v14  ;;  %v10875_v14 = vld [vmem:[%s14333_s5 + $0x964] ss:$8 sps:$4 sm:$0xff]  }
 0x645   :  { %7608 = vmatpush1.bf16.msra.mxu0 %v10810_v44  ;;  %v10878_v44 = vld [vmem:[%s14333_s5 + $0x974] ss:$8 sps:$4 sm:$0xff]  }
 0x646   :  { %7609 = vmatprep.subr.bf16.mxu0 %v10815_v45  ;;  %v10876_v45 = vld [vmem:[%s14333_s5 + $0x970] ss:$8 sps:$4 sm:$0xff]  }
 0x649   :  { %7610 = vmatpush1.bf16.msra.mxu0 %v10813_v47  ;;  %v10884_v47 = vld [vmem:[%s14333_s5 + $0x994] ss:$8 sps:$4 sm:$0xff]  }
 0x64a   :  { %7611 = vmatprep.subr.bf16.mxu0 %v10818_v23  ;;  %v10890_v23 = vld [vmem:[%s14333_s5 + $0x9b4] ss:$8 sps:$4 sm:$0xff]  }
 0x64d   :  { %7612 = vmatpush1.bf16.msra.mxu0 %v10816_v48  ;;  %v10888_v48 = vld [vmem:[%s14333_s5 + $0x9b0] ss:$8 sps:$4 sm:$0xff]  }
 0x64e   :  { %7613 = vmatprep.subr.bf16.mxu0 %v10821_v53  ;;  %v10896_v53 = vld [vmem:[%s14333_s5 + $0x9d4] ss:$8 sps:$4 sm:$0xff]  }
 0x651   :  { %7614 = vmatpush1.bf16.msra.mxu0 %v10819_v43  ;;  %v10894_v43 = vld [vmem:[%s14333_s5 + $0x9d0] ss:$8 sps:$4 sm:$0xff]  }
 0x652   :  { %7615 = vmatprep.subr.bf16.mxu0 %v10824_v55  ;;  %v10899_v55 = vld [vmem:[%s14333_s5 + $0x9e4] ss:$8 sps:$4 sm:$0xff]  }
 0x655   :  { %7616 = vmatpush1.bf16.msra.mxu0 %v10822_v15  ;;  %v6519_v15 = vpack.c.bf16 %v14199_v19, %v14199_v19 }
 0x656   :  { %7617 = vmatprep.subr.bf16.mxu0 %v10827_v11  ;;  %v10916_v11 = vld [vmem:[%s14335_s7 + $0x30] sm:$0xff]  }
 0x657   :  { %9377 = vmatpush3.bf16.msra.mxu1 %v10916_v11 }
 0x658   :  { %9378 = vmatprep.subr.bf16.mxu1 %v10917_v60 }
 0x659   :  { %7618 = vmatpush1.bf16.msra.mxu0 %v10825_v62  ;;  %v10918_v62 = vld [vmem:[%s14335_s7 + $0x38] sm:$0xff]  }
 0x65a   :  { %7619 = vmatprep.subr.bf16.mxu0 %v10830_v54  ;;  %v35_v54 = vld [vmem:[%s14336_s6] sm:$0x3] }
 0x65b   :  { %9379 = vmatpush3.bf16.msra.mxu1 %v10918_v62 }
 0x65d   :  { %7620 = vmatpush1.bf16.msra.mxu0 %v10828_v12  ;;  %v3856_v12 = vrot.slane %v35_v54, %v11690_v39 }
 0x65e   :  { %7621 = vmatprep.subr.bf16.mxu0 %v10833_v6  ;;  %v3860_v6 = vrot.slane %v35_v54, %v11696_v41 }
 0x661   :  { %7622 = vmatpush1.bf16.msra.mxu0 %v10831_v63 }
 0x662   :  { %7623 = vmatprep.subr.bf16.mxu0 %v10836_v0 }
 0x665   :  { %7624 = vmatpush1.bf16.msra.mxu0 %v10834_v1 }
 0x666   :  { %7625 = vmatprep.subr.bf16.mxu0 %v10839_v51 }
 0x669   :  { %7626 = vmatpush1.bf16.msra.mxu0 %v10837_v52 }
 0x66a   :  { %7627 = vmatprep.subr.bf16.mxu0 %v10842_v58 }
 0x66d   :  { %7628 = vmatpush1.bf16.msra.mxu0 %v10840_v57 }
 0x66e   :  { %7629 = vmatprep.subr.bf16.mxu0 %v10845_v2 }
 0x671   :  { %7630 = vmatpush1.bf16.msra.mxu0 %v10843_v3 }
 0x672   :  { %7631 = vmatprep.subr.bf16.mxu0 %v10848_v4 }
 0x675   :  { %7632 = vmatpush1.bf16.msra.mxu0 %v10846_v59  ;;  %v9346_v59 = vld [vmem:[#allocation2] ss:$0 sm:$0xff] }
 0x676   :  { %7633 = vmatprep.subr.bf16.mxu0 %v10851_v10 }
 0x679   :  { %7634 = vmatpush1.bf16.msra.mxu0 %v10849_v16 }
 0x67a   :  { %7635 = vmatprep.subr.bf16.mxu0 %v10854_v18 }
 0x67d   :  { %7636 = vmatpush1.bf16.msra.mxu0 %v10852_v21 }
 0x67e   :  { %7646 = vmatprep.subr.bf16.mxu0 %v10857_v22 }
 0x680   :  { %7638 = vmatmul.mubr.bf16.vlgmr.msra.gmra.mrb[4].mxu0 %v6517_v49 }
 0x681   :  { %7647 = vmatpush1.bf16.msra.mxu0 %v10855_v26  ;;  %7678 = vmatprep.mubr.bf16.mxu0 %v6520_v56 }
 0x682   :  { %7648 = vmatprep.subr.bf16.mxu0 %v10860_v28 }
 0x685   :  { %7649 = vmatpush1.bf16.msra.mxu0 %v10858_v35 }
 0x686   :  { %7650 = vmatprep.subr.bf16.mxu0 %v10863_v27 }
 0x689   :  { %7651 = vmatpush1.bf16.msra.mxu0 %v10861_v29 }
 0x68a   :  { %7652 = vmatprep.subr.bf16.mxu0 %v10866_v31 }
 0x68d   :  { %7653 = vmatpush1.bf16.msra.mxu0 %v10864_v9 }
 0x68e   :  { %7654 = vmatprep.subr.bf16.mxu0 %v10869_v33 }
 0x691   :  { %7655 = vmatpush1.bf16.msra.mxu0 %v10867_v34 }
 0x692   :  { %7656 = vmatprep.subr.bf16.mxu0 %v10872_v36 }
 0x695   :  { %7657 = vmatpush1.bf16.msra.mxu0 %v10870_v25 }
 0x696   :  { %7658 = vmatprep.subr.bf16.mxu0 %v10875_v14 }
 0x699   :  { %7659 = vmatpush1.bf16.msra.mxu0 %v10873_v42 }
 0x69a   :  { %7660 = vmatprep.subr.bf16.mxu0 %v10878_v44 }
 0x69d   :  { %7661 = vmatpush1.bf16.msra.mxu0 %v10876_v45 }
 0x69e   :  { %7662 = vmatprep.subr.bf16.mxu0 %v10881_v38 }
 0x6a1   :  { %7663 = vmatpush1.bf16.msra.mxu0 %v10879_v46 }
 0x6a2   :  { %7664 = vmatprep.subr.bf16.mxu0 %v10884_v47 }
 0x6a5   :  { %7665 = vmatpush1.bf16.msra.mxu0 %v10882_v30 }
 0x6a6   :  { %7666 = vmatprep.subr.bf16.mxu0 %v10887_v7 }
 0x6a9   :  { %7667 = vmatpush1.bf16.msra.mxu0 %v10885_v17 }
 0x6aa   :  { %7668 = vmatprep.subr.bf16.mxu0 %v10890_v23 }
 0x6ad   :  { %7669 = vmatpush1.bf16.msra.mxu0 %v10888_v48 }
 0x6ae   :  { %7670 = vmatprep.subr.bf16.mxu0 %v10893_v50 }
 0x6b1   :  { %7671 = vmatpush1.bf16.msra.mxu0 %v10891_v32 }
 0x6b2   :  { %7672 = vmatprep.subr.bf16.mxu0 %v10896_v53 }
 0x6b5   :  { %7673 = vmatpush1.bf16.msra.mxu0 %v10894_v43 }
 0x6b6   :  { %7674 = vmatprep.subr.bf16.mxu0 %v10899_v55 }
 0x6b9   :  { %7675 = vmatpush1.bf16.msra.mxu0 %v10897_v8 }
 0x6ba   :  { %7676 = vmatprep.subr.bf16.mxu0 %v10902_v37 }
 0x6bd   :  { %7677 = vmatpush1.bf16.msra.mxu0 %v10900_v40 }
 0x6c0   :  { %7679 = vmatmul.mubr.bf16.vlgmr.msra.gmra.mrb[4].mxu0 %v6519_v15 }
 0x793   :  { %v7680_v63 = vpop.f32.mrb[4].mxu0 }
 0x794   :  { %v9390_v0 = vadd.f32 %v7680_v63, %v3856_v12  ;;  %v7682_v1 = vpop.f32.mrb[5].mxu0 }
 0x795   :  { %v9391_v51 = vadd.f32 %v7682_v1, %v3860_v6  ;;  %v7684_v52 = vpop.f32.mrb[6].mxu0 }
 0x796   :  { %v7689_v58 = vmax.f32 %v9390_v0, 0.0  ;;  %v7685_v57 = vpop.f32.mrb[7].mxu0 }
 0x797   :  { %v7690_v2 = vmax.f32 %v9391_v51, 0.0 }
 0x798   :  { %v7691_v4 = vpack.c.bf16 %v7689_v58, %v7689_v58 }
 0x799   :  { %v7692_v3 = vpack.c.bf16 %v7690_v2, %v7690_v2 }
 0x79b   :  { %7860 = vmatprep.mubr.bf16.mxu1 %v7692_v3 }
 0x79c   :  { %7861 = vmatmul.mubr.bf16.vlgmr.msra.gmra.mrb[36].mxu1 %v7691_v4 }
 0x86f   :  { %v9380_v39 = vpop.f32.mrb[36].mxu1 }
 0x870   :  { %v9381_v41 = vpop.f32.mrb[37].mxu1 }
 0x871   :  { %v9382_v10 = vadd.f32 %v9381_v41, %v9380_v39  ;;  %v9383_v13 = vpop.f32.mrb[38].mxu1 }
 0x872   :  { %v9384_v61 = vpop.f32.mrb[39].mxu1 }
 0x873   :  { %v7863_v16 = vadd.f32 %v9382_v10, %v9346_v59 }
 0x875   :  { %v9363_v18 = vmul.f32 -1.442695, %v7863_v16 }
 0x877   :  { %10999 = vpow2.f32 %v9363_v18 }
 0x881   :  { %v11000_v19 = vpop.eup %10999 }
 0x882   :  { %v7871_v21 = vadd.f32 1.0, %v11000_v19 }
 0x884   :  { %11001 = vrcp.f32 %v7871_v21 }
 0x88e   :  { %v11002_v22 = vpop.eup %11001 }
 0x88f   :  { %7875 = vst.msk [vmem:[%s14338_s9] sm:$0x3] %vm7874_vm0, %v11002_v22 }

</bundles_post_ra>
